<compile_context>
chip_gen: v6e
topology: v6e:2x2x1
jax: 0.10.0
libtpu: 0.0.40
codegen_flags: <defaults>
</compile_context>

<pallas_src>
import jax
import jax.numpy as jnp
from jax import lax
from jax.experimental import pallas as pl
from jax.experimental.pallas import tpu as pltpu


# ---------------- fused FlowStep kernel (one batch element per grid step) ----------------
def _make_flow_step_kernel(H, W, C, CH, HID):
    HW = H * W
    P = W + 1              # zero-halo rows above/below the flattened image

    def kernel(x_ref, anb_ref, ans_ref, wt1_ref, wt2_ref,
               w1_ref, a1b_ref, a1s_ref, w2_ref, a2b_ref, a2s_ref,
               w3_ref, b3_ref, s3_ref,
               out_ref, z1ext_ref, h2ext_ref):
        f32 = jnp.float32

        # ---- actnorm + invertible 1x1 conv (output channels pre-split on host) ----
        zn = (x_ref[...] + anb_ref[...]) * ans_ref[...]                  # (HW, C)
        z1 = jnp.dot(zn, wt1_ref[...], preferred_element_type=f32)        # (HW, CH)
        z2 = jnp.dot(zn, wt2_ref[...], preferred_element_type=f32)        # (HW, CH)

        # ---- horizontal-edge masks, hoisted once and shared by both 3x3 convs ----
        col = lax.broadcasted_iota(jnp.int32, (HW, 1), 0) % W
        not_left = (col > 0).astype(f32)          # zero taps that would read across x == 0
        not_right = (col < (W - 1)).astype(f32)   # zero taps that would read across x == W-1

        def conv3x3(src_ref, w_ref, cout):
            # 9 full-image shifted matmuls accumulated into one (HW, cout) tile.
            acc = jnp.zeros((HW, cout), f32)
            for dy in range(3):
                for dx in range(3):
                    off = P + (dy - 1) * W + (dx - 1)      # static offset per tap
                    patch = src_ref[pl.ds(off, HW), :]
                    if dx == 0:
                        patch = patch * not_left
                    elif dx == 2:
                        patch = patch * not_right
                    acc = acc + jnp.dot(patch, w_ref[dy * 3 + dx],
                                        preferred_element_type=f32)
            return acc

        # ---- place z1 into its zero-haloed buffer (halo-only zeroing, interior overwritten) ----
        z1ext_ref[pl.ds(0, P), :] = jnp.zeros((P, CH), f32)
        z1ext_ref[pl.ds(P + HW, P), :] = jnp.zeros((P, CH), f32)
        z1ext_ref[pl.ds(P, HW), :] = z1

        # ---- coupling net f(z1): Conv3x3 -> actnorm -> ReLU -> Conv1x1 -> actnorm -> ReLU
        #      -> Conv2dZeros(3x3, +bias, *exp(3*logs)) ----
        h1 = conv3x3(z1ext_ref, w1_ref, HID)
        h1 = jnp.maximum((h1 + a1b_ref[...]) * a1s_ref[...], 0.0)
        h2 = jnp.dot(h1, w2_ref[...], preferred_element_type=f32)
        h2 = jnp.maximum((h2 + a2b_ref[...]) * a2s_ref[...], 0.0)

        h2ext_ref[pl.ds(0, P), :] = jnp.zeros((P, HID), f32)
        h2ext_ref[pl.ds(P + HW, P), :] = jnp.zeros((P, HID), f32)
        h2ext_ref[pl.ds(P, HW), :] = h2

        h3 = conv3x3(h2ext_ref, w3_ref, CH)
        z2n = z2 + (h3 + b3_ref[...]) * s3_ref[...]          # additive coupling

        # ---- cat(z1, z2') : two full-height lane-sliced stores ----
        out_ref[:, :CH] = z1
        out_ref[:, CH:] = z2n

    return kernel


# ---------------- wrapper ----------------
def flow_step_forward(x_nchw, params, logdet):
    N, C, H, W = x_nchw.shape
    CH = C // 2
    HID = params['w2'].shape[0]
    HW = H * W
    P = W + 1

    x = jnp.transpose(x_nchw, (0, 2, 3, 1)).astype(jnp.float32).reshape(N, HW, C)

    wt = params['inv_w'].T.astype(jnp.float32)        # invconv as (C_in, C_out)
    inputs = (
        x,
        params['an_bias'].reshape(1, C),
        jnp.exp(params['an_logs']).reshape(1, C),
        wt[:, :CH], wt[:, CH:],
        params['w1'].reshape(9, CH, HID),
        params['a1_bias'].reshape(1, HID), jnp.exp(params['a1_logs']).reshape(1, HID),
        params['w2'],
        params['a2_bias'].reshape(1, HID), jnp.exp(params['a2_logs']).reshape(1, HID),
        params['w3'].reshape(9, HID, CH),
        params['b3'].reshape(1, CH), jnp.exp(3.0 * params['logs3']).reshape(1, CH),
    )

    kernel = _make_flow_step_kernel(H, W, C, CH, HID)

    def full(shape):
        nd = len(shape)
        return pl.BlockSpec(shape, lambda b, _nd=nd: (0,) * _nd)

    in_specs = ([pl.BlockSpec((None, HW, C), lambda b: (b, 0, 0))]
                + [full(t.shape) for t in inputs[1:]])

    z_flat = pl.pallas_call(
        kernel,
        out_shape=jax.ShapeDtypeStruct((N, HW, C), jnp.float32),
        grid=(N,),
        in_specs=in_specs,
        out_specs=pl.BlockSpec((None, HW, C), lambda b: (b, 0, 0)),
        scratch_shapes=[pltpu.VMEM((HW + 2 * P, CH), jnp.float32),
                        pltpu.VMEM((HW + 2 * P, HID), jnp.float32)],
        compiler_params=pltpu.CompilerParams(
            dimension_semantics=("parallel",)),   # batch shards across TCs on v7x
    )(*inputs)

    # logdet: actnorm + invconv contributions (additive coupling adds nothing).
    # log|det W| stays as a tiny host-side XLA op.
    dlogdet = (jnp.sum(params['an_logs'])
               + jnp.linalg.slogdet(params['inv_w'])[1]) * (H * W)
    logdet = logdet + dlogdet

    z = z_flat.reshape(N, H, W, C)
    return jnp.transpose(z, (0, 3, 1, 2)), logdet


# ---------------- deterministic synthetic parameters ----------------
def init_params(key, C, HID):
    CH = C // 2
    ks = jax.random.split(key, 12)

    def n(k, s, sd=0.05):
        return sd * jax.random.normal(k, s, jnp.float32)

    # invconv weight: random orthogonal (mirrors the PyTorch QR init).
    q, _ = jnp.linalg.qr(jax.random.normal(ks[0], (C, C), jnp.float32))
    return dict(
        an_bias=n(ks[1], (C,), 0.1), an_logs=n(ks[2], (C,), 0.1),
        inv_w=q,
        w1=n(ks[3], (3, 3, CH, HID)),          # HWIO
        a1_bias=n(ks[4], (HID,), 0.1), a1_logs=n(ks[5], (HID,), 0.1),
        w2=n(ks[6], (HID, HID)),               # 1x1 conv as (in, out) matrix
        a2_bias=n(ks[7], (HID,), 0.1), a2_logs=n(ks[8], (HID,), 0.1),
        # Conv2dZeros is zero-initialized in the original; use small non-zero values here.
        w3=n(ks[9], (3, 3, HID, CH)),
        b3=n(ks[10], (CH,), 0.1), logs3=n(ks[11], (CH,), 0.1),
    )


# ---------------- pure-JAX reference for validation ----------------
def ref_flow_step(x_nchw, params, logdet):
    x = jnp.transpose(x_nchw, (0, 2, 3, 1)).astype(jnp.float32)
    N, H, W, C = x.shape
    CH = C // 2
    z = (x + params['an_bias']) * jnp.exp(params['an_logs'])
    z = jnp.einsum('nhwc,cd->nhwd', z, params['inv_w'].T)
    dlogdet = (jnp.sum(params['an_logs'])
               + jnp.linalg.slogdet(params['inv_w'])[1]) * (H * W)
    z1, z2 = z[..., :CH], z[..., CH:]
    dn = ('NHWC', 'HWIO', 'NHWC')
    h = lax.conv_general_dilated(z1, params['w1'], (1, 1), 'SAME', dimension_numbers=dn)
    h = jnp.maximum((h + params['a1_bias']) * jnp.exp(params['a1_logs']), 0.0)
    h = jnp.einsum('nhwc,cd->nhwd', h, params['w2'])
    h = jnp.maximum((h + params['a2_bias']) * jnp.exp(params['a2_logs']), 0.0)
    h = lax.conv_general_dilated(h, params['w3'], (1, 1), 'SAME', dimension_numbers=dn)
    h = (h + params['b3']) * jnp.exp(3.0 * params['logs3'])
    zo = jnp.concatenate([z1, z2 + h], axis=-1)
    return jnp.transpose(zo, (0, 3, 1, 2)), logdet + dlogdet


if __name__ == "__main__":
    N, C, H, W, HID = 2, 4, 16, 16, 32
    key = jax.random.PRNGKey(0)
    kx, kp = jax.random.split(key)
    x = jax.random.normal(kx, (N, C, H, W), jnp.float32)
    params = init_params(kp, C, HID)
    # TODO(synk): PyTorch default passes logdet=None; we use an explicit zero logdet vector.
    logdet0 = jnp.zeros((N,), jnp.float32)

    z, logdet = jax.jit(flow_step_forward)(x, params, logdet0)
    jax.block_until_ready((z, logdet))

    z_ref, ld_ref = ref_flow_step(x, params, logdet0)
    assert z.shape == (N, C, H, W) and logdet.shape == (N,)
    assert jnp.allclose(z, z_ref, atol=2e-3, rtol=2e-3), float(jnp.max(jnp.abs(z - z_ref)))
    assert jnp.allclose(logdet, ld_ref, atol=1e-3, rtol=1e-3)
    print("KERNEL_OK")
</pallas_src>

<mosaic_0001>
module attributes {stable_mosaic.version = 11 : i64} {
  func.func @kernel(%arg0: i32, %arg1: memref<1x256x4xf32, #tpu.memory_space<vmem>>, %arg2: memref<1x4xf32, #tpu.memory_space<vmem>>, %arg3: memref<1x4xf32, #tpu.memory_space<vmem>>, %arg4: memref<4x2xf32, #tpu.memory_space<vmem>>, %arg5: memref<4x2xf32, #tpu.memory_space<vmem>>, %arg6: memref<9x2x32xf32, #tpu.memory_space<vmem>>, %arg7: memref<1x32xf32, #tpu.memory_space<vmem>>, %arg8: memref<1x32xf32, #tpu.memory_space<vmem>>, %arg9: memref<32x32xf32, #tpu.memory_space<vmem>>, %arg10: memref<1x32xf32, #tpu.memory_space<vmem>>, %arg11: memref<1x32xf32, #tpu.memory_space<vmem>>, %arg12: memref<9x32x2xf32, #tpu.memory_space<vmem>>, %arg13: memref<1x2xf32, #tpu.memory_space<vmem>>, %arg14: memref<1x2xf32, #tpu.memory_space<vmem>>, %arg15: memref<1x256x4xf32, #tpu.memory_space<vmem>>, %arg16: memref<290x2xf32, #tpu.memory_space<vmem>>, %arg17: memref<290x32xf32, #tpu.memory_space<vmem>>) attributes {dimension_semantics = [#tpu.dimension_semantics<parallel>], iteration_bounds = array<i64: 2>, scalar_prefetch = 0 : i64, scratch_operands = 2 : i64, tpu.core_type = #tpu.core_type<tc>, window_params = [{transform_indices = @transform_0, window_bounds = array<i64: 1, 256, 4>}, {pipeline_mode = #tpu.pipeline_mode<synchronous>, transform_indices = @transform_1, window_bounds = array<i64: 1, 4>}, {pipeline_mode = #tpu.pipeline_mode<synchronous>, transform_indices = @transform_2, window_bounds = array<i64: 1, 4>}, {pipeline_mode = #tpu.pipeline_mode<synchronous>, transform_indices = @transform_3, window_bounds = array<i64: 4, 2>}, {pipeline_mode = #tpu.pipeline_mode<synchronous>, transform_indices = @transform_4, window_bounds = array<i64: 4, 2>}, {pipeline_mode = #tpu.pipeline_mode<synchronous>, transform_indices = @transform_5, window_bounds = array<i64: 9, 2, 32>}, {pipeline_mode = #tpu.pipeline_mode<synchronous>, transform_indices = @transform_6, window_bounds = array<i64: 1, 32>}, {pipeline_mode = #tpu.pipeline_mode<synchronous>, transform_indices = @transform_7, window_bounds = array<i64: 1, 32>}, {pipeline_mode = #tpu.pipeline_mode<synchronous>, transform_indices = @transform_8, window_bounds = array<i64: 32, 32>}, {pipeline_mode = #tpu.pipeline_mode<synchronous>, transform_indices = @transform_9, window_bounds = array<i64: 1, 32>}, {pipeline_mode = #tpu.pipeline_mode<synchronous>, transform_indices = @transform_10, window_bounds = array<i64: 1, 32>}, {pipeline_mode = #tpu.pipeline_mode<synchronous>, transform_indices = @transform_11, window_bounds = array<i64: 9, 32, 2>}, {pipeline_mode = #tpu.pipeline_mode<synchronous>, transform_indices = @transform_12, window_bounds = array<i64: 1, 2>}, {pipeline_mode = #tpu.pipeline_mode<synchronous>, transform_indices = @transform_13, window_bounds = array<i64: 1, 2>}, {transform_indices = @transform_14, window_bounds = array<i64: 1, 256, 4>}]} {
    %c0 = arith.constant 0 : index
    %c0_0 = arith.constant 0 : index
    %c0_1 = arith.constant 0 : index
    %0 = vector.load %arg1[%c0, %c0_0, %c0_1] : memref<1x256x4xf32, #tpu.memory_space<vmem>>, vector<1x256x4xf32>
    %1 = vector.shape_cast %0 : vector<1x256x4xf32> to vector<256x4xf32>
    %c0_2 = arith.constant 0 : index
    %c0_3 = arith.constant 0 : index
    %2 = vector.load %arg2[%c0_2, %c0_3] : memref<1x4xf32, #tpu.memory_space<vmem>>, vector<1x4xf32>
    %3 = vector.broadcast %2 : vector<1x4xf32> to vector<256x4xf32>
    %4 = arith.addf %1, %3 : vector<256x4xf32>
    %c0_4 = arith.constant 0 : index
    %c0_5 = arith.constant 0 : index
    %5 = vector.load %arg3[%c0_4, %c0_5] : memref<1x4xf32, #tpu.memory_space<vmem>>, vector<1x4xf32>
    %6 = vector.broadcast %5 : vector<1x4xf32> to vector<256x4xf32>
    %7 = arith.mulf %4, %6 : vector<256x4xf32>
    %c0_6 = arith.constant 0 : index
    %c0_7 = arith.constant 0 : index
    %8 = vector.load %arg4[%c0_6, %c0_7] : memref<4x2xf32, #tpu.memory_space<vmem>>, vector<4x2xf32>
    %cst = arith.constant dense<0.000000e+00> : vector<256x2xf32>
    %9 = tpu.matmul %7, %8, %cst {dimension_numbers = #tpu.dot_dimension_numbers<[1], [0], [0], [1], [0, 0, 1, 1], [], []>} : vector<256x4xf32>, vector<4x2xf32>, vector<256x2xf32> -> vector<256x2xf32>
    %c0_8 = arith.constant 0 : index
    %c0_9 = arith.constant 0 : index
    %10 = vector.load %arg5[%c0_8, %c0_9] : memref<4x2xf32, #tpu.memory_space<vmem>>, vector<4x2xf32>
    %cst_10 = arith.constant dense<0.000000e+00> : vector<256x2xf32>
    %11 = tpu.matmul %7, %10, %cst_10 {dimension_numbers = #tpu.dot_dimension_numbers<[1], [0], [0], [1], [0, 0, 1, 1], [], []>} : vector<256x4xf32>, vector<4x2xf32>, vector<256x2xf32> -> vector<256x2xf32>
    %12 = tpu.iota {dimensions = array<i32: 0>} : vector<256x1xi32>
    %c16_i32 = arith.constant 16 : i32
    %c0_i32 = arith.constant 0 : i32
    %13 = arith.cmpi eq, %c16_i32, %c0_i32 : i32
    %c1_i32 = arith.constant 1 : i32
    %14 = arith.select %13, %c1_i32, %c16_i32 : i32
    %15 = vector.broadcast %14 : i32 to vector<256x1xi32>
    %16 = arith.remsi %12, %15 : vector<256x1xi32>
    %c0_i32_11 = arith.constant 0 : i32
    %17 = vector.broadcast %c0_i32_11 : i32 to vector<256x1xi32>
    %18 = arith.cmpi ne, %16, %17 : vector<256x1xi32>
    %c0_i32_12 = arith.constant 0 : i32
    %19 = vector.broadcast %c0_i32_12 : i32 to vector<256x1xi32>
    %20 = arith.cmpi slt, %16, %19 : vector<256x1xi32>
    %c0_i32_13 = arith.constant 0 : i32
    %21 = arith.cmpi slt, %14, %c0_i32_13 : i32
    %22 = vector.broadcast %21 : i1 to vector<256x1xi1>
    %23 = vector.broadcast %22 : vector<256x1xi1> to vector<256x1xi1>
    %24 = arith.xori %20, %23 : vector<256x1xi1>
    %25 = arith.andi %24, %18 : vector<256x1xi1>
    %26 = vector.broadcast %14 : i32 to vector<256x1xi32>
    %27 = arith.addi %16, %26 : vector<256x1xi32>
    %28 = arith.select %25, %27, %16 : vector<256x1xi1>, vector<256x1xi32>
    %c0_i32_14 = arith.constant 0 : i32
    %29 = vector.broadcast %c0_i32_14 : i32 to vector<256x1xi32>
    %30 = arith.cmpi sgt, %28, %29 : vector<256x1xi32>
    %31 = arith.extui %30 : vector<256x1xi1> to vector<256x1xi32>
    %32 = arith.sitofp %31 : vector<256x1xi32> to vector<256x1xf32>
    %c15_i32 = arith.constant 15 : i32
    %33 = vector.broadcast %c15_i32 : i32 to vector<256x1xi32>
    %34 = arith.cmpi slt, %28, %33 : vector<256x1xi32>
    %35 = arith.extui %34 : vector<256x1xi1> to vector<256x1xi32>
    %36 = arith.sitofp %35 : vector<256x1xi32> to vector<256x1xf32>
    %cst_15 = arith.constant 0.000000e+00 : f32
    %37 = vector.broadcast %cst_15 : f32 to vector<17x2xf32>
    %c0_16 = arith.constant 0 : index
    %c0_17 = arith.constant 0 : index
    %38 = vector.load %arg16[%c0_16, %c0_17] : memref<290x2xf32, #tpu.memory_space<vmem>>, vector<17x2xf32>
    tpu.vector_store %arg16[%c0_16, %c0_17], %37 {strides = array<i32>} : memref<290x2xf32, #tpu.memory_space<vmem>>, vector<17x2xf32>,
    %cst_18 = arith.constant 0.000000e+00 : f32
    %39 = vector.broadcast %cst_18 : f32 to vector<17x2xf32>
    %c273 = arith.constant 273 : index
    %c0_19 = arith.constant 0 : index
    %40 = vector.load %arg16[%c273, %c0_19] : memref<290x2xf32, #tpu.memory_space<vmem>>, vector<17x2xf32>
    tpu.vector_store %arg16[%c273, %c0_19], %39 {strides = array<i32>} : memref<290x2xf32, #tpu.memory_space<vmem>>, vector<17x2xf32>,
    %c17 = arith.constant 17 : index
    %c0_20 = arith.constant 0 : index
    %41 = vector.load %arg16[%c17, %c0_20] : memref<290x2xf32, #tpu.memory_space<vmem>>, vector<256x2xf32>
    tpu.vector_store %arg16[%c17, %c0_20], %9 {strides = array<i32>} : memref<290x2xf32, #tpu.memory_space<vmem>>, vector<256x2xf32>,
    %cst_21 = arith.constant 0.000000e+00 : f32
    %42 = vector.broadcast %cst_21 : f32 to vector<256x32xf32>
    %c0_22 = arith.constant 0 : index
    %c0_23 = arith.constant 0 : index
    %43 = vector.load %arg16[%c0_22, %c0_23] : memref<290x2xf32, #tpu.memory_space<vmem>>, vector<256x2xf32>
    %44 = vector.broadcast %32 : vector<256x1xf32> to vector<256x2xf32>
    %45 = arith.mulf %43, %44 : vector<256x2xf32>
    %c0_24 = arith.constant 0 : index
    %c0_25 = arith.constant 0 : index
    %c0_26 = arith.constant 0 : index
    %46 = vector.load %arg6[%c0_24, %c0_25, %c0_26] : memref<9x2x32xf32, #tpu.memory_space<vmem>>, vector<1x2x32xf32>
    %47 = vector.shape_cast %46 : vector<1x2x32xf32> to vector<2x32xf32>
    %cst_27 = arith.constant dense<0.000000e+00> : vector<256x32xf32>
    %48 = tpu.matmul %45, %47, %cst_27 {dimension_numbers = #tpu.dot_dimension_numbers<[1], [0], [0], [1], [0, 0, 1, 1], [], []>} : vector<256x2xf32>, vector<2x32xf32>, vector<256x32xf32> -> vector<256x32xf32>
    %49 = arith.addf %42, %48 : vector<256x32xf32>
    %c1 = arith.constant 1 : index
    %c0_28 = arith.constant 0 : index
    %50 = vector.load %arg16[%c1, %c0_28] : memref<290x2xf32, #tpu.memory_space<vmem>>, vector<256x2xf32>
    %c1_29 = arith.constant 1 : index
    %c0_30 = arith.constant 0 : index
    %c0_31 = arith.constant 0 : index
    %51 = vector.load %arg6[%c1_29, %c0_30, %c0_31] : memref<9x2x32xf32, #tpu.memory_space<vmem>>, vector<1x2x32xf32>
    %52 = vector.shape_cast %51 : vector<1x2x32xf32> to vector<2x32xf32>
    %cst_32 = arith.constant dense<0.000000e+00> : vector<256x32xf32>
    %53 = tpu.matmul %50, %52, %cst_32 {dimension_numbers = #tpu.dot_dimension_numbers<[1], [0], [0], [1], [0, 0, 1, 1], [], []>} : vector<256x2xf32>, vector<2x32xf32>, vector<256x32xf32> -> vector<256x32xf32>
    %54 = arith.addf %49, %53 : vector<256x32xf32>
    %c2 = arith.constant 2 : index
    %c0_33 = arith.constant 0 : index
    %55 = vector.load %arg16[%c2, %c0_33] : memref<290x2xf32, #tpu.memory_space<vmem>>, vector<256x2xf32>
    %56 = vector.broadcast %36 : vector<256x1xf32> to vector<256x2xf32>
    %57 = arith.mulf %55, %56 : vector<256x2xf32>
    %c2_34 = arith.constant 2 : index
    %c0_35 = arith.constant 0 : index
    %c0_36 = arith.constant 0 : index
    %58 = vector.load %arg6[%c2_34, %c0_35, %c0_36] : memref<9x2x32xf32, #tpu.memory_space<vmem>>, vector<1x2x32xf32>
    %59 = vector.shape_cast %58 : vector<1x2x32xf32> to vector<2x32xf32>
    %cst_37 = arith.constant dense<0.000000e+00> : vector<256x32xf32>
    %60 = tpu.matmul %57, %59, %cst_37 {dimension_numbers = #tpu.dot_dimension_numbers<[1], [0], [0], [1], [0, 0, 1, 1], [], []>} : vector<256x2xf32>, vector<2x32xf32>, vector<256x32xf32> -> vector<256x32xf32>
    %61 = arith.addf %54, %60 : vector<256x32xf32>
    %c16 = arith.constant 16 : index
    %c0_38 = arith.constant 0 : index
    %62 = vector.load %arg16[%c16, %c0_38] : memref<290x2xf32, #tpu.memory_space<vmem>>, vector<256x2xf32>
    %63 = vector.broadcast %32 : vector<256x1xf32> to vector<256x2xf32>
    %64 = arith.mulf %62, %63 : vector<256x2xf32>
    %c3 = arith.constant 3 : index
    %c0_39 = arith.constant 0 : index
    %c0_40 = arith.constant 0 : index
    %65 = vector.load %arg6[%c3, %c0_39, %c0_40] : memref<9x2x32xf32, #tpu.memory_space<vmem>>, vector<1x2x32xf32>
    %66 = vector.shape_cast %65 : vector<1x2x32xf32> to vector<2x32xf32>
    %cst_41 = arith.constant dense<0.000000e+00> : vector<256x32xf32>
    %67 = tpu.matmul %64, %66, %cst_41 {dimension_numbers = #tpu.dot_dimension_numbers<[1], [0], [0], [1], [0, 0, 1, 1], [], []>} : vector<256x2xf32>, vector<2x32xf32>, vector<256x32xf32> -> vector<256x32xf32>
    %68 = arith.addf %61, %67 : vector<256x32xf32>
    %c17_42 = arith.constant 17 : index
    %c0_43 = arith.constant 0 : index
    %69 = vector.load %arg16[%c17_42, %c0_43] : memref<290x2xf32, #tpu.memory_space<vmem>>, vector<256x2xf32>
    %c4 = arith.constant 4 : index
    %c0_44 = arith.constant 0 : index
    %c0_45 = arith.constant 0 : index
    %70 = vector.load %arg6[%c4, %c0_44, %c0_45] : memref<9x2x32xf32, #tpu.memory_space<vmem>>, vector<1x2x32xf32>
    %71 = vector.shape_cast %70 : vector<1x2x32xf32> to vector<2x32xf32>
    %cst_46 = arith.constant dense<0.000000e+00> : vector<256x32xf32>
    %72 = tpu.matmul %69, %71, %cst_46 {dimension_numbers = #tpu.dot_dimension_numbers<[1], [0], [0], [1], [0, 0, 1, 1], [], []>} : vector<256x2xf32>, vector<2x32xf32>, vector<256x32xf32> -> vector<256x32xf32>
    %73 = arith.addf %68, %72 : vector<256x32xf32>
    %c18 = arith.constant 18 : index
    %c0_47 = arith.constant 0 : index
    %74 = vector.load %arg16[%c18, %c0_47] : memref<290x2xf32, #tpu.memory_space<vmem>>, vector<256x2xf32>
    %75 = vector.broadcast %36 : vector<256x1xf32> to vector<256x2xf32>
    %76 = arith.mulf %74, %75 : vector<256x2xf32>
    %c5 = arith.constant 5 : index
    %c0_48 = arith.constant 0 : index
    %c0_49 = arith.constant 0 : index
    %77 = vector.load %arg6[%c5, %c0_48, %c0_49] : memref<9x2x32xf32, #tpu.memory_space<vmem>>, vector<1x2x32xf32>
    %78 = vector.shape_cast %77 : vector<1x2x32xf32> to vector<2x32xf32>
    %cst_50 = arith.constant dense<0.000000e+00> : vector<256x32xf32>
    %79 = tpu.matmul %76, %78, %cst_50 {dimension_numbers = #tpu.dot_dimension_numbers<[1], [0], [0], [1], [0, 0, 1, 1], [], []>} : vector<256x2xf32>, vector<2x32xf32>, vector<256x32xf32> -> vector<256x32xf32>
    %80 = arith.addf %73, %79 : vector<256x32xf32>
    %c32 = arith.constant 32 : index
    %c0_51 = arith.constant 0 : index
    %81 = vector.load %arg16[%c32, %c0_51] : memref<290x2xf32, #tpu.memory_space<vmem>>, vector<256x2xf32>
    %82 = vector.broadcast %32 : vector<256x1xf32> to vector<256x2xf32>
    %83 = arith.mulf %81, %82 : vector<256x2xf32>
    %c6 = arith.constant 6 : index
    %c0_52 = arith.constant 0 : index
    %c0_53 = arith.constant 0 : index
    %84 = vector.load %arg6[%c6, %c0_52, %c0_53] : memref<9x2x32xf32, #tpu.memory_space<vmem>>, vector<1x2x32xf32>
    %85 = vector.shape_cast %84 : vector<1x2x32xf32> to vector<2x32xf32>
    %cst_54 = arith.constant dense<0.000000e+00> : vector<256x32xf32>
    %86 = tpu.matmul %83, %85, %cst_54 {dimension_numbers = #tpu.dot_dimension_numbers<[1], [0], [0], [1], [0, 0, 1, 1], [], []>} : vector<256x2xf32>, vector<2x32xf32>, vector<256x32xf32> -> vector<256x32xf32>
    %87 = arith.addf %80, %86 : vector<256x32xf32>
    %c33 = arith.constant 33 : index
    %c0_55 = arith.constant 0 : index
    %88 = vector.load %arg16[%c33, %c0_55] : memref<290x2xf32, #tpu.memory_space<vmem>>, vector<256x2xf32>
    %c7 = arith.constant 7 : index
    %c0_56 = arith.constant 0 : index
    %c0_57 = arith.constant 0 : index
    %89 = vector.load %arg6[%c7, %c0_56, %c0_57] : memref<9x2x32xf32, #tpu.memory_space<vmem>>, vector<1x2x32xf32>
    %90 = vector.shape_cast %89 : vector<1x2x32xf32> to vector<2x32xf32>
    %cst_58 = arith.constant dense<0.000000e+00> : vector<256x32xf32>
    %91 = tpu.matmul %88, %90, %cst_58 {dimension_numbers = #tpu.dot_dimension_numbers<[1], [0], [0], [1], [0, 0, 1, 1], [], []>} : vector<256x2xf32>, vector<2x32xf32>, vector<256x32xf32> -> vector<256x32xf32>
    %92 = arith.addf %87, %91 : vector<256x32xf32>
    %c34 = arith.constant 34 : index
    %c0_59 = arith.constant 0 : index
    %93 = vector.load %arg16[%c34, %c0_59] : memref<290x2xf32, #tpu.memory_space<vmem>>, vector<256x2xf32>
    %94 = vector.broadcast %36 : vector<256x1xf32> to vector<256x2xf32>
    %95 = arith.mulf %93, %94 : vector<256x2xf32>
    %c8 = arith.constant 8 : index
    %c0_60 = arith.constant 0 : index
    %c0_61 = arith.constant 0 : index
    %96 = vector.load %arg6[%c8, %c0_60, %c0_61] : memref<9x2x32xf32, #tpu.memory_space<vmem>>, vector<1x2x32xf32>
    %97 = vector.shape_cast %96 : vector<1x2x32xf32> to vector<2x32xf32>
    %cst_62 = arith.constant dense<0.000000e+00> : vector<256x32xf32>
    %98 = tpu.matmul %95, %97, %cst_62 {dimension_numbers = #tpu.dot_dimension_numbers<[1], [0], [0], [1], [0, 0, 1, 1], [], []>} : vector<256x2xf32>, vector<2x32xf32>, vector<256x32xf32> -> vector<256x32xf32>
    %99 = arith.addf %92, %98 : vector<256x32xf32>
    %c0_63 = arith.constant 0 : index
    %c0_64 = arith.constant 0 : index
    %100 = vector.load %arg7[%c0_63, %c0_64] : memref<1x32xf32, #tpu.memory_space<vmem>>, vector<1x32xf32>
    %101 = vector.broadcast %100 : vector<1x32xf32> to vector<256x32xf32>
    %102 = arith.addf %99, %101 : vector<256x32xf32>
    %c0_65 = arith.constant 0 : index
    %c0_66 = arith.constant 0 : index
    %103 = vector.load %arg8[%c0_65, %c0_66] : memref<1x32xf32, #tpu.memory_space<vmem>>, vector<1x32xf32>
    %104 = vector.broadcast %103 : vector<1x32xf32> to vector<256x32xf32>
    %105 = arith.mulf %102, %104 : vector<256x32xf32>
    %cst_67 = arith.constant 0.000000e+00 : f32
    %106 = vector.broadcast %cst_67 : f32 to vector<256x32xf32>
    %107 = arith.maximumf %105, %106 : vector<256x32xf32>
    %c0_68 = arith.constant 0 : index
    %c0_69 = arith.constant 0 : index
    %108 = vector.load %arg9[%c0_68, %c0_69] : memref<32x32xf32, #tpu.memory_space<vmem>>, vector<32x32xf32>
    %cst_70 = arith.constant dense<0.000000e+00> : vector<256x32xf32>
    %109 = tpu.matmul %107, %108, %cst_70 {dimension_numbers = #tpu.dot_dimension_numbers<[1], [0], [0], [1], [0, 0, 1, 1], [], []>} : vector<256x32xf32>, vector<32x32xf32>, vector<256x32xf32> -> vector<256x32xf32>
    %c0_71 = arith.constant 0 : index
    %c0_72 = arith.constant 0 : index
    %110 = vector.load %arg10[%c0_71, %c0_72] : memref<1x32xf32, #tpu.memory_space<vmem>>, vector<1x32xf32>
    %111 = vector.broadcast %110 : vector<1x32xf32> to vector<256x32xf32>
    %112 = arith.addf %109, %111 : vector<256x32xf32>
    %c0_73 = arith.constant 0 : index
    %c0_74 = arith.constant 0 : index
    %113 = vector.load %arg11[%c0_73, %c0_74] : memref<1x32xf32, #tpu.memory_space<vmem>>, vector<1x32xf32>
    %114 = vector.broadcast %113 : vector<1x32xf32> to vector<256x32xf32>
    %115 = arith.mulf %112, %114 : vector<256x32xf32>
    %cst_75 = arith.constant 0.000000e+00 : f32
    %116 = vector.broadcast %cst_75 : f32 to vector<256x32xf32>
    %117 = arith.maximumf %115, %116 : vector<256x32xf32>
    %cst_76 = arith.constant 0.000000e+00 : f32
    %118 = vector.broadcast %cst_76 : f32 to vector<17x32xf32>
    %c0_77 = arith.constant 0 : index
    %c0_78 = arith.constant 0 : index
    %119 = vector.load %arg17[%c0_77, %c0_78] : memref<290x32xf32, #tpu.memory_space<vmem>>, vector<17x32xf32>
    tpu.vector_store %arg17[%c0_77, %c0_78], %118 {strides = array<i32>} : memref<290x32xf32, #tpu.memory_space<vmem>>, vector<17x32xf32>,
    %cst_79 = arith.constant 0.000000e+00 : f32
    %120 = vector.broadcast %cst_79 : f32 to vector<17x32xf32>
    %c273_80 = arith.constant 273 : index
    %c0_81 = arith.constant 0 : index
    %121 = vector.load %arg17[%c273_80, %c0_81] : memref<290x32xf32, #tpu.memory_space<vmem>>, vector<17x32xf32>
    tpu.vector_store %arg17[%c273_80, %c0_81], %120 {strides = array<i32>} : memref<290x32xf32, #tpu.memory_space<vmem>>, vector<17x32xf32>,
    %c17_82 = arith.constant 17 : index
    %c0_83 = arith.constant 0 : index
    %122 = vector.load %arg17[%c17_82, %c0_83] : memref<290x32xf32, #tpu.memory_space<vmem>>, vector<256x32xf32>
    tpu.vector_store %arg17[%c17_82, %c0_83], %117 {strides = array<i32>} : memref<290x32xf32, #tpu.memory_space<vmem>>, vector<256x32xf32>,
    %cst_84 = arith.constant 0.000000e+00 : f32
    %123 = vector.broadcast %cst_84 : f32 to vector<256x2xf32>
    %c0_85 = arith.constant 0 : index
    %c0_86 = arith.constant 0 : index
    %124 = vector.load %arg17[%c0_85, %c0_86] : memref<290x32xf32, #tpu.memory_space<vmem>>, vector<256x32xf32>
    %125 = vector.broadcast %32 : vector<256x1xf32> to vector<256x32xf32>
    %126 = arith.mulf %124, %125 : vector<256x32xf32>
    %c0_87 = arith.constant 0 : index
    %c0_88 = arith.constant 0 : index
    %c0_89 = arith.constant 0 : index
    %127 = vector.load %arg12[%c0_87, %c0_88, %c0_89] : memref<9x32x2xf32, #tpu.memory_space<vmem>>, vector<1x32x2xf32>
    %128 = vector.shape_cast %127 : vector<1x32x2xf32> to vector<32x2xf32>
    %cst_90 = arith.constant dense<0.000000e+00> : vector<256x2xf32>
    %129 = tpu.matmul %126, %128, %cst_90 {dimension_numbers = #tpu.dot_dimension_numbers<[1], [0], [0], [1], [0, 0, 1, 1], [], []>} : vector<256x32xf32>, vector<32x2xf32>, vector<256x2xf32> -> vector<256x2xf32>
    %130 = arith.addf %123, %129 : vector<256x2xf32>
    %c1_91 = arith.constant 1 : index
    %c0_92 = arith.constant 0 : index
    %131 = vector.load %arg17[%c1_91, %c0_92] : memref<290x32xf32, #tpu.memory_space<vmem>>, vector<256x32xf32>
    %c1_93 = arith.constant 1 : index
    %c0_94 = arith.constant 0 : index
    %c0_95 = arith.constant 0 : index
    %132 = vector.load %arg12[%c1_93, %c0_94, %c0_95] : memref<9x32x2xf32, #tpu.memory_space<vmem>>, vector<1x32x2xf32>
    %133 = vector.shape_cast %132 : vector<1x32x2xf32> to vector<32x2xf32>
    %cst_96 = arith.constant dense<0.000000e+00> : vector<256x2xf32>
    %134 = tpu.matmul %131, %133, %cst_96 {dimension_numbers = #tpu.dot_dimension_numbers<[1], [0], [0], [1], [0, 0, 1, 1], [], []>} : vector<256x32xf32>, vector<32x2xf32>, vector<256x2xf32> -> vector<256x2xf32>
    %135 = arith.addf %130, %134 : vector<256x2xf32>
    %c2_97 = arith.constant 2 : index
    %c0_98 = arith.constant 0 : index
    %136 = vector.load %arg17[%c2_97, %c0_98] : memref<290x32xf32, #tpu.memory_space<vmem>>, vector<256x32xf32>
    %137 = vector.broadcast %36 : vector<256x1xf32> to vector<256x32xf32>
    %138 = arith.mulf %136, %137 : vector<256x32xf32>
    %c2_99 = arith.constant 2 : index
    %c0_100 = arith.constant 0 : index
    %c0_101 = arith.constant 0 : index
    %139 = vector.load %arg12[%c2_99, %c0_100, %c0_101] : memref<9x32x2xf32, #tpu.memory_space<vmem>>, vector<1x32x2xf32>
    %140 = vector.shape_cast %139 : vector<1x32x2xf32> to vector<32x2xf32>
    %cst_102 = arith.constant dense<0.000000e+00> : vector<256x2xf32>
    %141 = tpu.matmul %138, %140, %cst_102 {dimension_numbers = #tpu.dot_dimension_numbers<[1], [0], [0], [1], [0, 0, 1, 1], [], []>} : vector<256x32xf32>, vector<32x2xf32>, vector<256x2xf32> -> vector<256x2xf32>
    %142 = arith.addf %135, %141 : vector<256x2xf32>
    %c16_103 = arith.constant 16 : index
    %c0_104 = arith.constant 0 : index
    %143 = vector.load %arg17[%c16_103, %c0_104] : memref<290x32xf32, #tpu.memory_space<vmem>>, vector<256x32xf32>
    %144 = vector.broadcast %32 : vector<256x1xf32> to vector<256x32xf32>
    %145 = arith.mulf %143, %144 : vector<256x32xf32>
    %c3_105 = arith.constant 3 : index
    %c0_106 = arith.constant 0 : index
    %c0_107 = arith.constant 0 : index
    %146 = vector.load %arg12[%c3_105, %c0_106, %c0_107] : memref<9x32x2xf32, #tpu.memory_space<vmem>>, vector<1x32x2xf32>
    %147 = vector.shape_cast %146 : vector<1x32x2xf32> to vector<32x2xf32>
    %cst_108 = arith.constant dense<0.000000e+00> : vector<256x2xf32>
    %148 = tpu.matmul %145, %147, %cst_108 {dimension_numbers = #tpu.dot_dimension_numbers<[1], [0], [0], [1], [0, 0, 1, 1], [], []>} : vector<256x32xf32>, vector<32x2xf32>, vector<256x2xf32> -> vector<256x2xf32>
    %149 = arith.addf %142, %148 : vector<256x2xf32>
    %c17_109 = arith.constant 17 : index
    %c0_110 = arith.constant 0 : index
    %150 = vector.load %arg17[%c17_109, %c0_110] : memref<290x32xf32, #tpu.memory_space<vmem>>, vector<256x32xf32>
    %c4_111 = arith.constant 4 : index
    %c0_112 = arith.constant 0 : index
    %c0_113 = arith.constant 0 : index
    %151 = vector.load %arg12[%c4_111, %c0_112, %c0_113] : memref<9x32x2xf32, #tpu.memory_space<vmem>>, vector<1x32x2xf32>
    %152 = vector.shape_cast %151 : vector<1x32x2xf32> to vector<32x2xf32>
    %cst_114 = arith.constant dense<0.000000e+00> : vector<256x2xf32>
    %153 = tpu.matmul %150, %152, %cst_114 {dimension_numbers = #tpu.dot_dimension_numbers<[1], [0], [0], [1], [0, 0, 1, 1], [], []>} : vector<256x32xf32>, vector<32x2xf32>, vector<256x2xf32> -> vector<256x2xf32>
    %154 = arith.addf %149, %153 : vector<256x2xf32>
    %c18_115 = arith.constant 18 : index
    %c0_116 = arith.constant 0 : index
    %155 = vector.load %arg17[%c18_115, %c0_116] : memref<290x32xf32, #tpu.memory_space<vmem>>, vector<256x32xf32>
    %156 = vector.broadcast %36 : vector<256x1xf32> to vector<256x32xf32>
    %157 = arith.mulf %155, %156 : vector<256x32xf32>
    %c5_117 = arith.constant 5 : index
    %c0_118 = arith.constant 0 : index
    %c0_119 = arith.constant 0 : index
    %158 = vector.load %arg12[%c5_117, %c0_118, %c0_119] : memref<9x32x2xf32, #tpu.memory_space<vmem>>, vector<1x32x2xf32>
    %159 = vector.shape_cast %158 : vector<1x32x2xf32> to vector<32x2xf32>
    %cst_120 = arith.constant dense<0.000000e+00> : vector<256x2xf32>
    %160 = tpu.matmul %157, %159, %cst_120 {dimension_numbers = #tpu.dot_dimension_numbers<[1], [0], [0], [1], [0, 0, 1, 1], [], []>} : vector<256x32xf32>, vector<32x2xf32>, vector<256x2xf32> -> vector<256x2xf32>
    %161 = arith.addf %154, %160 : vector<256x2xf32>
    %c32_121 = arith.constant 32 : index
    %c0_122 = arith.constant 0 : index
    %162 = vector.load %arg17[%c32_121, %c0_122] : memref<290x32xf32, #tpu.memory_space<vmem>>, vector<256x32xf32>
    %163 = vector.broadcast %32 : vector<256x1xf32> to vector<256x32xf32>
    %164 = arith.mulf %162, %163 : vector<256x32xf32>
    %c6_123 = arith.constant 6 : index
    %c0_124 = arith.constant 0 : index
    %c0_125 = arith.constant 0 : index
    %165 = vector.load %arg12[%c6_123, %c0_124, %c0_125] : memref<9x32x2xf32, #tpu.memory_space<vmem>>, vector<1x32x2xf32>
    %166 = vector.shape_cast %165 : vector<1x32x2xf32> to vector<32x2xf32>
    %cst_126 = arith.constant dense<0.000000e+00> : vector<256x2xf32>
    %167 = tpu.matmul %164, %166, %cst_126 {dimension_numbers = #tpu.dot_dimension_numbers<[1], [0], [0], [1], [0, 0, 1, 1], [], []>} : vector<256x32xf32>, vector<32x2xf32>, vector<256x2xf32> -> vector<256x2xf32>
    %168 = arith.addf %161, %167 : vector<256x2xf32>
    %c33_127 = arith.constant 33 : index
    %c0_128 = arith.constant 0 : index
    %169 = vector.load %arg17[%c33_127, %c0_128] : memref<290x32xf32, #tpu.memory_space<vmem>>, vector<256x32xf32>
    %c7_129 = arith.constant 7 : index
    %c0_130 = arith.constant 0 : index
    %c0_131 = arith.constant 0 : index
    %170 = vector.load %arg12[%c7_129, %c0_130, %c0_131] : memref<9x32x2xf32, #tpu.memory_space<vmem>>, vector<1x32x2xf32>
    %171 = vector.shape_cast %170 : vector<1x32x2xf32> to vector<32x2xf32>
    %cst_132 = arith.constant dense<0.000000e+00> : vector<256x2xf32>
    %172 = tpu.matmul %169, %171, %cst_132 {dimension_numbers = #tpu.dot_dimension_numbers<[1], [0], [0], [1], [0, 0, 1, 1], [], []>} : vector<256x32xf32>, vector<32x2xf32>, vector<256x2xf32> -> vector<256x2xf32>
    %173 = arith.addf %168, %172 : vector<256x2xf32>
    %c34_133 = arith.constant 34 : index
    %c0_134 = arith.constant 0 : index
    %174 = vector.load %arg17[%c34_133, %c0_134] : memref<290x32xf32, #tpu.memory_space<vmem>>, vector<256x32xf32>
    %175 = vector.broadcast %36 : vector<256x1xf32> to vector<256x32xf32>
    %176 = arith.mulf %174, %175 : vector<256x32xf32>
    %c8_135 = arith.constant 8 : index
    %c0_136 = arith.constant 0 : index
    %c0_137 = arith.constant 0 : index
    %177 = vector.load %arg12[%c8_135, %c0_136, %c0_137] : memref<9x32x2xf32, #tpu.memory_space<vmem>>, vector<1x32x2xf32>
    %178 = vector.shape_cast %177 : vector<1x32x2xf32> to vector<32x2xf32>
    %cst_138 = arith.constant dense<0.000000e+00> : vector<256x2xf32>
    %179 = tpu.matmul %176, %178, %cst_138 {dimension_numbers = #tpu.dot_dimension_numbers<[1], [0], [0], [1], [0, 0, 1, 1], [], []>} : vector<256x32xf32>, vector<32x2xf32>, vector<256x2xf32> -> vector<256x2xf32>
    %180 = arith.addf %173, %179 : vector<256x2xf32>
    %c0_139 = arith.constant 0 : index
    %c0_140 = arith.constant 0 : index
    %181 = vector.load %arg13[%c0_139, %c0_140] : memref<1x2xf32, #tpu.memory_space<vmem>>, vector<1x2xf32>
    %182 = vector.broadcast %181 : vector<1x2xf32> to vector<256x2xf32>
    %183 = arith.addf %180, %182 : vector<256x2xf32>
    %c0_141 = arith.constant 0 : index
    %c0_142 = arith.constant 0 : index
    %184 = vector.load %arg14[%c0_141, %c0_142] : memref<1x2xf32, #tpu.memory_space<vmem>>, vector<1x2xf32>
    %185 = vector.broadcast %184 : vector<1x2xf32> to vector<256x2xf32>
    %186 = arith.mulf %183, %185 : vector<256x2xf32>
    %187 = arith.addf %11, %186 : vector<256x2xf32>
    %c0_143 = arith.constant 0 : index
    %c0_144 = arith.constant 0 : index
    %c0_145 = arith.constant 0 : index
    %188 = vector.load %arg15[%c0_143, %c0_144, %c0_145] : memref<1x256x4xf32, #tpu.memory_space<vmem>>, vector<1x256x2xf32>
    %189 = vector.shape_cast %188 : vector<1x256x2xf32> to vector<256x2xf32>
    %190 = vector.shape_cast %9 : vector<256x2xf32> to vector<1x256x2xf32>
    tpu.vector_store %arg15[%c0_143, %c0_144, %c0_145], %190 {strides = array<i32>} : memref<1x256x4xf32, #tpu.memory_space<vmem>>, vector<1x256x2xf32>,
    %c0_146 = arith.constant 0 : index
    %c0_147 = arith.constant 0 : index
    %c2_148 = arith.constant 2 : index
    %191 = vector.load %arg15[%c0_146, %c0_147, %c2_148] : memref<1x256x4xf32, #tpu.memory_space<vmem>>, vector<1x256x2xf32>
    %192 = vector.shape_cast %191 : vector<1x256x2xf32> to vector<256x2xf32>
    %193 = vector.shape_cast %187 : vector<256x2xf32> to vector<1x256x2xf32>
    tpu.vector_store %arg15[%c0_146, %c0_147, %c2_148], %193 {strides = array<i32>} : memref<1x256x4xf32, #tpu.memory_space<vmem>>, vector<1x256x2xf32>,
    return
  }
  func.func @transform_0(%arg0: i32) -> (i32, i32, i32) {
    %c0_i32 = arith.constant 0 : i32
    %c0_i32_0 = arith.constant 0 : i32
    %c0_i32_1 = arith.constant 0 : i32
    return %arg0, %c0_i32, %c0_i32_0 : i32, i32, i32
  }
  func.func @transform_1(%arg0: i32) -> (i32, i32) {
    %c0_i32 = arith.constant 0 : i32
    %c0_i32_0 = arith.constant 0 : i32
    %c0_i32_1 = arith.constant 0 : i32
    return %c0_i32, %c0_i32_0 : i32, i32
  }
  func.func @transform_2(%arg0: i32) -> (i32, i32) {
    %c0_i32 = arith.constant 0 : i32
    %c0_i32_0 = arith.constant 0 : i32
    %c0_i32_1 = arith.constant 0 : i32
    return %c0_i32, %c0_i32_0 : i32, i32
  }
  func.func @transform_3(%arg0: i32) -> (i32, i32) {
    %c0_i32 = arith.constant 0 : i32
    %c0_i32_0 = arith.constant 0 : i32
    %c0_i32_1 = arith.constant 0 : i32
    return %c0_i32, %c0_i32_0 : i32, i32
  }
  func.func @transform_4(%arg0: i32) -> (i32, i32) {
    %c0_i32 = arith.constant 0 : i32
    %c0_i32_0 = arith.constant 0 : i32
    %c0_i32_1 = arith.constant 0 : i32
    return %c0_i32, %c0_i32_0 : i32, i32
  }
  func.func @transform_5(%arg0: i32) -> (i32, i32, i32) {
    %c0_i32 = arith.constant 0 : i32
    %c0_i32_0 = arith.constant 0 : i32
    %c0_i32_1 = arith.constant 0 : i32
    %c0_i32_2 = arith.constant 0 : i32
    return %c0_i32, %c0_i32_0, %c0_i32_1 : i32, i32, i32
  }
  func.func @transform_6(%arg0: i32) -> (i32, i32) {
    %c0_i32 = arith.constant 0 : i32
    %c0_i32_0 = arith.constant 0 : i32
    %c0_i32_1 = arith.constant 0 : i32
    return %c0_i32, %c0_i32_0 : i32, i32
  }
  func.func @transform_7(%arg0: i32) -> (i32, i32) {
    %c0_i32 = arith.constant 0 : i32
    %c0_i32_0 = arith.constant 0 : i32
    %c0_i32_1 = arith.constant 0 : i32
    return %c0_i32, %c0_i32_0 : i32, i32
  }
  func.func @transform_8(%arg0: i32) -> (i32, i32) {
    %c0_i32 = arith.constant 0 : i32
    %c0_i32_0 = arith.constant 0 : i32
    %c0_i32_1 = arith.constant 0 : i32
    return %c0_i32, %c0_i32_0 : i32, i32
  }
  func.func @transform_9(%arg0: i32) -> (i32, i32) {
    %c0_i32 = arith.constant 0 : i32
    %c0_i32_0 = arith.constant 0 : i32
    %c0_i32_1 = arith.constant 0 : i32
    return %c0_i32, %c0_i32_0 : i32, i32
  }
  func.func @transform_10(%arg0: i32) -> (i32, i32) {
    %c0_i32 = arith.constant 0 : i32
    %c0_i32_0 = arith.constant 0 : i32
    %c0_i32_1 = arith.constant 0 : i32
    return %c0_i32, %c0_i32_0 : i32, i32
  }
  func.func @transform_11(%arg0: i32) -> (i32, i32, i32) {
    %c0_i32 = arith.constant 0 : i32
    %c0_i32_0 = arith.constant 0 : i32
    %c0_i32_1 = arith.constant 0 : i32
    %c0_i32_2 = arith.constant 0 : i32
    return %c0_i32, %c0_i32_0, %c0_i32_1 : i32, i32, i32
  }
  func.func @transform_12(%arg0: i32) -> (i32, i32) {
    %c0_i32 = arith.constant 0 : i32
    %c0_i32_0 = arith.constant 0 : i32
    %c0_i32_1 = arith.constant 0 : i32
    return %c0_i32, %c0_i32_0 : i32, i32
  }
  func.func @transform_13(%arg0: i32) -> (i32, i32) {
    %c0_i32 = arith.constant 0 : i32
    %c0_i32_0 = arith.constant 0 : i32
    %c0_i32_1 = arith.constant 0 : i32
    return %c0_i32, %c0_i32_0 : i32, i32
  }
  func.func @transform_14(%arg0: i32) -> (i32, i32, i32) {
    %c0_i32 = arith.constant 0 : i32
    %c0_i32_0 = arith.constant 0 : i32
    %c0_i32_1 = arith.constant 0 : i32
    return %arg0, %c0_i32, %c0_i32_0 : i32, i32, i32
  }
}

</mosaic_0001>

<bundles_post_ra>
// kernel: custom-call.2
= control target key start
LH: loop header
LB: loop body
LE: loop exit
PB: predicated region body
PF: predicated region fallthrough
CT: control target
= control target key end

     0   :  { %5 = vsyncpa [#allocation6], 0  ;;  %s549_s0 = inlined_call_operand.vmem [shape: f32[4,4], index: 0, kind: input, shape index: {}]   ;;  %s550_s1 = inlined_call_operand.vmem [shape: f32[4,4], index: 1, kind: output, shape index: {0}]   ;;  %s551_s2 = inlined_call_operand.hbm [shape: s32[4], index: 2, kind: output, shape index: {1}]   ;;  %s552_s3 = inlined_call_operand.hbm [shape: s32[4], index: 3, kind: output, shape index: {2}]  }
   0x1   :  { %6 = vsyncpa [#allocation9], 0  ;;  %v68_v0 = vld [vmem:[%s549_s0] sm:$0xf]  ;;  %v78_v1 = vlaneseq  ;;  %v478_v2 = vmov 0   ;;  %s508_s14 = smov 0  }
   0x2   :  { %69 = vst [vmem:[#allocation1] sm:$0xf] %v68_v0  ;;  %77 = vst [vmem:[#allocation4] sm:$0x1] %v478_v2 }
   0x3   :  { %v505_v3 = vshrl.u32 %v78_v1, 7 }
   0x5   :  { %82 = vst [vmem:[#allocation10] sm:$0xff] %v505_v3 }
   0x9   :  { %v73_v4 = vld [vmem:[#allocation1] sm:$0xf] }
   0xa   :  { %74 = vst [vmem:[#allocation0] sm:$0xf] %v73_v4 }
  0x11   :  { %v75_v5 = vld [vmem:[#allocation0] sm:$0xff] }
  0x12   :  { %76 = vst [vmem:[#allocation2] sm:$0xff] %v75_v5 }
  0x13 LB: > { %vm98_vm0 = vcmp.lt.s32.totalorder %v505_v3, 4  ;;  %v515_v8 = vstv %s476_s14  ;;  %s139_s0 = ssub.s32 128, %s476_s14  ;;  %v145_v38 = vand.u32 127, %v78_v1  ;;  %v148_v40 = vld [vmem:[#allocation4] ss:$0 sm:$0xff]  ;;  %s151_s15 = scalar_lea.vmem [#allocation2], %s476_s14  ;;  %s476_s14 = sphi %s508_s14, %s88_s14  }
  0x14   : > { %vm97_vm1 = vcmp.ge.s32.totalorder %v505_v3, %v515_v8  ;;  %s157_s17 = scalar_lea.vmem [#allocation10], %s476_s14  ;;  %vm177_vm15 = vcmp.gt.s32.totalorder %v505_v3, %v515_v8  ;;  %s88_s14 = sadd.s32 1, %s476_s14  }
  0x15   : > { %vm99_vm3 = vmand %vm97_vm1, %vm98_vm0  ;;  %vm169_vm12 = vcmp.gt.s32.totalorder %v145_v38, %v515_v8  ;;  %vm146_vm13 = vcmp.eq.s32.totalorder %v145_v38, %v515_v8  ;;  %v159_v42 = vld [vmem:[%s157_s17] ss:$0 sm:$0xff]  ;;  %p85_p0 = scmp.ge.s32.totalorder %s88_s14, 4  }
  0x16   : > { %vm181_vm1 = vmand %vm177_vm15, %vm146_vm13  ;;  %s479_s20 = smov (%p85_p0), [#allocation5]  }
  0x17   :  { %s329_s21 = sshll.u32 (%p85_p0), %s479_s20, 4  ;;  %s330_s21 = int_to_ptr.vmem [resolvable:$true] %s329_s21 }
  0x18   :  { %s426_s22 = scalar_lea.vmem (%p85_p0), %s330_s21, 16  ;;  %s430_s23 = scalar_lea.vmem (%p85_p0), %s330_s21, 32 }
  0x19   : > { %v93_v6 = vld [vmem:[#allocation2] sm:$0xff]  ;;  %v153_v41 = vld [vmem:[%s151_s15] ss:$0 sm:$0xff]  ;;  %p427_p1 = scmp.ne.s32.totalorder (%p85_p0), %s330_s21, %s426_s22  ;;  %p431_p2 = scmp.lt.s32.totalorder (%p85_p0), %s330_s21, %s330_s21 }
  0x1a   : > { %v94_v7 = vand.u32 2147483647, %v93_v6  ;;  %p432_p3 = scmp.lt.s32.totalorder (%p85_p0), %s430_s23, %s426_s22 }
  0x1c   : > { %vm407_vm2 = vcmp.gt.f32.partialorder %v94_v7, -inf  ;;  %p433_p4 = por (%p85_p0), %p432_p3, %p431_p2 }
  0x1d   : > { %vm101_vm4 = vmand %vm99_vm3, %vm407_vm2 }
  0x1e   : > { %v102_v9 = vsel %vm101_vm4, %v505_v3, %v515_v8  ;;  %v103_v10 = vsel %vm101_vm4, %v94_v7, -inf  ;;  %p434_p5 = pnand (%p85_p0), %p433_p4, %p427_p1 }
  0x1f   : > { %v104_v11 = vrot.slane %v103_v10, 1  ;;  %v105_v12 = vrot.slane %v102_v9, 1 }
  0x21   : > { %vm106_vm5 = vcmp.ge.f32.partialorder %v104_v11, %v103_v10  ;;  %v109_v13 = vrot.slane %v104_v11, 1  ;;  %v110_v14 = vrot.slane %v105_v12, 1 }
  0x22   : > { %v107_v15 = vsel %vm106_vm5, %v104_v11, %v103_v10  ;;  %v108_v16 = vsel %vm106_vm5, %v105_v12, %v102_v9 }
  0x23   : > { %vm111_vm6 = vcmp.ge.f32.partialorder %v109_v13, %v107_v15  ;;  %v114_v17 = vrot.slane %v109_v13, 1  ;;  %v115_v18 = vrot.slane %v110_v14, 1 }
  0x24   : > { %v112_v19 = vsel %vm111_vm6, %v109_v13, %v107_v15  ;;  %v113_v20 = vsel %vm111_vm6, %v110_v14, %v108_v16 }
  0x25   : > { %vm116_vm7 = vcmp.ge.f32.partialorder %v114_v17, %v112_v19  ;;  %v119_v21 = vrot.slane %v114_v17, 1  ;;  %v120_v22 = vrot.slane %v115_v18, 1 }
  0x26   : > { %v117_v23 = vsel %vm116_vm7, %v114_v17, %v112_v19  ;;  %v118_v24 = vsel %vm116_vm7, %v115_v18, %v113_v20 }
  0x27   : > { %vm121_vm8 = vcmp.ge.f32.partialorder %v119_v21, %v117_v23  ;;  %v124_v25 = vrot.slane %v119_v21, 1  ;;  %v125_v26 = vrot.slane %v120_v22, 1 }
  0x28   : > { %v122_v27 = vsel %vm121_vm8, %v119_v21, %v117_v23  ;;  %v123_v28 = vsel %vm121_vm8, %v120_v22, %v118_v24 }
  0x29   : > { %vm126_vm9 = vcmp.ge.f32.partialorder %v124_v25, %v122_v27  ;;  %v129_v29 = vrot.slane %v124_v25, 1  ;;  %v130_v30 = vrot.slane %v125_v26, 1 }
  0x2a   : > { %v127_v31 = vsel %vm126_vm9, %v124_v25, %v122_v27  ;;  %v128_v32 = vsel %vm126_vm9, %v125_v26, %v123_v28 }
  0x2b   : > { %vm131_vm10 = vcmp.ge.f32.partialorder %v129_v29, %v127_v31  ;;  %v134_v33 = vrot.slane %v129_v29, 1  ;;  %v135_v34 = vrot.slane %v130_v30, 1 }
  0x2c   : > { %v132_v35 = vsel %vm131_vm10, %v129_v29, %v127_v31  ;;  %v133_v36 = vsel %vm131_vm10, %v130_v30, %v128_v32 }
  0x2d   : > { %vm136_vm11 = vcmp.ge.f32.partialorder %v134_v33, %v132_v35 }
  0x2e   : > { %v138_v37 = vsel %vm136_vm11, %v135_v34, %v133_v36 }
  0x2f   : > { %140 = vrot.lane.b32.xlu0 %v138_v37, %s139_s0 }
  0xa1   : > { %v141_v39 = vpop.permute.xlu0 %140 }
  0xa2   : > { %411 = vpush %v141_v39 }
  0xd3   : > { %s412_s16 = spop %411 }
  0xd4   : > { %v147_v43 = vstv %s412_s16  ;;  %s152_s18 = scalar_lea.vmem [#allocation2], %s412_s16  ;;  %s158_s19 = scalar_lea.vmem [#allocation10], %s412_s16 }
  0xd5   : > { %v154_v44 = vld [vmem:[%s152_s18] ss:$0 sm:$0xff]  ;;  %v149_v46 = vsel %vm146_vm13, %v147_v43, %v148_v40 }
  0xd6   : > { %v160_v45 = vld [vmem:[%s158_s19] ss:$0 sm:$0xff]  ;;  %155 = vst [vmem:[%s152_s18] sm:$0x1] %v153_v41  ;;  %vm163_vm14 = vcmp.ne.f32.partialorder %v154_v44, 0.0  ;;  %150 = vst [vmem:[#allocation4] sm:$0x1] %v149_v46 }
  0xd7   : > { %161 = vst [vmem:[%s158_s19] sm:$0x1] %v159_v42  ;;  %156 = vst [vmem:[%s151_s15] sm:$0x1] %v154_v44  ;;  %v170_v53 = vsel %vm169_vm12, %v154_v44, 0.0 }
  0xd8   : > { %162 = vst [vmem:[%s157_s17] sm:$0x1] %v160_v45  ;;  %vm164_vm0 = vmand %vm146_vm13, %vm163_vm14 }
  0xd9   : > { %v165_v47 = vsel %vm164_vm0, %v154_v44, 1.0 }
  0xda   : > { %v178_v48 = vsel %vm177_vm15, %v165_v47, 1.0 }
  0xdb   : > { %424 = vrcp.f32 %v178_v48 }
  0xdd   :  { %v249_v59 = vld [vmem:[#allocation4] sm:$0x1] (%p85_p0) }
  0xde   : > { %v174_v50 = vld [vmem:[#allocation2] sm:$0xff]  ;;  %252 = vst [vmem:[#allocation5] sm:$0x1] (%p85_p0), %v249_v59 }
  0xdf   :  { %v188_v57 = vld [vmem:[#allocation10] sm:$0xff] (%p85_p0) }
  0xe8   : > { %v425_v49 = vpop.eup %424 }
  0xe9   : > { %v180_v51 = vmul.f32 %v425_v49, %v174_v50 }
  0xeb   : > { %v182_v52 = vsel %vm181_vm1, %v180_v51, 0.0 }
  0xec   : > { %183 = vadd.xlane.f32.xlu0 %v182_v52 }
 0x119   :  { %204 = vxpose.xlu0.b32.start.end [1/1] (short) (narrow) (%p85_p0), %v188_v57, 8 }
 0x175   : > { %v184_v54 = vpop.xlane.xlu0 %183 }
 0x176   : > { %v185_v55 = vmul.f32 %v184_v54, %v170_v53  ;;  %87 = sbr.rel (!%p85_p0) target bundleno = 19 (0x13), region = 134 }
 0x178   : > { %v186_v56 = vsub.f32 %v180_v51, %v185_v55 }
 0x17a   : > { %187 = vst [vmem:[#allocation2] sm:$0xff] %v186_v56 }
 0x181   :  { %v241_v58 = vld [vmem:[#allocation2] sm:$0xf] }
 0x182   :  { %244 = vst [vmem:[#allocation3] sm:$0xf] %v241_v58 }
 0x183   :  { %437 = shalt.err (!%p434_p5)
}
 0x184   :  { %332 = dma.vmem_to_hbm [thread:$0]  %s330_s21, 16, %s551_s2, [#allocation6]  }
 0x185   :  { %s480_s28 = smov [#allocation8]  }
 0x186   :  { %s338_s29 = sshll.u32 %s480_s28, 4  ;;  %s339_s29 = int_to_ptr.vmem [resolvable:$true] %s338_s29 }
 0x187   :  { %s446_s30 = scalar_lea.vmem %s339_s29, 16  ;;  %s450_s4 = scalar_lea.vmem %s339_s29, 32 }
 0x188   :  { %p447_p6 = scmp.ne.s32.totalorder %s339_s29, %s446_s30  ;;  %p451_p7 = scmp.lt.s32.totalorder %s339_s29, %s339_s29 }
 0x189   :  { %v322_v60 = vld [vmem:[#allocation3] sm:$0xf]  ;;  %p452_p8 = scmp.lt.s32.totalorder %s450_s4, %s446_s30 }
 0x18a   :  { %323 = vst [vmem:[%s550_s1] sm:$0xf] %v322_v60 }
 0x18b   :  { %p453_p9 = por %p452_p8, %p451_p7 }
 0x18d   :  { %p454_p10 = pnand %p453_p9, %p447_p6 }
 0x195   :  { %v220_v61 = vpop.trf.xlu0 }
 0x196   :  { %236 = vst [vmem:[#allocation7] sm:$0x1] %v220_v61 }
 0x19d   :  { %v257_v62 = vld [vmem:[#allocation7] sm:$0x1] }
 0x19e   :  { %260 = vst [vmem:[#allocation8] sm:$0x1] %v257_v62 }
 0x19f   :  { %457 = shalt.err (!%p454_p10)
}
 0x1a0   :  { %341 = dma.vmem_to_hbm [thread:$0]  %s339_s29, 16, %s552_s3, [#allocation9]  }
 0x1a1   :  { %470 = dma.done.wait [#allocation6], 16  }
 0x1a2   :  { %471 = vsyncadd [#allocation6], 4294967280 }
 0x1a3   :  { %472 = dma.done.wait [#allocation9], 16  }
 0x1a4   :  { %473 = vsyncadd [#allocation9], 4294967280 }
 0x1a5   :  { %348 = vsyncpa [#allocation6], 1 }
 0x1a6   :  { %349 = vsyncpa [#allocation9], 1 }

// kernel: flow_step_forward.1
= control target key start
LH: loop header
LB: loop body
LE: loop exit
PB: predicated region body
PF: predicated region fallthrough
CT: control target
= control target key end

     0   :  { %s12643_s29 = smov 0   ;;  %s16559_s0 = inlined_call_operand.vmem [shape: f32[2,256,4], index: 0, kind: input, shape index: {}]   ;;  %s16560_s1 = inlined_call_operand.vmem [shape: f32[1,4], index: 1, kind: input, shape index: {}]   ;;  %s16561_s2 = inlined_call_operand.vmem [shape: f32[1,4], index: 2, kind: input, shape index: {}]   ;;  %s16562_s3 = inlined_call_operand.vmem [shape: f32[4,2], index: 3, kind: input, shape index: {}]   ;;  %s16563_s4 = inlined_call_operand.vmem [shape: f32[4,2], index: 4, kind: input, shape index: {}]   ;;  %s16564_s5 = inlined_call_operand.vmem [shape: f32[9,2,32], index: 5, kind: input, shape index: {}]   ;;  %s16565_s6 = inlined_call_operand.vmem [shape: f32[1,32], index: 6, kind: input, shape index: {}]   ;;  %s16566_s7 = inlined_call_operand.vmem [shape: f32[1,32], index: 7, kind: input, shape index: {}]   ;;  %s16567_s8 = inlined_call_operand.vmem [shape: f32[32,32], index: 8, kind: input, shape index: {}]   ;;  %s16568_s9 = inlined_call_operand.vmem [shape: f32[1,32], index: 9, kind: input, shape index: {}]   ;;  %s16569_s10 = inlined_call_operand.vmem [shape: f32[1,32], index: 10, kind: input, shape index: {}]   ;;  %s16570_s11 = inlined_call_operand.vmem [shape: f32[9,32,2], index: 11, kind: input, shape index: {}]   ;;  %s16571_s12 = inlined_call_operand.vmem [shape: f32[1,2], index: 12, kind: input, shape index: {}]   ;;  %s16572_s13 = inlined_call_operand.vmem [shape: f32[1,2], index: 13, kind: input, shape index: {}]   ;;  %s16573_s14 = inlined_call_operand.vmem [shape: f32[2,256,4], index: 14, kind: output, shape index: {}]  }
   0x1 LB: > { %s9937_s30 = sadd.s32 4294967295, %s12564_s29   ;;  %p9941_p0 = scmp.ge.s32.totalorder %s12564_s29, 1  ;;  %s12564_s29 = sphi %s12643_s29, %s24_s29  }
   0x2   : > { %p412_p1 = scmp.lt.s32.totalorder %s12564_s29, 3 }
   0x4   : > { %p413_p2 = pnand %p9941_p0, %p412_p1 }
   0x6   : > { %416 = sbr.rel (%p413_p2) target bundleno = 1531 (0x5fb), region = 76 }
   0xb   : > { %v578_v0 = vld [vmem:[%s16562_s3] sm:$0xf]  ;;  %vm676_vm0 = vcmask 1043456   ;;  %p458_p3 = scmp.lt.s32.totalorder %s9937_s30, 1  ;;  %vm1750_vm1 = vcmask 1041408   ;;  %vm579_vm2 = vcmask 31744  }
   0xc   : > { %11436 = vmatprep.subr.msk.mxu0 %vm676_vm0, %v578_v0  ;;  %12546 = vmatprep.subr.msk.mxu1 %vm676_vm0, %v578_v0  ;;  %v12659_v1 = vld [vmem:[%s16564_s5 + $0x2] sm:$0x3]  ;;  %v12671_v2 = vld [vmem:[%s16560_s1] ss:$0 sm:$0xff]  ;;  %vm1515_vm3 = vcmask 15360   ;;  %vm1518_vm4 = vcmask 8192  }
   0xd   : > { %11437 = vmatpush3.msk.msra.mxu0 %vm676_vm0, %v578_v0  ;;  %s17271_s30 = smov (!%p458_p3, %s9937_s30), 1  ;;  %12547 = vmatpush3.msk.msra.mxu1 %vm676_vm0, %v578_v0  ;;  %v12683_v3 = vld [vmem:[%s16561_s2] ss:$0 sm:$0xff]  ;;  %s12567_s27 = smov 2  }
   0xe   : > { %11486 = vmatprep.subr.msk.mxu1 %vm1750_vm1, %v12659_v1  ;;  %s10711_s19 = sshll.u32 %s17271_s30, 8 }
   0xf   : > { %s12678_s24 = scalar_lea.vmem %s16559_s0, %s10711_s19 }
  0x10   : > { %v468_v4 = vld [vmem:[%s12678_s24] sm:$0xff]  ;;  %v469_v5 = vld [vmem:[%s12678_s24 + $0x8] sm:$0xff]  ;;  %v470_v6 = vld [vmem:[%s12678_s24 + $0x10] sm:$0xff] }
  0x11   : > { %v507_v7 = vadd.f32 %v12671_v2, %v468_v4  ;;  %v508_v8 = vadd.f32 %v12671_v2, %v469_v5  ;;  %v509_v9 = vadd.f32 %v12671_v2, %v470_v6  ;;  %v471_v10 = vld [vmem:[%s12678_s24 + $0x18] sm:$0xff]  ;;  %v472_v11 = vld [vmem:[%s12678_s24 + $0x20] sm:$0xff]  ;;  %v473_v13 = vld [vmem:[%s12678_s24 + $0x28] sm:$0xff] }
  0x12   : > { %v510_v12 = vadd.f32 %v12671_v2, %v471_v10  ;;  %v511_v17 = vadd.f32 %v12671_v2, %v472_v11  ;;  %v474_v18 = vld [vmem:[%s12678_s24 + $0x30] sm:$0xff]  ;;  %v484_v19 = vld [vmem:[%s12678_s24 + $0x80] sm:$0xff]  ;;  %v512_v20 = vadd.f32 %v12671_v2, %v473_v13  ;;  %v485_v21 = vld [vmem:[%s12678_s24 + $0x88] sm:$0xff] }
  0x13   : > { %v12696_v14 = vmul.f32 %v12683_v3, %v507_v7  ;;  %v12699_v15 = vmul.f32 %v12683_v3, %v508_v8  ;;  %v12702_v16 = vmul.f32 %v12683_v3, %v509_v9  ;;  %v486_v23 = vld [vmem:[%s12678_s24 + $0x90] sm:$0xff]  ;;  %v513_v25 = vadd.f32 %v12671_v2, %v474_v18  ;;  %v475_v26 = vld [vmem:[%s12678_s24 + $0x38] sm:$0xff]  ;;  %v488_v29 = vld [vmem:[%s12678_s24 + $0xa0] sm:$0xff] }
  0x14   : > { %v12714_v22 = vmul.f32 %v12683_v3, %v510_v12  ;;  %v12720_v24 = vmul.f32 %v12683_v3, %v511_v17  ;;  %v523_v27 = vadd.f32 %v12671_v2, %v484_v19  ;;  %v487_v28 = vld [vmem:[%s12678_s24 + $0x98] sm:$0xff]  ;;  %v476_v30 = vld [vmem:[%s12678_s24 + $0x40] sm:$0xff]  ;;  %v524_v31 = vadd.f32 %v12671_v2, %v485_v21  ;;  %v489_v35 = vld [vmem:[%s12678_s24 + $0xa8] sm:$0xff] }
  0x15   : > { %16737 = vst [vmem:[#allocation4_spill] sm:$0xff] %v12696_v14  ;;  %16738 = vst [vmem:[#allocation5_spill] sm:$0xff] %v12699_v15  ;;  %11438 = vmatprep.mubr.msk.f32.mxu0 %vm579_vm2, %v12696_v14  ;;  %v12730_v32 = vmul.f32 %v12683_v3, %v512_v20  ;;  %v525_v34 = vadd.f32 %v12671_v2, %v486_v23  ;;  %v514_v36 = vadd.f32 %v12671_v2, %v475_v26  ;;  %v490_v40 = vld [vmem:[%s12678_s24 + $0xb0] sm:$0xff]  ;;  %v477_v43 = vld [vmem:[%s12678_s24 + $0x48] sm:$0xff] }
  0x16   : > { %16739 = vst [vmem:[#allocation6_spill] sm:$0xff] %v12702_v16  ;;  %11439 = vmatmul.mubr.msk.f32.vlgmr.msra.gmra.mxu0 %vm579_vm2, %v12699_v15  ;;  %16740 = vst [vmem:[#allocation7_spill] sm:$0xff] %v12714_v22  ;;  %v12733_v33 = vmul.f32 %v12683_v3, %v523_v27  ;;  %v12741_v37 = vmul.f32 %v12683_v3, %v524_v31  ;;  %v526_v38 = vadd.f32 %v12671_v2, %v487_v28  ;;  %v478_v45 = vld [vmem:[%s12678_s24 + $0x50] sm:$0xff]  ;;  %v491_v50 = vld [vmem:[%s12678_s24 + $0xb8] sm:$0xff] }
  0x17   : > { %11441 = vmatprep.mubr.msk.f32.mxu0 %vm579_vm2, %v12702_v16  ;;  %16741 = vst [vmem:[#allocation8_spill] sm:$0xff] %v12720_v24  ;;  %16742 = vst [vmem:[#allocation9_spill] sm:$0xff] %v12730_v32  ;;  %v527_v39 = vadd.f32 %v12671_v2, %v488_v29  ;;  %v12749_v41 = vmul.f32 %v12683_v3, %v513_v25  ;;  %v515_v42 = vadd.f32 %v12671_v2, %v476_v30  ;;  %v492_v53 = vld [vmem:[%s12678_s24 + $0xc0] sm:$0xff]  ;;  %v479_v56 = vld [vmem:[%s12678_s24 + $0x58] sm:$0xff] }
  0x18   : > { %16743 = vst [vmem:[#allocation10_spill] sm:$0xff] %v12733_v33  ;;  %16744 = vst [vmem:[#allocation11_spill] sm:$0xff] %v12741_v37  ;;  %11462 = vmatprep.mubr.msk.f32.mxu1 %vm579_vm2, %v12733_v33  ;;  %v12756_v44 = vmul.f32 %v12683_v3, %v525_v34  ;;  %v12762_v46 = vmul.f32 %v12683_v3, %v526_v38  ;;  %v528_v47 = vadd.f32 %v12671_v2, %v489_v35  ;;  %v480_v57 = vld [vmem:[%s12678_s24 + $0x60] sm:$0xff]  ;;  %v493_v62 = vld [vmem:[%s12678_s24 + $0xc8] sm:$0xff] }
  0x19   : > { %16745 = vst [vmem:[#allocation12_spill] sm:$0xff] %v12749_v41  ;;  %11463 = vmatmul.mubr.msk.f32.vlgmr.msra.gmra.mxu1 %vm579_vm2, %v12741_v37  ;;  %v12768_v48 = vmul.f32 %v12683_v3, %v527_v39  ;;  %v529_v49 = vadd.f32 %v12671_v2, %v490_v40  ;;  %v12775_v51 = vmul.f32 %v12683_v3, %v514_v36  ;;  %v494_v4 = vld [vmem:[%s12678_s24 + $0xd0] sm:$0xff]  ;;  %v495_v12 = vld [vmem:[%s12678_s24 + $0xd8] sm:$0xff]  ;;  %v496_v18 = vld [vmem:[%s12678_s24 + $0xe0] sm:$0xff] }
  0x1a   : > { %11442 = vmatmul.mubr.msk.f32.gmra.mxu0 %vm579_vm2, %v12714_v22  ;;  %16746 = vst [vmem:[#allocation13_spill] sm:$0xff] %v12756_v44  ;;  %16747 = vst [vmem:[#allocation14_spill] sm:$0xff] %v12762_v46  ;;  %11465 = vmatprep.mubr.msk.f32.mxu1 %vm579_vm2, %v12756_v44  ;;  %v516_v52 = vadd.f32 %v12671_v2, %v477_v43  ;;  %v12782_v54 = vmul.f32 %v12683_v3, %v515_v42  ;;  %v482_v7 = vld [vmem:[%s12678_s24 + $0x70] sm:$0xff]  ;;  %v483_v21 = vld [vmem:[%s12678_s24 + $0x78] sm:$0xff] }
  0x1b   : > { %11444 = vmatprep.mubr.msk.f32.mxu0 %vm579_vm2, %v12720_v24  ;;  %16748 = vst [vmem:[#allocation15_spill] sm:$0xff] %v12768_v48  ;;  %16749 = vst [vmem:[#allocation16_spill] sm:$0xff] %v12775_v51  ;;  %v517_v55 = vadd.f32 %v12671_v2, %v478_v45  ;;  %v12790_v58 = vmul.f32 %v12683_v3, %v528_v47  ;;  %v530_v59 = vadd.f32 %v12671_v2, %v491_v50  ;;  %v497_v28 = vld [vmem:[%s12678_s24 + $0xe8] sm:$0xff]  ;;  %v498_v31 = vld [vmem:[%s12678_s24 + $0xf0] sm:$0xff] }
  0x1c   : > { %16750 = vst [vmem:[#allocation17_spill] sm:$0xff] %v12782_v54  ;;  %v12796_v60 = vmul.f32 %v12683_v3, %v529_v49  ;;  %v531_v61 = vadd.f32 %v12671_v2, %v492_v53  ;;  %11487 = vmatpush3.msk.msra.mxu1 %vm1750_vm1, %v12659_v1  ;;  %v12805_v63 = vmul.f32 %v12683_v3, %v516_v52  ;;  %v481_v1 = vld [vmem:[%s12678_s24 + $0x68] sm:$0xff]  ;;  %v499_v40 = vld [vmem:[%s12678_s24 + $0xf8] sm:$0xff]  ;;  %s12960_s24 = scalar_lea.vmem %s16573_s14, %s10711_s19 }
  0x1d   : > { %11466 = vmatmul.mubr.msk.f32.gmra.mxu1 %vm579_vm2, %v12762_v46  ;;  %16751 = vst [vmem:[#allocation18_spill] sm:$0xff] %v12790_v58  ;;  %v518_v0 = vadd.f32 %v12671_v2, %v479_v56  ;;  %v12812_v5 = vmul.f32 %v12683_v3, %v517_v55  ;;  %v519_v6 = vadd.f32 %v12671_v2, %v480_v57  ;;  %v1619_v56 = vld [vmem:[%s16564_s5] sm:$0x3] }
  0x1e   : > { %11445 = vmatmul.mubr.msk.f32.gmra.mxu0 %vm579_vm2, %v12730_v32  ;;  %11468 = vmatprep.mubr.msk.f32.mxu1 %vm579_vm2, %v12768_v48  ;;  %16752 = vst [vmem:[#allocation19_spill] sm:$0xff] %v12796_v60  ;;  %16753 = vst [vmem:[#allocation20_spill] sm:$0xff] %v12805_v63  ;;  %v12820_v8 = vmul.f32 %v12683_v3, %v530_v59  ;;  %v532_v9 = vadd.f32 %v12671_v2, %v493_v62 }
  0x1f   : > { %11447 = vmatprep.mubr.msk.f32.mxu0 %vm579_vm2, %v12749_v41  ;;  %16754 = vst [vmem:[#allocation21_spill] sm:$0xff] %v12812_v5  ;;  %v12826_v10 = vmul.f32 %v12683_v3, %v531_v61  ;;  %v533_v11 = vadd.f32 %v12671_v2, %v494_v4  ;;  %v12833_v13 = vmul.f32 %v12683_v3, %v518_v0  ;;  %v10080_v0 = vld [vmem:[%s16564_s5 + $0x4] sm:$0x3]  ;;  %v10114_v4 = vld [vmem:[%s16564_s5 + $0x6] sm:$0x3] }
  0x20   : > { %16755 = vst [vmem:[#allocation22_spill] sm:$0xff] %v12820_v8  ;;  %v520_v17 = vadd.f32 %v12671_v2, %v481_v1  ;;  %v12840_v19 = vmul.f32 %v12683_v3, %v519_v6  ;;  %v521_v20 = vadd.f32 %v12671_v2, %v482_v7  ;;  %v12847_v23 = vmul.f32 %v12683_v3, %v532_v9  ;;  %v12950_v6 = vld [vmem:[%s16564_s5 + $0x8] sm:$0x3] }
  0x21   : > { %11469 = vmatmul.mubr.msk.f32.gmra.mxu1 %vm579_vm2, %v12790_v58  ;;  %16756 = vst [vmem:[#allocation23_spill] sm:$0xff] %v12826_v10  ;;  %16757 = vst [vmem:[#allocation24_spill] sm:$0xff] %v12833_v13  ;;  %v534_v25 = vadd.f32 %v12671_v2, %v495_v12  ;;  %v12853_v26 = vmul.f32 %v12683_v3, %v533_v11  ;;  %v535_v27 = vadd.f32 %v12671_v2, %v496_v18 }
  0x22   : > { %11448 = vmatmul.mubr.msk.f32.gmra.mxu0 %vm579_vm2, %v12775_v51  ;;  %11471 = vmatprep.mubr.msk.f32.mxu1 %vm579_vm2, %v12796_v60  ;;  %16758 = vst [vmem:[#allocation25_spill] sm:$0xff] %v12840_v19  ;;  %16759 = vst [vmem:[#allocation26_spill] sm:$0xff] %v12847_v23  ;;  %v12860_v29 = vmul.f32 %v12683_v3, %v520_v17  ;;  %v522_v30 = vadd.f32 %v12671_v2, %v483_v21  ;;  %v12976_v21 = vld [vmem:[%s16564_s5 + $0xa] sm:$0x3] }
  0x23   : > { %11450 = vmatprep.mubr.msk.f32.mxu0 %vm579_vm2, %v12782_v54  ;;  %16760 = vst [vmem:[#allocation27_spill] sm:$0xff] %v12853_v26  ;;  %v12867_v34 = vmul.f32 %v12683_v3, %v521_v20  ;;  %v12872_v35 = vmul.f32 %v12683_v3, %v534_v25  ;;  %v536_v36 = vadd.f32 %v12671_v2, %v497_v28 }
  0x24   : > { %16761 = vst [vmem:[#allocation28_spill] sm:$0xff] %v12860_v29  ;;  %v12878_v38 = vmul.f32 %v12683_v3, %v535_v27  ;;  %v537_v39 = vadd.f32 %v12671_v2, %v498_v31  ;;  %v12885_v42 = vmul.f32 %v12683_v3, %v522_v30  ;;  %v538_v45 = vadd.f32 %v12671_v2, %v499_v40 }
  0x25   : > { %11472 = vmatmul.mubr.msk.f32.gmra.mxu1 %vm579_vm2, %v12820_v8  ;;  %16762 = vst [vmem:[#allocation29_spill] sm:$0xff] %v12867_v34  ;;  %16763 = vst [vmem:[#allocation30_spill] sm:$0xff] %v12872_v35  ;;  %v12892_v43 = vmul.f32 %v12683_v3, %v536_v36  ;;  %v16576_v2 = vmov 0.0   ;;  %11536 = vmatprep.subr.msk.mxu0 %vm1750_vm1, %v1619_v56 }
  0x26   : > { %11451 = vmatmul.mubr.msk.f32.gmra.mxu0 %vm579_vm2, %v12805_v63  ;;  %11474 = vmatprep.mubr.msk.f32.mxu1 %vm579_vm2, %v12826_v10  ;;  %16764 = vst [vmem:[#allocation31_spill] sm:$0xff] %v12878_v38  ;;  %16765 = vst [vmem:[#allocation32_spill] sm:$0xff] %v12885_v42  ;;  %v12898_v47 = vmul.f32 %v12683_v3, %v537_v39  ;;  %v12905_v49 = vmul.f32 %v12683_v3, %v538_v45  ;;  %v906_v3 = vlaneseq }
  0x27   : > { %11453 = vmatprep.mubr.msk.f32.mxu0 %vm579_vm2, %v12812_v5  ;;  %16766 = vst [vmem:[#allocation33_spill] sm:$0xff] %v12892_v43  ;;  %1516 = vst.msk [vmem:[#allocation2] sm:$0xff] %vm1515_vm3, %v16576_v2  ;;  %11537 = vmatpush3.msk.msra.mxu0 %vm1750_vm1, %v1619_v56 }
  0x28   : > { %16767 = vst [vmem:[#allocation34_spill] sm:$0xff] %v12898_v47  ;;  %16768 = vst [vmem:[#allocation35_spill] sm:$0xff] %v12905_v49  ;;  %v12919_v50 = vshrl.u32 %v906_v3, 7  ;;  %11586 = vmatprep.subr.msk.mxu1 %vm1750_vm1, %v10080_v0  ;;  %11636 = vmatprep.subr.msk.mxu0 %vm1750_vm1, %v10114_v4 }
  0x29   : > { %11475 = vmatmul.mubr.msk.f32.gmra.mxu1 %vm579_vm2, %v12847_v23  ;;  %1517 = vst.msk [vmem:[#allocation2 + $0x8] sm:$0xff] %vm1515_vm3, %v16576_v2  ;;  %1520 = vst.msk [vmem:[#allocation2 + $0x111] sm:$0xff] %vm1515_vm3, %v16576_v2 }
  0x2a   : > { %11454 = vmatmul.mubr.msk.f32.gmra.mxu0 %vm579_vm2, %v12833_v13  ;;  %11477 = vmatprep.mubr.msk.f32.mxu1 %vm579_vm2, %v12853_v26  ;;  %1521 = vst.msk [vmem:[#allocation2 + $0x119] sm:$0xff] %vm1515_vm3, %v16576_v2  ;;  %v943_v52 = vand.u32 15, %v12919_v50  ;;  %v909_v1 = vadd.s32 16, %v12919_v50  ;;  %v911_v11 = vadd.s32 32, %v12919_v50  ;;  %v913_v20 = vadd.s32 48, %v12919_v50 }
  0x2b   : > { %11456 = vmatprep.mubr.msk.f32.mxu0 %vm579_vm2, %v12840_v19  ;;  %1519 = vst.msk [vmem:[#allocation2 + $0x10] sm:$0x1] %vm1518_vm4, %v16576_v2  ;;  %1522 = vst.msk [vmem:[#allocation2 + $0x121] sm:$0x1] %vm1518_vm4, %v16576_v2  ;;  %v915_v40 = vadd.s32 64, %v12919_v50  ;;  %v927_v58 = vadd.s32 160, %v12919_v50 }
  0x2c   : > { %vm1323_vm5 = vcmp.gt.s32.totalorder %v943_v52, 0  ;;  %v957_v9 = vand.u32 15, %v909_v1  ;;  %v971_v18 = vand.u32 15, %v911_v11  ;;  %v985_v39 = vand.u32 15, %v913_v20 }
  0x2d   : > { %11478 = vmatmul.mubr.msk.f32.gmra.mxu1 %vm579_vm2, %v12872_v35  ;;  %v12925_v53 = vsel %vm1323_vm5, 1.0, %v16576_v2  ;;  %v999_v1 = vand.u32 15, %v915_v40  ;;  %v919_v40 = vadd.s32 96, %v12919_v50  ;;  %v1083_v37 = vand.u32 15, %v927_v58 }
  0x2e   : > { %11457 = vmatmul.mubr.msk.f32.gmra.mxu0 %vm579_vm2, %v12860_v29  ;;  %11480 = vmatprep.mubr.msk.f32.mxu1 %vm579_vm2, %v12878_v38  ;;  %16769 = vst [vmem:[#allocation36_spill] sm:$0xff] %v12925_v53  ;;  %v1555_v55 = vld [vmem:[#allocation2] sm:$0xff]  ;;  %vm1325_vm6 = vcmp.gt.s32.totalorder %v957_v9, 0  ;;  %vm12992_vm7 = vcmp.gt.s32.totalorder %v971_v18, 0  ;;  %vm13029_vm8 = vcmp.gt.s32.totalorder %v985_v39, 0  ;;  %v931_v13 = vadd.s32 192, %v12919_v50 }
  0x2f   : > { %11459 = vmatprep.mubr.msk.f32.mxu0 %vm579_vm2, %v12867_v34  ;;  %v1587_v57 = vmul.f32 %v12925_v53, %v1555_v55  ;;  %v12987_v30 = vsel %vm1325_vm6, 1.0, %v16576_v2  ;;  %vm13068_vm9 = vcmp.gt.s32.totalorder %v999_v1, 0  ;;  %vm1343_vm15 = vcmp.gt.s32.totalorder %v1083_v37, 0 }
  0x30   : > { %v1620_v59 = vld [vmem:[#allocation2 + $0x1] sm:$0xff]  ;;  %16770 = vst [vmem:[#allocation37_spill] sm:$0xff] %v12987_v30  ;;  %v933_v51 = vadd.s32 208, %v12919_v50  ;;  %v935_v16 = vadd.s32 224, %v12919_v50 }
  0x31   : > { %11481 = vmatmul.mubr.msk.f32.gmra.mxu1 %vm579_vm2, %v12892_v43  ;;  %v1556_v62 = vld [vmem:[#allocation2 + $0x8] sm:$0xff]  ;;  %v925_v43 = vadd.s32 144, %v12919_v50 }
  0x32   : > { %11460 = vmatmul.mubr.msk.f32.gmra.mxu0 %vm579_vm2, %v12885_v42  ;;  %11483 = vmatprep.mubr.msk.f32.mxu1 %vm579_vm2, %v12898_v47  ;;  %v1621_v61 = vld [vmem:[#allocation2 + $0x9] sm:$0xff]  ;;  %v1125_v22 = vand.u32 15, %v933_v51 }
  0x33   : > { %11538 = vmatprep.mubr.msk.f32.mxu0 %vm1515_vm3, %v1587_v57  ;;  %v1069_v60 = vand.u32 15, %v925_v43 }
  0x34   : > { %vm1349_vm6 = vcmp.gt.s32.totalorder %v1125_v22, 0 }
  0x35   : > { %11484 = vmatmul.mubr.msk.f32.gmra.mxu1 %vm579_vm2, %v12905_v49  ;;  %vm13241_vm14 = vcmp.gt.s32.totalorder %v1069_v60, 0 }
  0x36   : > { %11488 = vmatprep.mubr.msk.f32.mxu1 %vm1515_vm3, %v1620_v59  ;;  %11539 = vmatmul.mubr.msk.f32.vlgmr.msra.gmra.mxu0 %vm1515_vm3, %v1556_v62 }
  0x37   : > { %11637 = vmatpush3.msk.msra.mxu0 %vm1750_vm1, %v10114_v4 }
  0x38   : > { %11736 = vmatprep.subr.msk.mxu0 %vm1750_vm1, %v12976_v21 }
  0x39   : > { %11489 = vmatmul.mubr.msk.f32.vlgmr.msra.gmra.mxu1 %vm1515_vm3, %v1621_v61  ;;  %v13021_v61 = vsel %vm12992_vm7, 1.0, %v16576_v2 }
  0x3a   : > { %11587 = vmatpush3.msk.msra.mxu1 %vm1750_vm1, %v10080_v0  ;;  %16773 = vst [vmem:[#allocation38_spill] sm:$0xff] %v13021_v61 }
  0x3b   : > { %11686 = vmatprep.subr.msk.mxu1 %vm1750_vm1, %v12950_v6 }
  0xd6   : > { %v11440_v7 = vpop.f32.mrf.mxu0 }
  0xd7   : > { %1524 = vst.msk [vmem:[#allocation2 + $0x19] sm:$0xff] %vm1515_vm3, %v11440_v7  ;;  %9690 = vst.msk [vmem:[%s12960_s24 + $0x8] sm:$0xff] %vm1515_vm3, %v11440_v7  ;;  %v917_v7 = vadd.s32 80, %v12919_v50 }
  0xd8   : > { %v746_v12 = vpop.f32.mrf.mxu0 }
  0xd9   : > { %1523 = vst.msk [vmem:[#allocation2 + $0x11] sm:$0xff] %vm1515_vm3, %v746_v12  ;;  %9689 = vst.msk [vmem:[%s12960_s24] sm:$0xff] %vm1515_vm3, %v746_v12  ;;  %v11464_v27 = vpop.f32.mrf.mxu1  ;;  %v1013_v39 = vand.u32 15, %v917_v7  ;;  %v13099_v7 = vsel %vm13068_vm9, 1.0, %v16576_v2 }
  0xda   : > { %v11443_v17 = vpop.f32.mrf.mxu0  ;;  %1540 = vst.msk [vmem:[#allocation2 + $0x99] sm:$0xff] %vm1515_vm3, %v11464_v27  ;;  %9706 = vst.msk [vmem:[%s12960_s24 + $0x88] sm:$0xff] %vm1515_vm3, %v11464_v27  ;;  %v13060_v27 = vsel %vm13029_vm8, 1.0, %v16576_v2 }
  0xdb   : > { %1526 = vst.msk [vmem:[#allocation2 + $0x29] sm:$0xff] %vm1515_vm3, %v11443_v17  ;;  %9692 = vst.msk [vmem:[%s12960_s24 + $0x18] sm:$0xff] %vm1515_vm3, %v11443_v17  ;;  %v826_v31 = vpop.f32.mrf.mxu1  ;;  %vm13107_vm10 = vcmp.gt.s32.totalorder %v1013_v39, 0 }
  0xdc   : > { %v756_v25 = vpop.f32.mrf.mxu0  ;;  %1539 = vst.msk [vmem:[#allocation2 + $0x91] sm:$0xff] %vm1515_vm3, %v826_v31  ;;  %9705 = vst.msk [vmem:[%s12960_s24 + $0x80] sm:$0xff] %vm1515_vm3, %v826_v31 }
  0xdd   : > { %1525 = vst.msk [vmem:[#allocation2 + $0x21] sm:$0xff] %vm1515_vm3, %v756_v25  ;;  %9691 = vst.msk [vmem:[%s12960_s24 + $0x10] sm:$0xff] %vm1515_vm3, %v756_v25  ;;  %v11467_v55 = vpop.f32.mrf.mxu1 }
  0xde   : > { %v11446_v28 = vpop.f32.mrf.mxu0  ;;  %v13009_v56 = vld [vmem:[#allocation2 + $0x19] sm:$0xff]  ;;  %1542 = vst.msk [vmem:[#allocation2 + $0xa9] sm:$0xff] %vm1515_vm3, %v11467_v55  ;;  %9708 = vst.msk [vmem:[%s12960_s24 + $0x98] sm:$0xff] %vm1515_vm3, %v11467_v55 }
  0xdf   : > { %1528 = vst.msk [vmem:[#allocation2 + $0x39] sm:$0xff] %vm1515_vm3, %v11446_v28  ;;  %9694 = vst.msk [vmem:[%s12960_s24 + $0x28] sm:$0xff] %vm1515_vm3, %v11446_v28  ;;  %v836_v62 = vpop.f32.mrf.mxu1 }
  0xe0   : > { %v766_v45 = vpop.f32.mrf.mxu0  ;;  %v13000_v3 = vld [vmem:[#allocation2 + $0x11] sm:$0xff]  ;;  %1541 = vst.msk [vmem:[#allocation2 + $0xa1] sm:$0xff] %vm1515_vm3, %v836_v62  ;;  %9707 = vst.msk [vmem:[%s12960_s24 + $0x90] sm:$0xff] %vm1515_vm3, %v836_v62 }
  0xe1   : > { %v13002_v52 = vld [vmem:[#allocation2 + $0x10] sm:$0xff]  ;;  %1527 = vst.msk [vmem:[#allocation2 + $0x31] sm:$0xff] %vm1515_vm3, %v766_v45  ;;  %9693 = vst.msk [vmem:[%s12960_s24 + $0x20] sm:$0xff] %vm1515_vm3, %v766_v45  ;;  %11491 = vmatprep.mubr.msk.f32.mxu1 %vm1515_vm3, %v13000_v3  ;;  %v13027_v0 = vld [vmem:[#allocation2 + $0x18] sm:$0xff]  ;;  %v11470_v17 = vpop.f32.mrf.mxu1 }
  0xe2   : > { %v1589_v57 = vmul.f32 %v12987_v30, %v13002_v52  ;;  %v11449_v59 = vpop.f32.mrf.mxu0  ;;  %11492 = vmatmul.mubr.msk.f32.gmra.mxu1 %vm1515_vm3, %v13009_v56  ;;  %v13048_v18 = vld [vmem:[#allocation2 + $0x29] sm:$0xff]  ;;  %1544 = vst.msk [vmem:[#allocation2 + $0xb9] sm:$0xff] %vm1515_vm3, %v11470_v17  ;;  %9710 = vst.msk [vmem:[%s12960_s24 + $0xa8] sm:$0xff] %vm1515_vm3, %v11470_v17  ;;  %v13303_v54 = vld [vmem:[#allocation2 + $0x99] sm:$0xff] }
  0xe3   : > { %1530 = vst.msk [vmem:[#allocation2 + $0x49] sm:$0xff] %vm1515_vm3, %v11449_v59  ;;  %9696 = vst.msk [vmem:[%s12960_s24 + $0x38] sm:$0xff] %vm1515_vm3, %v11449_v59  ;;  %v846_v28 = vpop.f32.mrf.mxu1  ;;  %v13254_v34 = vld [vmem:[#allocation2 + $0x91] sm:$0xff] }
  0xe4   : > { %11541 = vmatprep.mubr.msk.f32.mxu0 %vm1515_vm3, %v1589_v57  ;;  %v776_v9 = vpop.f32.mrf.mxu0  ;;  %v13039_v11 = vld [vmem:[#allocation2 + $0x21] sm:$0xff]  ;;  %16777 = vst [vmem:[#allocation40_spill] sm:$0xff] %v13048_v18  ;;  %16778 = vst [vmem:[#allocation41_spill] sm:$0xff] %v13060_v27  ;;  %v13310_v41 = vld [vmem:[#allocation2 + $0x98] sm:$0xff] }
  0xe5   : > { %11542 = vmatmul.mubr.msk.f32.gmra.mxu0 %vm1515_vm3, %v13027_v0  ;;  %16776 = vst [vmem:[#allocation39_spill] sm:$0xff] %v13039_v11  ;;  %v13041_v12 = vld [vmem:[#allocation2 + $0x20] sm:$0xff]  ;;  %1529 = vst.msk [vmem:[#allocation2 + $0x41] sm:$0xff] %vm1515_vm3, %v776_v9  ;;  %11494 = vmatprep.mubr.msk.f32.mxu1 %vm1515_vm3, %v13039_v11  ;;  %v13066_v31 = vld [vmem:[#allocation2 + $0x28] sm:$0xff]  ;;  %v11473_v59 = vpop.f32.mrf.mxu1 }
  0xe6   : > { %9695 = vst.msk [vmem:[%s12960_s24 + $0x30] sm:$0xff] %vm1515_vm3, %v776_v9  ;;  %v1591_v20 = vmul.f32 %v13021_v61, %v13041_v12  ;;  %v11452_v25 = vpop.f32.mrf.mxu0  ;;  %11495 = vmatmul.mubr.msk.f32.gmra.mxu1 %vm1515_vm3, %v13048_v18  ;;  %1543 = vst.msk [vmem:[#allocation2 + $0xb1] sm:$0xff] %vm1515_vm3, %v846_v28  ;;  %v13087_v62 = vld [vmem:[#allocation2 + $0x39] sm:$0xff]  ;;  %v13324_v24 = vld [vmem:[#allocation2 + $0xa9] sm:$0xff]  ;;  %v2759_v11 = vmul.f32 %v12987_v30, %v13041_v12 }
  0xe7   : > { %1532 = vst.msk [vmem:[#allocation2 + $0x59] sm:$0xff] %vm1515_vm3, %v11452_v25  ;;  %9698 = vst.msk [vmem:[%s12960_s24 + $0x48] sm:$0xff] %vm1515_vm3, %v11452_v25  ;;  %v856_v9 = vpop.f32.mrf.mxu1  ;;  %v1027_v25 = vand.u32 15, %v919_v40  ;;  %v13295_v37 = vld [vmem:[#allocation2 + $0xa1] sm:$0xff] }
  0xe8   : > { %11544 = vmatprep.mubr.msk.f32.mxu0 %vm1515_vm3, %v1591_v20  ;;  %9709 = vst.msk [vmem:[%s12960_s24 + $0xa0] sm:$0xff] %vm1515_vm3, %v846_v28  ;;  %v786_v45 = vpop.f32.mrf.mxu0  ;;  %v13078_v55 = vld [vmem:[#allocation2 + $0x31] sm:$0xff]  ;;  %16782 = vst [vmem:[#allocation43_spill] sm:$0xff] %v13087_v62  ;;  %v921_v28 = vadd.s32 112, %v12919_v50  ;;  %v13300_v63 = vld [vmem:[#allocation2 + $0xa0] sm:$0xff] }
  0xe9   : > { %11545 = vmatmul.mubr.msk.f32.gmra.mxu0 %vm1515_vm3, %v13066_v31  ;;  %16781 = vst [vmem:[#allocation42_spill] sm:$0xff] %v13078_v55  ;;  %v13080_v57 = vld [vmem:[#allocation2 + $0x30] sm:$0xff]  ;;  %1531 = vst.msk [vmem:[#allocation2 + $0x51] sm:$0xff] %vm1515_vm3, %v786_v45  ;;  %11497 = vmatprep.mubr.msk.f32.mxu1 %vm1515_vm3, %v13078_v55  ;;  %v13105_v17 = vld [vmem:[#allocation2 + $0x38] sm:$0xff]  ;;  %v11476_v39 = vpop.f32.mrf.mxu1  ;;  %vm13146_vm11 = vcmp.gt.s32.totalorder %v1027_v25, 0  ;;  %v923_v25 = vadd.s32 128, %v12919_v50 }
  0xea   : > { %9697 = vst.msk [vmem:[%s12960_s24 + $0x40] sm:$0xff] %vm1515_vm3, %v786_v45  ;;  %v1593_v4 = vmul.f32 %v13060_v27, %v13080_v57  ;;  %1546 = vst.msk [vmem:[#allocation2 + $0xc9] sm:$0xff] %vm1515_vm3, %v11473_v59  ;;  %v11455_v1 = vpop.f32.mrf.mxu0  ;;  %11498 = vmatmul.mubr.msk.f32.gmra.mxu1 %vm1515_vm3, %v13087_v62  ;;  %v13126_v40 = vld [vmem:[#allocation2 + $0x49] sm:$0xff]  ;;  %v1041_v47 = vand.u32 15, %v921_v28 }
  0xeb   : > { %9712 = vst.msk [vmem:[%s12960_s24 + $0xb8] sm:$0xff] %vm1515_vm3, %v11473_v59  ;;  %16783 = vst [vmem:[#allocation44_spill] sm:$0xff] %v13099_v7  ;;  %v13331_v15 = vld [vmem:[#allocation2 + $0xa8] sm:$0xff] }
  0xec   : > { %1534 = vst.msk [vmem:[#allocation2 + $0x69] sm:$0xff] %vm1515_vm3, %v11455_v1  ;;  %9700 = vst.msk [vmem:[%s12960_s24 + $0x58] sm:$0xff] %vm1515_vm3, %v11455_v1  ;;  %11547 = vmatprep.mubr.msk.f32.mxu0 %vm1515_vm3, %v1593_v4  ;;  %v796_v36 = vpop.f32.mrf.mxu0  ;;  %v13117_v45 = vld [vmem:[#allocation2 + $0x41] sm:$0xff]  ;;  %vm13186_vm12 = vcmp.gt.s32.totalorder %v1041_v47, 0  ;;  %v13476_v12 = vld [vmem:[#allocation2 + $0x2a] sm:$0xff] }
  0xed   : > { %1545 = vst.msk [vmem:[#allocation2 + $0xc1] sm:$0xff] %vm1515_vm3, %v856_v9  ;;  %9711 = vst.msk [vmem:[%s12960_s24 + $0xb0] sm:$0xff] %vm1515_vm3, %v856_v9  ;;  %11548 = vmatmul.mubr.msk.f32.gmra.mxu0 %vm1515_vm3, %v13105_v17  ;;  %v13119_v59 = vld [vmem:[#allocation2 + $0x40] sm:$0xff]  ;;  %11500 = vmatprep.mubr.msk.f32.mxu1 %vm1515_vm3, %v13117_v45  ;;  %v13138_v9 = vsel %vm13107_vm10, 1.0, %v16576_v2  ;;  %v13144_v49 = vld [vmem:[#allocation2 + $0x48] sm:$0xff] }
  0xee   : > { %16786 = vst [vmem:[#allocation45_spill] sm:$0xff] %v13117_v45  ;;  %1533 = vst.msk [vmem:[#allocation2 + $0x61] sm:$0xff] %vm1515_vm3, %v796_v36  ;;  %v1595_v4 = vmul.f32 %v13099_v7, %v13119_v59  ;;  %v11458_v1 = vpop.f32.mrf.mxu0  ;;  %11501 = vmatmul.mubr.msk.f32.gmra.mxu1 %vm1515_vm3, %v13126_v40  ;;  %v13165_v28 = vld [vmem:[#allocation2 + $0x59] sm:$0xff] }
  0xef   : > { %9699 = vst.msk [vmem:[%s12960_s24 + $0x50] sm:$0xff] %vm1515_vm3, %v796_v36  ;;  %16787 = vst [vmem:[#allocation46_spill] sm:$0xff] %v13126_v40  ;;  %v866_v36 = vpop.f32.mrf.mxu1 }
  0xf0   : > { %1548 = vst.msk [vmem:[#allocation2 + $0xd9] sm:$0xff] %vm1515_vm3, %v11476_v39  ;;  %9714 = vst.msk [vmem:[%s12960_s24 + $0xc8] sm:$0xff] %vm1515_vm3, %v11476_v39  ;;  %11550 = vmatprep.mubr.msk.f32.mxu0 %vm1515_vm3, %v1595_v4  ;;  %v806_v20 = vpop.f32.mrf.mxu0  ;;  %v13155_v2 = vld [vmem:[#allocation2 + $0x51] sm:$0xff] }
  0xf1   : > { %16788 = vst [vmem:[#allocation47_spill] sm:$0xff] %v13138_v9  ;;  %1536 = vst.msk [vmem:[#allocation2 + $0x79] sm:$0xff] %vm1515_vm3, %v11458_v1  ;;  %11551 = vmatmul.mubr.msk.f32.gmra.mxu0 %vm1515_vm3, %v13144_v49  ;;  %v11479_v4 = vpop.f32.mrf.mxu1  ;;  %11503 = vmatprep.mubr.msk.f32.mxu1 %vm1515_vm3, %v13155_v2  ;;  %v13184_v23 = vld [vmem:[#allocation2 + $0x58] sm:$0xff] }
  0xf2   : > { %9702 = vst.msk [vmem:[%s12960_s24 + $0x68] sm:$0xff] %vm1515_vm3, %v11458_v1  ;;  %1547 = vst.msk [vmem:[#allocation2 + $0xd1] sm:$0xff] %vm1515_vm3, %v866_v36  ;;  %v13157_v1 = vld [vmem:[#allocation2 + $0x50] sm:$0xff]  ;;  %v11461_v38 = vpop.f32.mrf.mxu0  ;;  %11504 = vmatmul.mubr.msk.f32.gmra.mxu1 %vm1515_vm3, %v13165_v28 }
  0xf3   : > { %9713 = vst.msk [vmem:[%s12960_s24 + $0xc0] sm:$0xff] %vm1515_vm3, %v866_v36  ;;  %16791 = vst [vmem:[#allocation48_spill] sm:$0xff] %v13155_v2  ;;  %v1597_v36 = vmul.f32 %v13138_v9, %v13157_v1  ;;  %v876_v26 = vpop.f32.mrf.mxu1  ;;  %v13204_v47 = vld [vmem:[#allocation2 + $0x69] sm:$0xff] }
  0xf4   : > { %1535 = vst.msk [vmem:[#allocation2 + $0x71] sm:$0xff] %vm1515_vm3, %v806_v20  ;;  %9701 = vst.msk [vmem:[%s12960_s24 + $0x60] sm:$0xff] %vm1515_vm3, %v806_v20  ;;  %v16793_v20 = vmov 0.0   ;;  %v816_v39 = vpop.f32.mrf.mxu0 }
  0xf5   : > { %16792 = vst [vmem:[#allocation49_spill] sm:$0xff] %v13165_v28  ;;  %1550 = vst.msk [vmem:[#allocation2 + $0xe9] sm:$0xff] %vm1515_vm3, %v11479_v4  ;;  %v13178_v35 = vsel %vm13146_vm11, 1.0, %v16793_v20  ;;  %11553 = vmatprep.mubr.msk.f32.mxu0 %vm1515_vm3, %v1597_v36  ;;  %v13195_v10 = vld [vmem:[#allocation2 + $0x61] sm:$0xff]  ;;  %v1055_v36 = vand.u32 15, %v923_v25  ;;  %v11482_v8 = vpop.f32.mrf.mxu1  ;;  %v13217_v25 = vsel %vm13186_vm12, 1.0, %v16793_v20 }
  0xf6   : > { %9716 = vst.msk [vmem:[%s12960_s24 + $0xd8] sm:$0xff] %vm1515_vm3, %v11479_v4  ;;  %16794 = vst [vmem:[#allocation50_spill] sm:$0xff] %v13178_v35  ;;  %11554 = vmatmul.mubr.msk.f32.gmra.mxu0 %vm1515_vm3, %v13184_v23  ;;  %11506 = vmatprep.mubr.msk.f32.mxu1 %vm1515_vm3, %v13195_v10  ;;  %v13220_v48 = vld [vmem:[#allocation2 + $0x68] sm:$0xff]  ;;  %v912_v28 = vadd.s32 40, %v12919_v50  ;;  %v11540_v18 = vpop.f32.mrf.mxu0 }
  0xf7   : > { %1538 = vst.msk [vmem:[#allocation2 + $0x89] sm:$0xff] %vm1515_vm3, %v11461_v38  ;;  %9704 = vst.msk [vmem:[%s12960_s24 + $0x78] sm:$0xff] %vm1515_vm3, %v11461_v38  ;;  %v13197_v38 = vld [vmem:[#allocation2 + $0x60] sm:$0xff]  ;;  %11507 = vmatmul.mubr.msk.f32.gmra.mxu1 %vm1515_vm3, %v13204_v47  ;;  %vm13231_vm13 = vcmp.gt.s32.totalorder %v1055_v36, 0  ;;  %v929_v36 = vadd.s32 176, %v12919_v50 }
  0xf8   : > { %1549 = vst.msk [vmem:[#allocation2 + $0xe1] sm:$0xff] %vm1515_vm3, %v876_v26  ;;  %9715 = vst.msk [vmem:[%s12960_s24 + $0xd0] sm:$0xff] %vm1515_vm3, %v876_v26  ;;  %v1599_v26 = vmul.f32 %v13178_v35, %v13197_v38  ;;  %v13237_v46 = vld [vmem:[#allocation2 + $0x79] sm:$0xff]  ;;  %v13266_v60 = vsel %vm13231_vm13, 1.0, %v16793_v20 }
  0xf9   : > { %16797 = vst [vmem:[#allocation51_spill] sm:$0xff] %v13195_v10  ;;  %1537 = vst.msk [vmem:[#allocation2 + $0x81] sm:$0xff] %vm1515_vm3, %v816_v39  ;;  %v1097_v4 = vand.u32 15, %v929_v36  ;;  %v13298_v36 = vsel %vm1343_vm15, 1.0, %v16793_v20  ;;  %v13363_v22 = vld [vmem:[#allocation2 + $0xd0] sm:$0xff] }
  0xfa   : > { %9703 = vst.msk [vmem:[%s12960_s24 + $0x70] sm:$0xff] %vm1515_vm3, %v816_v39  ;;  %16798 = vst [vmem:[#allocation52_spill] sm:$0xff] %v13204_v47  ;;  %v886_v39 = vpop.f32.mrf.mxu1  ;;  %11556 = vmatprep.mubr.msk.f32.mxu0 %vm1515_vm3, %v1599_v26  ;;  %v1607_v32 = vmul.f32 %v13298_v36, %v13300_v63  ;;  %v13394_v47 = vld [vmem:[#allocation2 + $0xd8] sm:$0xff] }
  0xfb   : > { %1552 = vst.msk [vmem:[#allocation2 + $0xf9] sm:$0xff] %vm1515_vm3, %v11482_v8  ;;  %9718 = vst.msk [vmem:[%s12960_s24 + $0xe8] sm:$0xff] %vm1515_vm3, %v11482_v8  ;;  %11557 = vmatmul.mubr.msk.f32.gmra.mxu0 %vm1515_vm3, %v13220_v48  ;;  %v13227_v8 = vld [vmem:[#allocation2 + $0x71] sm:$0xff]  ;;  %vm1345_vm4 = vcmp.gt.s32.totalorder %v1097_v4, 0 }
  0xfc   : > { %16799 = vst [vmem:[#allocation53_spill] sm:$0xff] %v13217_v25  ;;  %1551 = vst.msk [vmem:[#allocation2 + $0xf1] sm:$0xff] %vm1515_vm3, %v886_v39  ;;  %v13229_v43 = vld [vmem:[#allocation2 + $0x70] sm:$0xff]  ;;  %v11485_v26 = vpop.f32.mrf.mxu1  ;;  %11509 = vmatprep.mubr.msk.f32.mxu1 %vm1515_vm3, %v13227_v8  ;;  %v13252_v42 = vld [vmem:[#allocation2 + $0x78] sm:$0xff] }
  0xfd   : > { %9717 = vst.msk [vmem:[%s12960_s24 + $0xe0] sm:$0xff] %vm1515_vm3, %v886_v39  ;;  %16800 = vst [vmem:[#allocation54_spill] sm:$0xff] %v13227_v8  ;;  %v1601_v39 = vmul.f32 %v13217_v25, %v13229_v43  ;;  %11510 = vmatmul.mubr.msk.f32.gmra.mxu1 %vm1515_vm3, %v13237_v46  ;;  %v13321_v4 = vld [vmem:[#allocation2 + $0xb0] sm:$0xff]  ;;  %v910_v8 = vadd.s32 24, %v12919_v50 }
  0xfe   : > { %16803 = vst [vmem:[#allocation55_spill] sm:$0xff] %v13237_v46  ;;  %1554 = vst.msk [vmem:[#allocation2 + $0x109] sm:$0xff] %vm1515_vm3, %v11485_v26  ;;  %v896_v33 = vpop.f32.mrf.mxu1  ;;  %v13275_v29 = vld [vmem:[#allocation2 + $0x90] sm:$0xff] }
  0xff   : > { %9720 = vst.msk [vmem:[%s12960_s24 + $0xf8] sm:$0xff] %vm1515_vm3, %v11485_v26  ;;  %11559 = vmatprep.mubr.msk.f32.mxu0 %vm1515_vm3, %v1601_v39  ;;  %16806 = vst [vmem:[#allocation56_spill] sm:$0xff] %v13254_v34  ;;  %v13273_v39 = vsel %vm13241_vm14, 1.0, %v16793_v20  ;;  %v13415_v2 = vld [vmem:[#allocation2 + $0xe8] sm:$0xff] }
 0x100   : > { %1553 = vst.msk [vmem:[#allocation2 + $0x101] sm:$0xff] %vm1515_vm3, %v896_v33  ;;  %9719 = vst.msk [vmem:[%s12960_s24 + $0xf0] sm:$0xff] %vm1515_vm3, %v896_v33  ;;  %11560 = vmatmul.mubr.msk.f32.gmra.mxu0 %vm1515_vm3, %v13252_v42  ;;  %v13261_v58 = vld [vmem:[#allocation2 + $0x81] sm:$0xff]  ;;  %v13279_v33 = vld [vmem:[#allocation2 + $0x89] sm:$0xff]  ;;  %v1605_v5 = vmul.f32 %v13273_v39, %v13275_v29 }
 0x101   : > { %16807 = vst [vmem:[#allocation57_spill] sm:$0xff] %v13261_v58  ;;  %16808 = vst [vmem:[#allocation58_spill] sm:$0xff] %v13266_v60  ;;  %v13268_v26 = vld [vmem:[#allocation2 + $0x80] sm:$0xff]  ;;  %11512 = vmatprep.mubr.msk.f32.mxu1 %vm1515_vm3, %v13261_v58  ;;  %v13289_v44 = vld [vmem:[#allocation2 + $0x88] sm:$0xff] }
 0x102   : > { %16809 = vst [vmem:[#allocation59_spill] sm:$0xff] %v13273_v39  ;;  %16810 = vst [vmem:[#allocation60_spill] sm:$0xff] %v13279_v33  ;;  %v1603_v19 = vmul.f32 %v13266_v60, %v13268_v26  ;;  %11513 = vmatmul.mubr.msk.f32.gmra.mxu1 %vm1515_vm3, %v13279_v33  ;;  %v908_v33 = vadd.s32 8, %v12919_v50  ;;  %v13373_v58 = vld [vmem:[#allocation2 + $0xc8] sm:$0xff]  ;;  %v13422_v45 = vld [vmem:[#allocation2 + $0xf9] sm:$0xff] }
 0x103   : > { %11515 = vmatprep.mubr.msk.f32.mxu1 %vm1515_vm3, %v13254_v34  ;;  %16811 = vst [vmem:[#allocation61_spill] sm:$0xff] %v13295_v37  ;;  %16812 = vst [vmem:[#allocation62_spill] sm:$0xff] %v13298_v36  ;;  %v13430_v62 = vld [vmem:[#allocation2 + $0xf8] sm:$0xff] }
 0x104   : > { %11562 = vmatprep.mubr.msk.f32.mxu0 %vm1515_vm3, %v1603_v19  ;;  %16813 = vst [vmem:[#allocation63_spill] sm:$0xff] %v13303_v54  ;;  %v1111_v19 = vand.u32 15, %v931_v13  ;;  %v13319_v13 = vsel %vm1345_vm4, 1.0, %v16793_v20  ;;  %16816 = vst [vmem:[#allocation66_spill] sm:$0xff] %v13324_v24 }
 0x105   : > { %11563 = vmatmul.mubr.msk.f32.gmra.mxu0 %vm1515_vm3, %v13289_v44  ;;  %16815 = vst [vmem:[#allocation65_spill] sm:$0xff] %v13319_v13  ;;  %v1609_v14 = vmul.f32 %v13319_v13, %v13321_v4  ;;  %16829 = vst [vmem:[#allocation79_spill] sm:$0xff] %v13422_v45 }
 0x106   : > { %11565 = vmatprep.mubr.msk.f32.mxu0 %vm1515_vm3, %v1605_v5  ;;  %11516 = vmatmul.mubr.msk.f32.gmra.mxu1 %vm1515_vm3, %v13303_v54  ;;  %v13316_v5 = vld [vmem:[#allocation2 + $0xb1] sm:$0xff]  ;;  %vm1347_vm5 = vcmp.gt.s32.totalorder %v1111_v19, 0  ;;  %v13342_v19 = vld [vmem:[#allocation2 + $0xc0] sm:$0xff] }
 0x107   : > { %11518 = vmatprep.mubr.msk.f32.mxu1 %vm1515_vm3, %v13295_v37  ;;  %16814 = vst [vmem:[#allocation64_spill] sm:$0xff] %v13316_v5  ;;  %v13340_v51 = vsel %vm1347_vm5, 1.0, %v16793_v20  ;;  %v937_v37 = vadd.s32 240, %v12919_v50  ;;  %v13352_v54 = vld [vmem:[#allocation2 + $0xb8] sm:$0xff] }
 0x108   : > { %16818 = vst [vmem:[#allocation68_spill] sm:$0xff] %v13340_v51  ;;  %v1611_v34 = vmul.f32 %v13340_v51, %v13342_v19 }
 0x109   : > { %11566 = vmatmul.mubr.msk.f32.gmra.mxu0 %vm1515_vm3, %v13310_v41 }
 0x10a   : > { %11568 = vmatprep.mubr.msk.f32.mxu0 %vm1515_vm3, %v1607_v32  ;;  %11519 = vmatmul.mubr.msk.f32.gmra.mxu1 %vm1515_vm3, %v13324_v24  ;;  %v13337_v32 = vld [vmem:[#allocation2 + $0xc1] sm:$0xff]  ;;  %v13345_v24 = vld [vmem:[#allocation2 + $0xb9] sm:$0xff] }
 0x10b   : > { %11521 = vmatprep.mubr.msk.f32.mxu1 %vm1515_vm3, %v13316_v5  ;;  %16817 = vst [vmem:[#allocation67_spill] sm:$0xff] %v13337_v32  ;;  %16819 = vst [vmem:[#allocation69_spill] sm:$0xff] %v13345_v24  ;;  %v1139_v5 = vand.u32 15, %v935_v16  ;;  %v13361_v16 = vsel %vm1349_vm6, 1.0, %v16793_v20 }
 0x10c   : > { %16821 = vst [vmem:[#allocation71_spill] sm:$0xff] %v13361_v16  ;;  %v1613_v46 = vmul.f32 %v13361_v16, %v13363_v22 }
 0x10d   : > { %11569 = vmatmul.mubr.msk.f32.gmra.mxu0 %vm1515_vm3, %v13331_v15  ;;  %vm1351_vm7 = vcmp.gt.s32.totalorder %v1139_v5, 0  ;;  %v13384_v5 = vld [vmem:[#allocation2 + $0xe0] sm:$0xff] }
 0x10e   : > { %11571 = vmatprep.mubr.msk.f32.mxu0 %vm1515_vm3, %v1609_v14  ;;  %11522 = vmatmul.mubr.msk.f32.gmra.mxu1 %vm1515_vm3, %v13345_v24  ;;  %v13358_v14 = vld [vmem:[#allocation2 + $0xd1] sm:$0xff]  ;;  %v13366_v24 = vld [vmem:[#allocation2 + $0xc9] sm:$0xff] }
 0x10f   : > { %11524 = vmatprep.mubr.msk.f32.mxu1 %vm1515_vm3, %v13337_v32  ;;  %16820 = vst [vmem:[#allocation70_spill] sm:$0xff] %v13358_v14  ;;  %16822 = vst [vmem:[#allocation72_spill] sm:$0xff] %v13366_v24  ;;  %v1153_v32 = vand.u32 15, %v937_v37  ;;  %v13382_v37 = vsel %vm1351_vm7, 1.0, %v16793_v20 }
 0x110   : > { %16824 = vst [vmem:[#allocation74_spill] sm:$0xff] %v13382_v37  ;;  %v1615_v10 = vmul.f32 %v13382_v37, %v13384_v5 }
 0x111   : > { %11572 = vmatmul.mubr.msk.f32.gmra.mxu0 %vm1515_vm3, %v13352_v54  ;;  %vm1353_vm8 = vcmp.gt.s32.totalorder %v1153_v32, 0 }
 0x112   : > { %11574 = vmatprep.mubr.msk.f32.mxu0 %vm1515_vm3, %v1611_v34  ;;  %11525 = vmatmul.mubr.msk.f32.gmra.mxu1 %vm1515_vm3, %v13366_v24  ;;  %v13379_v34 = vld [vmem:[#allocation2 + $0xe1] sm:$0xff]  ;;  %v13387_v24 = vld [vmem:[#allocation2 + $0xd9] sm:$0xff]  ;;  %v13403_v32 = vsel %vm1353_vm8, 1.0, %v16793_v20 }
 0x113   : > { %11527 = vmatprep.mubr.msk.f32.mxu1 %vm1515_vm3, %v13358_v14  ;;  %16823 = vst [vmem:[#allocation73_spill] sm:$0xff] %v13379_v34  ;;  %16825 = vst [vmem:[#allocation75_spill] sm:$0xff] %v13387_v24  ;;  %v950_v14 = vand.u32 15, %v908_v33  ;;  %v13408_v33 = vld [vmem:[#allocation2 + $0xe9] sm:$0xff] }
 0x114   : > { %16827 = vst [vmem:[#allocation77_spill] sm:$0xff] %v13403_v32  ;;  %16828 = vst [vmem:[#allocation78_spill] sm:$0xff] %v13408_v33 }
 0x115   : > { %11575 = vmatmul.mubr.msk.f32.gmra.mxu0 %vm1515_vm3, %v13373_v58  ;;  %vm1420_vm9 = vcmp.lt.s32.totalorder %v950_v14, 15  ;;  %v2304_v14 = vld [vmem:[#allocation2 + $0xa] sm:$0xff] }
 0x116   : > { %11577 = vmatprep.mubr.msk.f32.mxu0 %vm1515_vm3, %v1613_v46  ;;  %11528 = vmatmul.mubr.msk.f32.gmra.mxu1 %vm1515_vm3, %v13387_v24  ;;  %v13400_v46 = vld [vmem:[#allocation2 + $0xf1] sm:$0xff] }
 0x117   : > { %11530 = vmatprep.mubr.msk.f32.mxu1 %vm1515_vm3, %v13379_v34  ;;  %16826 = vst [vmem:[#allocation76_spill] sm:$0xff] %v13400_v46  ;;  %v13405_v24 = vld [vmem:[#allocation2 + $0xf0] sm:$0xff]  ;;  %v964_v34 = vand.u32 15, %v910_v8  ;;  %v13425_v8 = vsel %vm1420_vm9, 1.0, %v16793_v20 }
 0x118   : > { %v1617_v40 = vmul.f32 %v13403_v32, %v13405_v24  ;;  %16830 = vst [vmem:[#allocation80_spill] sm:$0xff] %v13425_v8  ;;  %v2336_v55 = vmul.f32 %v13425_v8, %v2304_v14 }
 0x119   : > { %11578 = vmatmul.mubr.msk.f32.gmra.mxu0 %vm1515_vm3, %v13394_v47  ;;  %vm1422_vm10 = vcmp.lt.s32.totalorder %v964_v34, 15  ;;  %v13447_v34 = vld [vmem:[%s16564_s5 + $0xc] sm:$0x3] }
 0x11a   : > { %11580 = vmatprep.mubr.msk.f32.mxu0 %vm1515_vm3, %v1615_v10  ;;  %11531 = vmatmul.mubr.msk.f32.gmra.mxu1 %vm1515_vm3, %v13408_v33  ;;  %v2303_v10 = vld [vmem:[#allocation2 + $0x2] sm:$0xff]  ;;  %v914_v33 = vadd.s32 56, %v12919_v50 }
 0x11b   : > { %11533 = vmatprep.mubr.msk.f32.mxu1 %vm1515_vm3, %v13400_v46  ;;  %v978_v46 = vand.u32 15, %v912_v28  ;;  %v13442_v28 = vld [vmem:[#allocation2 + $0x1a] sm:$0xff] }
 0x11c   : > { %v992_v14 = vand.u32 15, %v914_v33  ;;  %v918_v33 = vadd.s32 88, %v12919_v50 }
 0x11d   : > { %11581 = vmatmul.mubr.msk.f32.gmra.mxu0 %vm1515_vm3, %v13415_v2  ;;  %vm1424_vm11 = vcmp.lt.s32.totalorder %v978_v46, 15  ;;  %v13481_v46 = vld [vmem:[#allocation2 + $0x22] sm:$0xff] }
 0x11e   : > { %11583 = vmatprep.mubr.msk.f32.mxu0 %vm1515_vm3, %v1617_v40  ;;  %11534 = vmatmul.mubr.msk.f32.gmra.mxu1 %vm1515_vm3, %v13422_v45  ;;  %v2757_v40 = vmul.f32 %v12925_v53, %v13002_v52  ;;  %v13440_v45 = vsel %vm1422_vm10, 1.0, %v16793_v20  ;;  %v13450_v52 = vld [vmem:[#allocation2 + $0x12] sm:$0xff]  ;;  %vm1426_vm12 = vcmp.lt.s32.totalorder %v992_v14, 15  ;;  %v13498_v14 = vld [vmem:[#allocation2 + $0x3a] sm:$0xff] }
 0x11f   : > { %11588 = vmatprep.mubr.msk.f32.mxu1 %vm1515_vm3, %v2303_v10  ;;  %16831 = vst [vmem:[#allocation81_spill] sm:$0xff] %v13440_v45  ;;  %v11490_v10 = vpop.f32.mrf.mxu1 }
 0x120   : > { %v13453_v53 = vadd.f32 %v11540_v18, %v11490_v10  ;;  %v2338_v18 = vmul.f32 %v13440_v45, %v13442_v28  ;;  %v13496_v10 = vsel %vm1426_vm12, 1.0, %v16793_v20 }
 0x121   : > { %11584 = vmatmul.mubr.msk.f32.gmra.mxu0 %vm1515_vm3, %v13430_v62  ;;  %16834 = vst [vmem:[#allocation84_spill] sm:$0xff] %v13496_v10 }
 0x122   : > { %11638 = vmatprep.mubr.msk.f32.mxu0 %vm1515_vm3, %v2757_v40  ;;  %11589 = vmatmul.mubr.msk.f32.vlgmr.msra.gmra.mxu1 %vm1515_vm3, %v2336_v55  ;;  %v916_v40 = vadd.s32 72, %v12919_v50  ;;  %16832 = vst [vmem:[#allocation82_spill] sm:$0xff] %v13453_v53  ;;  %v13464_v55 = vld [vmem:[%s16564_s5 + $0xe] sm:$0x3] }
 0x123   : > { %11687 = vmatpush3.msk.msra.mxu1 %vm1750_vm1, %v12950_v6  ;;  %11591 = vmatprep.mubr.msk.f32.mxu1 %vm1515_vm3, %v13450_v52  ;;  %v13474_v6 = vsel %vm1424_vm11, 1.0, %v16793_v20 }
 0x124   : > { %11786 = vmatprep.subr.msk.mxu1 %vm1750_vm1, %v13447_v34  ;;  %16833 = vst [vmem:[#allocation83_spill] sm:$0xff] %v13474_v6 }
 0x125   : > { %11639 = vmatmul.mubr.msk.f32.vlgmr.msra.gmra.mxu0 %vm1515_vm3, %v13027_v0  ;;  %v1006_v0 = vand.u32 15, %v916_v40  ;;  %v13501_v40 = vld [vmem:[#allocation2 + $0x32] sm:$0xff] }
 0x126   : > { %11641 = vmatprep.mubr.msk.f32.mxu0 %vm1515_vm3, %v2759_v11  ;;  %11737 = vmatpush3.msk.msra.mxu0 %vm1750_vm1, %v12976_v21  ;;  %v2761_v11 = vmul.f32 %v13021_v61, %v13080_v57  ;;  %v2340_v21 = vmul.f32 %v13474_v6, %v13476_v12  ;;  %v920_v57 = vadd.s32 104, %v12919_v50 }
 0x127   : > { %11592 = vmatmul.mubr.msk.f32.gmra.mxu1 %vm1515_vm3, %v2338_v18  ;;  %11836 = vmatprep.subr.msk.mxu0 %vm1750_vm1, %v13464_v55  ;;  %vm1428_vm13 = vcmp.lt.s32.totalorder %v1006_v0, 15  ;;  %v1020_v18 = vand.u32 15, %v918_v33  ;;  %v13516_v0 = vld [vmem:[#allocation2 + $0x4a] sm:$0xff]  ;;  %v13519_v33 = vld [vmem:[#allocation2 + $0x42] sm:$0xff] }
 0x128   : > { %11594 = vmatprep.mubr.msk.f32.mxu1 %vm1515_vm3, %v13481_v46  ;;  %v1034_v53 = vand.u32 15, %v920_v57  ;;  %v13537_v57 = vld [vmem:[#allocation2 + $0x52] sm:$0xff] }
 0x129   : > { %11642 = vmatmul.mubr.msk.f32.gmra.mxu0 %vm1515_vm3, %v13066_v31  ;;  %v2763_v31 = vmul.f32 %v13060_v27, %v13119_v59  ;;  %vm1430_vm14 = vcmp.lt.s32.totalorder %v1020_v18, 15  ;;  %v13534_v18 = vld [vmem:[#allocation2 + $0x5a] sm:$0xff]  ;;  %v13555_v27 = vld [vmem:[#allocation2 + $0x62] sm:$0xff] }
 0x12a   : > { %11644 = vmatprep.mubr.msk.f32.mxu0 %vm1515_vm3, %v2761_v11  ;;  %v2342_v11 = vmul.f32 %v13496_v10, %v13498_v14  ;;  %vm1432_vm15 = vcmp.lt.s32.totalorder %v1034_v53, 15  ;;  %v13552_v53 = vld [vmem:[#allocation2 + $0x6a] sm:$0xff] }
 0x12b   : > { %11595 = vmatmul.mubr.msk.f32.gmra.mxu1 %vm1515_vm3, %v2340_v21  ;;  %v13514_v21 = vsel %vm1428_vm13, 1.0, %v16793_v20 }
 0x12c   : > { %11597 = vmatprep.mubr.msk.f32.mxu1 %vm1515_vm3, %v13501_v40  ;;  %16835 = vst [vmem:[#allocation85_spill] sm:$0xff] %v13514_v21  ;;  %v2344_v59 = vmul.f32 %v13514_v21, %v13516_v0 }
 0x12d   : > { %11645 = vmatmul.mubr.msk.f32.gmra.mxu0 %vm1515_vm3, %v13105_v17  ;;  %v2765_v17 = vmul.f32 %v13099_v7, %v13157_v1  ;;  %v924_v1 = vadd.s32 136, %v12919_v50 }
 0x12e   : > { %11647 = vmatprep.mubr.msk.f32.mxu0 %vm1515_vm3, %v2763_v31  ;;  %v922_v31 = vadd.s32 120, %v12919_v50 }
 0x12f   : > { %11598 = vmatmul.mubr.msk.f32.gmra.mxu1 %vm1515_vm3, %v2342_v11  ;;  %v13532_v11 = vsel %vm1430_vm14, 1.0, %v16793_v20  ;;  %v1062_v61 = vand.u32 15, %v924_v1  ;;  %v13570_v1 = vld [vmem:[#allocation2 + $0x72] sm:$0xff] }
 0x130   : > { %11600 = vmatprep.mubr.msk.f32.mxu1 %vm1515_vm3, %v13519_v33  ;;  %16836 = vst [vmem:[#allocation86_spill] sm:$0xff] %v13532_v11  ;;  %v1048_v7 = vand.u32 15, %v922_v31 }
 0x131   : > { %11648 = vmatmul.mubr.msk.f32.gmra.mxu0 %vm1515_vm3, %v13144_v49  ;;  %v2767_v49 = vmul.f32 %v13138_v9, %v13197_v38  ;;  %v926_v38 = vadd.s32 152, %v12919_v50  ;;  %vm1436_vm5 = vcmp.lt.s32.totalorder %v1062_v61, 15  ;;  %v928_v9 = vadd.s32 168, %v12919_v50 }
 0x132   : > { %11650 = vmatprep.mubr.msk.f32.mxu0 %vm1515_vm3, %v2765_v17  ;;  %v2346_v17 = vmul.f32 %v13532_v11, %v13534_v18  ;;  %vm1434_vm4 = vcmp.lt.s32.totalorder %v1048_v7, 15  ;;  %v13586_v61 = vsel %vm1436_vm5, 1.0, %v16793_v20 }
 0x133   : > { %11601 = vmatmul.mubr.msk.f32.gmra.mxu1 %vm1515_vm3, %v2344_v59  ;;  %v13550_v59 = vsel %vm1432_vm15, 1.0, %v16793_v20  ;;  %v13578_v7 = vsel %vm1434_vm4, 1.0, %v16793_v20  ;;  %16839 = vst [vmem:[#allocation89_spill] sm:$0xff] %v13586_v61 }
 0x134   : > { %11603 = vmatprep.mubr.msk.f32.mxu1 %vm1515_vm3, %v13537_v57  ;;  %16837 = vst [vmem:[#allocation87_spill] sm:$0xff] %v13550_v59  ;;  %v2348_v31 = vmul.f32 %v13550_v59, %v13552_v53  ;;  %16838 = vst [vmem:[#allocation88_spill] sm:$0xff] %v13578_v7 }
 0x135   : > { %11651 = vmatmul.mubr.msk.f32.gmra.mxu0 %vm1515_vm3, %v13184_v23  ;;  %v2769_v23 = vmul.f32 %v13178_v35, %v13229_v43 }
 0x136   : > { %11653 = vmatprep.mubr.msk.f32.mxu0 %vm1515_vm3, %v2767_v49  ;;  %v13567_v49 = vld [vmem:[#allocation2 + $0x7a] sm:$0xff] }
 0x137   : > { %11604 = vmatmul.mubr.msk.f32.gmra.mxu1 %vm1515_vm3, %v2346_v17  ;;  %v1076_v17 = vand.u32 15, %v926_v38  ;;  %v2350_v43 = vmul.f32 %v13578_v7, %v13567_v49  ;;  %v13588_v38 = vld [vmem:[#allocation2 + $0x8a] sm:$0xff] }
 0x138   : > { %11606 = vmatprep.mubr.msk.f32.mxu1 %vm1515_vm3, %v13555_v27 }
 0x139   : > { %11654 = vmatmul.mubr.msk.f32.gmra.mxu0 %vm1515_vm3, %v13220_v48  ;;  %v2771_v48 = vmul.f32 %v13217_v25, %v13268_v26  ;;  %vm1438_vm6 = vcmp.lt.s32.totalorder %v1076_v17, 15  ;;  %v1090_v26 = vand.u32 15, %v928_v9  ;;  %v13606_v9 = vld [vmem:[#allocation2 + $0x9a] sm:$0xff]  ;;  %v13609_v17 = vld [vmem:[#allocation2 + $0x92] sm:$0xff] }
 0x13a   : > { %11656 = vmatprep.mubr.msk.f32.mxu0 %vm1515_vm3, %v2769_v23  ;;  %v13591_v23 = vld [vmem:[#allocation2 + $0x82] sm:$0xff] }
 0x13b   : > { %11607 = vmatmul.mubr.msk.f32.gmra.mxu1 %vm1515_vm3, %v2348_v31  ;;  %v930_v31 = vadd.s32 184, %v12919_v50  ;;  %vm1440_vm7 = vcmp.lt.s32.totalorder %v1090_v26, 15  ;;  %v13624_v26 = vld [vmem:[#allocation2 + $0xaa] sm:$0xff] }
 0x13c   : > { %11609 = vmatprep.mubr.msk.f32.mxu1 %vm1515_vm3, %v13570_v1 }
 0x13d   : > { %11657 = vmatmul.mubr.msk.f32.gmra.mxu0 %vm1515_vm3, %v13252_v42  ;;  %v2773_v42 = vmul.f32 %v13266_v60, %v13275_v29  ;;  %v1104_v25 = vand.u32 15, %v930_v31  ;;  %v932_v29 = vadd.s32 200, %v12919_v50  ;;  %v13627_v31 = vld [vmem:[#allocation2 + $0xa2] sm:$0xff] }
 0x13e   : > { %11659 = vmatprep.mubr.msk.f32.mxu0 %vm1515_vm3, %v2771_v48  ;;  %v2352_v48 = vmul.f32 %v13586_v61, %v13588_v38 }
 0x13f   : > { %11610 = vmatmul.mubr.msk.f32.gmra.mxu1 %vm1515_vm3, %v2350_v43  ;;  %v13604_v43 = vsel %vm1438_vm6, 1.0, %v16793_v20  ;;  %vm1442_vm8 = vcmp.lt.s32.totalorder %v1104_v25, 15  ;;  %v1118_v60 = vand.u32 15, %v932_v29  ;;  %v13642_v25 = vld [vmem:[#allocation2 + $0xba] sm:$0xff]  ;;  %v13645_v29 = vld [vmem:[#allocation2 + $0xb2] sm:$0xff] }
 0x140   : > { %11612 = vmatprep.mubr.msk.f32.mxu1 %vm1515_vm3, %v13591_v23  ;;  %16840 = vst [vmem:[#allocation90_spill] sm:$0xff] %v13604_v43 }
 0x141   : > { %11660 = vmatmul.mubr.msk.f32.gmra.mxu0 %vm1515_vm3, %v13289_v44  ;;  %v2775_v44 = vmul.f32 %v13273_v39, %v13300_v63  ;;  %v934_v63 = vadd.s32 216, %v12919_v50  ;;  %vm1444_vm9 = vcmp.lt.s32.totalorder %v1118_v60, 15  ;;  %v13660_v60 = vld [vmem:[#allocation2 + $0xca] sm:$0xff] }
 0x142   : > { %11662 = vmatprep.mubr.msk.f32.mxu0 %vm1515_vm3, %v2773_v42  ;;  %v2354_v42 = vmul.f32 %v13604_v43, %v13606_v9 }
 0x143   : > { %11613 = vmatmul.mubr.msk.f32.gmra.mxu1 %vm1515_vm3, %v2352_v48  ;;  %v13622_v48 = vsel %vm1440_vm7, 1.0, %v16793_v20  ;;  %v1132_v39 = vand.u32 15, %v934_v63  ;;  %v13663_v63 = vld [vmem:[#allocation2 + $0xc2] sm:$0xff] }
 0x144   : > { %11615 = vmatprep.mubr.msk.f32.mxu1 %vm1515_vm3, %v13609_v17  ;;  %16841 = vst [vmem:[#allocation91_spill] sm:$0xff] %v13622_v48 }
 0x145   : > { %11663 = vmatmul.mubr.msk.f32.gmra.mxu0 %vm1515_vm3, %v13310_v41  ;;  %v2777_v41 = vmul.f32 %v13298_v36, %v13321_v4  ;;  %v936_v4 = vadd.s32 232, %v12919_v50  ;;  %vm1446_vm10 = vcmp.lt.s32.totalorder %v1132_v39, 15  ;;  %v13678_v39 = vld [vmem:[#allocation2 + $0xda] sm:$0xff] }
 0x146   : > { %11665 = vmatprep.mubr.msk.f32.mxu0 %vm1515_vm3, %v2775_v44  ;;  %v2356_v44 = vmul.f32 %v13622_v48, %v13624_v26 }
 0x147   : > { %11616 = vmatmul.mubr.msk.f32.gmra.mxu1 %vm1515_vm3, %v2354_v42  ;;  %v13640_v42 = vsel %vm1442_vm8, 1.0, %v16793_v20  ;;  %v1146_v36 = vand.u32 15, %v936_v4 }
 0x148   : > { %11618 = vmatprep.mubr.msk.f32.mxu1 %vm1515_vm3, %v13627_v31  ;;  %16842 = vst [vmem:[#allocation92_spill] sm:$0xff] %v13640_v42 }
 0x149   : > { %11666 = vmatmul.mubr.msk.f32.gmra.mxu0 %vm1515_vm3, %v13331_v15  ;;  %v2779_v15 = vmul.f32 %v13319_v13, %v13342_v19  ;;  %v938_v19 = vadd.s32 248, %v12919_v50  ;;  %v13681_v50 = vld [vmem:[#allocation2 + $0xd2] sm:$0xff]  ;;  %vm1448_vm11 = vcmp.lt.s32.totalorder %v1146_v36, 15  ;;  %v13698_v36 = vld [vmem:[#allocation2 + $0xe2] sm:$0xff] }
 0x14a   : > { %11668 = vmatprep.mubr.msk.f32.mxu0 %vm1515_vm3, %v2777_v41  ;;  %v2358_v41 = vmul.f32 %v13640_v42, %v13642_v25 }
 0x14b   : > { %11619 = vmatmul.mubr.msk.f32.gmra.mxu1 %vm1515_vm3, %v2356_v44  ;;  %v13658_v44 = vsel %vm1444_vm9, 1.0, %v16793_v20  ;;  %v1160_v4 = vand.u32 15, %v938_v19  ;;  %v13708_v19 = vld [vmem:[#allocation2 + $0x100] sm:$0xff] }
 0x14c   : > { %11621 = vmatprep.mubr.msk.f32.mxu1 %vm1515_vm3, %v13645_v29  ;;  %16843 = vst [vmem:[#allocation93_spill] sm:$0xff] %v13658_v44 }
 0x14d   : > { %11669 = vmatmul.mubr.msk.f32.gmra.mxu0 %vm1515_vm3, %v13352_v54  ;;  %v2781_v54 = vmul.f32 %v13340_v51, %v13363_v22  ;;  %vm1450_vm12 = vcmp.lt.s32.totalorder %v1160_v4, 15  ;;  %v13714_v4 = vld [vmem:[#allocation2 + $0xfa] sm:$0xff] }
 0x14e   : > { %11671 = vmatprep.mubr.msk.f32.mxu0 %vm1515_vm3, %v2779_v15  ;;  %v2360_v15 = vmul.f32 %v13658_v44, %v13660_v60 }
 0x14f   : > { %11622 = vmatmul.mubr.msk.f32.gmra.mxu1 %vm1515_vm3, %v2358_v41  ;;  %v13676_v41 = vsel %vm1446_vm10, 1.0, %v16793_v20 }
 0x150   : > { %11624 = vmatprep.mubr.msk.f32.mxu1 %vm1515_vm3, %v13663_v63  ;;  %16844 = vst [vmem:[#allocation94_spill] sm:$0xff] %v13676_v41  ;;  %v2362_v22 = vmul.f32 %v13676_v41, %v13678_v39 }
 0x151   : > { %11672 = vmatmul.mubr.msk.f32.gmra.mxu0 %vm1515_vm3, %v13373_v58  ;;  %v2783_v58 = vmul.f32 %v13361_v16, %v13384_v5 }
 0x152   : > { %11674 = vmatprep.mubr.msk.f32.mxu0 %vm1515_vm3, %v2781_v54  ;;  %v13693_v54 = vsel %vm1448_vm11, 1.0, %v16793_v20 }
 0x153   : > { %11625 = vmatmul.mubr.msk.f32.gmra.mxu1 %vm1515_vm3, %v2360_v15  ;;  %16845 = vst [vmem:[#allocation95_spill] sm:$0xff] %v13693_v54  ;;  %v13695_v15 = vld [vmem:[#allocation2 + $0xea] sm:$0xff] }
 0x154   : > { %11627 = vmatprep.mubr.msk.f32.mxu1 %vm1515_vm3, %v13681_v50  ;;  %v2364_v5 = vmul.f32 %v13693_v54, %v13695_v15 }
 0x155   : > { %11675 = vmatmul.mubr.msk.f32.gmra.mxu0 %vm1515_vm3, %v13394_v47  ;;  %v2785_v47 = vmul.f32 %v13382_v37, %v13405_v24  ;;  %v2787_v24 = vmul.f32 %v13403_v32, %v13708_v19 }
 0x156   : > { %11677 = vmatprep.mubr.msk.f32.mxu0 %vm1515_vm3, %v2783_v58  ;;  %v13712_v58 = vsel %vm1450_vm12, 1.0, %v16793_v20 }
 0x157   : > { %11628 = vmatmul.mubr.msk.f32.gmra.mxu1 %vm1515_vm3, %v2362_v22  ;;  %16846 = vst [vmem:[#allocation96_spill] sm:$0xff] %v13712_v58  ;;  %v13717_v22 = vld [vmem:[#allocation2 + $0xf2] sm:$0xff] }
 0x158   : > { %11630 = vmatprep.mubr.msk.f32.mxu1 %vm1515_vm3, %v13698_v36 }
 0x159   : > { %11678 = vmatmul.mubr.msk.f32.gmra.mxu0 %vm1515_vm3, %v13415_v2  ;;  %v2366_v2 = vmul.f32 %v13712_v58, %v13714_v4 }
 0x15a   : > { %11680 = vmatprep.mubr.msk.f32.mxu0 %vm1515_vm3, %v2785_v47  ;;  %v13731_v47 = vld [vmem:[#allocation2 + $0x108] sm:$0xff] }
 0x15b   : > { %11631 = vmatmul.mubr.msk.f32.gmra.mxu1 %vm1515_vm3, %v2364_v5  ;;  %v3570_v5 = vmul.f32 %v13425_v8, %v13442_v28  ;;  %v3572_v28 = vmul.f32 %v13440_v45, %v13476_v12  ;;  %v16852_v12 = vld [vmem:[#allocation46_spill] sm:$0xff] }
 0x15c   : > { %11633 = vmatprep.mubr.msk.f32.mxu1 %vm1515_vm3, %v13717_v22 }
 0x15d   : > { %11681 = vmatmul.mubr.msk.f32.gmra.mxu0 %vm1515_vm3, %v13430_v62  ;;  %v13740_v62 = vld [vmem:[%s16564_s5 + $0x10] sm:$0x3] }
 0x15e   : > { %11683 = vmatprep.mubr.msk.f32.mxu0 %vm1515_vm3, %v2787_v24  ;;  %v16853_v24 = vld [vmem:[#allocation48_spill] sm:$0xff] }
 0x15f   : > { %11634 = vmatmul.mubr.msk.f32.gmra.mxu1 %vm1515_vm3, %v2366_v2  ;;  %v16855_v2 = vld [vmem:[#allocation51_spill] sm:$0xff] }
 0x160   : > { %11688 = vmatprep.mubr.msk.f32.mxu1 %vm1515_vm3, %v13000_v3  ;;  %v16847_v3 = vld [vmem:[#allocation39_spill] sm:$0xff] }
 0x161   : > { %11684 = vmatmul.mubr.msk.f32.gmra.mxu0 %vm1515_vm3, %v13731_v47 }
 0x162   : > { %11738 = vmatprep.mubr.msk.f32.mxu0 %vm1515_vm3, %v13450_v52  ;;  %v16850_v52 = vld [vmem:[#allocation43_spill] sm:$0xff] }
 0x163   : > { %11689 = vmatmul.mubr.msk.f32.vlgmr.msra.gmra.mxu1 %vm1515_vm3, %v13009_v56  ;;  %v16848_v56 = vld [vmem:[#allocation40_spill] sm:$0xff] }
 0x164   : > { %11787 = vmatpush3.msk.msra.mxu1 %vm1750_vm1, %v13447_v34  ;;  %11691 = vmatprep.mubr.msk.f32.mxu1 %vm1515_vm3, %v16847_v3  ;;  %v16849_v34 = vld [vmem:[#allocation42_spill] sm:$0xff]  ;;  %v16859_v3 = vld [vmem:[#allocation57_spill] sm:$0xff] }
 0x165   : > { %11739 = vmatmul.mubr.msk.f32.vlgmr.msra.gmra.mxu0 %vm1515_vm3, %v3570_v5  ;;  %11886 = vmatprep.subr.msk.mxu1 %vm1750_vm1, %v13740_v62  ;;  %v16857_v5 = vld [vmem:[#allocation54_spill] sm:$0xff] }
 0x166   : > { %11741 = vmatprep.mubr.msk.f32.mxu0 %vm1515_vm3, %v13481_v46  ;;  %11837 = vmatpush3.msk.msra.mxu0 %vm1750_vm1, %v13464_v55  ;;  %v3574_v55 = vmul.f32 %v13474_v6, %v13498_v14  ;;  %v16851_v46 = vld [vmem:[#allocation45_spill] sm:$0xff] }
 0x167   : > { %11692 = vmatmul.mubr.msk.f32.gmra.mxu1 %vm1515_vm3, %v16848_v56  ;;  %v16854_v14 = vld [vmem:[#allocation49_spill] sm:$0xff]  ;;  %v16861_v56 = vld [vmem:[#allocation56_spill] sm:$0xff] }
 0x168   : > { %11694 = vmatprep.mubr.msk.f32.mxu1 %vm1515_vm3, %v16849_v34  ;;  %v16865_v34 = vld [vmem:[#allocation64_spill] sm:$0xff] }
 0x169   : > { %11742 = vmatmul.mubr.msk.f32.gmra.mxu0 %vm1515_vm3, %v3572_v28  ;;  %v16863_v28 = vld [vmem:[#allocation61_spill] sm:$0xff] }
 0x16a   : > { %11744 = vmatprep.mubr.msk.f32.mxu0 %vm1515_vm3, %v13501_v40  ;;  %v3576_v40 = vmul.f32 %v13496_v10, %v13516_v0  ;;  %v16856_v0 = vld [vmem:[#allocation52_spill] sm:$0xff] }
 0x16b   : > { %11695 = vmatmul.mubr.msk.f32.gmra.mxu1 %vm1515_vm3, %v16850_v52  ;;  %v16867_v52 = vld [vmem:[#allocation67_spill] sm:$0xff] }
 0x16c   : > { %11697 = vmatprep.mubr.msk.f32.mxu1 %vm1515_vm3, %v16851_v46  ;;  %v16871_v46 = vld [vmem:[#allocation73_spill] sm:$0xff] }
 0x16d   : > { %11745 = vmatmul.mubr.msk.f32.gmra.mxu0 %vm1515_vm3, %v3574_v55  ;;  %v16869_v55 = vld [vmem:[#allocation70_spill] sm:$0xff] }
 0x16e   : > { %11747 = vmatprep.mubr.msk.f32.mxu0 %vm1515_vm3, %v13519_v33  ;;  %v3578_v33 = vmul.f32 %v13514_v21, %v13534_v18  ;;  %v16858_v18 = vld [vmem:[#allocation55_spill] sm:$0xff] }
 0x16f   : > { %11698 = vmatmul.mubr.msk.f32.gmra.mxu1 %vm1515_vm3, %v16852_v12  ;;  %v16873_v12 = vld [vmem:[#allocation76_spill] sm:$0xff] }
 0x170   : > { %11700 = vmatprep.mubr.msk.f32.mxu1 %vm1515_vm3, %v16853_v24  ;;  %v3959_v24 = vld [vmem:[#allocation2 + $0x20] sm:$0xff] }
 0x171   : > { %11748 = vmatmul.mubr.msk.f32.gmra.mxu0 %vm1515_vm3, %v3576_v40  ;;  %v13876_v40 = vld [vmem:[#allocation2 + $0x101] sm:$0xff] }
 0x172   : > { %11750 = vmatprep.mubr.msk.f32.mxu0 %vm1515_vm3, %v13537_v57  ;;  %v3580_v57 = vmul.f32 %v13532_v11, %v13552_v53  ;;  %v16860_v53 = vld [vmem:[#allocation60_spill] sm:$0xff] }
 0x173   : > { %11701 = vmatmul.mubr.msk.f32.gmra.mxu1 %vm1515_vm3, %v16854_v14  ;;  %v13885_v14 = vld [vmem:[#allocation2 + $0x102] sm:$0xff] }
 0x174   : > { %11703 = vmatprep.mubr.msk.f32.mxu1 %vm1515_vm3, %v16855_v2 }
 0x175   : > { %11751 = vmatmul.mubr.msk.f32.gmra.mxu0 %vm1515_vm3, %v3578_v33  ;;  %v16875_v33 = vld [vmem:[#allocation36_spill] sm:$0xff] }
 0x176   : > { %11753 = vmatprep.mubr.msk.f32.mxu0 %vm1515_vm3, %v13555_v27  ;;  %v3582_v27 = vmul.f32 %v13550_v59, %v13567_v49  ;;  %v16862_v49 = vld [vmem:[#allocation63_spill] sm:$0xff]  ;;  %v3991_v2 = vmul.f32 %v16875_v33, %v3959_v24 }
 0x177   : > { %11704 = vmatmul.mubr.msk.f32.gmra.mxu1 %vm1515_vm3, %v16856_v0  ;;  %v3961_v0 = vld [vmem:[#allocation2 + $0x30] sm:$0xff] }
 0x178   : > { %11706 = vmatprep.mubr.msk.f32.mxu1 %vm1515_vm3, %v16857_v5  ;;  %v3960_v5 = vld [vmem:[#allocation2 + $0x28] sm:$0xff] }
 0x179   : > { %11754 = vmatmul.mubr.msk.f32.gmra.mxu0 %vm1515_vm3, %v3580_v57  ;;  %v4381_v57 = vld [vmem:[#allocation2 + $0x21] sm:$0xff] }
 0x17a   : > { %11756 = vmatprep.mubr.msk.f32.mxu0 %vm1515_vm3, %v13570_v1  ;;  %v3584_v1 = vmul.f32 %v13578_v7, %v13588_v38  ;;  %v16864_v38 = vld [vmem:[#allocation66_spill] sm:$0xff] }
 0x17b   : > { %11707 = vmatmul.mubr.msk.f32.gmra.mxu1 %vm1515_vm3, %v16858_v18  ;;  %v3993_v18 = vmul.f32 %v12987_v30, %v3961_v0 }
 0x17c   : > { %11709 = vmatprep.mubr.msk.f32.mxu1 %vm1515_vm3, %v16859_v3  ;;  %v4382_v3 = vld [vmem:[#allocation2 + $0x29] sm:$0xff] }
 0x17d   : > { %11757 = vmatmul.mubr.msk.f32.gmra.mxu0 %vm1515_vm3, %v3582_v27  ;;  %v3963_v27 = vld [vmem:[#allocation2 + $0x40] sm:$0xff] }
 0x17e   : > { %11759 = vmatprep.mubr.msk.f32.mxu0 %vm1515_vm3, %v13591_v23  ;;  %v3586_v23 = vmul.f32 %v13586_v61, %v13606_v9  ;;  %v16866_v9 = vld [vmem:[#allocation69_spill] sm:$0xff] }
 0x17f   : > { %11710 = vmatmul.mubr.msk.f32.gmra.mxu1 %vm1515_vm3, %v16860_v53  ;;  %v13904_v53 = vpop.f32.mrf.mxu1 }
 0x180   : > { %11712 = vmatprep.mubr.msk.f32.mxu1 %vm1515_vm3, %v16861_v56  ;;  %v3962_v56 = vld [vmem:[#allocation2 + $0x38] sm:$0xff] }
 0x181   : > { %11760 = vmatmul.mubr.msk.f32.gmra.mxu0 %vm1515_vm3, %v3584_v1  ;;  %v4383_v1 = vld [vmem:[#allocation2 + $0x31] sm:$0xff] }
 0x182   : > { %11762 = vmatprep.mubr.msk.f32.mxu0 %vm1515_vm3, %v13609_v17  ;;  %v3588_v17 = vmul.f32 %v13604_v43, %v13624_v26  ;;  %v16868_v26 = vld [vmem:[#allocation72_spill] sm:$0xff] }
 0x183   : > { %11713 = vmatmul.mubr.msk.f32.gmra.mxu1 %vm1515_vm3, %v16862_v49  ;;  %v16876_v49 = vld [vmem:[#allocation38_spill] sm:$0xff] }
 0x184   : > { %11715 = vmatprep.mubr.msk.f32.mxu1 %vm1515_vm3, %v16863_v28  ;;  %v13909_v28 = vpop.f32.mrf.mxu0 }
 0x185   : > { %11763 = vmatmul.mubr.msk.f32.gmra.mxu0 %vm1515_vm3, %v3586_v23  ;;  %v3995_v23 = vmul.f32 %v16876_v49, %v3963_v27 }
 0x186   : > { %11765 = vmatprep.mubr.msk.f32.mxu0 %vm1515_vm3, %v13627_v31  ;;  %v3590_v31 = vmul.f32 %v13622_v48, %v13642_v25  ;;  %v16870_v25 = vld [vmem:[#allocation75_spill] sm:$0xff] }
 0x187   : > { %11716 = vmatmul.mubr.msk.f32.gmra.mxu1 %vm1515_vm3, %v16864_v38 }
 0x188   : > { %11718 = vmatprep.mubr.msk.f32.mxu1 %vm1515_vm3, %v16865_v34 }
 0x189   : > { %11766 = vmatmul.mubr.msk.f32.gmra.mxu0 %vm1515_vm3, %v3588_v17  ;;  %v3965_v17 = vld [vmem:[#allocation2 + $0x50] sm:$0xff] }
 0x18a   : > { %11768 = vmatprep.mubr.msk.f32.mxu0 %vm1515_vm3, %v13645_v29  ;;  %v3592_v29 = vmul.f32 %v13640_v42, %v13660_v60  ;;  %v16872_v60 = vld [vmem:[#allocation78_spill] sm:$0xff] }
 0x18b   : > { %11719 = vmatmul.mubr.msk.f32.gmra.mxu1 %vm1515_vm3, %v16866_v9 }
 0x18c   : > { %11721 = vmatprep.mubr.msk.f32.mxu1 %vm1515_vm3, %v16867_v52 }
 0x18d   : > { %11769 = vmatmul.mubr.msk.f32.gmra.mxu0 %vm1515_vm3, %v3590_v31  ;;  %v4385_v31 = vld [vmem:[#allocation2 + $0x41] sm:$0xff] }
 0x18e   : > { %11771 = vmatprep.mubr.msk.f32.mxu0 %vm1515_vm3, %v13663_v63  ;;  %v3594_v63 = vmul.f32 %v13658_v44, %v13678_v39  ;;  %v16874_v39 = vld [vmem:[#allocation79_spill] sm:$0xff] }
 0x18f   : > { %11722 = vmatmul.mubr.msk.f32.gmra.mxu1 %vm1515_vm3, %v16868_v26  ;;  %v3964_v26 = vld [vmem:[#allocation2 + $0x48] sm:$0xff] }
 0x190   : > { %11724 = vmatprep.mubr.msk.f32.mxu1 %vm1515_vm3, %v16869_v55 }
 0x191   : > { %11772 = vmatmul.mubr.msk.f32.gmra.mxu0 %vm1515_vm3, %v3592_v29  ;;  %v16877_v29 = vld [vmem:[#allocation41_spill] sm:$0xff] }
 0x192   : > { %11774 = vmatprep.mubr.msk.f32.mxu0 %vm1515_vm3, %v13681_v50  ;;  %v3596_v50 = vmul.f32 %v13676_v41, %v13695_v15  ;;  %v13882_v15 = vld [vmem:[#allocation2 + $0x10a] sm:$0xff]  ;;  %v3997_v55 = vmul.f32 %v16877_v29, %v3965_v17 }
 0x193   : > { %11725 = vmatmul.mubr.msk.f32.gmra.mxu1 %vm1515_vm3, %v16870_v25  ;;  %v3968_v17 = vld [vmem:[#allocation2 + $0x68] sm:$0xff] }
 0x194   : > { %11727 = vmatprep.mubr.msk.f32.mxu1 %vm1515_vm3, %v16871_v46  ;;  %v3967_v46 = vld [vmem:[#allocation2 + $0x60] sm:$0xff] }
 0x195   : > { %11775 = vmatmul.mubr.msk.f32.gmra.mxu0 %vm1515_vm3, %v3594_v63 }
 0x196   : > { %11777 = vmatprep.mubr.msk.f32.mxu0 %vm1515_vm3, %v13698_v36  ;;  %v3598_v36 = vmul.f32 %v13693_v54, %v13714_v4  ;;  %v3600_v4 = vmul.f32 %v13712_v58, %v13882_v15 }
 0x197   : > { %11728 = vmatmul.mubr.msk.f32.gmra.mxu1 %vm1515_vm3, %v16872_v60 }
 0x198   : > { %11730 = vmatprep.mubr.msk.f32.mxu1 %vm1515_vm3, %v16873_v12 }
 0x199   : > { %11778 = vmatmul.mubr.msk.f32.gmra.mxu0 %vm1515_vm3, %v3596_v50  ;;  %v4386_v50 = vld [vmem:[#allocation2 + $0x49] sm:$0xff] }
 0x19a   : > { %11780 = vmatprep.mubr.msk.f32.mxu0 %vm1515_vm3, %v13717_v22  ;;  %v13889_v22 = vld [vmem:[#allocation2 + $0x109] sm:$0xff] }
 0x19b   : > { %11731 = vmatmul.mubr.msk.f32.gmra.mxu1 %vm1515_vm3, %v16874_v39 }
 0x19c   : > { %11733 = vmatprep.mubr.msk.f32.mxu1 %vm1515_vm3, %v13876_v40 }
 0x19d   : > { %11781 = vmatmul.mubr.msk.f32.gmra.mxu0 %vm1515_vm3, %v3598_v36  ;;  %v4387_v36 = vld [vmem:[#allocation2 + $0x51] sm:$0xff] }
 0x19e   : > { %11783 = vmatprep.mubr.msk.f32.mxu0 %vm1515_vm3, %v13885_v14 }
 0x19f   : > { %11734 = vmatmul.mubr.msk.f32.gmra.mxu1 %vm1515_vm3, %v13889_v22 }
 0x1a0   : > { %11788 = vmatprep.mubr.msk.f32.mxu1 %vm1515_vm3, %v3991_v2  ;;  %v3966_v2 = vld [vmem:[#allocation2 + $0x58] sm:$0xff] }
 0x1a1   : > { %11784 = vmatmul.mubr.msk.f32.gmra.mxu0 %vm1515_vm3, %v3600_v4  ;;  %v16878_v4 = vld [vmem:[#allocation44_spill] sm:$0xff] }
 0x1a2   : > { %11838 = vmatprep.mubr.msk.f32.mxu0 %vm1515_vm3, %v4381_v57  ;;  %v11493_v38 = vpop.f32.mrf.mxu1  ;;  %v3999_v0 = vmul.f32 %v16878_v4, %v3967_v46 }
 0x1a3   : > { %11789 = vmatmul.mubr.msk.f32.vlgmr.msra.gmra.mxu1 %vm1515_vm3, %v3960_v5 }
 0x1a4   : > { %11887 = vmatpush3.msk.msra.mxu1 %vm1750_vm1, %v13740_v62  ;;  %11791 = vmatprep.mubr.msk.f32.mxu1 %vm1515_vm3, %v3993_v18  ;;  %v4384_v62 = vld [vmem:[#allocation2 + $0x39] sm:$0xff]  ;;  %v1830_v34 = vpop.f32.mrf.mxu1  ;;  %v3969_v18 = vld [vmem:[#allocation2 + $0x70] sm:$0xff]  ;;  %vm5314_vm1 = vcmask 261120  }
 0x1a5   : > { %11839 = vmatmul.mubr.msk.f32.vlgmr.msra.gmra.mxu0 %vm1515_vm3, %v4382_v3  ;;  %v11543_v9 = vpop.f32.mrf.mxu0  ;;  %v4388_v3 = vld [vmem:[#allocation2 + $0x59] sm:$0xff]  ;;  %5707 = vst.msk [vmem:[#allocation3] sm:$0xff] %vm5314_vm1, %v16793_v20  ;;  %5708 = vst.msk [vmem:[#allocation3 + $0x8] sm:$0xff] %vm5314_vm1, %v16793_v20 }
 0x1a6   : > { %11841 = vmatprep.mubr.msk.f32.mxu0 %vm1515_vm3, %v4383_v1  ;;  %v13914_v52 = vadd.f32 %v11543_v9, %v11493_v38  ;;  %v11496_v25 = vpop.f32.mrf.mxu1  ;;  %5711 = vst.msk [vmem:[#allocation3 + $0x111] sm:$0xff] %vm5314_vm1, %v16793_v20  ;;  %5712 = vst.msk [vmem:[#allocation3 + $0x119] sm:$0xff] %vm5314_vm1, %v16793_v20 }
 0x1a7   : > { %11792 = vmatmul.mubr.msk.f32.gmra.mxu1 %vm1515_vm3, %v3962_v56  ;;  %v2154_v63 = vpop.f32.mrf.mxu0 }
 0x1a8   : > { %11794 = vmatprep.mubr.msk.f32.mxu1 %vm1515_vm3, %v3995_v23  ;;  %v13919_v60 = vadd.f32 %v2154_v63, %v1830_v34  ;;  %v1840_v12 = vpop.f32.mrf.mxu1  ;;  %v4389_v23 = vld [vmem:[#allocation2 + $0x61] sm:$0xff] }
 0x1a9   : > { %11842 = vmatmul.mubr.msk.f32.gmra.mxu0 %vm1515_vm3, %v4384_v62  ;;  %v11546_v39 = vpop.f32.mrf.mxu0  ;;  %v16879_v62 = vld [vmem:[#allocation47_spill] sm:$0xff] }
 0x1aa   : > { %11844 = vmatprep.mubr.msk.f32.mxu0 %vm1515_vm3, %v4385_v31  ;;  %v13923_v24 = vadd.f32 %v11546_v39, %v11496_v25  ;;  %v11499_v57 = vpop.f32.mrf.mxu1  ;;  %v4001_v34 = vmul.f32 %v16879_v62, %v3969_v18  ;;  %v4390_v25 = vld [vmem:[#allocation2 + $0x69] sm:$0xff]  ;;  %v3970_v39 = vld [vmem:[#allocation2 + $0x78] sm:$0xff] }
 0x1ab   : > { %11795 = vmatmul.mubr.msk.f32.gmra.mxu1 %vm1515_vm3, %v3964_v26  ;;  %v2164_v5 = vpop.f32.mrf.mxu0  ;;  %v3971_v26 = vld [vmem:[#allocation2 + $0x80] sm:$0xff] }
 0x1ac   : > { %11797 = vmatprep.mubr.msk.f32.mxu1 %vm1515_vm3, %v3997_v55  ;;  %v13928_v27 = vadd.f32 %v2164_v5, %v1840_v12  ;;  %v1850_v1 = vpop.f32.mrf.mxu1  ;;  %v4392_v18 = vld [vmem:[#allocation2 + $0x79] sm:$0xff] }
 0x1ad   : > { %11845 = vmatmul.mubr.msk.f32.gmra.mxu0 %vm1515_vm3, %v4386_v50  ;;  %v11549_v56 = vpop.f32.mrf.mxu0  ;;  %v4391_v50 = vld [vmem:[#allocation2 + $0x71] sm:$0xff] }
 0x1ae   : > { %11847 = vmatprep.mubr.msk.f32.mxu0 %vm1515_vm3, %v4387_v36  ;;  %v13932_v38 = vadd.f32 %v11549_v56, %v11499_v57  ;;  %v11502_v9 = vpop.f32.mrf.mxu1  ;;  %v4003_v36 = vmul.f32 %v13178_v35, %v3971_v26  ;;  %v3973_v57 = vld [vmem:[#allocation2 + $0x90] sm:$0xff]  ;;  %v4393_v56 = vld [vmem:[#allocation2 + $0x81] sm:$0xff] }
 0x1af   : > { %11798 = vmatmul.mubr.msk.f32.gmra.mxu1 %vm1515_vm3, %v3966_v2  ;;  %v2174_v31 = vpop.f32.mrf.mxu0 }
 0x1b0   : > { %11800 = vmatprep.mubr.msk.f32.mxu1 %vm1515_vm3, %v3999_v0  ;;  %v13937_v55 = vadd.f32 %v2174_v31, %v1850_v1  ;;  %v1860_v63 = vpop.f32.mrf.mxu1 }
 0x1b1   : > { %11848 = vmatmul.mubr.msk.f32.gmra.mxu0 %vm1515_vm3, %v4388_v3  ;;  %v11552_v46 = vpop.f32.mrf.mxu0 }
 0x1b2   : > { %11850 = vmatprep.mubr.msk.f32.mxu0 %vm1515_vm3, %v4389_v23  ;;  %v13941_v12 = vadd.f32 %v11552_v46, %v11502_v9  ;;  %v11505_v2 = vpop.f32.mrf.mxu1  ;;  %v4394_v46 = vld [vmem:[#allocation2 + $0x89] sm:$0xff] }
 0x1b3   : > { %11801 = vmatmul.mubr.msk.f32.gmra.mxu1 %vm1515_vm3, %v3968_v17  ;;  %v2184_v0 = vpop.f32.mrf.mxu0  ;;  %v3972_v17 = vld [vmem:[#allocation2 + $0x88] sm:$0xff] }
 0x1b4   : > { %11803 = vmatprep.mubr.msk.f32.mxu1 %vm1515_vm3, %v4001_v34  ;;  %v13946_v5 = vadd.f32 %v2184_v0, %v1860_v63  ;;  %v1870_v3 = vpop.f32.mrf.mxu1  ;;  %v16880_v34 = vld [vmem:[#allocation53_spill] sm:$0xff] }
 0x1b5   : > { %11851 = vmatmul.mubr.msk.f32.gmra.mxu0 %vm1515_vm3, %v4390_v25  ;;  %v4005_v9 = vmul.f32 %v16880_v34, %v3973_v57  ;;  %v3975_v25 = vld [vmem:[#allocation2 + $0xa0] sm:$0xff]  ;;  %v3974_v0 = vld [vmem:[#allocation2 + $0x98] sm:$0xff] }
 0x1b6   : > { %11853 = vmatprep.mubr.msk.f32.mxu0 %vm1515_vm3, %v4391_v50  ;;  %v11555_v1 = vpop.f32.mrf.mxu0  ;;  %v16881_v57 = vld [vmem:[#allocation58_spill] sm:$0xff] }
 0x1b7   : > { %11804 = vmatmul.mubr.msk.f32.gmra.mxu1 %vm1515_vm3, %v3970_v39  ;;  %v13950_v23 = vadd.f32 %v11555_v1, %v11505_v2  ;;  %v11508_v31 = vpop.f32.mrf.mxu1 }
 0x1b8   : > { %11806 = vmatprep.mubr.msk.f32.mxu1 %vm1515_vm3, %v4003_v36  ;;  %v2194_v26 = vpop.f32.mrf.mxu0  ;;  %v4395_v36 = vld [vmem:[#allocation2 + $0x91] sm:$0xff] }
 0x1b9   : > { %11854 = vmatmul.mubr.msk.f32.gmra.mxu0 %vm1515_vm3, %v4392_v18  ;;  %v13955_v63 = vadd.f32 %v2194_v26, %v1870_v3  ;;  %v1880_v50 = vpop.f32.mrf.mxu1  ;;  %v4007_v18 = vmul.f32 %v16881_v57, %v3975_v25  ;;  %v3977_v3 = vld [vmem:[#allocation2 + $0xb0] sm:$0xff]  ;;  %v3976_v25 = vld [vmem:[#allocation2 + $0xa8] sm:$0xff] }
 0x1ba   : > { %11856 = vmatprep.mubr.msk.f32.mxu0 %vm1515_vm3, %v4393_v56 }
 0x1bb   : > { %11807 = vmatmul.mubr.msk.f32.gmra.mxu1 %vm1515_vm3, %v3972_v17  ;;  %v11558_v39 = vpop.f32.mrf.mxu0 }
 0x1bc   : > { %11809 = vmatprep.mubr.msk.f32.mxu1 %vm1515_vm3, %v4005_v9  ;;  %v13959_v2 = vadd.f32 %v11558_v39, %v11508_v31  ;;  %v4396_v9 = vld [vmem:[#allocation2 + $0x99] sm:$0xff]  ;;  %v4397_v31 = vld [vmem:[#allocation2 + $0xa1] sm:$0xff] }
 0x1bd   : > { %11857 = vmatmul.mubr.msk.f32.gmra.mxu0 %vm1515_vm3, %v4394_v46  ;;  %v11511_v1 = vpop.f32.mrf.mxu1  ;;  %v2204_v56 = vpop.f32.mrf.mxu0 }
 0x1be   : > { %11859 = vmatprep.mubr.msk.f32.mxu0 %vm1515_vm3, %v4395_v36  ;;  %v13964_v17 = vadd.f32 %v2204_v56, %v1880_v50  ;;  %v16882_v36 = vld [vmem:[#allocation59_spill] sm:$0xff]  ;;  %v3979_v50 = vld [vmem:[#allocation2 + $0xc0] sm:$0xff] }
 0x1bf   : > { %11810 = vmatmul.mubr.msk.f32.gmra.mxu1 %vm1515_vm3, %v3974_v0  ;;  %v1890_v26 = vpop.f32.mrf.mxu1  ;;  %v4009_v57 = vmul.f32 %v16882_v36, %v3977_v3  ;;  %v3978_v3 = vld [vmem:[#allocation2 + $0xb8] sm:$0xff] }
 0x1c0   : > { %11812 = vmatprep.mubr.msk.f32.mxu1 %vm1515_vm3, %v4007_v18  ;;  %v11561_v46 = vpop.f32.mrf.mxu0  ;;  %v4398_v18 = vld [vmem:[#allocation2 + $0xa9] sm:$0xff] }
 0x1c1   : > { %11860 = vmatmul.mubr.msk.f32.gmra.mxu0 %vm1515_vm3, %v4396_v9  ;;  %v13968_v39 = vadd.f32 %v11561_v46, %v11511_v1  ;;  %v4399_v1 = vld [vmem:[#allocation2 + $0xb1] sm:$0xff] }
 0x1c2   : > { %11862 = vmatprep.mubr.msk.f32.mxu0 %vm1515_vm3, %v4397_v31  ;;  %v11514_v34 = vpop.f32.mrf.mxu1  ;;  %v2214_v0 = vpop.f32.mrf.mxu0  ;;  %v16883_v31 = vld [vmem:[#allocation62_spill] sm:$0xff] }
 0x1c3   : > { %11813 = vmatmul.mubr.msk.f32.gmra.mxu1 %vm1515_vm3, %v3976_v25  ;;  %v13973_v56 = vadd.f32 %v2214_v0, %v1890_v26  ;;  %v4011_v36 = vmul.f32 %v16883_v31, %v3979_v50  ;;  %v4400_v26 = vld [vmem:[#allocation2 + $0xb9] sm:$0xff]  ;;  %v3980_v50 = vld [vmem:[#allocation2 + $0xc8] sm:$0xff] }
 0x1c4   : > { %11815 = vmatprep.mubr.msk.f32.mxu1 %vm1515_vm3, %v4009_v57  ;;  %v13976_v35 = vpop.f32.mrf.mxu1  ;;  %v3981_v57 = vld [vmem:[#allocation2 + $0xd0] sm:$0xff] }
 0x1c5   : > { %v11564_v9 = vpop.f32.mrf.mxu0  ;;  %11863 = vmatmul.mubr.msk.f32.gmra.mxu0 %vm1515_vm3, %v4398_v18 }
 0x1c6   : > { %v13979_v46 = vadd.f32 %v11564_v9, %v11514_v34  ;;  %11865 = vmatprep.mubr.msk.f32.mxu0 %vm1515_vm3, %v4399_v1  ;;  %v11517_v25 = vpop.f32.mrf.mxu1  ;;  %v4401_v34 = vld [vmem:[#allocation2 + $0xc1] sm:$0xff]  ;;  %v4013_v1 = vmul.f32 %v13319_v13, %v3981_v57  ;;  %v3982_v57 = vld [vmem:[#allocation2 + $0xd8] sm:$0xff] }
 0x1c7   : > { %v13983_v62 = vpop.f32.mrf.mxu0  ;;  %11816 = vmatmul.mubr.msk.f32.gmra.mxu1 %vm1515_vm3, %v3978_v3  ;;  %v4402_v3 = vld [vmem:[#allocation2 + $0xc9] sm:$0xff] }
 0x1c8   : > { %11818 = vmatprep.mubr.msk.f32.mxu1 %vm1515_vm3, %v4011_v36  ;;  %v13987_v0 = vpop.f32.mrf.mxu1  ;;  %v3983_v36 = vld [vmem:[#allocation2 + $0xe0] sm:$0xff] }
 0x1c9   : > { %v11567_v18 = vpop.f32.mrf.mxu0  ;;  %11866 = vmatmul.mubr.msk.f32.gmra.mxu0 %vm1515_vm3, %v4400_v26 }
 0x1ca   : > { %v13990_v9 = vadd.f32 %v11567_v18, %v11517_v25  ;;  %11868 = vmatprep.mubr.msk.f32.mxu0 %vm1515_vm3, %v4401_v34  ;;  %v11520_v31 = vpop.f32.mrf.mxu1  ;;  %v4403_v25 = vld [vmem:[#allocation2 + $0xd1] sm:$0xff]  ;;  %v4015_v34 = vmul.f32 %v13340_v51, %v3983_v36  ;;  %v3984_v36 = vld [vmem:[#allocation2 + $0xe8] sm:$0xff] }
 0x1cb   : > { %v13994_v4 = vpop.f32.mrf.mxu0  ;;  %11819 = vmatmul.mubr.msk.f32.gmra.mxu1 %vm1515_vm3, %v3980_v50  ;;  %v3985_v50 = vld [vmem:[#allocation2 + $0xf0] sm:$0xff] }
 0x1cc   : > { %11821 = vmatprep.mubr.msk.f32.mxu1 %vm1515_vm3, %v4013_v1  ;;  %v13998_v29 = vpop.f32.mrf.mxu1  ;;  %v4404_v1 = vld [vmem:[#allocation2 + $0xd9] sm:$0xff] }
 0x1cd   : > { %v11570_v26 = vpop.f32.mrf.mxu0  ;;  %11869 = vmatmul.mubr.msk.f32.gmra.mxu0 %vm1515_vm3, %v4402_v3 }
 0x1ce   : > { %v14001_v18 = vadd.f32 %v11570_v26, %v11520_v31  ;;  %11871 = vmatprep.mubr.msk.f32.mxu0 %vm1515_vm3, %v4403_v25  ;;  %v11523_v13 = vpop.f32.mrf.mxu1  ;;  %v4405_v31 = vld [vmem:[#allocation2 + $0xe1] sm:$0xff]  ;;  %v4017_v25 = vmul.f32 %v13361_v16, %v3985_v50  ;;  %v4019_v50 = vmul.f32 %v13382_v37, %v13708_v19 }
 0x1cf   : > { %v14005_v49 = vpop.f32.mrf.mxu0  ;;  %11822 = vmatmul.mubr.msk.f32.gmra.mxu1 %vm1515_vm3, %v3982_v57  ;;  %v4406_v57 = vld [vmem:[#allocation2 + $0xe9] sm:$0xff] }
 0x1d0   : > { %11824 = vmatprep.mubr.msk.f32.mxu1 %vm1515_vm3, %v4015_v34  ;;  %v14009_v30 = vpop.f32.mrf.mxu1 }
 0x1d1   : > { %16884 = vst [vmem:[#allocation39_spill] sm:$0xff] %v14009_v30  ;;  %v11573_v3 = vpop.f32.mrf.mxu0  ;;  %11872 = vmatmul.mubr.msk.f32.gmra.mxu0 %vm1515_vm3, %v4404_v1 }
 0x1d2   : > { %v14012_v26 = vadd.f32 %v11573_v3, %v11523_v13  ;;  %11874 = vmatprep.mubr.msk.f32.mxu0 %vm1515_vm3, %v4405_v31  ;;  %v11526_v51 = vpop.f32.mrf.mxu1  ;;  %v4407_v13 = vld [vmem:[#allocation2 + $0xf1] sm:$0xff] }
 0x1d3   : > { %v14016_v33 = vpop.f32.mrf.mxu0  ;;  %11825 = vmatmul.mubr.msk.f32.gmra.mxu1 %vm1515_vm3, %v3984_v36  ;;  %v3986_v3 = vld [vmem:[#allocation2 + $0xf8] sm:$0xff]  ;;  %v3989_v36 = vld [vmem:[#allocation2 + $0x110] sm:$0xff] }
 0x1d4   : > { %11827 = vmatprep.mubr.msk.f32.mxu1 %vm1515_vm3, %v4017_v25  ;;  %v14020_v34 = vpop.f32.mrf.mxu1  ;;  %v4408_v25 = vld [vmem:[#allocation2 + $0xf9] sm:$0xff] }
 0x1d5   : > { %16885 = vst [vmem:[#allocation40_spill] sm:$0xff] %v14020_v34  ;;  %v11576_v30 = vpop.f32.mrf.mxu0  ;;  %11875 = vmatmul.mubr.msk.f32.gmra.mxu0 %vm1515_vm3, %v4406_v57 }
 0x1d6   : > { %v14023_v1 = vadd.f32 %v11576_v30, %v11526_v51  ;;  %11877 = vmatprep.mubr.msk.f32.mxu0 %vm1515_vm3, %v4407_v13  ;;  %v11529_v31 = vpop.f32.mrf.mxu1  ;;  %v4021_v51 = vmul.f32 %v13403_v32, %v3989_v36  ;;  %v4772_v36 = vld [vmem:[#allocation2 + $0x2a] sm:$0xff] }
 0x1d7   : > { %v14028_v16 = vpop.f32.mrf.mxu0  ;;  %11828 = vmatmul.mubr.msk.f32.gmra.mxu1 %vm1515_vm3, %v3986_v3  ;;  %v4411_v3 = vld [vmem:[#allocation2 + $0x111] sm:$0xff] }
 0x1d8   : > { %16886 = vst [vmem:[#allocation42_spill] sm:$0xff] %v14028_v16  ;;  %11830 = vmatprep.mubr.msk.f32.mxu1 %vm1515_vm3, %v4019_v50  ;;  %v14032_v34 = vpop.f32.mrf.mxu1  ;;  %v3990_v50 = vld [vmem:[#allocation2 + $0x118] sm:$0xff] }
 0x1d9   : > { %16887 = vst [vmem:[#allocation43_spill] sm:$0xff] %v14032_v34  ;;  %v11579_v57 = vpop.f32.mrf.mxu0  ;;  %11878 = vmatmul.mubr.msk.f32.gmra.mxu0 %vm1515_vm3, %v4408_v25 }
 0x1da   : > { %v14035_v30 = vadd.f32 %v11579_v57, %v11529_v31  ;;  %11880 = vmatprep.mubr.msk.f32.mxu0 %vm1515_vm3, %v13876_v40  ;;  %v11532_v19 = vpop.f32.mrf.mxu1  ;;  %v4412_v40 = vld [vmem:[#allocation2 + $0x119] sm:$0xff] }
 0x1db   : > { %v14040_v13 = vpop.f32.mrf.mxu0  ;;  %11831 = vmatmul.mubr.msk.f32.gmra.mxu1 %vm1515_vm3, %v13731_v47  ;;  %v4771_v47 = vld [vmem:[#allocation2 + $0x22] sm:$0xff] }
 0x1dc   : > { %16888 = vst [vmem:[#allocation45_spill] sm:$0xff] %v14040_v13  ;;  %11833 = vmatprep.mubr.msk.f32.mxu1 %vm1515_vm3, %v4021_v51  ;;  %v14045_v37 = vpop.f32.mrf.mxu1 }
 0x1dd   : > { %16889 = vst [vmem:[#allocation46_spill] sm:$0xff] %v14045_v37  ;;  %v11582_v25 = vpop.f32.mrf.mxu0  ;;  %11881 = vmatmul.mubr.msk.f32.gmra.mxu0 %vm1515_vm3, %v13889_v22  ;;  %v4804_v22 = vmul.f32 %v13425_v8, %v4772_v36  ;;  %v4775_v8 = vld [vmem:[#allocation2 + $0x42] sm:$0xff] }
 0x1de   : > { %v14049_v31 = vadd.f32 %v11582_v25, %v11532_v19  ;;  %11883 = vmatprep.mubr.msk.f32.mxu0 %vm1515_vm3, %v4411_v3  ;;  %v11535_v57 = vpop.f32.mrf.mxu1  ;;  %v4774_v3 = vld [vmem:[#allocation2 + $0x3a] sm:$0xff] }
 0x1df   : > { %v14052_v32 = vpop.f32.mrf.mxu0  ;;  %11834 = vmatmul.mubr.msk.f32.gmra.mxu1 %vm1515_vm3, %v3990_v50  ;;  %v16893_v50 = vld [vmem:[#allocation82_spill] sm:$0xff] }
 0x1e0   : > { %16890 = vst [vmem:[#allocation48_spill] sm:$0xff] %v14052_v32  ;;  %11888 = vmatprep.mubr.msk.f32.mxu1 %vm1515_vm3, %v4771_v47  ;;  %v14056_v51 = vpop.f32.mrf.mxu1  ;;  %v4773_v32 = vld [vmem:[#allocation2 + $0x32] sm:$0xff] }
 0x1e1   : > { %16891 = vst [vmem:[#allocation49_spill] sm:$0xff] %v14056_v51  ;;  %v11585_v37 = vpop.f32.mrf.mxu0  ;;  %11884 = vmatmul.mubr.msk.f32.gmra.mxu0 %vm1515_vm3, %v4412_v40  ;;  %v4806_v40 = vmul.f32 %v13440_v45, %v4774_v3 }
 0x1e2   : > { %v14060_v19 = vadd.f32 %v11585_v37, %v11535_v57  ;;  %v11590_v13 = vpop.f32.mrf.mxu1  ;;  %v4776_v37 = vld [vmem:[#allocation2 + $0x4a] sm:$0xff] }
 0x1e3   : > { %v14062_v25 = vpop.f32.mrf.mxu0  ;;  %11889 = vmatmul.mubr.msk.f32.vlgmr.msra.gmra.mxu1 %vm1515_vm3, %v4804_v22  ;;  %v2694_v34 = vadd.f32 %v11590_v13, %v16893_v50  ;;  %v4808_v50 = vmul.f32 %v13474_v6, %v4776_v37 }
 0x1e4   : > { %16892 = vst [vmem:[#allocation51_spill] sm:$0xff] %v14062_v25  ;;  %11891 = vmatprep.mubr.msk.f32.mxu1 %vm1515_vm3, %v4773_v32  ;;  %v14067_v47 = vpop.f32.mrf.mxu1 }
 0x1e5   : > { %v11640_v51 = vpop.f32.mrf.mxu0 }
 0x1e6   : > { %v14070_v16 = vadd.f32 %v11640_v51, %v2694_v34  ;;  %v4778_v51 = vld [vmem:[#allocation2 + $0x5a] sm:$0xff] }
 0x1e7   : > { %v11593_v36 = vpop.f32.mrf.mxu1  ;;  %v14072_v57 = vpop.f32.mrf.mxu0  ;;  %11892 = vmatmul.mubr.msk.f32.gmra.mxu1 %vm1515_vm3, %v4806_v40  ;;  %v4777_v40 = vld [vmem:[#allocation2 + $0x52] sm:$0xff]  ;;  %v4810_v37 = vmul.f32 %v13496_v10, %v4778_v51 }
 0x1e8   : > { %v2696_v22 = vadd.f32 %v11593_v36, %v13914_v52  ;;  %11894 = vmatprep.mubr.msk.f32.mxu1 %vm1515_vm3, %v4775_v8 }
 0x1e9   : > { %v2544_v13 = vpop.f32.mrf.mxu1  ;;  %v11643_v32 = vpop.f32.mrf.mxu0 }
 0x1ea   : > { %v14079_v25 = vadd.f32 %v2544_v13, %v13919_v60  ;;  %v14081_v34 = vadd.f32 %v11643_v32, %v2696_v22  ;;  %v4780_v13 = vld [vmem:[#allocation2 + $0x6a] sm:$0xff]  ;;  %v5306_v32 = vld [vmem:[%s16567_s8 + $0x18] sm:$0xff] }
 0x1eb   : > { %v11596_v3 = vpop.f32.mrf.mxu1  ;;  %v14083_v45 = vpop.f32.mrf.mxu0  ;;  %11895 = vmatmul.mubr.msk.f32.gmra.mxu1 %vm1515_vm3, %v4808_v50  ;;  %11936 = vmatprep.subr.mxu0 %v5306_v32 }
 0x1ec   : > { %v2698_v52 = vadd.f32 %v11596_v3, %v13923_v24  ;;  %11897 = vmatprep.mubr.msk.f32.mxu1 %vm1515_vm3, %v4777_v40  ;;  %v4779_v24 = vld [vmem:[#allocation2 + $0x62] sm:$0xff]  ;;  %11937 = vmatpush3.msra.mxu0 %v5306_v32  ;;  %v4812_v40 = vmul.f32 %v13514_v21, %v4780_v13 }
 0x1ed   : > { %v2554_v8 = vpop.f32.mrf.mxu1  ;;  %v11646_v36 = vpop.f32.mrf.mxu0 }
 0x1ee   : > { %v14090_v60 = vadd.f32 %v2554_v8, %v13928_v27  ;;  %v14092_v22 = vadd.f32 %v11646_v36, %v2698_v52  ;;  %v4782_v36 = vld [vmem:[#allocation2 + $0x7a] sm:$0xff] }
 0x1ef   : > { %v11599_v50 = vpop.f32.mrf.mxu1  ;;  %v14097_v6 = vpop.f32.mrf.mxu0  ;;  %11898 = vmatmul.mubr.msk.f32.gmra.mxu1 %vm1515_vm3, %v4810_v37  ;;  %v4781_v37 = vld [vmem:[#allocation2 + $0x72] sm:$0xff]  ;;  %v4814_v13 = vmul.f32 %v13532_v11, %v4782_v36 }
 0x1f0   : > { %16894 = vst [vmem:[#allocation52_spill] sm:$0xff] %v14097_v6  ;;  %v2700_v3 = vadd.f32 %v11599_v50, %v13932_v38  ;;  %11900 = vmatprep.mubr.msk.f32.mxu1 %vm1515_vm3, %v4779_v24 }
 0x1f1   : > { %v2564_v27 = vpop.f32.mrf.mxu1  ;;  %v11649_v51 = vpop.f32.mrf.mxu0 }
 0x1f2   : > { %v14104_v52 = vadd.f32 %v2564_v27, %v13937_v55  ;;  %v14106_v8 = vadd.f32 %v11649_v51, %v2700_v3  ;;  %v4784_v3 = vld [vmem:[#allocation2 + $0x8a] sm:$0xff] }
 0x1f3   : > { %v11602_v10 = vpop.f32.mrf.mxu1  ;;  %v14108_v6 = vpop.f32.mrf.mxu0  ;;  %11901 = vmatmul.mubr.msk.f32.gmra.mxu1 %vm1515_vm3, %v4812_v40  ;;  %v4783_v40 = vld [vmem:[#allocation2 + $0x82] sm:$0xff]  ;;  %v4816_v36 = vmul.f32 %v13550_v59, %v4784_v3 }
 0x1f4   : > { %v2702_v38 = vadd.f32 %v11602_v10, %v13941_v12  ;;  %11903 = vmatprep.mubr.msk.f32.mxu1 %vm1515_vm3, %v4781_v37 }
 0x1f5   : > { %v2574_v32 = vpop.f32.mrf.mxu1  ;;  %v11652_v50 = vpop.f32.mrf.mxu0 }
 0x1f6   : > { %v14115_v55 = vadd.f32 %v2574_v32, %v13946_v5  ;;  %v14117_v24 = vadd.f32 %v11652_v50, %v2702_v38  ;;  %v4786_v32 = vld [vmem:[#allocation2 + $0x9a] sm:$0xff] }
 0x1f7   : > { %v11605_v27 = vpop.f32.mrf.mxu1  ;;  %v14119_v51 = vpop.f32.mrf.mxu0  ;;  %11904 = vmatmul.mubr.msk.f32.gmra.mxu1 %vm1515_vm3, %v4814_v13  ;;  %v4785_v13 = vld [vmem:[#allocation2 + $0x92] sm:$0xff]  ;;  %v4818_v3 = vmul.f32 %v13578_v7, %v4786_v32 }
 0x1f8   : > { %v2704_v10 = vadd.f32 %v11605_v27, %v13950_v23  ;;  %11906 = vmatprep.mubr.msk.f32.mxu1 %vm1515_vm3, %v4783_v40 }
 0x1f9   : > { %v2584_v12 = vpop.f32.mrf.mxu1  ;;  %v11655_v37 = vpop.f32.mrf.mxu0 }
 0x1fa   : > { %v14126_v5 = vadd.f32 %v2584_v12, %v13955_v63  ;;  %v14128_v38 = vadd.f32 %v11655_v37, %v2704_v10  ;;  %v4788_v12 = vld [vmem:[#allocation2 + $0xaa] sm:$0xff] }
 0x1fb   : > { %v11608_v50 = vpop.f32.mrf.mxu1  ;;  %v14130_v11 = vpop.f32.mrf.mxu0  ;;  %11907 = vmatmul.mubr.msk.f32.gmra.mxu1 %vm1515_vm3, %v4816_v36  ;;  %v5305_v37 = vld [vmem:[%s16567_s8 + $0x10] sm:$0xff] }
 0x1fc   : > { %v2706_v23 = vadd.f32 %v11608_v50, %v13959_v2  ;;  %11909 = vmatprep.mubr.msk.f32.mxu1 %vm1515_vm3, %v4785_v13  ;;  %v4787_v2 = vld [vmem:[#allocation2 + $0xa2] sm:$0xff]  ;;  %11938 = vmatprep.subr.mxu0 %v5305_v37  ;;  %v4820_v13 = vmul.f32 %v13586_v61, %v4788_v12 }
 0x1fd   : > { %v2594_v27 = vpop.f32.mrf.mxu1  ;;  %v11658_v40 = vpop.f32.mrf.mxu0  ;;  %11939 = vmatpush3.msra.mxu0 %v5305_v37 }
 0x1fe   : > { %v14137_v63 = vadd.f32 %v2594_v27, %v13964_v17  ;;  %v14139_v10 = vadd.f32 %v11658_v40, %v2706_v23  ;;  %v4790_v40 = vld [vmem:[#allocation2 + $0xba] sm:$0xff] }
 0x1ff   : > { %v11611_v36 = vpop.f32.mrf.mxu1  ;;  %v14144_v59 = vpop.f32.mrf.mxu0  ;;  %11910 = vmatmul.mubr.msk.f32.gmra.mxu1 %vm1515_vm3, %v4818_v3  ;;  %v4789_v3 = vld [vmem:[#allocation2 + $0xb2] sm:$0xff]  ;;  %v4822_v12 = vmul.f32 %v13604_v43, %v4790_v40  ;;  %v4794_v40 = vld [vmem:[#allocation2 + $0xda] sm:$0xff] }
 0x200   : > { %v2708_v50 = vadd.f32 %v11611_v36, %v13968_v39  ;;  %11912 = vmatprep.mubr.msk.f32.mxu1 %vm1515_vm3, %v4787_v2  ;;  %v4792_v2 = vld [vmem:[#allocation2 + $0xca] sm:$0xff]  ;;  %v4793_v43 = vld [vmem:[#allocation2 + $0xd2] sm:$0xff] }
 0x201   : > { %v2604_v17 = vpop.f32.mrf.mxu1  ;;  %v11661_v32 = vpop.f32.mrf.mxu0 }
 0x202   : > { %v14151_v23 = vadd.f32 %v2604_v17, %v13973_v56  ;;  %v14153_v27 = vadd.f32 %v11661_v32, %v2708_v50  ;;  %v4791_v32 = vld [vmem:[#allocation2 + $0xc2] sm:$0xff] }
 0x203   : > { %v11614_v7 = vpop.f32.mrf.mxu1  ;;  %v14155_v21 = vpop.f32.mrf.mxu0  ;;  %11913 = vmatmul.mubr.msk.f32.gmra.mxu1 %vm1515_vm3, %v4820_v13 }
 0x204   : > { %v2710_v39 = vadd.f32 %v11614_v7, %v13979_v46  ;;  %11915 = vmatprep.mubr.msk.f32.mxu1 %vm1515_vm3, %v4789_v3  ;;  %v4824_v3 = vmul.f32 %v13622_v48, %v4792_v2  ;;  %v4796_v2 = vld [vmem:[#allocation2 + $0xea] sm:$0xff] }
 0x205   : > { %v14160_v37 = vpop.f32.mrf.mxu1  ;;  %v11664_v36 = vpop.f32.mrf.mxu0 }
 0x206   : > { %v14163_v56 = vadd.f32 %v11664_v36, %v2710_v39 }
 0x207   : > { %v11617_v50 = vpop.f32.mrf.mxu1  ;;  %v14165_v17 = vpop.f32.mrf.mxu0  ;;  %11916 = vmatmul.mubr.msk.f32.gmra.mxu1 %vm1515_vm3, %v4822_v12 }
 0x208   : > { %16895 = vst [vmem:[#allocation54_spill] sm:$0xff] %v14165_v17  ;;  %v2712_v13 = vadd.f32 %v11617_v50, %v13990_v9  ;;  %11918 = vmatprep.mubr.msk.f32.mxu1 %vm1515_vm3, %v4791_v32  ;;  %v4826_v32 = vmul.f32 %v13640_v42, %v4794_v40 }
 0x209   : > { %v14170_v7 = vpop.f32.mrf.mxu1  ;;  %v11667_v46 = vpop.f32.mrf.mxu0 }
 0x20a   : > { %v14173_v61 = vadd.f32 %v11667_v46, %v2712_v13  ;;  %v5304_v13 = vld [vmem:[%s16567_s8 + $0x8] sm:$0xff] }
 0x20b   : > { %v11620_v39 = vpop.f32.mrf.mxu1  ;;  %v14175_v36 = vpop.f32.mrf.mxu0  ;;  %11919 = vmatmul.mubr.msk.f32.gmra.mxu1 %vm1515_vm3, %v4824_v3  ;;  %11940 = vmatprep.subr.mxu0 %v5304_v13 }
 0x20c   : > { %16896 = vst [vmem:[#allocation55_spill] sm:$0xff] %v14175_v36  ;;  %v2714_v12 = vadd.f32 %v11620_v39, %v14001_v18  ;;  %11921 = vmatprep.mubr.msk.f32.mxu1 %vm1515_vm3, %v4793_v43  ;;  %v4795_v18 = vld [vmem:[#allocation2 + $0xe2] sm:$0xff]  ;;  %11941 = vmatpush3.msra.mxu0 %v5304_v13  ;;  %v4828_v39 = vmul.f32 %v13658_v44, %v4796_v2 }
 0x20d   : > { %v14180_v9 = vpop.f32.mrf.mxu1  ;;  %v11670_v50 = vpop.f32.mrf.mxu0 }
 0x20e   : > { %v14183_v17 = vadd.f32 %v11670_v50, %v2714_v12  ;;  %v4798_v50 = vld [vmem:[#allocation2 + $0xfa] sm:$0xff] }
 0x20f   : > { %v11623_v46 = vpop.f32.mrf.mxu1  ;;  %v14188_v48 = vpop.f32.mrf.mxu0  ;;  %11922 = vmatmul.mubr.msk.f32.gmra.mxu1 %vm1515_vm3, %v4826_v32  ;;  %v4797_v32 = vld [vmem:[#allocation2 + $0xf2] sm:$0xff] }
 0x210   : > { %16897 = vst [vmem:[#allocation57_spill] sm:$0xff] %v14188_v48  ;;  %v2716_v43 = vadd.f32 %v11623_v46, %v14012_v26  ;;  %11924 = vmatprep.mubr.msk.f32.mxu1 %vm1515_vm3, %v4795_v18  ;;  %v4830_v46 = vmul.f32 %v13676_v41, %v4798_v50  ;;  %v4801_v50 = vld [vmem:[#allocation2 + $0x112] sm:$0xff] }
 0x211   : > { %v14193_v3 = vpop.f32.mrf.mxu1  ;;  %v11673_v40 = vpop.f32.mrf.mxu0 }
 0x212   : > { %v14196_v12 = vadd.f32 %v11673_v40, %v2716_v43 }
 0x213   : > { %v11626_v42 = vpop.f32.mrf.mxu1  ;;  %v14198_v36 = vpop.f32.mrf.mxu0  ;;  %11925 = vmatmul.mubr.msk.f32.gmra.mxu1 %vm1515_vm3, %v4828_v39 }
 0x214   : > { %16898 = vst [vmem:[#allocation60_spill] sm:$0xff] %v14198_v36  ;;  %v2718_v48 = vadd.f32 %v11626_v42, %v14023_v1  ;;  %11927 = vmatprep.mubr.msk.f32.mxu1 %vm1515_vm3, %v4797_v32  ;;  %v4802_v42 = vld [vmem:[#allocation2 + $0x11a] sm:$0xff]  ;;  %v4832_v32 = vmul.f32 %v13693_v54, %v13882_v15 }
 0x215   : > { %v14203_v26 = vpop.f32.mrf.mxu1  ;;  %v11676_v13 = vpop.f32.mrf.mxu0  ;;  %v5303_v15 = vld [vmem:[%s16567_s8] sm:$0xff] }
 0x216   : > { %16899 = vst [vmem:[#allocation56_spill] sm:$0xff] %v14203_v26  ;;  %v14206_v18 = vadd.f32 %v11676_v13, %v2718_v48  ;;  %11942 = vmatprep.subr.mxu0 %v5303_v15 }
 0x217   : > { %v11629_v2 = vpop.f32.mrf.mxu1  ;;  %v14208_v43 = vpop.f32.mrf.mxu0  ;;  %11928 = vmatmul.mubr.msk.f32.gmra.mxu1 %vm1515_vm3, %v4830_v46  ;;  %11943 = vmatpush3.msra.mxu0 %v5303_v15 }
 0x218   : > { %16900 = vst [vmem:[#allocation63_spill] sm:$0xff] %v14208_v43  ;;  %v2720_v40 = vadd.f32 %v11629_v2, %v14035_v30  ;;  %11930 = vmatprep.mubr.msk.f32.mxu1 %vm1515_vm3, %v13885_v14  ;;  %v4834_v30 = vmul.f32 %v13712_v58, %v4802_v42 }
 0x219   : > { %v14214_v1 = vpop.f32.mrf.mxu1  ;;  %v11679_v39 = vpop.f32.mrf.mxu0 }
 0x21a   : > { %16901 = vst [vmem:[#allocation61_spill] sm:$0xff] %v14214_v1  ;;  %v14218_v48 = vadd.f32 %v11679_v39, %v2720_v40 }
 0x21b   : > { %v11632_v13 = vpop.f32.mrf.mxu1  ;;  %v14220_v41 = vpop.f32.mrf.mxu0  ;;  %11931 = vmatmul.mubr.msk.f32.gmra.mxu1 %vm1515_vm3, %v4832_v32 }
 0x21c   : > { %16902 = vst [vmem:[#allocation66_spill] sm:$0xff] %v14220_v41  ;;  %v2722_v46 = vadd.f32 %v11632_v13, %v14049_v31  ;;  %11933 = vmatprep.mubr.msk.f32.mxu1 %vm1515_vm3, %v4801_v50 }
 0x21d   : > { %v14226_v14 = vpop.f32.mrf.mxu1  ;;  %v11682_v2 = vpop.f32.mrf.mxu0 }
 0x21e   : > { %16903 = vst [vmem:[#allocation64_spill] sm:$0xff] %v14226_v14  ;;  %v14228_v44 = vadd.f32 %v11682_v2, %v2722_v46 }
 0x21f   : > { %v11635_v40 = vpop.f32.mrf.mxu1  ;;  %v14233_v39 = vpop.f32.mrf.mxu0  ;;  %11934 = vmatmul.mubr.msk.f32.gmra.mxu1 %vm1515_vm3, %v4834_v30  ;;  %vm5709_vm3 = vcmask 253952  }
 0x220   : > { %16904 = vst [vmem:[#allocation69_spill] sm:$0xff] %v14233_v39  ;;  %v2724_v42 = vadd.f32 %v11635_v40, %v14060_v19 }
 0x221   : > { %v14237_v31 = vpop.f32.mrf.mxu1  ;;  %v11685_v32 = vpop.f32.mrf.mxu0 }
 0x222   : > { %16905 = vst [vmem:[#allocation67_spill] sm:$0xff] %v14237_v31  ;;  %v14239_v50 = vadd.f32 %v11685_v32, %v2724_v42 }
 0x223   : > { %v14241_v13 = vpop.f32.mrf.mxu0  ;;  %v11690_v46 = vpop.f32.mrf.mxu1 }
 0x224   : > { %16906 = vst [vmem:[#allocation72_spill] sm:$0xff] %v14241_v13  ;;  %v14244_v2 = vadd.f32 %v11690_v46, %v14070_v16 }
 0x225   : > { %v14246_v58 = vpop.f32.mrf.mxu1  ;;  %v14248_v54 = vpop.f32.mrf.mxu0 }
 0x227   : > { %v11693_v30 = vpop.f32.mrf.mxu1  ;;  %v14250_v39 = vpop.f32.mrf.mxu0 }
 0x228   : > { %v14253_v19 = vadd.f32 %v11693_v30, %v14081_v34 }
 0x229   : > { %v14255_v15 = vpop.f32.mrf.mxu1  ;;  %v14257_v40 = vpop.f32.mrf.mxu0 }
 0x22b   : > { %v11696_v42 = vpop.f32.mrf.mxu1  ;;  %v14259_v32 = vpop.f32.mrf.mxu0 }
 0x22c   : > { %v14262_v16 = vadd.f32 %v11696_v42, %v14092_v22 }
 0x22d   : > { %v14264_v46 = vpop.f32.mrf.mxu1  ;;  %v14266_v13 = vpop.f32.mrf.mxu0 }
 0x22f   : > { %v11699_v31 = vpop.f32.mrf.mxu1  ;;  %v14268_v14 = vpop.f32.mrf.mxu0 }
 0x230   : > { %v14271_v34 = vadd.f32 %v11699_v31, %v14106_v8 }
 0x231   : > { %v14273_v30 = vpop.f32.mrf.mxu1  ;;  %v14275_v41 = vpop.f32.mrf.mxu0 }
 0x232   : > { %16907 = vst [vmem:[#allocation70_spill] sm:$0xff] %v14271_v34  ;;  %16908 = vst [vmem:[#allocation75_spill] sm:$0xff] %v14275_v41 }
 0x233   : > { %v11702_v1 = vpop.f32.mrf.mxu1  ;;  %v14277_v43 = vpop.f32.mrf.mxu0 }
 0x234   : > { %16909 = vst [vmem:[#allocation73_spill] sm:$0xff] %v14277_v43  ;;  %v14280_v22 = vadd.f32 %v11702_v1, %v14117_v24 }
 0x235   : > { %v14282_v42 = vpop.f32.mrf.mxu1  ;;  %v14284_v26 = vpop.f32.mrf.mxu0 }
 0x236   : > { %16910 = vst [vmem:[#allocation78_spill] sm:$0xff] %v14280_v22  ;;  %16911 = vst [vmem:[#allocation76_spill] sm:$0xff] %v14282_v42 }
 0x237   : > { %16912 = vst [vmem:[#allocation79_spill] sm:$0xff] %v14284_v26  ;;  %v11705_v8 = vpop.f32.mrf.mxu1  ;;  %v14294_v24 = vpop.f32.mrf.mxu0 }
 0x238   : > { %16913 = vst [vmem:[#allocation82_spill] sm:$0xff] %v14294_v24  ;;  %v14297_v1 = vadd.f32 %v11705_v8, %v14128_v38 }
 0x239   : > { %v14299_v31 = vpop.f32.mrf.mxu1  ;;  %v14301_v26 = vpop.f32.mrf.mxu0 }
 0x23a   : > { %16914 = vst [vmem:[#allocation97_spill] sm:$0xff] %v14297_v1  ;;  %16915 = vst [vmem:[#allocation98_spill] sm:$0xff] %v14299_v31 }
 0x23b   : > { %16916 = vst [vmem:[#allocation99_spill] sm:$0xff] %v14301_v26  ;;  %v11708_v22 = vpop.f32.mrf.mxu1  ;;  %v14303_v36 = vpop.f32.mrf.mxu0 }
 0x23c   : > { %16917 = vst [vmem:[#allocation100_spill] sm:$0xff] %v14303_v36  ;;  %v14306_v42 = vadd.f32 %v11708_v22, %v14139_v10 }
 0x23d   : > { %v14308_v43 = vpop.f32.mrf.mxu1  ;;  %v14310_v41 = vpop.f32.mrf.mxu0 }
 0x23e   : > { %16918 = vst [vmem:[#allocation101_spill] sm:$0xff] %v14306_v42  ;;  %16919 = vst [vmem:[#allocation102_spill] sm:$0xff] %v14308_v43 }
 0x23f   : > { %16920 = vst [vmem:[#allocation103_spill] sm:$0xff] %v14310_v41  ;;  %v11711_v20 = vpop.f32.mrf.mxu1  ;;  %v14312_v34 = vpop.f32.mrf.mxu0 }
 0x240   : > { %16921 = vst [vmem:[#allocation104_spill] sm:$0xff] %v14312_v34  ;;  %v14315_v38 = vadd.f32 %v11711_v20, %v14153_v27 }
 0x241   : > { %v14317_v8 = vpop.f32.mrf.mxu1  ;;  %v14319_v1 = vpop.f32.mrf.mxu0 }
 0x242   : > { %16922 = vst [vmem:[#allocation105_spill] sm:$0xff] %v14315_v38  ;;  %16923 = vst [vmem:[#allocation106_spill] sm:$0xff] %v14317_v8 }
 0x243   : > { %16924 = vst [vmem:[#allocation107_spill] sm:$0xff] %v14319_v1  ;;  %v11714_v26 = vpop.f32.mrf.mxu1  ;;  %v14321_v24 = vpop.f32.mrf.mxu0 }
 0x244   : > { %16925 = vst [vmem:[#allocation108_spill] sm:$0xff] %v14321_v24  ;;  %v14324_v10 = vadd.f32 %v11714_v26, %v14163_v56 }
 0x245   : > { %v14326_v22 = vpop.f32.mrf.mxu1  ;;  %v14328_v42 = vpop.f32.mrf.mxu0 }
 0x246   : > { %16926 = vst [vmem:[#allocation109_spill] sm:$0xff] %v14324_v10  ;;  %16927 = vst [vmem:[#allocation110_spill] sm:$0xff] %v14326_v22 }
 0x247   : > { %16928 = vst [vmem:[#allocation111_spill] sm:$0xff] %v14328_v42  ;;  %v11717_v41 = vpop.f32.mrf.mxu1  ;;  %v14330_v43 = vpop.f32.mrf.mxu0 }
 0x248   : > { %16929 = vst [vmem:[#allocation112_spill] sm:$0xff] %v14330_v43  ;;  %v14333_v20 = vadd.f32 %v11717_v41, %v14173_v61 }
 0x249   : > { %v14335_v27 = vpop.f32.mrf.mxu1  ;;  %v14337_v38 = vpop.f32.mrf.mxu0 }
 0x24a   : > { %16930 = vst [vmem:[#allocation113_spill] sm:$0xff] %v14333_v20  ;;  %16931 = vst [vmem:[#allocation114_spill] sm:$0xff] %v14335_v27 }
 0x24b   : > { %16932 = vst [vmem:[#allocation115_spill] sm:$0xff] %v14337_v38  ;;  %v11720_v1 = vpop.f32.mrf.mxu1  ;;  %v14339_v8 = vpop.f32.mrf.mxu0 }
 0x24c   : > { %16933 = vst [vmem:[#allocation116_spill] sm:$0xff] %v14339_v8  ;;  %v14342_v56 = vadd.f32 %v11720_v1, %v14183_v17 }
 0x24d   : > { %v14344_v26 = vpop.f32.mrf.mxu1  ;;  %v14346_v10 = vpop.f32.mrf.mxu0 }
 0x24e   : > { %16934 = vst [vmem:[#allocation117_spill] sm:$0xff] %v14342_v56  ;;  %16935 = vst [vmem:[#allocation118_spill] sm:$0xff] %v14344_v26 }
 0x24f   : > { %16936 = vst [vmem:[#allocation119_spill] sm:$0xff] %v14346_v10  ;;  %v11723_v42 = vpop.f32.mrf.mxu1  ;;  %v14348_v24 = vpop.f32.mrf.mxu0 }
 0x250   : > { %16937 = vst [vmem:[#allocation120_spill] sm:$0xff] %v14348_v24  ;;  %v14351_v61 = vadd.f32 %v11723_v42, %v14196_v12 }
 0x251   : > { %v14353_v41 = vpop.f32.mrf.mxu1  ;;  %v14355_v20 = vpop.f32.mrf.mxu0 }
 0x252   : > { %16938 = vst [vmem:[#allocation121_spill] sm:$0xff] %v14351_v61  ;;  %16939 = vst [vmem:[#allocation122_spill] sm:$0xff] %v14353_v41 }
 0x253   : > { %16940 = vst [vmem:[#allocation123_spill] sm:$0xff] %v14355_v20  ;;  %v11726_v38 = vpop.f32.mrf.mxu1  ;;  %v14357_v27 = vpop.f32.mrf.mxu0 }
 0x254   : > { %16941 = vst [vmem:[#allocation124_spill] sm:$0xff] %v14357_v27  ;;  %v14360_v17 = vadd.f32 %v11726_v38, %v14206_v18 }
 0x255   : > { %v14362_v1 = vpop.f32.mrf.mxu1  ;;  %v14364_v56 = vpop.f32.mrf.mxu0 }
 0x256   : > { %16942 = vst [vmem:[#allocation125_spill] sm:$0xff] %v14360_v17  ;;  %16943 = vst [vmem:[#allocation126_spill] sm:$0xff] %v14362_v1  ;;  %v10354_v1 = vld [vmem:[%s16570_s11 + $0x20] sm:$0xff] }
 0x257   : > { %16944 = vst [vmem:[#allocation127_spill] sm:$0xff] %v14364_v56  ;;  %v11729_v10 = vpop.f32.mrf.mxu1  ;;  %v14366_v8 = vpop.f32.mrf.mxu0 }
 0x258   : > { %16945 = vst [vmem:[#allocation128_spill] sm:$0xff] %v14366_v8  ;;  %v14369_v12 = vadd.f32 %v11729_v10, %v14218_v48 }
 0x259   : > { %v14371_v42 = vpop.f32.mrf.mxu1  ;;  %v14373_v61 = vpop.f32.mrf.mxu0 }
 0x25a   : > { %16946 = vst [vmem:[#allocation129_spill] sm:$0xff] %v14369_v12  ;;  %16947 = vst [vmem:[#allocation130_spill] sm:$0xff] %v14371_v42  ;;  %v10355_v42 = vld [vmem:[%s16570_s11 + $0x28] sm:$0xff] }
 0x25b   : > { %16948 = vst [vmem:[#allocation131_spill] sm:$0xff] %v14373_v61  ;;  %v11732_v20 = vpop.f32.mrf.mxu1  ;;  %v14375_v41 = vpop.f32.mrf.mxu0 }
 0x25c   : > { %16949 = vst [vmem:[#allocation132_spill] sm:$0xff] %v14375_v41  ;;  %v14378_v18 = vadd.f32 %v11732_v20, %v14228_v44 }
 0x25d   : > { %v14380_v38 = vpop.f32.mrf.mxu1  ;;  %v14382_v17 = vpop.f32.mrf.mxu0 }
 0x25e   : > { %16950 = vst [vmem:[#allocation133_spill] sm:$0xff] %v14378_v18  ;;  %16951 = vst [vmem:[#allocation134_spill] sm:$0xff] %v14380_v38 }
 0x25f   : > { %16952 = vst [vmem:[#allocation135_spill] sm:$0xff] %v14382_v17  ;;  %v11735_v56 = vpop.f32.mrf.mxu1  ;;  %v14384_v27 = vpop.f32.mrf.mxu0 }
 0x260   : > { %16953 = vst [vmem:[#allocation136_spill] sm:$0xff] %v14384_v27  ;;  %v14387_v48 = vadd.f32 %v11735_v56, %v14239_v50 }
 0x261   : > { %v14389_v10 = vpop.f32.mrf.mxu1  ;;  %v14391_v12 = vpop.f32.mrf.mxu0 }
 0x262   : > { %16954 = vst [vmem:[#allocation137_spill] sm:$0xff] %v14387_v48  ;;  %16955 = vst [vmem:[#allocation138_spill] sm:$0xff] %v14389_v10  ;;  %v10356_v48 = vld [vmem:[%s16570_s11 + $0x30] sm:$0xff] }
 0x263   : > { %16956 = vst [vmem:[#allocation139_spill] sm:$0xff] %v14391_v12  ;;  %v14393_v61 = vpop.f32.mrf.mxu0  ;;  %v14395_v41 = vpop.f32.mrf.mxu1  ;;  %v14417_v12 = vld [vmem:[%s16570_s11 + $0x18] sm:$0xff] }
 0x264   : > { %16957 = vst [vmem:[#allocation140_spill] sm:$0xff] %v14393_v61  ;;  %v10357_v61 = vld [vmem:[%s16570_s11 + $0x38] sm:$0xff]  ;;  %16958 = vst [vmem:[#allocation141_spill] sm:$0xff] %v14417_v12  ;;  %12048 = vmatprep.subr.mxu0 %v14417_v12 }
 0x265   : > { %v14397_v44 = vpop.f32.mrf.mxu1  ;;  %v14399_v20 = vpop.f32.mrf.mxu0  ;;  %11992 = vmatprep.subr.mxu1 %v10357_v61 }
 0x266   : > { %11993 = vmatpush3.msra.mxu1 %v10357_v61 }
 0x267   : > { %v14401_v18 = vpop.f32.mrf.mxu1  ;;  %v14403_v17 = vpop.f32.mrf.mxu0  ;;  %11994 = vmatprep.subr.mxu1 %v10356_v48 }
 0x268   : > { %11995 = vmatpush3.msra.mxu1 %v10356_v48 }
 0x269   : > { %v14405_v27 = vpop.f32.mrf.mxu1  ;;  %v14407_v50 = vpop.f32.mrf.mxu0  ;;  %11996 = vmatprep.subr.mxu1 %v10355_v42 }
 0x26a   : > { %11997 = vmatpush3.msra.mxu1 %v10355_v42 }
 0x26b   : > { %v14409_v56 = vpop.f32.mrf.mxu1  ;;  %v14423_v10 = vpop.f32.mrf.mxu0  ;;  %11998 = vmatprep.subr.mxu1 %v10354_v1 }
 0x26c   : > { %11999 = vmatpush3.msra.mxu1 %v10354_v1 }
 0x26d   : > { %v14425_v38 = vpop.f32.mrf.mxu1  ;;  %v14435_v24 = vpop.f32.mrf.mxu0 }
 0x26f   : > { %v14430_v8 = vpop.f32.mrf.mxu1  ;;  %v14441_v43 = vpop.f32.mrf.mxu0 }
 0x270   : > { %16961 = vst [vmem:[#allocation144_spill] sm:$0xff] %v14441_v43 }
 0x271   : > { %v14437_v26 = vpop.f32.mrf.mxu1  ;;  %v14447_v48 = vpop.f32.mrf.mxu0 }
 0x272   : > { %16959 = vst [vmem:[#allocation142_spill] sm:$0xff] %v14437_v26  ;;  %16964 = vst [vmem:[#allocation147_spill] sm:$0xff] %v14447_v48 }
 0x273   : > { %v14439_v61 = vpop.f32.mrf.mxu1  ;;  %v14453_v31 = vpop.f32.mrf.mxu0 }
 0x274   : > { %16960 = vst [vmem:[#allocation143_spill] sm:$0xff] %v14439_v61  ;;  %16967 = vst [vmem:[#allocation150_spill] sm:$0xff] %v14453_v31 }
 0x275   : > { %v14443_v22 = vpop.f32.mrf.mxu1  ;;  %v14459_v61 = vpop.f32.mrf.mxu0 }
 0x276   : > { %16962 = vst [vmem:[#allocation145_spill] sm:$0xff] %v14443_v22  ;;  %16970 = vst [vmem:[#allocation153_spill] sm:$0xff] %v14459_v61 }
 0x277   : > { %v14445_v34 = vpop.f32.mrf.mxu1  ;;  %v14465_v22 = vpop.f32.mrf.mxu0 }
 0x278   : > { %16963 = vst [vmem:[#allocation146_spill] sm:$0xff] %v14445_v34  ;;  %16973 = vst [vmem:[#allocation156_spill] sm:$0xff] %v14465_v22 }
 0x279   : > { %v14449_v12 = vpop.f32.mrf.mxu1 }
 0x27a   : > { %16965 = vst [vmem:[#allocation148_spill] sm:$0xff] %v14449_v12  ;;  %v14471_v12 = vpop.f32.mrf.mxu0 }
 0x27b   : > { %v14451_v36 = vpop.f32.mrf.mxu1  ;;  %16976 = vst [vmem:[#allocation159_spill] sm:$0xff] %v14471_v12 }
 0x27c   : > { %16966 = vst [vmem:[#allocation149_spill] sm:$0xff] %v14451_v36 }
 0x27d   : > { %v14455_v26 = vpop.f32.mrf.mxu1 }
 0x27e   : > { %16968 = vst [vmem:[#allocation151_spill] sm:$0xff] %v14455_v26  ;;  %v14477_v26 = vpop.f32.mrf.mxu0 }
 0x27f   : > { %v14457_v42 = vpop.f32.mrf.mxu1  ;;  %16979 = vst [vmem:[#allocation162_spill] sm:$0xff] %v14477_v26 }
 0x280   : > { %16969 = vst [vmem:[#allocation152_spill] sm:$0xff] %v14457_v42 }
 0x281   : > { %v14461_v1 = vpop.f32.mrf.mxu1 }
 0x282   : > { %16971 = vst [vmem:[#allocation154_spill] sm:$0xff] %v14461_v1  ;;  %v14483_v1 = vpop.f32.mrf.mxu0 }
 0x283   : > { %v14463_v43 = vpop.f32.mrf.mxu1  ;;  %16982 = vst [vmem:[#allocation165_spill] sm:$0xff] %v14483_v1 }
 0x284   : > { %16972 = vst [vmem:[#allocation155_spill] sm:$0xff] %v14463_v43 }
 0x285   : > { %v14467_v34 = vpop.f32.mrf.mxu1 }
 0x286   : > { %16974 = vst [vmem:[#allocation157_spill] sm:$0xff] %v14467_v34  ;;  %v2145_v34 = vadd.f32 %v13909_v28, %v13904_v53  ;;  %v3117_v53 = vadd.f32 %v14083_v45, %v14079_v25  ;;  %v3928_v28 = vadd.f32 %v14248_v54, %v14244_v2  ;;  %v2245_v45 = vadd.f32 %v14005_v49, %v13998_v29  ;;  %v16987_v54 = vld [vmem:[#allocation39_spill] sm:$0xff]  ;;  %v16995_v29 = vld [vmem:[#allocation49_spill] sm:$0xff] }
 0x287   : > { %v14469_v48 = vpop.f32.mrf.mxu1  ;;  %v2255_v25 = vadd.f32 %v14016_v33, %v16987_v54  ;;  %v3930_v33 = vadd.f32 %v14257_v40, %v14253_v19 }
 0x288   : > { %16975 = vst [vmem:[#allocation158_spill] sm:$0xff] %v14469_v48  ;;  %v2693_v12 = vadd.f32 %v14067_v47, %v2145_v34  ;;  %v2225_v47 = vadd.f32 %v13983_v62, %v13976_v35  ;;  %v16988_v35 = vld [vmem:[#allocation40_spill] sm:$0xff]  ;;  %v16989_v62 = vld [vmem:[#allocation42_spill] sm:$0xff] }
 0x289   : > { %v14473_v36 = vpop.f32.mrf.mxu1  ;;  %v14527_v2 = vadd.f32 %v16989_v62, %v16988_v35 }
 0x28a   : > { %16977 = vst [vmem:[#allocation160_spill] sm:$0xff] %v14473_v36  ;;  %v14492_v36 = vpop.f32.mrf.mxu0  ;;  %v2709_v19 = vadd.f32 %v14160_v37, %v2225_v47  ;;  %v14570_v37 = vld [vmem:[%s16565_s6] ss:$0 sm:$0xff]  ;;  %v2715_v47 = vadd.f32 %v14193_v3, %v2255_v25 }
 0x28b   : > { %v14475_v31 = vpop.f32.mrf.mxu1 }
 0x28c   : > { %16978 = vst [vmem:[#allocation161_spill] sm:$0xff] %v14475_v31 }
 0x28d   : > { %v14479_v42 = vpop.f32.mrf.mxu1 }
 0x28e   : > { %16980 = vst [vmem:[#allocation163_spill] sm:$0xff] %v14479_v42  ;;  %v3115_v42 = vadd.f32 %v14072_v57, %v2693_v12  ;;  %v2235_v12 = vadd.f32 %v13994_v4, %v13987_v0  ;;  %v16991_v0 = vld [vmem:[#allocation43_spill] sm:$0xff] }
 0x28f   : > { %v14481_v61 = vpop.f32.mrf.mxu1 }
 0x290   : > { %16981 = vst [vmem:[#allocation164_spill] sm:$0xff] %v14481_v61  ;;  %v14499_v61 = vpop.f32.mrf.mxu0 }
 0x291   : > { %v14485_v43 = vpop.f32.mrf.mxu1 }
 0x292   : > { %16983 = vst [vmem:[#allocation166_spill] sm:$0xff] %v14485_v43  ;;  %v3505_v43 = vadd.f32 %v14246_v58, %v3115_v42  ;;  %v14512_v34 = vpop.f32.mrf.mxu0  ;;  %v3507_v42 = vadd.f32 %v14255_v15, %v3117_v53  ;;  %v16993_v15 = vld [vmem:[#allocation46_spill] sm:$0xff] }
 0x293   : > { %v14489_v48 = vpop.f32.mrf.mxu1 }
 0x294   : > { %v3927_v58 = vadd.f32 %v14250_v39, %v3505_v43  ;;  %v16992_v43 = vld [vmem:[#allocation45_spill] sm:$0xff]  ;;  %v14553_v62 = vpop.f32.mrf.mxu0  ;;  %v3929_v40 = vadd.f32 %v14259_v32, %v3507_v42  ;;  %v3127_v32 = vadd.f32 %v14144_v59, %v14137_v63 }
 0x295   : > { %v14494_v31 = vpop.f32.mrf.mxu1  ;;  %v14535_v39 = vadd.f32 %v16992_v43, %v16991_v0 }
 0x296   : > { %v4349_v49 = vadd.f32 %v14397_v44, %v3927_v58  ;;  %v4352_v58 = vadd.f32 %v14401_v18, %v3930_v33  ;;  %v14583_v18 = vpop.f32.mrf.mxu0 }
 0x297   : > { %v14496_v26 = vpop.f32.mrf.mxu1 }
 0x298   : > { %v4742_v63 = vadd.f32 %v14407_v50, %v4352_v58  ;;  %v17000_v50 = vld [vmem:[#allocation70_spill] sm:$0xff]  ;;  %v17004_v58 = vld [vmem:[#allocation60_spill] sm:$0xff] }
 0x299   : > { %v14501_v1 = vpop.f32.mrf.mxu1 }
 0x29a   : > { %16984 = vst [vmem:[#allocation167_spill] sm:$0xff] %v14501_v1 }
 0x29b   : > { %v14504_v22 = vpop.f32.mrf.mxu1 }
 0x29c   : > { %16985 = vst [vmem:[#allocation168_spill] sm:$0xff] %v14504_v22  ;;  %v4350_v22 = vadd.f32 %v14395_v41, %v3928_v28  ;;  %v16994_v41 = vld [vmem:[#allocation48_spill] sm:$0xff]  ;;  %v16996_v28 = vld [vmem:[#allocation51_spill] sm:$0xff] }
 0x29d   : > { %v14514_v57 = vpop.f32.mrf.mxu1  ;;  %v14539_v53 = vadd.f32 %v16994_v41, %v16993_v15  ;;  %v14546_v54 = vadd.f32 %v16996_v28, %v16995_v29  ;;  %v17003_v28 = vld [vmem:[#allocation76_spill] sm:$0xff] }
 0x29e   : > { %16986 = vst [vmem:[#allocation169_spill] sm:$0xff] %v14514_v57  ;;  %v16990_v57 = vld [vmem:[#allocation52_spill] sm:$0xff]  ;;  %v4740_v44 = vadd.f32 %v14399_v20, %v4350_v22  ;;  %v4739_v22 = vadd.f32 %v14403_v17, %v4349_v49  ;;  %v16999_v17 = vld [vmem:[#allocation57_spill] sm:$0xff] }
 0x29f   : > { %v3119_v1 = vadd.f32 %v16990_v57, %v14090_v60  ;;  %v14531_v4 = vpop.f32.mrf.mxu1  ;;  %v3121_v60 = vadd.f32 %v14108_v6, %v14104_v52  ;;  %v3123_v57 = vadd.f32 %v14119_v51, %v14115_v55  ;;  %v3125_v6 = vadd.f32 %v14130_v11, %v14126_v5  ;;  %v17002_v49 = vld [vmem:[#allocation73_spill] sm:$0xff] }
 0x2a0   : > { %v2711_v52 = vadd.f32 %v14170_v7, %v2235_v12  ;;  %v2713_v55 = vadd.f32 %v14180_v9, %v2245_v45  ;;  %v3932_v51 = vadd.f32 %v14266_v13, %v14262_v16  ;;  %v4351_v11 = vadd.f32 %v14405_v27, %v3929_v40  ;;  %v17001_v45 = vld [vmem:[#allocation75_spill] sm:$0xff] }
 0x2a1   : > { %v3509_v35 = vadd.f32 %v14264_v46, %v3119_v1  ;;  %v14555_v0 = vpop.f32.mrf.mxu1  ;;  %v14578_v7 = vadd.f32 %v14155_v21, %v14151_v23  ;;  %v3511_v13 = vadd.f32 %v14273_v30, %v3121_v60  ;;  %v16997_v1 = vld [vmem:[#allocation54_spill] sm:$0xff]  ;;  %v3934_v43 = vadd.f32 %v17001_v45, %v17000_v50 }
 0x2a2   : > { %v4354_v16 = vadd.f32 %v14409_v56, %v3932_v51  ;;  %v14586_v59 = vadd.f32 %v16997_v1, %v2709_v19  ;;  %v14593_v21 = vld [vmem:[%s16566_s7] ss:$0 sm:$0xff]  ;;  %v14599_v56 = vadd.f32 %v16999_v17, %v2713_v55  ;;  %v4741_v15 = vadd.f32 %v14423_v10, %v4351_v11  ;;  %v14610_v19 = vpop.f32.mrf.mxu0  ;;  %v17006_v51 = vld [vmem:[#allocation79_spill] sm:$0xff] }
 0x2a3   : > { %v11890_v46 = vpop.f32.mrf.mxu1  ;;  %v3931_v9 = vadd.f32 %v14268_v14, %v3509_v35  ;;  %v16998_v14 = vld [vmem:[#allocation55_spill] sm:$0xff]  ;;  %v3933_v29 = vadd.f32 %v17002_v49, %v3511_v13  ;;  %v3513_v60 = vadd.f32 %v17003_v28, %v3123_v57  ;;  %v4356_v25 = vadd.f32 %v14430_v8, %v3934_v43  ;;  %v17005_v55 = vld [vmem:[#allocation78_spill] sm:$0xff] }
 0x2a4   : > { %v5162_v5 = vadd.f32 %v11890_v46, %v4740_v44  ;;  %v14596_v30 = vadd.f32 %v16998_v14, %v2711_v52  ;;  %v4744_v35 = vadd.f32 %v14435_v24, %v4354_v16  ;;  %v14617_v52 = vadd.f32 %v17004_v58, %v2715_v47  ;;  %v17007_v46 = vld [vmem:[#allocation98_spill] sm:$0xff]  ;;  %v14627_v14 = vpop.f32.mrf.mxu0 }
 0x2a5   : > { %v5002_v20 = vpop.f32.mrf.mxu1  ;;  %v4353_v12 = vadd.f32 %v14425_v38, %v3931_v9  ;;  %v3936_v57 = vadd.f32 %v17006_v51, %v17005_v55  ;;  %v3515_v24 = vadd.f32 %v17007_v46, %v3125_v6  ;;  %v17009_v9 = vld [vmem:[#allocation142_spill] sm:$0xff]  ;;  %v17012_v6 = vld [vmem:[#allocation147_spill] sm:$0xff]  ;;  %v17019_v51 = vld [vmem:[#allocation141_spill] sm:$0xff] }
 0x2a6   : > { %v5201_v27 = vadd.f32 %v14570_v37, %v5162_v5  ;;  %v5161_v23 = vadd.f32 %v5002_v20, %v4739_v22  ;;  %v17008_v22 = vld [vmem:[#allocation144_spill] sm:$0xff]  ;;  %v4355_v13 = vadd.f32 %v17009_v9, %v3933_v29  ;;  %v17010_v1 = vld [vmem:[#allocation82_spill] sm:$0xff]  ;;  %v4746_v50 = vadd.f32 %v17012_v6, %v4356_v25  ;;  %v17020_v46 = vld [vmem:[#allocation153_spill] sm:$0xff] }
 0x2a7   : > { %v11893_v42 = vpop.f32.mrf.mxu1  ;;  %v4743_v11 = vadd.f32 %v17008_v22, %v4353_v12  ;;  %v17015_v29 = vld [vmem:[#allocation100_spill] sm:$0xff] }
 0x2a8   : > { %v5200_v41 = vadd.f32 %v14570_v37, %v5161_v23  ;;  %v5164_v33 = vadd.f32 %v11893_v42, %v4742_v63  ;;  %v5240_v3 = vmul.f32 %v14593_v21, %v5201_v27  ;;  %v3935_v63 = vadd.f32 %v17010_v1, %v3513_v60  ;;  %v17011_v27 = vld [vmem:[#allocation143_spill] sm:$0xff]  ;;  %v17016_v60 = vld [vmem:[#allocation102_spill] sm:$0xff]  ;;  %v17022_v1 = vld [vmem:[#allocation101_spill] sm:$0xff] }
 0x2a9   : > { %v5012_v38 = vpop.f32.mrf.mxu1  ;;  %v4358_v23 = vadd.f32 %v17011_v27, %v3936_v57  ;;  %v3937_v28 = vadd.f32 %v17015_v29, %v3515_v24  ;;  %v5811_v57 = vld [vmem:[%s16570_s11 + $0x8] sm:$0xff] }
 0x2aa   : > { %v5239_v40 = vmul.f32 %v14593_v21, %v5200_v41  ;;  %v5203_v10 = vadd.f32 %v14570_v37, %v5164_v33  ;;  %v5163_v44 = vadd.f32 %v5012_v38, %v4741_v15  ;;  %v5272_v17 = vmax.f32 %v5240_v3, 0.0  ;;  %v5812_v15 = vld [vmem:[%s16570_s11 + $0x10] sm:$0xff]  ;;  %v17013_v41 = vld [vmem:[#allocation97_spill] sm:$0xff]  ;;  %v17014_v33 = vld [vmem:[#allocation99_spill] sm:$0xff] }
 0x2ab   : > { %v11896_v5 = vpop.f32.mrf.mxu1  ;;  %v3938_v49 = vadd.f32 %v17014_v33, %v17013_v41  ;;  %v17017_v3 = vld [vmem:[#allocation145_spill] sm:$0xff]  ;;  %v4748_v24 = vadd.f32 %v17020_v46, %v4358_v23  ;;  %v17024_v23 = vld [vmem:[#allocation104_spill] sm:$0xff]  ;;  %v17033_v46 = vld [vmem:[#allocation110_spill] sm:$0xff] }
 0x2ac   : > { %v5271_v16 = vmax.f32 %v5239_v40, 0.0  ;;  %v5202_v8 = vadd.f32 %v14570_v37, %v5163_v44  ;;  %v5166_v20 = vadd.f32 %v11896_v5, %v4744_v35  ;;  %v5242_v47 = vmul.f32 %v14593_v21, %v5203_v10  ;;  %v17018_v40 = vld [vmem:[#allocation150_spill] sm:$0xff] }
 0x2ad   : > { %v5022_v42 = vpop.f32.mrf.mxu1  ;;  %v3517_v35 = vadd.f32 %v17016_v60, %v3127_v32  ;;  %v4357_v38 = vadd.f32 %v17017_v3, %v3935_v63  ;;  %v4745_v10 = vadd.f32 %v17018_v40, %v4355_v13  ;;  %v17021_v32 = vld [vmem:[#allocation146_spill] sm:$0xff]  ;;  %v17023_v63 = vld [vmem:[#allocation103_spill] sm:$0xff] }
 0x2ae   : > { %v5241_v12 = vmul.f32 %v14593_v21, %v5202_v8  ;;  %v5205_v45 = vadd.f32 %v14570_v37, %v5166_v20  ;;  %v5165_v43 = vadd.f32 %v5022_v42, %v4743_v11  ;;  %11944 = vmatprep.mubr.msk.f32.mxu0 %vm5314_vm1, %v5271_v16  ;;  %v4360_v22 = vadd.f32 %v17021_v32, %v3938_v49  ;;  %v14651_v11 = vpop.f32.mrf.mxu0  ;;  %v17025_v42 = vld [vmem:[#allocation156_spill] sm:$0xff]  ;;  %v17028_v49 = vld [vmem:[#allocation149_spill] sm:$0xff]  ;;  %v17034_v32 = vld [vmem:[#allocation151_spill] sm:$0xff] }
 0x2af   : > { %v11899_v25 = vpop.f32.mrf.mxu1  ;;  %11945 = vmatmul.mubr.msk.f32.vlgmr.msra.gmra.mxu0 %vm5314_vm1, %v5272_v17  ;;  %v5274_v5 = vmax.f32 %v5242_v47, 0.0  ;;  %v3940_v27 = vadd.f32 %v17023_v63, %v17022_v1  ;;  %v3939_v17 = vadd.f32 %v17024_v23, %v3517_v35  ;;  %v4747_v6 = vadd.f32 %v17025_v42, %v4357_v38  ;;  %v17036_v1 = vld [vmem:[#allocation108_spill] sm:$0xff] }
 0x2b0   : > { %v5273_v44 = vmax.f32 %v5241_v12, 0.0  ;;  %v5204_v58 = vadd.f32 %v14570_v37, %v5165_v43  ;;  %v5168_v55 = vadd.f32 %v11899_v25, %v4746_v50  ;;  %12049 = vmatpush3.msra.mxu0 %v17019_v51  ;;  %v5244_v9 = vmul.f32 %v14593_v21, %v5205_v45  ;;  %v17026_v50 = vld [vmem:[#allocation148_spill] sm:$0xff]  ;;  %v14667_v60 = vpop.f32.mrf.mxu0  ;;  %v17029_v25 = vld [vmem:[#allocation159_spill] sm:$0xff] }
 0x2b1   : > { %v5032_v13 = vpop.f32.mrf.mxu1  ;;  %12050 = vmatprep.subr.mxu0 %v5812_v15  ;;  %v4359_v12 = vadd.f32 %v17026_v50, %v3937_v28  ;;  %v4362_v29 = vadd.f32 %v17028_v49, %v3940_v27  ;;  %v4750_v40 = vadd.f32 %v17029_v25, %v4360_v22  ;;  %v17032_v51 = vld [vmem:[#allocation107_spill] sm:$0xff]  ;;  %v17035_v22 = vld [vmem:[#allocation162_spill] sm:$0xff] }
 0x2b2   : > { %v5243_v16 = vmul.f32 %v14593_v21, %v5204_v58  ;;  %v5207_v8 = vadd.f32 %v14570_v37, %v5168_v55  ;;  %v5167_v20 = vadd.f32 %v5032_v13, %v4745_v10  ;;  %11947 = vmatprep.mubr.msk.f32.mxu0 %vm5314_vm1, %v5273_v44  ;;  %12051 = vmatpush3.msra.mxu0 %v5812_v15  ;;  %v17027_v15 = vld [vmem:[#allocation106_spill] sm:$0xff]  ;;  %v5276_v35 = vmax.f32 %v5244_v9, 0.0  ;;  %v17030_v58 = vld [vmem:[#allocation56_spill] sm:$0xff]  ;;  %v17031_v55 = vld [vmem:[#allocation105_spill] sm:$0xff]  ;;  %v14686_v23 = vpop.f32.mrf.mxu0 }
 0x2b3   : > { %v11902_v47 = vpop.f32.mrf.mxu1  ;;  %11948 = vmatmul.mubr.msk.f32.gmra.mxu0 %vm5314_vm1, %v5274_v5  ;;  %12052 = vmatprep.subr.mxu0 %v5811_v57  ;;  %v3519_v33 = vadd.f32 %v17027_v15, %v14578_v7  ;;  %v2717_v7 = vadd.f32 %v17030_v58, %v14527_v2  ;;  %v4361_v5 = vadd.f32 %v17034_v32, %v3939_v17  ;;  %v17037_v2 = vld [vmem:[#allocation165_spill] sm:$0xff]  ;;  %v17038_v17 = vld [vmem:[#allocation152_spill] sm:$0xff]  ;;  %v17043_v25 = vld [vmem:[#allocation154_spill] sm:$0xff] }
 0x2b4   : > { %v5275_v45 = vmax.f32 %v5243_v16, 0.0  ;;  %v5206_v43 = vadd.f32 %v14570_v37, %v5167_v20  ;;  %v5170_v41 = vadd.f32 %v11902_v47, %v4748_v24  ;;  %12053 = vmatpush3.msra.mxu0 %v5811_v57  ;;  %v5246_v3 = vmul.f32 %v14593_v21, %v5207_v8  ;;  %v17040_v15 = vld [vmem:[#allocation109_spill] sm:$0xff]  ;;  %v17044_v58 = vld [vmem:[#allocation114_spill] sm:$0xff] }
 0x2b5   : > { %v5042_v38 = vpop.f32.mrf.mxu1  ;;  %v3942_v57 = vadd.f32 %v17032_v51, %v17031_v55  ;;  %v3521_v24 = vadd.f32 %v17033_v46, %v14586_v59  ;;  %v4749_v13 = vadd.f32 %v17035_v22, %v4359_v12  ;;  %v3941_v63 = vadd.f32 %v17036_v1, %v3519_v33  ;;  %v17041_v33 = vld [vmem:[#allocation111_spill] sm:$0xff]  ;;  %v17049_v1 = vld [vmem:[#allocation118_spill] sm:$0xff] }
 0x2b6   : > { %v5245_v28 = vmul.f32 %v14593_v21, %v5206_v43  ;;  %v5209_v10 = vadd.f32 %v14570_v37, %v5170_v41  ;;  %v5169_v44 = vadd.f32 %v5042_v38, %v4747_v6  ;;  %11950 = vmatprep.mubr.msk.f32.mxu0 %vm5314_vm1, %v5275_v45  ;;  %v4752_v27 = vadd.f32 %v17037_v2, %v4362_v29  ;;  %v17039_v43 = vld [vmem:[#allocation63_spill] sm:$0xff]  ;;  %v17042_v29 = vld [vmem:[#allocation112_spill] sm:$0xff]  ;;  %v17050_v2 = vld [vmem:[#allocation157_spill] sm:$0xff] }
 0x2b7   : > { %v11905_v9 = vpop.f32.mrf.mxu1  ;;  %11951 = vmatmul.mubr.msk.f32.gmra.mxu0 %vm5314_vm1, %v5276_v35  ;;  %v5278_v42 = vmax.f32 %v5246_v3, 0.0  ;;  %v4364_v47 = vadd.f32 %v17038_v17, %v3942_v57  ;;  %v14694_v41 = vadd.f32 %v17039_v43, %v2717_v7  ;;  %v3944_v49 = vadd.f32 %v17041_v33, %v17040_v15  ;;  %v17045_v55 = vld [vmem:[#allocation155_spill] sm:$0xff]  ;;  %v14706_v57 = vpop.f32.mrf.mxu0  ;;  %v17052_v15 = vld [vmem:[#allocation158_spill] sm:$0xff] }
 0x2b8   : > { %v5277_v16 = vmax.f32 %v5245_v28, 0.0  ;;  %v5208_v8 = vadd.f32 %v14570_v37, %v5169_v44  ;;  %v5172_v20 = vadd.f32 %v11905_v9, %v4750_v40  ;;  %v5248_v59 = vmul.f32 %v14593_v21, %v5209_v10 }
 0x2b9   : > { %v5052_v6 = vpop.f32.mrf.mxu1  ;;  %v3943_v35 = vadd.f32 %v17042_v29, %v3521_v24  ;;  %v4751_v3 = vadd.f32 %v14492_v36, %v4361_v5  ;;  %v4363_v40 = vadd.f32 %v17043_v25, %v3941_v63  ;;  %v3523_v7 = vadd.f32 %v17044_v58, %v14596_v30  ;;  %v17055_v25 = vld [vmem:[#allocation119_spill] sm:$0xff]  ;;  %v17057_v58 = vld [vmem:[#allocation160_spill] sm:$0xff] }
 0x2ba   : > { %v5247_v50 = vmul.f32 %v14593_v21, %v5208_v8  ;;  %v5211_v12 = vadd.f32 %v14570_v37, %v5172_v20  ;;  %v5171_v45 = vadd.f32 %v5052_v6, %v4749_v13  ;;  %11953 = vmatprep.mubr.msk.f32.mxu0 %vm5314_vm1, %v5277_v16  ;;  %v4366_v51 = vadd.f32 %v17045_v55, %v3944_v49  ;;  %v17046_v13 = vld [vmem:[#allocation61_spill] sm:$0xff]  ;;  %v17048_v8 = vld [vmem:[#allocation115_spill] sm:$0xff] }
 0x2bb   : > { %v11908_v38 = vpop.f32.mrf.mxu1  ;;  %11954 = vmatmul.mubr.msk.f32.gmra.mxu0 %vm5314_vm1, %v5278_v42  ;;  %v5280_v46 = vmax.f32 %v5248_v59, 0.0  ;;  %v4754_v32 = vadd.f32 %v14499_v61, %v4364_v47  ;;  %v2719_v30 = vadd.f32 %v17046_v13, %v14535_v39  ;;  %v17047_v16 = vld [vmem:[#allocation113_spill] sm:$0xff]  ;;  %v3525_v63 = vadd.f32 %v17049_v1, %v14599_v56  ;;  %v17051_v47 = vld [vmem:[#allocation116_spill] sm:$0xff] }
 0x2bc   : > { %v5279_v28 = vmax.f32 %v5247_v50, 0.0  ;;  %v5210_v10 = vadd.f32 %v14570_v37, %v5171_v45  ;;  %v5174_v44 = vadd.f32 %v11908_v38, %v4752_v27  ;;  %v5250_v24 = vmul.f32 %v14593_v21, %v5211_v12  ;;  %v14725_v12 = vpop.f32.mrf.mxu0  ;;  %v17054_v38 = vld [vmem:[#allocation117_spill] sm:$0xff]  ;;  %v17060_v1 = vld [vmem:[#allocation64_spill] sm:$0xff] }
 0x2bd   : > { %v5062_v36 = vpop.f32.mrf.mxu1  ;;  %v3946_v20 = vadd.f32 %v17048_v8, %v17047_v16  ;;  %v4365_v27 = vadd.f32 %v17050_v2, %v3943_v35  ;;  %v4753_v61 = vadd.f32 %v14512_v34, %v4363_v40  ;;  %v3945_v50 = vadd.f32 %v17051_v47, %v3523_v7  ;;  %v17053_v35 = vld [vmem:[#allocation66_spill] sm:$0xff]  ;;  %v17056_v40 = vld [vmem:[#allocation120_spill] sm:$0xff]  ;;  %v17062_v2 = vld [vmem:[#allocation123_spill] sm:$0xff] }
 0x2be   : > { %v5249_v5 = vmul.f32 %v14593_v21, %v5210_v10  ;;  %v5213_v9 = vadd.f32 %v14570_v37, %v5174_v44  ;;  %v5173_v22 = vadd.f32 %v5062_v36, %v4751_v3  ;;  %11956 = vmatprep.mubr.msk.f32.mxu0 %vm5314_vm1, %v5279_v28  ;;  %v4756_v39 = vadd.f32 %v14553_v62, %v4366_v51 }
 0x2bf   : > { %v11911_v42 = vpop.f32.mrf.mxu1  ;;  %11957 = vmatmul.mubr.msk.f32.gmra.mxu0 %vm5314_vm1, %v5280_v46  ;;  %v5282_v45 = vmax.f32 %v5250_v24, 0.0  ;;  %v4368_v33 = vadd.f32 %v17052_v15, %v3946_v20  ;;  %v3141_v3 = vadd.f32 %v17053_v35, %v2719_v30  ;;  %v3948_v62 = vadd.f32 %v17055_v25, %v17054_v38  ;;  %v17058_v24 = vld [vmem:[#allocation122_spill] sm:$0xff]  ;;  %v17067_v38 = vld [vmem:[#allocation69_spill] sm:$0xff] }
 0x2c0   : > { %v5281_v59 = vmax.f32 %v5249_v5, 0.0  ;;  %v5212_v6 = vadd.f32 %v14570_v37, %v5173_v22  ;;  %v5176_v17 = vadd.f32 %v11911_v42, %v4754_v32  ;;  %v5252_v56 = vmul.f32 %v14593_v21, %v5213_v9  ;;  %v17059_v32 = vld [vmem:[#allocation161_spill] sm:$0xff]  ;;  %v14743_v9 = vpop.f32.mrf.mxu0  ;;  %v17063_v42 = vld [vmem:[#allocation126_spill] sm:$0xff] }
 0x2c1   : > { %v5072_v43 = vpop.f32.mrf.mxu1  ;;  %v3947_v28 = vadd.f32 %v17056_v40, %v3525_v63  ;;  %v4755_v10 = vadd.f32 %v14583_v18, %v4365_v27  ;;  %v4367_v7 = vadd.f32 %v17057_v58, %v3945_v50  ;;  %v3527_v36 = vadd.f32 %v17058_v24, %v14617_v52  ;;  %v17061_v63 = vld [vmem:[#allocation121_spill] sm:$0xff]  ;;  %v17069_v40 = vld [vmem:[#allocation127_spill] sm:$0xff] }
 0x2c2   : > { %v5251_v49 = vmul.f32 %v14593_v21, %v5212_v6  ;;  %v5215_v34 = vadd.f32 %v14570_v37, %v5176_v17  ;;  %v5175_v29 = vadd.f32 %v5072_v43, %v4753_v61  ;;  %11959 = vmatprep.mubr.msk.f32.mxu0 %vm5314_vm1, %v5281_v59  ;;  %v4370_v5 = vadd.f32 %v17059_v32, %v3948_v62  ;;  %v17064_v59 = vld [vmem:[#allocation163_spill] sm:$0xff]  ;;  %v14762_v43 = vpop.f32.mrf.mxu0  ;;  %v17068_v62 = vld [vmem:[#allocation125_spill] sm:$0xff] }
 0x2c3   : > { %v11914_v44 = vpop.f32.mrf.mxu1  ;;  %11960 = vmatmul.mubr.msk.f32.gmra.mxu0 %vm5314_vm1, %v5282_v45  ;;  %v5284_v22 = vmax.f32 %v5252_v56, 0.0  ;;  %v4758_v30 = vadd.f32 %v14610_v19, %v4368_v33  ;;  %v2721_v52 = vadd.f32 %v17060_v1, %v14539_v53  ;;  %v3950_v27 = vadd.f32 %v17062_v2, %v17061_v63  ;;  %v17065_v45 = vld [vmem:[#allocation124_spill] sm:$0xff]  ;;  %v17073_v1 = vld [vmem:[#allocation67_spill] sm:$0xff]  ;;  %v17076_v2 = vld [vmem:[#allocation134_spill] sm:$0xff] }
 0x2c4   : > { %v5283_v55 = vmax.f32 %v5251_v49, 0.0  ;;  %v5214_v51 = vadd.f32 %v14570_v37, %v5175_v29  ;;  %v5178_v46 = vadd.f32 %v11914_v44, %v4756_v39  ;;  %v5254_v13 = vmul.f32 %v14593_v21, %v5215_v34  ;;  %v17066_v49 = vld [vmem:[#allocation164_spill] sm:$0xff]  ;;  %v17075_v63 = vld [vmem:[#allocation131_spill] sm:$0xff] }
 0x2c5   : > { %v5082_v18 = vpop.f32.mrf.mxu1  ;;  %v3529_v61 = vadd.f32 %v17063_v42, %v14694_v41  ;;  %v4369_v6 = vadd.f32 %v17064_v59, %v3947_v28  ;;  %v4757_v19 = vadd.f32 %v14627_v14, %v4367_v7  ;;  %v3949_v56 = vadd.f32 %v17065_v45, %v3527_v36  ;;  %v17070_v28 = vld [vmem:[#allocation128_spill] sm:$0xff]  ;;  %v17071_v7 = vld [vmem:[#allocation166_spill] sm:$0xff] }
 0x2c6   : > { %v5253_v16 = vmul.f32 %v14593_v21, %v5214_v51  ;;  %v5217_v8 = vadd.f32 %v14570_v37, %v5178_v46  ;;  %v5177_v20 = vadd.f32 %v5082_v18, %v4755_v10  ;;  %11962 = vmatprep.mubr.msk.f32.mxu0 %vm5314_vm1, %v5283_v55  ;;  %v4760_v53 = vadd.f32 %v14651_v11, %v4370_v5  ;;  %v17072_v36 = vld [vmem:[#allocation130_spill] sm:$0xff] }
 0x2c7   : > { %v11917_v17 = vpop.f32.mrf.mxu1  ;;  %11963 = vmatmul.mubr.msk.f32.gmra.mxu0 %vm5314_vm1, %v5284_v22  ;;  %v5286_v15 = vmax.f32 %v5254_v13, 0.0  ;;  %v4372_v34 = vadd.f32 %v17066_v49, %v3950_v27  ;;  %v3143_v25 = vadd.f32 %v17067_v38, %v2721_v52  ;;  %v3952_v11 = vadd.f32 %v17069_v40, %v17068_v62  ;;  %v4710_v22 = vpop.f32.mrf.mxu0  ;;  %v17079_v49 = vld [vmem:[#allocation133_spill] sm:$0xff] }
 0x2c8   : > { %v5285_v47 = vmax.f32 %v5253_v16, 0.0  ;;  %v5216_v50 = vadd.f32 %v14570_v37, %v5177_v20  ;;  %v5180_v39 = vadd.f32 %v11917_v17, %v4758_v30  ;;  %v5256_v41 = vmul.f32 %v14593_v21, %v5217_v8 }
 0x2c9   : > { %v5092_v33 = vpop.f32.mrf.mxu1  ;;  %v3951_v10 = vadd.f32 %v17070_v28, %v3529_v61  ;;  %v4759_v44 = vadd.f32 %v14667_v60, %v4369_v6  ;;  %v4371_v55 = vadd.f32 %v17071_v7, %v3949_v56  ;;  %v3531_v32 = vadd.f32 %v17072_v36, %v3141_v3  ;;  %v17074_v3 = vld [vmem:[#allocation129_spill] sm:$0xff]  ;;  %v17083_v28 = vld [vmem:[#allocation138_spill] sm:$0xff] }
 0x2ca   : > { %v5255_v29 = vmul.f32 %v14593_v21, %v5216_v50  ;;  %v5219_v14 = vadd.f32 %v14570_v37, %v5180_v39  ;;  %v5179_v35 = vadd.f32 %v5092_v33, %v4757_v19  ;;  %11965 = vmatprep.mubr.msk.f32.mxu0 %vm5314_vm1, %v5285_v47  ;;  %v4374_v5 = vadd.f32 %v14489_v48, %v3952_v11  ;;  %v17077_v19 = vld [vmem:[#allocation132_spill] sm:$0xff]  ;;  %v11882_v50 = vpop.f32.mrf.mxu0 }
 0x2cb   : > { %v11920_v58 = vpop.f32.mrf.mxu1  ;;  %11966 = vmatmul.mubr.msk.f32.gmra.mxu0 %vm5314_vm1, %v5286_v15  ;;  %v5288_v13 = vmax.f32 %v5256_v41, 0.0  ;;  %v4762_v60 = vadd.f32 %v14686_v23, %v4372_v34  ;;  %v2723_v52 = vadd.f32 %v17073_v1, %v14546_v54  ;;  %v3954_v48 = vadd.f32 %v17075_v63, %v17074_v3  ;;  %v17078_v41 = vld [vmem:[#allocation72_spill] sm:$0xff]  ;;  %v17080_v34 = vld [vmem:[#allocation135_spill] sm:$0xff] }
 0x2cc   : > { %v5287_v51 = vmax.f32 %v5255_v29, 0.0  ;;  %v5218_v46 = vadd.f32 %v14570_v37, %v5179_v35  ;;  %v5182_v24 = vadd.f32 %v11920_v58, %v4760_v53  ;;  %v5258_v18 = vmul.f32 %v14593_v21, %v5219_v14  ;;  %v4720_v7 = vpop.f32.mrf.mxu0 }
 0x2cd   : > { %v5102_v30 = vpop.f32.mrf.mxu1  ;;  %v3533_v27 = vadd.f32 %v17076_v2, %v3143_v25  ;;  %v4373_v42 = vadd.f32 %v14494_v31, %v3951_v10  ;;  %v4761_v23 = vadd.f32 %v14706_v57, %v4371_v55  ;;  %v3953_v47 = vadd.f32 %v17077_v19, %v3531_v32 }
 0x2ce   : > { %v5257_v16 = vmul.f32 %v14593_v21, %v5218_v46  ;;  %v5221_v8 = vadd.f32 %v14570_v37, %v5182_v24  ;;  %v5181_v20 = vadd.f32 %v5102_v30, %v4759_v44  ;;  %11968 = vmatprep.mubr.msk.f32.mxu0 %vm5314_vm1, %v5287_v51  ;;  %v4764_v54 = vadd.f32 %v14725_v12, %v4374_v5  ;;  %v17081_v12 = vld [vmem:[#allocation136_spill] sm:$0xff]  ;;  %v17085_v5 = vld [vmem:[#allocation137_spill] sm:$0xff] }
 0x2cf   : > { %v11923_v61 = vpop.f32.mrf.mxu1  ;;  %11969 = vmatmul.mubr.msk.f32.gmra.mxu0 %vm5314_vm1, %v5288_v13  ;;  %v5290_v39 = vmax.f32 %v5258_v18, 0.0  ;;  %v4376_v31 = vadd.f32 %v14496_v26, %v3954_v48  ;;  %v3145_v33 = vadd.f32 %v17078_v41, %v2723_v52  ;;  %v3956_v29 = vadd.f32 %v17080_v34, %v17079_v49  ;;  %v17082_v26 = vld [vmem:[#allocation167_spill] sm:$0xff]  ;;  %v17084_v44 = vld [vmem:[#allocation168_spill] sm:$0xff]  ;;  %v17087_v30 = vld [vmem:[#allocation169_spill] sm:$0xff]  ;;  %v11885_v48 = vpop.f32.mrf.mxu0 }
 0x2d0   : > { %v5289_v59 = vmax.f32 %v5257_v16, 0.0  ;;  %v5220_v6 = vadd.f32 %v14570_v37, %v5181_v20  ;;  %v5184_v17 = vadd.f32 %v11923_v61, %v4762_v60  ;;  %v5260_v45 = vmul.f32 %v14593_v21, %v5221_v8  ;;  %v17086_v13 = vld [vmem:[#allocation139_spill] sm:$0xff]  ;;  %v17088_v52 = vld [vmem:[#allocation140_spill] sm:$0xff] }
 0x2d1   : > { %v5112_v56 = vpop.f32.mrf.mxu1  ;;  %v3955_v14 = vadd.f32 %v17081_v12, %v3533_v27  ;;  %v4763_v35 = vadd.f32 %v14743_v9, %v4373_v42  ;;  %v4375_v25 = vadd.f32 %v17082_v26, %v3953_v47  ;;  %v3535_v10 = vadd.f32 %v17083_v28, %v3145_v33 }
 0x2d2   : > { %v5259_v53 = vmul.f32 %v14593_v21, %v5220_v6  ;;  %v5223_v15 = vadd.f32 %v14570_v37, %v5184_v17  ;;  %v5183_v57 = vadd.f32 %v5112_v56, %v4761_v23  ;;  %11971 = vmatprep.mubr.msk.f32.mxu0 %vm5314_vm1, %v5289_v59  ;;  %v4378_v58 = vadd.f32 %v17084_v44, %v3956_v29 }
 0x2d3   : > { %v11926_v38 = vpop.f32.mrf.mxu1  ;;  %11972 = vmatmul.mubr.msk.f32.gmra.mxu0 %vm5314_vm1, %v5290_v39  ;;  %v5292_v55 = vmax.f32 %v5260_v45, 0.0  ;;  %v4766_v9 = vadd.f32 %v14762_v43, %v4376_v31  ;;  %v3958_v18 = vadd.f32 %v17086_v13, %v17085_v5  ;;  %v4377_v60 = vadd.f32 %v17087_v30, %v3955_v14  ;;  %v4730_v39 = vpop.f32.mrf.mxu0  ;;  %v10460_v5 = vld [vmem:[%s16570_s11 + $0x70] sm:$0xff]  ;;  %v10423_v13 = vld [vmem:[%s16570_s11 + $0x48] sm:$0xff]  ;;  %v10422_v30 = vld [vmem:[%s16570_s11 + $0x40] sm:$0xff] }
 0x2d4   : > { %v5291_v62 = vmax.f32 %v5259_v53, 0.0  ;;  %v5222_v40 = vadd.f32 %v14570_v37, %v5183_v57  ;;  %v5186_v11 = vadd.f32 %v11926_v38, %v4764_v54  ;;  %v5262_v51 = vmul.f32 %v14593_v21, %v5223_v15 }
 0x2d5   : > { %v5122_v46 = vpop.f32.mrf.mxu1  ;;  %v4765_v8 = vadd.f32 %v4710_v22, %v4375_v25  ;;  %v3957_v3 = vadd.f32 %v17088_v52, %v3535_v10  ;;  %v4768_v63 = vadd.f32 %v11882_v50, %v4378_v58  ;;  %v4380_v61 = vadd.f32 %v14531_v4, %v3958_v18  ;;  %v5810_v58 = vld [vmem:[%s16570_s11] sm:$0xff]  ;;  %v10459_v18 = vld [vmem:[%s16570_s11 + $0x68] sm:$0xff] }
 0x2d6   : > { %v5261_v24 = vmul.f32 %v14593_v21, %v5222_v40  ;;  %v5225_v36 = vadd.f32 %v14570_v37, %v5186_v11  ;;  %v5185_v32 = vadd.f32 %v5122_v46, %v4763_v35  ;;  %11974 = vmatprep.mubr.msk.f32.mxu0 %vm5314_vm1, %v5291_v62  ;;  %v5294_v2 = vmax.f32 %v5262_v51, 0.0  ;;  %12054 = vmatprep.subr.mxu0 %v5810_v58  ;;  %v5747_v51 = vld [vmem:[#allocation3 + $0x8] sm:$0xff]  ;;  %v10425_v46 = vld [vmem:[%s16570_s11 + $0x58] sm:$0xff] }
 0x2d7   : > { %v11929_v16 = vpop.f32.mrf.mxu1  ;;  %11975 = vmatmul.mubr.msk.f32.gmra.mxu0 %vm5314_vm1, %v5292_v55  ;;  %v4767_v22 = vadd.f32 %v4720_v7, %v4377_v60  ;;  %v4379_v19 = vadd.f32 %v14555_v0, %v3957_v3  ;;  %v4770_v31 = vadd.f32 %v11885_v48, %v4380_v61  ;;  %v5746_v7 = vld [vmem:[#allocation3] sm:$0xff]  ;;  %12104 = vmatprep.subr.mxu1 %v10425_v46  ;;  %v10458_v60 = vld [vmem:[%s16570_s11 + $0x60] sm:$0xff] }
 0x2d8   : > { %v5293_v20 = vmax.f32 %v5261_v24, 0.0  ;;  %v5224_v1 = vadd.f32 %v14570_v37, %v5185_v32  ;;  %v5188_v43 = vadd.f32 %v11929_v16, %v4766_v9  ;;  %v5264_v27 = vmul.f32 %v14593_v21, %v5225_v36  ;;  %12055 = vmatpush3.msra.mxu0 %v5810_v58  ;;  %v10461_v24 = vld [vmem:[%s16570_s11 + $0x78] sm:$0xff]  ;;  %v10424_v32 = vld [vmem:[%s16570_s11 + $0x50] sm:$0xff] }
 0x2d9   : > { %v5132_v42 = vpop.f32.mrf.mxu1  ;;  %v4769_v0 = vadd.f32 %v4730_v39, %v4379_v19  ;;  %v17090_v9 = vmov 0.0   ;;  %12160 = vmatprep.subr.mxu0 %v10461_v24  ;;  %v14884_v16 = vld [vmem:[%s16570_s11 + $0x98] sm:$0xff] }
 0x2da   : > { %v5263_v23 = vmul.f32 %v14593_v21, %v5224_v1  ;;  %v5227_v59 = vadd.f32 %v14570_v37, %v5188_v43  ;;  %v5187_v6 = vadd.f32 %v5132_v42, %v4765_v8  ;;  %11977 = vmatprep.mubr.msk.f32.mxu0 %vm5314_vm1, %v5293_v20  ;;  %v5296_v45 = vmax.f32 %v5264_v27, 0.0  ;;  %5710 = vst.msk [vmem:[#allocation3 + $0x10] sm:$0x1] %vm5709_vm3, %v17090_v9  ;;  %v14890_v8 = vld [vmem:[%s16570_s11 + $0xb8] sm:$0xff]  ;;  %v14896_v20 = vld [vmem:[%s16568_s9] ss:$0 sm:$0xff] }
 0x2db   : > { %v11932_v17 = vpop.f32.mrf.mxu1  ;;  %11978 = vmatmul.mubr.msk.f32.gmra.mxu0 %vm5314_vm1, %v5294_v2  ;;  %5713 = vst.msk [vmem:[#allocation3 + $0x121] sm:$0x1] %vm5709_vm3, %v17090_v9  ;;  %v14901_v43 = vld [vmem:[%s16569_s10] ss:$0 sm:$0xff] }
 0x2dc   : > { %v5295_v47 = vmax.f32 %v5263_v23, 0.0  ;;  %v5226_v54 = vadd.f32 %v14570_v37, %v5187_v6  ;;  %v5190_v50 = vadd.f32 %v11932_v17, %v4768_v63  ;;  %v5266_v4 = vmul.f32 %v14593_v21, %v5227_v59  ;;  %v17092_v9 = vld [vmem:[#allocation38_spill] sm:$0xff] }
 0x2dd   : > { %v5142_v56 = vpop.f32.mrf.mxu1 }
 0x2de   : > { %v5265_v53 = vmul.f32 %v14593_v21, %v5226_v54  ;;  %v5229_v15 = vadd.f32 %v14570_v37, %v5190_v50  ;;  %v5189_v57 = vadd.f32 %v5142_v56, %v4767_v22  ;;  %11980 = vmatprep.mubr.msk.f32.mxu0 %vm5314_vm1, %v5295_v47  ;;  %v5298_v29 = vmax.f32 %v5266_v4, 0.0 }
 0x2df   : > { %v11935_v41 = vpop.f32.mrf.mxu1  ;;  %11981 = vmatmul.mubr.msk.f32.gmra.mxu0 %vm5314_vm1, %v5296_v45 }
 0x2e0   : > { %v5297_v33 = vmax.f32 %v5265_v53, 0.0  ;;  %v5228_v49 = vadd.f32 %v14570_v37, %v5189_v57  ;;  %v5192_v34 = vadd.f32 %v11935_v41, %v4770_v31  ;;  %v5268_v12 = vmul.f32 %v14593_v21, %v5229_v15 }
 0x2e1   : > { %v5152_v14 = vpop.f32.mrf.mxu1  ;;  %v5815_v36 = vld [vmem:[#allocation3 + $0x9] sm:$0xff] }
 0x2e2   : > { %v5267_v35 = vmul.f32 %v14593_v21, %v5228_v49  ;;  %v5231_v38 = vadd.f32 %v14570_v37, %v5192_v34  ;;  %v5191_v26 = vadd.f32 %v5152_v14, %v4769_v0  ;;  %11983 = vmatprep.mubr.msk.f32.mxu0 %vm5314_vm1, %v5297_v33  ;;  %v5300_v40 = vmax.f32 %v5268_v12, 0.0 }
 0x2e3   : > { %11984 = vmatmul.mubr.msk.f32.gmra.mxu0 %vm5314_vm1, %v5298_v29 }
 0x2e4   : > { %v5299_v25 = vmax.f32 %v5267_v35, 0.0  ;;  %v5230_v62 = vadd.f32 %v14570_v37, %v5191_v26  ;;  %v5270_v11 = vmul.f32 %v14593_v21, %v5231_v38  ;;  %v5814_v37 = vld [vmem:[#allocation3 + $0x1] sm:$0xff]  ;;  %v17091_v26 = vld [vmem:[#allocation37_spill] sm:$0xff] }
 0x2e5   : > { %12000 = vmatprep.mubr.msk.f32.mxu1 %vm5314_vm1, %v5814_v37 }
 0x2e6   : > { %v5269_v28 = vmul.f32 %v14593_v21, %v5230_v62  ;;  %11986 = vmatprep.mubr.msk.f32.mxu0 %vm5314_vm1, %v5299_v25  ;;  %v5302_v44 = vmax.f32 %v5270_v11, 0.0  ;;  %v17089_v21 = vld [vmem:[#allocation36_spill] sm:$0xff]  ;;  %12001 = vmatmul.mubr.msk.f32.vlgmr.msra.gmra.mxu1 %vm5314_vm1, %v5815_v36 }
 0x2e7   : > { %11987 = vmatmul.mubr.msk.f32.gmra.mxu0 %vm5314_vm1, %v5300_v40  ;;  %v5778_v55 = vmul.f32 %v17089_v21, %v5746_v7  ;;  %12105 = vmatpush3.msra.mxu1 %v10425_v46 }
 0x2e8   : > { %v5301_v10 = vmax.f32 %v5269_v28, 0.0  ;;  %12106 = vmatprep.subr.mxu1 %v10424_v32 }
 0x2e9   : > { %12107 = vmatpush3.msra.mxu1 %v10424_v32 }
 0x2ea   : > { %11989 = vmatprep.mubr.msk.f32.mxu0 %vm5314_vm1, %v5301_v10  ;;  %12108 = vmatprep.subr.mxu1 %v10423_v13 }
 0x2eb   : > { %11990 = vmatmul.mubr.msk.f32.gmra.mxu0 %vm5314_vm1, %v5302_v44  ;;  %12109 = vmatpush3.msra.mxu1 %v10423_v13 }
 0x2ec   : > { %12056 = vmatprep.mubr.msk.f32.mxu0 %vm5314_vm1, %v5778_v55  ;;  %12110 = vmatprep.subr.mxu1 %v10422_v30 }
 0x2ed   : > { %12111 = vmatpush3.msra.mxu1 %v10422_v30 }
 0x2ee   : > { %12216 = vmatprep.subr.mxu1 %v14884_v16 }
 0x2ef   : > { %12057 = vmatmul.mubr.msk.f32.vlgmr.msra.gmra.mxu0 %vm5314_vm1, %v5747_v51 }
 0x2f0   : > { %12161 = vmatpush3.msra.mxu0 %v10461_v24 }
 0x2f1   : > { %12162 = vmatprep.subr.mxu0 %v10460_v5 }
 0x2f2   : > { %12163 = vmatpush3.msra.mxu0 %v10460_v5 }
 0x2f3   : > { %12164 = vmatprep.subr.mxu0 %v10459_v18 }
 0x2f4   : > { %12165 = vmatpush3.msra.mxu0 %v10459_v18 }
 0x2f5   : > { %12166 = vmatprep.subr.mxu0 %v10458_v60 }
 0x2f6   : > { %12167 = vmatpush3.msra.mxu0 %v10458_v60 }
 0x2f7   : > { %12272 = vmatprep.subr.mxu0 %v14890_v8 }
 0x36f   : > { %v11946_v1 = vpop.f32.mrf.mxu0 }
 0x370   : > { %v5483_v52 = vadd.f32 %v11946_v1, %v14896_v20 }
 0x371   : > { %v5477_v3 = vpop.f32.mrf.mxu0 }
 0x372   : > { %v5644_v63 = vmul.f32 %v14901_v43, %v5483_v52  ;;  %v5478_v48 = vadd.f32 %v14896_v20, %v5477_v3 }
 0x373   : > { %v11949_v2 = vpop.f32.mrf.mxu0 }
 0x374   : > { %v5676_v27 = vmax.f32 %v5644_v63, 0.0  ;;  %v5643_v42 = vmul.f32 %v14901_v43, %v5478_v48  ;;  %v5493_v61 = vadd.f32 %v11949_v2, %v14896_v20  ;;  %v17093_v2 = vld [vmem:[#allocation41_spill] sm:$0xff] }
 0x375   : > { %v5487_v23 = vpop.f32.mrf.mxu0 }
 0x376   : > { %5715 = vst.msk [vmem:[#allocation3 + $0x19] sm:$0xff] %vm5314_vm1, %v5676_v27  ;;  %v5675_v59 = vmax.f32 %v5643_v42, 0.0  ;;  %v5646_v6 = vmul.f32 %v14901_v43, %v5493_v61  ;;  %v5488_v22 = vadd.f32 %v14896_v20, %v5487_v23 }
 0x377   : > { %v11952_v17 = vpop.f32.mrf.mxu0 }
 0x378   : > { %5714 = vst.msk [vmem:[#allocation3 + $0x11] sm:$0xff] %vm5314_vm1, %v5675_v59  ;;  %v5678_v19 = vmax.f32 %v5646_v6, 0.0  ;;  %v5645_v47 = vmul.f32 %v14901_v43, %v5488_v22  ;;  %v5503_v54 = vadd.f32 %v11952_v17, %v14896_v20 }
 0x379   : > { %v5497_v50 = vpop.f32.mrf.mxu0 }
 0x37a   : > { %5717 = vst.msk [vmem:[#allocation3 + $0x29] sm:$0xff] %vm5314_vm1, %v5678_v19  ;;  %v5677_v39 = vmax.f32 %v5645_v47, 0.0  ;;  %v5648_v45 = vmul.f32 %v14901_v43, %v5503_v54  ;;  %v5498_v4 = vadd.f32 %v14896_v20, %v5497_v50 }
 0x37b   : > { %v11955_v56 = vpop.f32.mrf.mxu0 }
 0x37c   : > { %5716 = vst.msk [vmem:[#allocation3 + $0x21] sm:$0xff] %vm5314_vm1, %v5677_v39  ;;  %v5680_v31 = vmax.f32 %v5648_v45, 0.0  ;;  %v5647_v53 = vmul.f32 %v14901_v43, %v5498_v4  ;;  %v5513_v15 = vadd.f32 %v11955_v56, %v14896_v20  ;;  %v17094_v45 = vld [vmem:[#allocation44_spill] sm:$0xff] }
 0x37d   : > { %v5507_v57 = vpop.f32.mrf.mxu0  ;;  %v14932_v38 = vld [vmem:[#allocation3 + $0x19] sm:$0xff] }
 0x37e   : > { %5719 = vst.msk [vmem:[#allocation3 + $0x39] sm:$0xff] %vm5314_vm1, %v5680_v31  ;;  %v5679_v41 = vmax.f32 %v5647_v53, 0.0  ;;  %v5650_v0 = vmul.f32 %v14901_v43, %v5513_v15  ;;  %v5508_v33 = vadd.f32 %v14896_v20, %v5507_v57 }
 0x37f   : > { %v11958_v49 = vpop.f32.mrf.mxu0  ;;  %v14923_v34 = vld [vmem:[#allocation3 + $0x11] sm:$0xff] }
 0x380   : > { %v14925_v29 = vld [vmem:[#allocation3 + $0x10] sm:$0xff]  ;;  %5718 = vst.msk [vmem:[#allocation3 + $0x31] sm:$0xff] %vm5314_vm1, %v5679_v41  ;;  %v5682_v12 = vmax.f32 %v5650_v0, 0.0  ;;  %v5649_v14 = vmul.f32 %v14901_v43, %v5508_v33  ;;  %v5523_v35 = vadd.f32 %v11958_v49, %v14896_v20  ;;  %12003 = vmatprep.mubr.msk.f32.mxu1 %vm5314_vm1, %v14923_v34  ;;  %v14942_v10 = vld [vmem:[#allocation3 + $0x18] sm:$0xff] }
 0x381   : > { %v5780_v25 = vmul.f32 %v17091_v26, %v14925_v29  ;;  %v5517_v62 = vpop.f32.mrf.mxu0  ;;  %12004 = vmatmul.mubr.msk.f32.gmra.mxu1 %vm5314_vm1, %v14932_v38  ;;  %v14955_v46 = vld [vmem:[#allocation3 + $0x29] sm:$0xff] }
 0x382   : > { %5721 = vst.msk [vmem:[#allocation3 + $0x49] sm:$0xff] %vm5314_vm1, %v5682_v12  ;;  %v5681_v40 = vmax.f32 %v5649_v14, 0.0  ;;  %v5652_v11 = vmul.f32 %v14901_v43, %v5523_v35  ;;  %v5518_v28 = vadd.f32 %v14896_v20, %v5517_v62 }
 0x383   : > { %12059 = vmatprep.mubr.msk.f32.mxu0 %vm5314_vm1, %v5780_v25  ;;  %v11961_v44 = vpop.f32.mrf.mxu0  ;;  %v14946_v58 = vld [vmem:[#allocation3 + $0x21] sm:$0xff] }
 0x384   : > { %12060 = vmatmul.mubr.msk.f32.gmra.mxu0 %vm5314_vm1, %v14942_v10  ;;  %v14948_v37 = vld [vmem:[#allocation3 + $0x20] sm:$0xff]  ;;  %5720 = vst.msk [vmem:[#allocation3 + $0x41] sm:$0xff] %vm5314_vm1, %v5681_v40  ;;  %v5684_v7 = vmax.f32 %v5652_v11, 0.0  ;;  %v5651_v55 = vmul.f32 %v14901_v43, %v5518_v28  ;;  %v5533_v51 = vadd.f32 %v11961_v44, %v14896_v20  ;;  %12006 = vmatprep.mubr.msk.f32.mxu1 %vm5314_vm1, %v14946_v58  ;;  %v14965_v18 = vld [vmem:[#allocation3 + $0x28] sm:$0xff] }
 0x385   : > { %v5782_v24 = vmul.f32 %v17092_v9, %v14948_v37  ;;  %v5527_v36 = vpop.f32.mrf.mxu0  ;;  %12007 = vmatmul.mubr.msk.f32.gmra.mxu1 %vm5314_vm1, %v14955_v46  ;;  %v14978_v48 = vld [vmem:[#allocation3 + $0x39] sm:$0xff] }
 0x386   : > { %5723 = vst.msk [vmem:[#allocation3 + $0x59] sm:$0xff] %vm5314_vm1, %v5684_v7  ;;  %v5683_v32 = vmax.f32 %v5651_v55, 0.0  ;;  %v5654_v5 = vmul.f32 %v14901_v43, %v5533_v51  ;;  %v5528_v13 = vadd.f32 %v14896_v20, %v5527_v36  ;;  %v17097_v25 = vld [vmem:[#allocation47_spill] sm:$0xff] }
 0x387   : > { %12062 = vmatprep.mubr.msk.f32.mxu0 %vm5314_vm1, %v5782_v24  ;;  %v11964_v30 = vpop.f32.mrf.mxu0  ;;  %v14969_v60 = vld [vmem:[#allocation3 + $0x31] sm:$0xff] }
 0x388   : > { %12063 = vmatmul.mubr.msk.f32.gmra.mxu0 %vm5314_vm1, %v14965_v18  ;;  %v14971_v1 = vld [vmem:[#allocation3 + $0x30] sm:$0xff]  ;;  %5722 = vst.msk [vmem:[#allocation3 + $0x51] sm:$0xff] %vm5314_vm1, %v5683_v32  ;;  %v5686_v52 = vmax.f32 %v5654_v5, 0.0  ;;  %v5653_v3 = vmul.f32 %v14901_v43, %v5528_v13  ;;  %v5543_v63 = vadd.f32 %v11964_v30, %v14896_v20  ;;  %12009 = vmatprep.mubr.msk.f32.mxu1 %vm5314_vm1, %v14969_v60  ;;  %v14988_v6 = vld [vmem:[#allocation3 + $0x38] sm:$0xff] }
 0x389   : > { %v5784_v27 = vmul.f32 %v17093_v2, %v14971_v1  ;;  %v5537_v42 = vpop.f32.mrf.mxu0  ;;  %12010 = vmatmul.mubr.msk.f32.gmra.mxu1 %vm5314_vm1, %v14978_v48  ;;  %v15001_v39 = vld [vmem:[#allocation3 + $0x49] sm:$0xff]  ;;  %v17100_v30 = vld [vmem:[#allocation50_spill] sm:$0xff] }
 0x38a   : > { %5725 = vst.msk [vmem:[#allocation3 + $0x69] sm:$0xff] %vm5314_vm1, %v5686_v52  ;;  %v5685_v61 = vmax.f32 %v5653_v3, 0.0  ;;  %v5656_v23 = vmul.f32 %v14901_v43, %v5543_v63  ;;  %v5538_v59 = vadd.f32 %v14896_v20, %v5537_v42 }
 0x38b   : > { %12065 = vmatprep.mubr.msk.f32.mxu0 %vm5314_vm1, %v5784_v27  ;;  %v11967_v22 = vpop.f32.mrf.mxu0  ;;  %v14992_v17 = vld [vmem:[#allocation3 + $0x41] sm:$0xff] }
 0x38c   : > { %12066 = vmatmul.mubr.msk.f32.gmra.mxu0 %vm5314_vm1, %v14988_v6  ;;  %v14994_v19 = vld [vmem:[#allocation3 + $0x40] sm:$0xff]  ;;  %5724 = vst.msk [vmem:[#allocation3 + $0x61] sm:$0xff] %vm5314_vm1, %v5685_v61  ;;  %v5688_v47 = vmax.f32 %v5656_v23, 0.0  ;;  %v5655_v54 = vmul.f32 %v14901_v43, %v5538_v59  ;;  %v5553_v50 = vadd.f32 %v11967_v22, %v14896_v20  ;;  %12012 = vmatprep.mubr.msk.f32.mxu1 %vm5314_vm1, %v14992_v17  ;;  %v15011_v57 = vld [vmem:[#allocation3 + $0x48] sm:$0xff] }
 0x38d   : > { %v5786_v4 = vmul.f32 %v17094_v45, %v14994_v19  ;;  %v5547_v56 = vpop.f32.mrf.mxu0  ;;  %12013 = vmatmul.mubr.msk.f32.gmra.mxu1 %vm5314_vm1, %v15001_v39  ;;  %v15024_v35 = vld [vmem:[#allocation3 + $0x59] sm:$0xff] }
 0x38e   : > { %5727 = vst.msk [vmem:[#allocation3 + $0x79] sm:$0xff] %vm5314_vm1, %v5688_v47  ;;  %v5687_v31 = vmax.f32 %v5655_v54, 0.0  ;;  %v5658_v53 = vmul.f32 %v14901_v43, %v5553_v50  ;;  %v5548_v15 = vadd.f32 %v14896_v20, %v5547_v56  ;;  %17096 = vst [vmem:[#allocation40_spill] sm:$0xff] %v15024_v35  ;;  %v17103_v56 = vld [vmem:[#allocation53_spill] sm:$0xff] }
 0x38f   : > { %12068 = vmatprep.mubr.msk.f32.mxu0 %vm5314_vm1, %v5786_v4  ;;  %v11970_v41 = vpop.f32.mrf.mxu0  ;;  %v15015_v0 = vld [vmem:[#allocation3 + $0x51] sm:$0xff] }
 0x390   : > { %12069 = vmatmul.mubr.msk.f32.gmra.mxu0 %vm5314_vm1, %v15011_v57  ;;  %17095 = vst [vmem:[#allocation39_spill] sm:$0xff] %v15015_v0  ;;  %v15017_v33 = vld [vmem:[#allocation3 + $0x50] sm:$0xff]  ;;  %5726 = vst.msk [vmem:[#allocation3 + $0x71] sm:$0xff] %vm5314_vm1, %v5687_v31  ;;  %v5690_v49 = vmax.f32 %v5658_v53, 0.0  ;;  %v5657_v12 = vmul.f32 %v14901_v43, %v5548_v15  ;;  %v5563_v14 = vadd.f32 %v11970_v41, %v14896_v20  ;;  %12015 = vmatprep.mubr.msk.f32.mxu1 %vm5314_vm1, %v15015_v0  ;;  %v15034_v7 = vld [vmem:[#allocation3 + $0x58] sm:$0xff] }
 0x391   : > { %v5788_v62 = vmul.f32 %v17097_v25, %v15017_v33  ;;  %v5557_v40 = vpop.f32.mrf.mxu0  ;;  %12016 = vmatmul.mubr.msk.f32.gmra.mxu1 %vm5314_vm1, %v15024_v35  ;;  %v15047_v13 = vld [vmem:[#allocation3 + $0x69] sm:$0xff]  ;;  %v15259_v0 = vld [vmem:[#allocation3 + $0x1a] sm:$0xff] }
 0x392   : > { %5729 = vst.msk [vmem:[#allocation3 + $0x89] sm:$0xff] %vm5314_vm1, %v5690_v49  ;;  %v5689_v11 = vmax.f32 %v5657_v12, 0.0  ;;  %v5660_v28 = vmul.f32 %v14901_v43, %v5563_v14  ;;  %v5558_v44 = vadd.f32 %v14896_v20, %v5557_v40  ;;  %17099 = vst [vmem:[#allocation52_spill] sm:$0xff] %v15047_v13 }
 0x393   : > { %12071 = vmatprep.mubr.msk.f32.mxu0 %vm5314_vm1, %v5788_v62  ;;  %v11973_v55 = vpop.f32.mrf.mxu0  ;;  %v15038_v51 = vld [vmem:[#allocation3 + $0x61] sm:$0xff] }
 0x394   : > { %12072 = vmatmul.mubr.msk.f32.gmra.mxu0 %vm5314_vm1, %v15034_v7  ;;  %17098 = vst [vmem:[#allocation42_spill] sm:$0xff] %v15038_v51  ;;  %v15040_v24 = vld [vmem:[#allocation3 + $0x60] sm:$0xff]  ;;  %5728 = vst.msk [vmem:[#allocation3 + $0x81] sm:$0xff] %vm5314_vm1, %v5689_v11  ;;  %v5692_v36 = vmax.f32 %v5660_v28, 0.0  ;;  %v5659_v32 = vmul.f32 %v14901_v43, %v5558_v44  ;;  %v5573_v5 = vadd.f32 %v11973_v55, %v14896_v20  ;;  %12018 = vmatprep.mubr.msk.f32.mxu1 %vm5314_vm1, %v15038_v51  ;;  %v15057_v61 = vld [vmem:[#allocation3 + $0x68] sm:$0xff] }
 0x395   : > { %v5790_v52 = vmul.f32 %v17100_v30, %v15040_v24  ;;  %v5567_v3 = vpop.f32.mrf.mxu0  ;;  %12019 = vmatmul.mubr.msk.f32.gmra.mxu1 %vm5314_vm1, %v15047_v13  ;;  %v15070_v4 = vld [vmem:[#allocation3 + $0x79] sm:$0xff]  ;;  %v6494_v13 = vld [vmem:[#allocation3 + $0xa] sm:$0xff]  ;;  %v6947_v51 = vmul.f32 %v17089_v21, %v14925_v29  ;;  %v6949_v29 = vmul.f32 %v17091_v26, %v14948_v37 }
 0x396   : > { %5731 = vst.msk [vmem:[#allocation3 + $0x99] sm:$0xff] %vm5314_vm1, %v5692_v36  ;;  %v5691_v63 = vmax.f32 %v5659_v32, 0.0  ;;  %v5662_v27 = vmul.f32 %v14901_v43, %v5573_v5  ;;  %v5568_v42 = vadd.f32 %v14896_v20, %v5567_v3  ;;  %17102 = vst [vmem:[#allocation45_spill] sm:$0xff] %v15070_v4  ;;  %v17106_v36 = vld [vmem:[#allocation58_spill] sm:$0xff]  ;;  %v10495_v37 = vld [vmem:[%s16570_s11 + $0x88] sm:$0xff] }
 0x397   : > { %12074 = vmatprep.mubr.msk.f32.mxu0 %vm5314_vm1, %v5790_v52  ;;  %v11976_v23 = vpop.f32.mrf.mxu0  ;;  %v15061_v59 = vld [vmem:[#allocation3 + $0x71] sm:$0xff]  ;;  %v15301_v26 = vld [vmem:[#allocation3 + $0x3a] sm:$0xff] }
 0x398   : > { %12075 = vmatmul.mubr.msk.f32.gmra.mxu0 %vm5314_vm1, %v15057_v61  ;;  %17101 = vst [vmem:[#allocation43_spill] sm:$0xff] %v15061_v59  ;;  %v15063_v22 = vld [vmem:[#allocation3 + $0x70] sm:$0xff]  ;;  %5730 = vst.msk [vmem:[#allocation3 + $0x91] sm:$0xff] %vm5314_vm1, %v5691_v63  ;;  %v5694_v47 = vmax.f32 %v5662_v27, 0.0  ;;  %v5661_v54 = vmul.f32 %v14901_v43, %v5568_v42  ;;  %v5583_v50 = vadd.f32 %v11976_v23, %v14896_v20  ;;  %12021 = vmatprep.mubr.msk.f32.mxu1 %vm5314_vm1, %v15061_v59  ;;  %v15080_v12 = vld [vmem:[#allocation3 + $0x78] sm:$0xff] }
 0x399   : > { %v5792_v31 = vmul.f32 %v17103_v56, %v15063_v22  ;;  %v5577_v53 = vpop.f32.mrf.mxu0  ;;  %12022 = vmatmul.mubr.msk.f32.gmra.mxu1 %vm5314_vm1, %v15070_v4  ;;  %v15093_v55 = vld [vmem:[#allocation3 + $0x89] sm:$0xff] }
 0x39a   : > { %5733 = vst.msk [vmem:[#allocation3 + $0xa9] sm:$0xff] %vm5314_vm1, %v5694_v47  ;;  %v5693_v15 = vmax.f32 %v5661_v54, 0.0  ;;  %v5664_v41 = vmul.f32 %v14901_v43, %v5583_v50  ;;  %v5578_v49 = vadd.f32 %v14896_v20, %v5577_v53  ;;  %17105 = vst [vmem:[#allocation48_spill] sm:$0xff] %v15093_v55 }
 0x39b   : > { %12077 = vmatprep.mubr.msk.f32.mxu0 %vm5314_vm1, %v5792_v31  ;;  %v11979_v14 = vpop.f32.mrf.mxu0  ;;  %v15084_v62 = vld [vmem:[#allocation3 + $0x81] sm:$0xff] }
 0x39c   : > { %12078 = vmatmul.mubr.msk.f32.gmra.mxu0 %vm5314_vm1, %v15080_v12  ;;  %17104 = vst [vmem:[#allocation46_spill] sm:$0xff] %v15084_v62  ;;  %v15086_v40 = vld [vmem:[#allocation3 + $0x80] sm:$0xff]  ;;  %5732 = vst.msk [vmem:[#allocation3 + $0xa1] sm:$0xff] %vm5314_vm1, %v5693_v15  ;;  %v5696_v11 = vmax.f32 %v5664_v41, 0.0  ;;  %v5663_v28 = vmul.f32 %v14901_v43, %v5578_v49  ;;  %v5593_v44 = vadd.f32 %v11979_v14, %v14896_v20  ;;  %12024 = vmatprep.mubr.msk.f32.mxu1 %vm5314_vm1, %v15084_v62  ;;  %v15103_v27 = vld [vmem:[#allocation3 + $0x88] sm:$0xff] }
 0x39d   : > { %v5794_v32 = vmul.f32 %v17106_v36, %v15086_v40  ;;  %v5587_v5 = vpop.f32.mrf.mxu0  ;;  %12025 = vmatmul.mubr.msk.f32.gmra.mxu1 %vm5314_vm1, %v15093_v55  ;;  %v15116_v53 = vld [vmem:[#allocation3 + $0x99] sm:$0xff] }
 0x39e   : > { %5735 = vst.msk [vmem:[#allocation3 + $0xb9] sm:$0xff] %vm5314_vm1, %v5696_v11  ;;  %v5695_v52 = vmax.f32 %v5663_v28, 0.0  ;;  %v5666_v3 = vmul.f32 %v14901_v43, %v5593_v44  ;;  %v5588_v63 = vadd.f32 %v14896_v20, %v5587_v5  ;;  %17108 = vst [vmem:[#allocation51_spill] sm:$0xff] %v15116_v53  ;;  %v17109_v15 = vld [vmem:[#allocation59_spill] sm:$0xff] }
 0x39f   : > { %12080 = vmatprep.mubr.msk.f32.mxu0 %vm5314_vm1, %v5794_v32  ;;  %v11982_v42 = vpop.f32.mrf.mxu0  ;;  %v15107_v23 = vld [vmem:[#allocation3 + $0x91] sm:$0xff] }
 0x3a0   : > { %12081 = vmatmul.mubr.msk.f32.gmra.mxu0 %vm5314_vm1, %v15103_v27  ;;  %17107 = vst [vmem:[#allocation49_spill] sm:$0xff] %v15107_v23  ;;  %v15109_v47 = vld [vmem:[#allocation3 + $0x90] sm:$0xff]  ;;  %5734 = vst.msk [vmem:[#allocation3 + $0xb1] sm:$0xff] %vm5314_vm1, %v5695_v52  ;;  %v5698_v54 = vmax.f32 %v5666_v3, 0.0  ;;  %v5665_v50 = vmul.f32 %v14901_v43, %v5588_v63  ;;  %v5603_v31 = vadd.f32 %v11982_v42, %v14896_v20  ;;  %12027 = vmatprep.mubr.msk.f32.mxu1 %vm5314_vm1, %v15107_v23  ;;  %v15126_v44 = vld [vmem:[#allocation3 + $0x98] sm:$0xff] }
 0x3a1   : > { %v5796_v41 = vmul.f32 %v17109_v15, %v15109_v47  ;;  %v5597_v49 = vpop.f32.mrf.mxu0  ;;  %12028 = vmatmul.mubr.msk.f32.gmra.mxu1 %vm5314_vm1, %v15116_v53 }
 0x3a2   : > { %5737 = vst.msk [vmem:[#allocation3 + $0xc9] sm:$0xff] %vm5314_vm1, %v5698_v54  ;;  %v5697_v14 = vmax.f32 %v5665_v50, 0.0  ;;  %v5668_v11 = vmul.f32 %v14901_v43, %v5603_v31  ;;  %v5598_v28 = vadd.f32 %v14896_v20, %v5597_v49  ;;  %v15139_v54 = vld [vmem:[#allocation3 + $0xa9] sm:$0xff]  ;;  %v17112_v50 = vld [vmem:[#allocation62_spill] sm:$0xff] }
 0x3a3   : > { %12083 = vmatprep.mubr.msk.f32.mxu0 %vm5314_vm1, %v5796_v41  ;;  %v11985_v32 = vpop.f32.mrf.mxu0  ;;  %v15130_v5 = vld [vmem:[#allocation3 + $0xa1] sm:$0xff]  ;;  %17111 = vst [vmem:[#allocation55_spill] sm:$0xff] %v15139_v54 }
 0x3a4   : > { %12084 = vmatmul.mubr.msk.f32.gmra.mxu0 %vm5314_vm1, %v15126_v44  ;;  %17110 = vst [vmem:[#allocation54_spill] sm:$0xff] %v15130_v5  ;;  %v15132_v52 = vld [vmem:[#allocation3 + $0xa0] sm:$0xff]  ;;  %5736 = vst.msk [vmem:[#allocation3 + $0xc1] sm:$0xff] %vm5314_vm1, %v5697_v14  ;;  %v5700_v3 = vmax.f32 %v5668_v11, 0.0  ;;  %v5667_v63 = vmul.f32 %v14901_v43, %v5598_v28  ;;  %v5613_v42 = vadd.f32 %v11985_v32, %v14896_v20  ;;  %12030 = vmatprep.mubr.msk.f32.mxu1 %vm5314_vm1, %v15130_v5  ;;  %v15149_v28 = vld [vmem:[#allocation3 + $0xa8] sm:$0xff] }
 0x3a5   : > { %v5798_v31 = vmul.f32 %v17112_v50, %v15132_v52  ;;  %v5607_v41 = vpop.f32.mrf.mxu0  ;;  %12031 = vmatmul.mubr.msk.f32.gmra.mxu1 %vm5314_vm1, %v15139_v54 }
 0x3a6   : > { %5739 = vst.msk [vmem:[#allocation3 + $0xd9] sm:$0xff] %vm5314_vm1, %v5700_v3  ;;  %v5699_v49 = vmax.f32 %v5667_v63, 0.0  ;;  %v5670_v14 = vmul.f32 %v14901_v43, %v5613_v42  ;;  %v5608_v11 = vadd.f32 %v14896_v20, %v5607_v41  ;;  %v17115_v41 = vld [vmem:[#allocation65_spill] sm:$0xff] }
 0x3a7   : > { %12086 = vmatprep.mubr.msk.f32.mxu0 %vm5314_vm1, %v5798_v31  ;;  %v11988_v32 = vpop.f32.mrf.mxu0  ;;  %v15153_v5 = vld [vmem:[#allocation3 + $0xb1] sm:$0xff]  ;;  %v15162_v31 = vld [vmem:[#allocation3 + $0xb9] sm:$0xff] }
 0x3a8   : > { %12087 = vmatmul.mubr.msk.f32.gmra.mxu0 %vm5314_vm1, %v15149_v28  ;;  %17113 = vst [vmem:[#allocation57_spill] sm:$0xff] %v15153_v5  ;;  %v15155_v53 = vld [vmem:[#allocation3 + $0xb0] sm:$0xff]  ;;  %5738 = vst.msk [vmem:[#allocation3 + $0xd1] sm:$0xff] %vm5314_vm1, %v5699_v49  ;;  %v5702_v3 = vmax.f32 %v5670_v14, 0.0  ;;  %v5669_v63 = vmul.f32 %v14901_v43, %v5608_v11  ;;  %v5623_v42 = vadd.f32 %v11988_v32, %v14896_v20  ;;  %12033 = vmatprep.mubr.msk.f32.mxu1 %vm5314_vm1, %v15153_v5  ;;  %v15172_v32 = vld [vmem:[#allocation3 + $0xb8] sm:$0xff] }
 0x3a9   : > { %17114 = vst [vmem:[#allocation70_spill] sm:$0xff] %v15162_v31  ;;  %v5800_v54 = vmul.f32 %v17115_v41, %v15155_v53  ;;  %v5617_v23 = vpop.f32.mrf.mxu0  ;;  %12034 = vmatmul.mubr.msk.f32.gmra.mxu1 %vm5314_vm1, %v15162_v31 }
 0x3aa   : > { %5741 = vst.msk [vmem:[#allocation3 + $0xe9] sm:$0xff] %vm5314_vm1, %v5702_v3  ;;  %v5701_v49 = vmax.f32 %v5669_v63, 0.0  ;;  %v5672_v14 = vmul.f32 %v14901_v43, %v5623_v42  ;;  %v5618_v11 = vadd.f32 %v14896_v20, %v5617_v23  ;;  %v15185_v23 = vld [vmem:[#allocation3 + $0xc9] sm:$0xff] }
 0x3ab   : > { %12089 = vmatprep.mubr.msk.f32.mxu0 %vm5314_vm1, %v5800_v54  ;;  %v11991_v5 = vpop.f32.mrf.mxu0  ;;  %v15176_v55 = vld [vmem:[#allocation3 + $0xc1] sm:$0xff]  ;;  %17117 = vst [vmem:[#allocation73_spill] sm:$0xff] %v15185_v23 }
 0x3ac   : > { %12090 = vmatmul.mubr.msk.f32.gmra.mxu0 %vm5314_vm1, %v15172_v32  ;;  %17116 = vst [vmem:[#allocation75_spill] sm:$0xff] %v15176_v55  ;;  %v15178_v62 = vld [vmem:[#allocation3 + $0xc0] sm:$0xff]  ;;  %5740 = vst.msk [vmem:[#allocation3 + $0xe1] sm:$0xff] %vm5314_vm1, %v5701_v49  ;;  %v5704_v3 = vmax.f32 %v5672_v14, 0.0  ;;  %v5671_v63 = vmul.f32 %v14901_v43, %v5618_v11  ;;  %v5633_v42 = vadd.f32 %v11991_v5, %v14896_v20  ;;  %12036 = vmatprep.mubr.msk.f32.mxu1 %vm5314_vm1, %v15176_v55  ;;  %v17118_v54 = vld [vmem:[#allocation68_spill] sm:$0xff] }
 0x3ad   : > { %v5802_v31 = vmul.f32 %v17118_v54, %v15178_v62  ;;  %v5627_v4 = vpop.f32.mrf.mxu0  ;;  %12037 = vmatmul.mubr.msk.f32.gmra.mxu1 %vm5314_vm1, %v15185_v23  ;;  %v15195_v5 = vld [vmem:[#allocation3 + $0xc8] sm:$0xff] }
 0x3ae   : > { %5743 = vst.msk [vmem:[#allocation3 + $0xf9] sm:$0xff] %vm5314_vm1, %v5704_v3  ;;  %v5703_v49 = vmax.f32 %v5671_v63, 0.0  ;;  %v5674_v14 = vmul.f32 %v14901_v43, %v5633_v42  ;;  %v5628_v11 = vadd.f32 %v14896_v20, %v5627_v4  ;;  %v15207_v20 = vld [vmem:[#allocation3 + $0xd9] sm:$0xff] }
 0x3af   : > { %12092 = vmatprep.mubr.msk.f32.mxu0 %vm5314_vm1, %v5802_v31  ;;  %v15199_v55 = vld [vmem:[#allocation3 + $0xd1] sm:$0xff]  ;;  %17120 = vst [vmem:[#allocation60_spill] sm:$0xff] %v15207_v20  ;;  %v17121_v4 = vld [vmem:[#allocation71_spill] sm:$0xff]  ;;  %v12058_v21 = vpop.f32.mrf.mxu0 }
 0x3b0   : > { %12093 = vmatmul.mubr.msk.f32.gmra.mxu0 %vm5314_vm1, %v15195_v5  ;;  %17119 = vst [vmem:[#allocation76_spill] sm:$0xff] %v15199_v55  ;;  %v15201_v59 = vld [vmem:[#allocation3 + $0xd0] sm:$0xff]  ;;  %5742 = vst.msk [vmem:[#allocation3 + $0xf1] sm:$0xff] %vm5314_vm1, %v5703_v49  ;;  %v5706_v23 = vmax.f32 %v5674_v14, 0.0  ;;  %v5673_v3 = vmul.f32 %v14901_v43, %v5628_v11  ;;  %12039 = vmatprep.mubr.msk.f32.mxu1 %vm5314_vm1, %v15199_v55  ;;  %v15215_v42 = vld [vmem:[#allocation3 + $0xd8] sm:$0xff] }
 0x3b1   : > { %v5804_v31 = vmul.f32 %v17121_v4, %v15201_v59  ;;  %12040 = vmatmul.mubr.msk.f32.gmra.mxu1 %vm5314_vm1, %v15207_v20  ;;  %v15226_v14 = vld [vmem:[#allocation3 + $0xe9] sm:$0xff] }
 0x3b2   : > { %5745 = vst.msk [vmem:[#allocation3 + $0x109] sm:$0xff] %vm5314_vm1, %v5706_v23  ;;  %v5705_v63 = vmax.f32 %v5673_v3, 0.0  ;;  %17123 = vst [vmem:[#allocation79_spill] sm:$0xff] %v15226_v14  ;;  %v17124_v23 = vld [vmem:[#allocation74_spill] sm:$0xff]  ;;  %v17127_v55 = vld [vmem:[#allocation77_spill] sm:$0xff] }
 0x3b3   : > { %12095 = vmatprep.mubr.msk.f32.mxu0 %vm5314_vm1, %v5804_v31  ;;  %v15219_v43 = vld [vmem:[#allocation3 + $0xe1] sm:$0xff] }
 0x3b4   : > { %12096 = vmatmul.mubr.msk.f32.gmra.mxu0 %vm5314_vm1, %v15215_v42  ;;  %17122 = vst [vmem:[#allocation78_spill] sm:$0xff] %v15219_v43  ;;  %v15221_v49 = vld [vmem:[#allocation3 + $0xe0] sm:$0xff]  ;;  %5744 = vst.msk [vmem:[#allocation3 + $0x101] sm:$0xff] %vm5314_vm1, %v5705_v63  ;;  %12042 = vmatprep.mubr.msk.f32.mxu1 %vm5314_vm1, %v15219_v43  ;;  %v15233_v3 = vld [vmem:[#allocation3 + $0xe8] sm:$0xff] }
 0x3b5   : > { %v5806_v11 = vmul.f32 %v17124_v23, %v15221_v49  ;;  %12043 = vmatmul.mubr.msk.f32.gmra.mxu1 %vm5314_vm1, %v15226_v14  ;;  %v6493_v43 = vld [vmem:[#allocation3 + $0x2] sm:$0xff]  ;;  %v15243_v20 = vld [vmem:[#allocation3 + $0xf9] sm:$0xff] }
 0x3b6   : > { %17126 = vst [vmem:[#allocation144_spill] sm:$0xff] %v15243_v20 }
 0x3b7   : > { %12098 = vmatprep.mubr.msk.f32.mxu0 %vm5314_vm1, %v5806_v11  ;;  %v15237_v31 = vld [vmem:[#allocation3 + $0xf1] sm:$0xff] }
 0x3b8   : > { %12099 = vmatmul.mubr.msk.f32.gmra.mxu0 %vm5314_vm1, %v15233_v3  ;;  %17125 = vst [vmem:[#allocation98_spill] sm:$0xff] %v15237_v31  ;;  %v15239_v63 = vld [vmem:[#allocation3 + $0xf0] sm:$0xff]  ;;  %12045 = vmatprep.mubr.msk.f32.mxu1 %vm5314_vm1, %v15237_v31  ;;  %v15250_v11 = vld [vmem:[#allocation3 + $0xf8] sm:$0xff]  ;;  %v17128_v31 = vld [vmem:[#allocation80_spill] sm:$0xff] }
 0x3b9   : > { %v5808_v14 = vmul.f32 %v17127_v55, %v15239_v63  ;;  %12046 = vmatmul.mubr.msk.f32.gmra.mxu1 %vm5314_vm1, %v15243_v20  ;;  %v6526_v35 = vmul.f32 %v17128_v31, %v6494_v13  ;;  %v15265_v20 = vld [vmem:[#allocation3 + $0x12] sm:$0xff] }
 0x3ba   : > { %12112 = vmatprep.mubr.msk.f32.mxu1 %vm5314_vm1, %v6493_v43  ;;  %v17129_v13 = vld [vmem:[#allocation81_spill] sm:$0xff]  ;;  %v15287_v43 = vld [vmem:[#allocation3 + $0x22] sm:$0xff] }
 0x3bb   : > { %12101 = vmatprep.mubr.msk.f32.mxu0 %vm5314_vm1, %v5808_v14  ;;  %v10496_v14 = vld [vmem:[%s16570_s11 + $0x90] sm:$0xff] }
 0x3bc   : > { %12102 = vmatmul.mubr.msk.f32.gmra.mxu0 %vm5314_vm1, %v15250_v11 }
 0x3bd   : > { %12168 = vmatprep.mubr.msk.f32.mxu0 %vm5314_vm1, %v6947_v51  ;;  %12113 = vmatmul.mubr.msk.f32.vlgmr.msra.gmra.mxu1 %vm5314_vm1, %v6526_v35  ;;  %v10532_v51 = vld [vmem:[%s16570_s11 + $0xb0] sm:$0xff]  ;;  %v6528_v35 = vmul.f32 %v17129_v13, %v15259_v0 }
 0x3be   : > { %12217 = vmatpush3.msra.mxu1 %v14884_v16  ;;  %12115 = vmatprep.mubr.msk.f32.mxu1 %vm5314_vm1, %v15265_v20  ;;  %v15281_v16 = vld [vmem:[#allocation3 + $0x2a] sm:$0xff] }
 0x3bf   : > { %12218 = vmatprep.subr.mxu1 %v10496_v14 }
 0x3c0   : > { %12169 = vmatmul.mubr.msk.f32.vlgmr.msra.gmra.mxu0 %vm5314_vm1, %v14942_v10  ;;  %v6951_v10 = vmul.f32 %v17092_v9, %v14971_v1  ;;  %12219 = vmatpush3.msra.mxu1 %v10496_v14  ;;  %v10494_v1 = vld [vmem:[%s16570_s11 + $0x80] sm:$0xff]  ;;  %v15321_v9 = vld [vmem:[#allocation3 + $0x4a] sm:$0xff] }
 0x3c1   : > { %12171 = vmatprep.mubr.msk.f32.mxu0 %vm5314_vm1, %v6949_v29  ;;  %12273 = vmatpush3.msra.mxu0 %v14890_v8  ;;  %v10531_v8 = vld [vmem:[%s16570_s11 + $0xa8] sm:$0xff]  ;;  %v15307_v14 = vld [vmem:[#allocation3 + $0x32] sm:$0xff] }
 0x3c2   : > { %12116 = vmatmul.mubr.msk.f32.gmra.mxu1 %vm5314_vm1, %v6528_v35  ;;  %12274 = vmatprep.subr.mxu0 %v10532_v51  ;;  %v17130_v29 = vld [vmem:[#allocation83_spill] sm:$0xff] }
 0x3c3   : > { %12118 = vmatprep.mubr.msk.f32.mxu1 %vm5314_vm1, %v15287_v43  ;;  %v6530_v35 = vmul.f32 %v17130_v29, %v15281_v16  ;;  %12220 = vmatprep.subr.mxu1 %v10495_v37 }
 0x3c4   : > { %12172 = vmatmul.mubr.msk.f32.gmra.mxu0 %vm5314_vm1, %v14965_v18  ;;  %v6953_v18 = vmul.f32 %v17093_v2, %v14994_v19  ;;  %12221 = vmatpush3.msra.mxu1 %v10495_v37  ;;  %v15326_v19 = vld [vmem:[%s16570_s11 + $0xd8] sm:$0xff]  ;;  %v15329_v37 = vld [vmem:[#allocation3 + $0x42] sm:$0xff]  ;;  %v12002_v2 = vpop.f32.mrf.mxu1 }
 0x3c5   : > { %12174 = vmatprep.mubr.msk.f32.mxu0 %vm5314_vm1, %v6951_v10  ;;  %12275 = vmatpush3.msra.mxu0 %v10532_v51  ;;  %v10530_v51 = vld [vmem:[%s16570_s11 + $0xa0] sm:$0xff]  ;;  %v17131_v10 = vld [vmem:[#allocation84_spill] sm:$0xff] }
 0x3c6   : > { %12119 = vmatmul.mubr.msk.f32.gmra.mxu1 %vm5314_vm1, %v6530_v35  ;;  %12276 = vmatprep.subr.mxu0 %v10531_v8  ;;  %v6532_v35 = vmul.f32 %v17131_v10, %v15301_v26  ;;  %v15346_v10 = vld [vmem:[#allocation3 + $0x5a] sm:$0xff] }
 0x3c7   : > { %12121 = vmatprep.mubr.msk.f32.mxu1 %vm5314_vm1, %v15307_v14  ;;  %12222 = vmatprep.subr.mxu1 %v10494_v1 }
 0x3c8   : > { %12175 = vmatmul.mubr.msk.f32.gmra.mxu0 %vm5314_vm1, %v14988_v6  ;;  %v6955_v6 = vmul.f32 %v17094_v45, %v15017_v33  ;;  %12223 = vmatpush3.msra.mxu1 %v10494_v1  ;;  %v15348_v33 = vadd.f32 %v12058_v21, %v12002_v2  ;;  %v15351_v1 = vld [vmem:[#allocation3 + $0x52] sm:$0xff]  ;;  %v15363_v21 = vld [vmem:[#allocation3 + $0x6a] sm:$0xff]  ;;  %v15366_v2 = vld [vmem:[#allocation3 + $0x62] sm:$0xff] }
 0x3c9   : > { %12177 = vmatprep.mubr.msk.f32.mxu0 %vm5314_vm1, %v6953_v18  ;;  %12277 = vmatpush3.msra.mxu0 %v10531_v8  ;;  %v15338_v8 = vld [vmem:[%s16570_s11 + $0xf8] sm:$0xff] }
 0x3ca   : > { %12122 = vmatmul.mubr.msk.f32.gmra.mxu1 %vm5314_vm1, %v6532_v35  ;;  %12278 = vmatprep.subr.mxu0 %v10530_v51  ;;  %v17132_v18 = vld [vmem:[#allocation85_spill] sm:$0xff]  ;;  %17133 = vst [vmem:[#allocation142_spill] sm:$0xff] %v15348_v33 }
 0x3cb   : > { %12124 = vmatprep.mubr.msk.f32.mxu1 %vm5314_vm1, %v15329_v37  ;;  %v6534_v35 = vmul.f32 %v17132_v18, %v15321_v9  ;;  %12328 = vmatprep.subr.mxu1 %v15326_v19 }
 0x3cc   : > { %12178 = vmatmul.mubr.msk.f32.gmra.mxu0 %vm5314_vm1, %v15011_v57  ;;  %v6957_v57 = vmul.f32 %v17097_v25, %v15040_v24  ;;  %v6959_v24 = vmul.f32 %v17100_v30, %v15063_v22  ;;  %v6961_v22 = vmul.f32 %v17103_v56, %v15086_v40  ;;  %v6963_v40 = vmul.f32 %v17106_v36, %v15109_v47  ;;  %v15488_v30 = vld [vmem:[#allocation3 + $0x100] sm:$0xff] }
 0x3cd   : > { %12180 = vmatprep.mubr.msk.f32.mxu0 %vm5314_vm1, %v6955_v6  ;;  %12279 = vmatpush3.msra.mxu0 %v10530_v51  ;;  %v17134_v6 = vld [vmem:[#allocation86_spill] sm:$0xff]  ;;  %v6965_v47 = vmul.f32 %v17109_v15, %v15132_v52  ;;  %v6967_v52 = vmul.f32 %v17112_v50, %v15155_v53  ;;  %v6969_v53 = vmul.f32 %v17115_v41, %v15178_v62 }
 0x3ce   : > { %12125 = vmatmul.mubr.msk.f32.gmra.mxu1 %vm5314_vm1, %v6534_v35  ;;  %12384 = vmatprep.subr.mxu0 %v15338_v8  ;;  %v6536_v51 = vmul.f32 %v17134_v6, %v15346_v10  ;;  %v6971_v62 = vmul.f32 %v17118_v54, %v15201_v59  ;;  %v6973_v59 = vmul.f32 %v17121_v4, %v15221_v49 }
 0x3cf   : > { %12127 = vmatprep.mubr.msk.f32.mxu1 %vm5314_vm1, %v15351_v1  ;;  %v6975_v49 = vmul.f32 %v17124_v23, %v15239_v63  ;;  %v6977_v63 = vmul.f32 %v17127_v55, %v15488_v30 }
 0x3d0   : > { %12181 = vmatmul.mubr.msk.f32.gmra.mxu0 %vm5314_vm1, %v15034_v7  ;;  %v17135_v7 = vld [vmem:[#allocation87_spill] sm:$0xff] }
 0x3d1   : > { %12183 = vmatprep.mubr.msk.f32.mxu0 %vm5314_vm1, %v6957_v57  ;;  %v6538_v35 = vmul.f32 %v17135_v7, %v15363_v21  ;;  %v15377_v57 = vld [vmem:[#allocation3 + $0x7a] sm:$0xff] }
 0x3d2   : > { %12128 = vmatmul.mubr.msk.f32.gmra.mxu1 %vm5314_vm1, %v6536_v51  ;;  %v15380_v51 = vld [vmem:[#allocation3 + $0x72] sm:$0xff] }
 0x3d3   : > { %12130 = vmatprep.mubr.msk.f32.mxu1 %vm5314_vm1, %v15366_v2 }
 0x3d4   : > { %12184 = vmatmul.mubr.msk.f32.gmra.mxu0 %vm5314_vm1, %v15057_v61  ;;  %v17136_v61 = vld [vmem:[#allocation88_spill] sm:$0xff] }
 0x3d5   : > { %12186 = vmatprep.mubr.msk.f32.mxu0 %vm5314_vm1, %v6959_v24  ;;  %v6540_v33 = vmul.f32 %v17136_v61, %v15377_v57  ;;  %v15391_v24 = vld [vmem:[#allocation3 + $0x8a] sm:$0xff] }
 0x3d6   : > { %12131 = vmatmul.mubr.msk.f32.gmra.mxu1 %vm5314_vm1, %v6538_v35  ;;  %v15394_v35 = vld [vmem:[#allocation3 + $0x82] sm:$0xff] }
 0x3d7   : > { %12133 = vmatprep.mubr.msk.f32.mxu1 %vm5314_vm1, %v15380_v51 }
 0x3d8   : > { %12187 = vmatmul.mubr.msk.f32.gmra.mxu0 %vm5314_vm1, %v15080_v12  ;;  %v17137_v12 = vld [vmem:[#allocation89_spill] sm:$0xff] }
 0x3d9   : > { %12189 = vmatprep.mubr.msk.f32.mxu0 %vm5314_vm1, %v6961_v22  ;;  %v6542_v56 = vmul.f32 %v17137_v12, %v15391_v24  ;;  %v15405_v22 = vld [vmem:[#allocation3 + $0x9a] sm:$0xff] }
 0x3da   : > { %12134 = vmatmul.mubr.msk.f32.gmra.mxu1 %vm5314_vm1, %v6540_v33  ;;  %v15408_v33 = vld [vmem:[#allocation3 + $0x92] sm:$0xff] }
 0x3db   : > { %12136 = vmatprep.mubr.msk.f32.mxu1 %vm5314_vm1, %v15394_v35 }
 0x3dc   : > { %12190 = vmatmul.mubr.msk.f32.gmra.mxu0 %vm5314_vm1, %v15103_v27  ;;  %v17138_v27 = vld [vmem:[#allocation90_spill] sm:$0xff] }
 0x3dd   : > { %12192 = vmatprep.mubr.msk.f32.mxu0 %vm5314_vm1, %v6963_v40  ;;  %v6544_v36 = vmul.f32 %v17138_v27, %v15405_v22  ;;  %v15419_v40 = vld [vmem:[#allocation3 + $0xaa] sm:$0xff] }
 0x3de   : > { %12137 = vmatmul.mubr.msk.f32.gmra.mxu1 %vm5314_vm1, %v6542_v56  ;;  %v15422_v56 = vld [vmem:[#allocation3 + $0xa2] sm:$0xff] }
 0x3df   : > { %12139 = vmatprep.mubr.msk.f32.mxu1 %vm5314_vm1, %v15408_v33 }
 0x3e0   : > { %12193 = vmatmul.mubr.msk.f32.gmra.mxu0 %vm5314_vm1, %v15126_v44  ;;  %v17139_v44 = vld [vmem:[#allocation91_spill] sm:$0xff] }
 0x3e1   : > { %12195 = vmatprep.mubr.msk.f32.mxu0 %vm5314_vm1, %v6965_v47  ;;  %v6546_v15 = vmul.f32 %v17139_v44, %v15419_v40  ;;  %v15433_v47 = vld [vmem:[#allocation3 + $0xba] sm:$0xff] }
 0x3e2   : > { %12140 = vmatmul.mubr.msk.f32.gmra.mxu1 %vm5314_vm1, %v6544_v36  ;;  %v15436_v36 = vld [vmem:[#allocation3 + $0xb2] sm:$0xff] }
 0x3e3   : > { %12142 = vmatprep.mubr.msk.f32.mxu1 %vm5314_vm1, %v15422_v56 }
 0x3e4   : > { %12196 = vmatmul.mubr.msk.f32.gmra.mxu0 %vm5314_vm1, %v15149_v28  ;;  %v17140_v28 = vld [vmem:[#allocation92_spill] sm:$0xff] }
 0x3e5   : > { %12198 = vmatprep.mubr.msk.f32.mxu0 %vm5314_vm1, %v6967_v52  ;;  %v6548_v50 = vmul.f32 %v17140_v28, %v15433_v47  ;;  %v15447_v52 = vld [vmem:[#allocation3 + $0xca] sm:$0xff] }
 0x3e6   : > { %12143 = vmatmul.mubr.msk.f32.gmra.mxu1 %vm5314_vm1, %v6546_v15  ;;  %v15450_v15 = vld [vmem:[#allocation3 + $0xc2] sm:$0xff] }
 0x3e7   : > { %12145 = vmatprep.mubr.msk.f32.mxu1 %vm5314_vm1, %v15436_v36 }
 0x3e8   : > { %12199 = vmatmul.mubr.msk.f32.gmra.mxu0 %vm5314_vm1, %v15172_v32  ;;  %v17141_v32 = vld [vmem:[#allocation93_spill] sm:$0xff] }
 0x3e9   : > { %12201 = vmatprep.mubr.msk.f32.mxu0 %vm5314_vm1, %v6969_v53  ;;  %v6550_v41 = vmul.f32 %v17141_v32, %v15447_v52  ;;  %v15461_v53 = vld [vmem:[#allocation3 + $0xda] sm:$0xff] }
 0x3ea   : > { %12146 = vmatmul.mubr.msk.f32.gmra.mxu1 %vm5314_vm1, %v6548_v50  ;;  %v15464_v50 = vld [vmem:[#allocation3 + $0xd2] sm:$0xff] }
 0x3eb   : > { %12148 = vmatprep.mubr.msk.f32.mxu1 %vm5314_vm1, %v15450_v15 }
 0x3ec   : > { %12202 = vmatmul.mubr.msk.f32.gmra.mxu0 %vm5314_vm1, %v15195_v5  ;;  %v17142_v5 = vld [vmem:[#allocation94_spill] sm:$0xff] }
 0x3ed   : > { %12204 = vmatprep.mubr.msk.f32.mxu0 %vm5314_vm1, %v6971_v62  ;;  %v6552_v54 = vmul.f32 %v17142_v5, %v15461_v53  ;;  %v15475_v62 = vld [vmem:[#allocation3 + $0xea] sm:$0xff] }
 0x3ee   : > { %12149 = vmatmul.mubr.msk.f32.gmra.mxu1 %vm5314_vm1, %v6550_v41  ;;  %v15478_v41 = vld [vmem:[#allocation3 + $0xe2] sm:$0xff] }
 0x3ef   : > { %12151 = vmatprep.mubr.msk.f32.mxu1 %vm5314_vm1, %v15464_v50 }
 0x3f0   : > { %12205 = vmatmul.mubr.msk.f32.gmra.mxu0 %vm5314_vm1, %v15215_v42  ;;  %v17143_v42 = vld [vmem:[#allocation95_spill] sm:$0xff] }
 0x3f1   : > { %12207 = vmatprep.mubr.msk.f32.mxu0 %vm5314_vm1, %v6973_v59  ;;  %v6554_v4 = vmul.f32 %v17143_v42, %v15475_v62  ;;  %v15491_v59 = vld [vmem:[#allocation3 + $0xfa] sm:$0xff] }
 0x3f2   : > { %12152 = vmatmul.mubr.msk.f32.gmra.mxu1 %vm5314_vm1, %v6552_v54  ;;  %v15494_v54 = vld [vmem:[#allocation3 + $0xf2] sm:$0xff] }
 0x3f3   : > { %12154 = vmatprep.mubr.msk.f32.mxu1 %vm5314_vm1, %v15478_v41 }
 0x3f4   : > { %12208 = vmatmul.mubr.msk.f32.gmra.mxu0 %vm5314_vm1, %v15233_v3  ;;  %v17144_v3 = vld [vmem:[#allocation96_spill] sm:$0xff] }
 0x3f5   : > { %12210 = vmatprep.mubr.msk.f32.mxu0 %vm5314_vm1, %v6975_v49  ;;  %v6556_v23 = vmul.f32 %v17144_v3, %v15491_v59  ;;  %v17154_v49 = vld [vmem:[#allocation49_spill] sm:$0xff] }
 0x3f6   : > { %12155 = vmatmul.mubr.msk.f32.gmra.mxu1 %vm5314_vm1, %v6554_v4  ;;  %v15508_v4 = vld [vmem:[#allocation3 + $0x108] sm:$0xff] }
 0x3f7   : > { %12157 = vmatprep.mubr.msk.f32.mxu1 %vm5314_vm1, %v15494_v54 }
 0x3f8   : > { %12211 = vmatmul.mubr.msk.f32.gmra.mxu0 %vm5314_vm1, %v15250_v11  ;;  %v10568_v11 = vld [vmem:[%s16570_s11 + $0xd0] sm:$0xff] }
 0x3f9   : > { %12213 = vmatprep.mubr.msk.f32.mxu0 %vm5314_vm1, %v6977_v63  ;;  %v17156_v63 = vld [vmem:[#allocation54_spill] sm:$0xff] }
 0x3fa   : > { %12158 = vmatmul.mubr.msk.f32.gmra.mxu1 %vm5314_vm1, %v6556_v23  ;;  %v7760_v23 = vmul.f32 %v17128_v31, %v15259_v0  ;;  %v10603_v0 = vld [vmem:[%s16570_s11 + $0xe8] sm:$0xff] }
 0x3fb   : > { %12224 = vmatprep.mubr.msk.f32.mxu1 %vm5314_vm1, %v14923_v34  ;;  %v10604_v34 = vld [vmem:[%s16570_s11 + $0xf0] sm:$0xff] }
 0x3fc   : > { %12214 = vmatmul.mubr.msk.f32.gmra.mxu0 %vm5314_vm1, %v15508_v4 }
 0x3fd   : > { %12280 = vmatprep.mubr.msk.f32.mxu0 %vm5314_vm1, %v15265_v20  ;;  %v10602_v20 = vld [vmem:[%s16570_s11 + $0xe0] sm:$0xff] }
 0x3fe   : > { %12225 = vmatmul.mubr.msk.f32.vlgmr.msra.gmra.mxu1 %vm5314_vm1, %v14932_v38  ;;  %v10567_v38 = vld [vmem:[%s16570_s11 + $0xc8] sm:$0xff] }
 0x3ff   : > { %12329 = vmatpush3.msra.mxu1 %v15326_v19  ;;  %12227 = vmatprep.mubr.msk.f32.mxu1 %vm5314_vm1, %v14946_v58  ;;  %v7762_v58 = vmul.f32 %v17129_v13, %v15281_v16  ;;  %v17146_v16 = vld [vmem:[#allocation39_spill] sm:$0xff]  ;;  %v17149_v19 = vld [vmem:[#allocation52_spill] sm:$0xff] }
 0x400   : > { %12281 = vmatmul.mubr.msk.f32.vlgmr.msra.gmra.mxu0 %vm5314_vm1, %v7760_v23  ;;  %12330 = vmatprep.subr.mxu1 %v10568_v11  ;;  %v17160_v23 = vld [vmem:[#allocation75_spill] sm:$0xff] }
 0x401   : > { %12283 = vmatprep.mubr.msk.f32.mxu0 %vm5314_vm1, %v15287_v43  ;;  %12385 = vmatpush3.msra.mxu0 %v15338_v8  ;;  %v15575_v43 = vld [vmem:[%s16563_s4] sm:$0xf]  ;;  %v17150_v8 = vld [vmem:[#allocation43_spill] sm:$0xff] }
 0x402   : > { %12228 = vmatmul.mubr.msk.f32.gmra.mxu1 %vm5314_vm1, %v14955_v46  ;;  %12386 = vmatprep.subr.mxu0 %v10604_v34  ;;  %v10566_v46 = vld [vmem:[%s16570_s11 + $0xc0] sm:$0xff] }
 0x403   : > { %12230 = vmatprep.mubr.msk.f32.mxu1 %vm5314_vm1, %v14969_v60  ;;  %12331 = vmatpush3.msra.mxu1 %v10568_v11  ;;  %v7764_v60 = vmul.f32 %v17130_v29, %v15301_v26  ;;  %v15564_v26 = vld [vmem:[%s16570_s11 + $0x118] sm:$0xff] }
 0x404   : > { %12284 = vmatmul.mubr.msk.f32.gmra.mxu0 %vm5314_vm1, %v7762_v58  ;;  %12332 = vmatprep.subr.mxu1 %v10567_v38  ;;  %v17158_v11 = vld [vmem:[#allocation57_spill] sm:$0xff]  ;;  %v17166_v58 = vld [vmem:[#allocation98_spill] sm:$0xff] }
 0x405   : > { %12286 = vmatprep.mubr.msk.f32.mxu0 %vm5314_vm1, %v15307_v14  ;;  %12387 = vmatpush3.msra.mxu0 %v10604_v34  ;;  %v17148_v14 = vld [vmem:[#allocation42_spill] sm:$0xff]  ;;  %v17162_v34 = vld [vmem:[#allocation76_spill] sm:$0xff] }
 0x406   : > { %12231 = vmatmul.mubr.msk.f32.gmra.mxu1 %vm5314_vm1, %v14978_v48  ;;  %12388 = vmatprep.subr.mxu0 %v10603_v0  ;;  %v17145_v48 = vld [vmem:[#allocation84_spill] sm:$0xff] }
 0x407   : > { %12233 = vmatprep.mubr.msk.f32.mxu1 %vm5314_vm1, %v14992_v17  ;;  %12333 = vmatpush3.msra.mxu1 %v10567_v38  ;;  %v7766_v17 = vmul.f32 %v17145_v48, %v15321_v9  ;;  %v7768_v9 = vmul.f32 %v17132_v18, %v15346_v10  ;;  %v17151_v10 = vld [vmem:[#allocation45_spill] sm:$0xff]  ;;  %v17164_v38 = vld [vmem:[#allocation78_spill] sm:$0xff] }
 0x408   : > { %12287 = vmatmul.mubr.msk.f32.gmra.mxu0 %vm5314_vm1, %v7764_v60  ;;  %12334 = vmatprep.subr.mxu1 %v10566_v46  ;;  %v15684_v60 = vld [vmem:[#allocation3 + $0x102] sm:$0xff] }
 0x409   : > { %12289 = vmatprep.mubr.msk.f32.mxu0 %vm5314_vm1, %v15329_v37  ;;  %12389 = vmatpush3.msra.mxu0 %v10603_v0  ;;  %v7770_v37 = vmul.f32 %v17134_v6, %v15363_v21  ;;  %v17153_v21 = vld [vmem:[#allocation48_spill] sm:$0xff] }
 0x40a   : > { %12234 = vmatmul.mubr.msk.f32.gmra.mxu1 %vm5314_vm1, %v15001_v39  ;;  %12390 = vmatprep.subr.mxu0 %v10602_v20  ;;  %v17147_v39 = vld [vmem:[#allocation40_spill] sm:$0xff] }
 0x40b   : > { %12236 = vmatprep.mubr.msk.f32.mxu1 %vm5314_vm1, %v17146_v16  ;;  %12335 = vmatpush3.msra.mxu1 %v10566_v46  ;;  %v15675_v0 = vld [vmem:[#allocation3 + $0x101] sm:$0xff]  ;;  %v8151_v16 = vld [vmem:[#allocation3 + $0x30] sm:$0xff] }
 0x40c   : > { %12290 = vmatmul.mubr.msk.f32.gmra.mxu0 %vm5314_vm1, %v7766_v17  ;;  %12440 = vmatprep.subr.mxu1 %v15564_v26  ;;  %v8149_v46 = vld [vmem:[#allocation3 + $0x20] sm:$0xff] }
 0x40d   : > { %12292 = vmatprep.mubr.msk.f32.mxu0 %vm5314_vm1, %v15351_v1  ;;  %12391 = vmatpush3.msra.mxu0 %v10602_v20  ;;  %v7772_v1 = vmul.f32 %v17135_v7, %v15377_v57  ;;  %v17155_v57 = vld [vmem:[#allocation51_spill] sm:$0xff]  ;;  %v17168_v20 = vld [vmem:[#allocation36_spill] sm:$0xff] }
 0x40e   : > { %12237 = vmatmul.mubr.msk.f32.gmra.mxu1 %vm5314_vm1, %v17147_v39  ;;  %12496 = vmatprep.subr.msk.mxu0 %vm676_vm0, %v15575_v43  ;;  %v8181_v17 = vmul.f32 %v17168_v20, %v8149_v46  ;;  %v8571_v39 = vld [vmem:[#allocation3 + $0x21] sm:$0xff]  ;;  %v8156_v46 = vld [vmem:[#allocation3 + $0x58] sm:$0xff] }
 0x40f   : > { %12239 = vmatprep.mubr.msk.f32.mxu1 %vm5314_vm1, %v17148_v14  ;;  %v17169_v14 = vld [vmem:[#allocation37_spill] sm:$0xff] }
 0x410   : > { %12293 = vmatmul.mubr.msk.f32.gmra.mxu0 %vm5314_vm1, %v7768_v9  ;;  %v8150_v9 = vld [vmem:[#allocation3 + $0x28] sm:$0xff] }
 0x411   : > { %12295 = vmatprep.mubr.msk.f32.mxu0 %vm5314_vm1, %v15366_v2  ;;  %v17152_v2 = vld [vmem:[#allocation46_spill] sm:$0xff] }
 0x412   : > { %12240 = vmatmul.mubr.msk.f32.gmra.mxu1 %vm5314_vm1, %v17149_v19  ;;  %v8183_v19 = vmul.f32 %v17169_v14, %v8151_v16  ;;  %v8159_v16 = vld [vmem:[#allocation3 + $0x70] sm:$0xff] }
 0x413   : > { %12242 = vmatprep.mubr.msk.f32.mxu1 %vm5314_vm1, %v17150_v8  ;;  %v8153_v8 = vld [vmem:[#allocation3 + $0x40] sm:$0xff] }
 0x414   : > { %12296 = vmatmul.mubr.msk.f32.gmra.mxu0 %vm5314_vm1, %v7770_v37  ;;  %v10640_v37 = vld [vmem:[%s16570_s11 + $0x110] sm:$0xff] }
 0x415   : > { %12298 = vmatprep.mubr.msk.f32.mxu0 %vm5314_vm1, %v15380_v51  ;;  %v7774_v51 = vmul.f32 %v17136_v61, %v15391_v24  ;;  %v17157_v24 = vld [vmem:[#allocation55_spill] sm:$0xff] }
 0x416   : > { %12243 = vmatmul.mubr.msk.f32.gmra.mxu1 %vm5314_vm1, %v17151_v10  ;;  %v8572_v10 = vld [vmem:[#allocation3 + $0x29] sm:$0xff] }
 0x417   : > { %12245 = vmatprep.mubr.msk.f32.mxu1 %vm5314_vm1, %v17152_v2  ;;  %v8573_v2 = vld [vmem:[#allocation3 + $0x31] sm:$0xff] }
 0x418   : > { %12299 = vmatmul.mubr.msk.f32.gmra.mxu0 %vm5314_vm1, %v7772_v1  ;;  %v15705_v1 = vpop.f32.mrf.mxu1 }
 0x419   : > { %12301 = vmatprep.mubr.msk.f32.mxu0 %vm5314_vm1, %v15394_v35  ;;  %v7776_v35 = vmul.f32 %v17137_v12, %v15405_v22  ;;  %v17159_v22 = vld [vmem:[#allocation70_spill] sm:$0xff] }
 0x41a   : > { %12246 = vmatmul.mubr.msk.f32.gmra.mxu1 %vm5314_vm1, %v17153_v21  ;;  %v8152_v21 = vld [vmem:[#allocation3 + $0x38] sm:$0xff] }
 0x41b   : > { %12248 = vmatprep.mubr.msk.f32.mxu1 %vm5314_vm1, %v17154_v49 }
 0x41c   : > { %12302 = vmatmul.mubr.msk.f32.gmra.mxu0 %vm5314_vm1, %v7774_v51  ;;  %v17170_v51 = vld [vmem:[#allocation38_spill] sm:$0xff] }
 0x41d   : > { %12304 = vmatprep.mubr.msk.f32.mxu0 %vm5314_vm1, %v15408_v33  ;;  %v7778_v33 = vmul.f32 %v17138_v27, %v15419_v40  ;;  %v17161_v40 = vld [vmem:[#allocation73_spill] sm:$0xff]  ;;  %v8185_v49 = vmul.f32 %v17170_v51, %v8153_v8  ;;  %v8161_v51 = vld [vmem:[#allocation3 + $0x80] sm:$0xff] }
 0x41e   : > { %12249 = vmatmul.mubr.msk.f32.gmra.mxu1 %vm5314_vm1, %v17155_v57  ;;  %v15715_v57 = vpop.f32.mrf.mxu0 }
 0x41f   : > { %12251 = vmatprep.mubr.msk.f32.mxu1 %vm5314_vm1, %v17156_v63  ;;  %v8155_v63 = vld [vmem:[#allocation3 + $0x50] sm:$0xff] }
 0x420   : > { %12305 = vmatmul.mubr.msk.f32.gmra.mxu0 %vm5314_vm1, %v7776_v35 }
 0x421   : > { %12307 = vmatprep.mubr.msk.f32.mxu0 %vm5314_vm1, %v15422_v56  ;;  %v7780_v56 = vmul.f32 %v17139_v44, %v15433_v47  ;;  %v17163_v47 = vld [vmem:[#allocation60_spill] sm:$0xff] }
 0x422   : > { %12252 = vmatmul.mubr.msk.f32.gmra.mxu1 %vm5314_vm1, %v17157_v24  ;;  %v8574_v24 = vld [vmem:[#allocation3 + $0x39] sm:$0xff] }
 0x423   : > { %12254 = vmatprep.mubr.msk.f32.mxu1 %vm5314_vm1, %v17158_v11 }
 0x424   : > { %12308 = vmatmul.mubr.msk.f32.gmra.mxu0 %vm5314_vm1, %v7778_v33  ;;  %v10638_v33 = vld [vmem:[%s16570_s11 + $0x100] sm:$0xff] }
 0x425   : > { %12310 = vmatprep.mubr.msk.f32.mxu0 %vm5314_vm1, %v15436_v36  ;;  %v7782_v36 = vmul.f32 %v17140_v28, %v15447_v52  ;;  %v17165_v52 = vld [vmem:[#allocation79_spill] sm:$0xff] }
 0x426   : > { %12255 = vmatmul.mubr.msk.f32.gmra.mxu1 %vm5314_vm1, %v17159_v22  ;;  %v8575_v22 = vld [vmem:[#allocation3 + $0x41] sm:$0xff] }
 0x427   : > { %12257 = vmatprep.mubr.msk.f32.mxu1 %vm5314_vm1, %v17160_v23  ;;  %v8154_v23 = vld [vmem:[#allocation3 + $0x48] sm:$0xff] }
 0x428   : > { %12311 = vmatmul.mubr.msk.f32.gmra.mxu0 %vm5314_vm1, %v7780_v56 }
 0x429   : > { %12313 = vmatprep.mubr.msk.f32.mxu0 %vm5314_vm1, %v15450_v15  ;;  %v7784_v15 = vmul.f32 %v17141_v32, %v15461_v53  ;;  %v17167_v53 = vld [vmem:[#allocation144_spill] sm:$0xff] }
 0x42a   : > { %12258 = vmatmul.mubr.msk.f32.gmra.mxu1 %vm5314_vm1, %v17161_v40  ;;  %v17171_v40 = vld [vmem:[#allocation41_spill] sm:$0xff] }
 0x42b   : > { %12260 = vmatprep.mubr.msk.f32.mxu1 %vm5314_vm1, %v17162_v34 }
 0x42c   : > { %12314 = vmatmul.mubr.msk.f32.gmra.mxu0 %vm5314_vm1, %v7782_v36  ;;  %v8187_v36 = vmul.f32 %v17171_v40, %v8155_v63  ;;  %v8163_v40 = vld [vmem:[#allocation3 + $0x90] sm:$0xff] }
 0x42d   : > { %12316 = vmatprep.mubr.msk.f32.mxu0 %vm5314_vm1, %v15464_v50  ;;  %v7786_v50 = vmul.f32 %v17142_v5, %v15475_v62  ;;  %v15681_v62 = vld [vmem:[#allocation3 + $0x10a] sm:$0xff] }
 0x42e   : > { %12261 = vmatmul.mubr.msk.f32.gmra.mxu1 %vm5314_vm1, %v17163_v47 }
 0x42f   : > { %12263 = vmatprep.mubr.msk.f32.mxu1 %vm5314_vm1, %v17164_v38 }
 0x430   : > { %12317 = vmatmul.mubr.msk.f32.gmra.mxu0 %vm5314_vm1, %v7784_v15  ;;  %v8157_v15 = vld [vmem:[#allocation3 + $0x60] sm:$0xff] }
 0x431   : > { %12319 = vmatprep.mubr.msk.f32.mxu0 %vm5314_vm1, %v15478_v41  ;;  %v7788_v41 = vmul.f32 %v17143_v42, %v15491_v59  ;;  %v7790_v59 = vmul.f32 %v17144_v3, %v15681_v62  ;;  %v8189_v20 = vmul.f32 %v17094_v45, %v8157_v15  ;;  %v8158_v45 = vld [vmem:[#allocation3 + $0x68] sm:$0xff] }
 0x432   : > { %12264 = vmatmul.mubr.msk.f32.gmra.mxu1 %vm5314_vm1, %v17165_v52  ;;  %v8576_v52 = vld [vmem:[#allocation3 + $0x49] sm:$0xff] }
 0x433   : > { %12266 = vmatprep.mubr.msk.f32.mxu1 %vm5314_vm1, %v17166_v58 }
 0x434   : > { %12320 = vmatmul.mubr.msk.f32.gmra.mxu0 %vm5314_vm1, %v7786_v50 }
 0x435   : > { %12322 = vmatprep.mubr.msk.f32.mxu0 %vm5314_vm1, %v15494_v54  ;;  %v15688_v54 = vld [vmem:[#allocation3 + $0x109] sm:$0xff] }
 0x436   : > { %12267 = vmatmul.mubr.msk.f32.gmra.mxu1 %vm5314_vm1, %v17167_v53  ;;  %v8577_v53 = vld [vmem:[#allocation3 + $0x51] sm:$0xff] }
 0x437   : > { %12269 = vmatprep.mubr.msk.f32.mxu1 %vm5314_vm1, %v15675_v0 }
 0x438   : > { %12323 = vmatmul.mubr.msk.f32.gmra.mxu0 %vm5314_vm1, %v7788_v41 }
 0x439   : > { %12325 = vmatprep.mubr.msk.f32.mxu0 %vm5314_vm1, %v15684_v60 }
 0x43a   : > { %12270 = vmatmul.mubr.msk.f32.gmra.mxu1 %vm5314_vm1, %v15688_v54 }
 0x43b   : > { %12336 = vmatprep.mubr.msk.f32.mxu1 %vm5314_vm1, %v8181_v17 }
 0x43c   : > { %12326 = vmatmul.mubr.msk.f32.gmra.mxu0 %vm5314_vm1, %v7790_v59 }
 0x43d   : > { %12392 = vmatprep.mubr.msk.f32.mxu0 %vm5314_vm1, %v8571_v39 }
 0x43e   : > { %12337 = vmatmul.mubr.msk.f32.vlgmr.msra.gmra.mxu1 %vm5314_vm1, %v8150_v9  ;;  %v8578_v9 = vld [vmem:[#allocation3 + $0x59] sm:$0xff] }
 0x43f   : > { %12441 = vmatpush3.msra.mxu1 %v15564_v26  ;;  %12339 = vmatprep.mubr.msk.f32.mxu1 %vm5314_vm1, %v8183_v19  ;;  %v10639_v26 = vld [vmem:[%s16570_s11 + $0x108] sm:$0xff] }
 0x440   : > { %12393 = vmatmul.mubr.msk.f32.vlgmr.msra.gmra.mxu0 %vm5314_vm1, %v8572_v10  ;;  %12442 = vmatprep.subr.mxu1 %v10640_v37  ;;  %v8191_v10 = vmul.f32 %v17097_v25, %v8159_v16  ;;  %v8160_v25 = vld [vmem:[#allocation3 + $0x78] sm:$0xff] }
 0x441   : > { %12395 = vmatprep.mubr.msk.f32.mxu0 %vm5314_vm1, %v8573_v2  ;;  %12497 = vmatpush3.msk.msra.mxu0 %vm676_vm0, %v15575_v43  ;;  %v12005_v35 = vpop.f32.mrf.mxu1  ;;  %vm9849_vm0 = vcmask 31760  }
 0x442   : > { %12340 = vmatmul.mubr.msk.f32.gmra.mxu1 %vm5314_vm1, %v8152_v21 }
 0x443   : > { %12342 = vmatprep.mubr.msk.f32.mxu1 %vm5314_vm1, %v8185_v49  ;;  %12443 = vmatpush3.msra.mxu1 %v10640_v37  ;;  %v6023_v11 = vpop.f32.mrf.mxu1  ;;  %v8579_v37 = vld [vmem:[#allocation3 + $0x61] sm:$0xff] }
 0x444   : > { %v12061_v43 = vpop.f32.mrf.mxu0  ;;  %12396 = vmatmul.mubr.msk.f32.gmra.mxu0 %vm5314_vm1, %v8574_v24  ;;  %12444 = vmatprep.subr.mxu1 %v10639_v26  ;;  %v8581_v24 = vld [vmem:[#allocation3 + $0x71] sm:$0xff] }
 0x445   : > { %v15723_v56 = vadd.f32 %v12061_v43, %v12005_v35  ;;  %12398 = vmatprep.mubr.msk.f32.mxu0 %vm5314_vm1, %v8575_v22  ;;  %12445 = vmatpush3.msra.mxu1 %v10639_v26  ;;  %v12008_v34 = vpop.f32.mrf.mxu1  ;;  %v8580_v26 = vld [vmem:[#allocation3 + $0x69] sm:$0xff] }
 0x446   : > { %v6344_v47 = vpop.f32.mrf.mxu0  ;;  %12343 = vmatmul.mubr.msk.f32.gmra.mxu1 %vm5314_vm1, %v8154_v23  ;;  %12446 = vmatprep.subr.mxu1 %v10638_v33 }
 0x447   : > { %v15728_v38 = vadd.f32 %v6344_v47, %v6023_v11  ;;  %12345 = vmatprep.mubr.msk.f32.mxu1 %vm5314_vm1, %v8187_v36  ;;  %12447 = vmatpush3.msra.mxu1 %v10638_v33  ;;  %v6033_v50 = vpop.f32.mrf.mxu1  ;;  %v17172_v11 = vld [vmem:[#allocation50_spill] sm:$0xff] }
 0x448   : > { %v12064_v58 = vpop.f32.mrf.mxu0  ;;  %12399 = vmatmul.mubr.msk.f32.gmra.mxu0 %vm5314_vm1, %v8576_v52  ;;  %v8193_v43 = vmul.f32 %v17172_v11, %v8161_v51  ;;  %v8583_v52 = vld [vmem:[#allocation3 + $0x81] sm:$0xff] }
 0x449   : > { %v15732_v41 = vadd.f32 %v12064_v58, %v12008_v34  ;;  %12401 = vmatprep.mubr.msk.f32.mxu0 %vm5314_vm1, %v8577_v53  ;;  %v12011_v17 = vpop.f32.mrf.mxu1  ;;  %v8582_v34 = vld [vmem:[#allocation3 + $0x79] sm:$0xff]  ;;  %v8162_v58 = vld [vmem:[#allocation3 + $0x88] sm:$0xff]  ;;  %v17173_v53 = vld [vmem:[#allocation53_spill] sm:$0xff] }
 0x44a   : > { %v6354_v59 = vpop.f32.mrf.mxu0  ;;  %12346 = vmatmul.mubr.msk.f32.gmra.mxu1 %vm5314_vm1, %v8156_v46  ;;  %v8195_v46 = vmul.f32 %v17173_v53, %v8163_v40  ;;  %v17175_v40 = vld [vmem:[#allocation59_spill] sm:$0xff]  ;;  %v8588_v53 = vld [vmem:[#allocation3 + $0xa9] sm:$0xff] }
 0x44b   : > { %v15737_v39 = vadd.f32 %v6354_v59, %v6033_v50  ;;  %12348 = vmatprep.mubr.msk.f32.mxu1 %vm5314_vm1, %v8189_v20  ;;  %v6043_v14 = vpop.f32.mrf.mxu1  ;;  %v8165_v59 = vld [vmem:[#allocation3 + $0xa0] sm:$0xff] }
 0x44c   : > { %v12067_v19 = vpop.f32.mrf.mxu0  ;;  %12402 = vmatmul.mubr.msk.f32.gmra.mxu0 %vm5314_vm1, %v8578_v9  ;;  %v8584_v9 = vld [vmem:[#allocation3 + $0x89] sm:$0xff] }
 0x44d   : > { %v15741_v8 = vadd.f32 %v12067_v19, %v12011_v17  ;;  %12404 = vmatprep.mubr.msk.f32.mxu0 %vm5314_vm1, %v8579_v37  ;;  %v12014_v2 = vpop.f32.mrf.mxu1  ;;  %v8585_v37 = vld [vmem:[#allocation3 + $0x91] sm:$0xff] }
 0x44e   : > { %v6364_v21 = vpop.f32.mrf.mxu0  ;;  %12349 = vmatmul.mubr.msk.f32.gmra.mxu1 %vm5314_vm1, %v8158_v45 }
 0x44f   : > { %v15746_v49 = vadd.f32 %v6364_v21, %v6043_v14  ;;  %12351 = vmatprep.mubr.msk.f32.mxu1 %vm5314_vm1, %v8191_v10  ;;  %v6053_v35 = vpop.f32.mrf.mxu1  ;;  %v8164_v10 = vld [vmem:[#allocation3 + $0x98] sm:$0xff] }
 0x450   : > { %v12070_v63 = vpop.f32.mrf.mxu0  ;;  %12405 = vmatmul.mubr.msk.f32.gmra.mxu0 %vm5314_vm1, %v8580_v26 }
 0x451   : > { %v15750_v33 = vadd.f32 %v12070_v63, %v12014_v2  ;;  %12407 = vmatprep.mubr.msk.f32.mxu0 %vm5314_vm1, %v8581_v24  ;;  %v12017_v22 = vpop.f32.mrf.mxu1  ;;  %v17174_v2 = vld [vmem:[#allocation58_spill] sm:$0xff] }
 0x452   : > { %v6374_v23 = vpop.f32.mrf.mxu0  ;;  %12352 = vmatmul.mubr.msk.f32.gmra.mxu1 %vm5314_vm1, %v8160_v25  ;;  %v8197_v21 = vmul.f32 %v17174_v2, %v8165_v59  ;;  %v8586_v24 = vld [vmem:[#allocation3 + $0x99] sm:$0xff]  ;;  %v8171_v2 = vld [vmem:[#allocation3 + $0xd0] sm:$0xff] }
 0x453   : > { %v15755_v36 = vadd.f32 %v6374_v23, %v6053_v35  ;;  %12354 = vmatprep.mubr.msk.f32.mxu1 %vm5314_vm1, %v8193_v43  ;;  %v6063_v47 = vpop.f32.mrf.mxu1  ;;  %v8167_v35 = vld [vmem:[#allocation3 + $0xb0] sm:$0xff]  ;;  %v8587_v43 = vld [vmem:[#allocation3 + $0xa1] sm:$0xff] }
 0x454   : > { %v12073_v15 = vpop.f32.mrf.mxu0  ;;  %12408 = vmatmul.mubr.msk.f32.gmra.mxu0 %vm5314_vm1, %v8582_v34  ;;  %v8166_v23 = vld [vmem:[#allocation3 + $0xa8] sm:$0xff]  ;;  %v8199_v34 = vmul.f32 %v17175_v40, %v8167_v35 }
 0x455   : > { %v15759_v50 = vadd.f32 %v12073_v15, %v12017_v22  ;;  %12410 = vmatprep.mubr.msk.f32.mxu0 %vm5314_vm1, %v8583_v52  ;;  %v12020_v20 = vpop.f32.mrf.mxu1  ;;  %v8169_v52 = vld [vmem:[#allocation3 + $0xc0] sm:$0xff] }
 0x456   : > { %v6384_v17 = vpop.f32.mrf.mxu0  ;;  %12355 = vmatmul.mubr.msk.f32.gmra.mxu1 %vm5314_vm1, %v8162_v58 }
 0x457   : > { %v15764_v16 = vadd.f32 %v6384_v17, %v6063_v47  ;;  %12357 = vmatprep.mubr.msk.f32.mxu1 %vm5314_vm1, %v8195_v46  ;;  %v6073_v14 = vpop.f32.mrf.mxu1  ;;  %v8589_v17 = vld [vmem:[#allocation3 + $0xb1] sm:$0xff] }
 0x458   : > { %v12076_v19 = vpop.f32.mrf.mxu0  ;;  %12411 = vmatmul.mubr.msk.f32.gmra.mxu0 %vm5314_vm1, %v8584_v9  ;;  %v8168_v9 = vld [vmem:[#allocation3 + $0xb8] sm:$0xff] }
 0x459   : > { %v15768_v45 = vadd.f32 %v12076_v19, %v12020_v20  ;;  %12413 = vmatprep.mubr.msk.f32.mxu0 %vm5314_vm1, %v8585_v37  ;;  %v12023_v51 = vpop.f32.mrf.mxu1 }
 0x45a   : > { %v6394_v26 = vpop.f32.mrf.mxu0  ;;  %12358 = vmatmul.mubr.msk.f32.gmra.mxu1 %vm5314_vm1, %v8164_v10 }
 0x45b   : > { %v15773_v63 = vadd.f32 %v6394_v26, %v6073_v14  ;;  %12360 = vmatprep.mubr.msk.f32.mxu1 %vm5314_vm1, %v8197_v21  ;;  %v6083_v25 = vpop.f32.mrf.mxu1  ;;  %v17176_v14 = vld [vmem:[#allocation62_spill] sm:$0xff] }
 0x45c   : > { %v12079_v11 = vpop.f32.mrf.mxu0  ;;  %12414 = vmatmul.mubr.msk.f32.gmra.mxu0 %vm5314_vm1, %v8586_v24  ;;  %v8201_v19 = vmul.f32 %v17176_v14, %v8169_v52  ;;  %v8591_v24 = vld [vmem:[#allocation3 + $0xc1] sm:$0xff]  ;;  %v8592_v52 = vld [vmem:[#allocation3 + $0xc9] sm:$0xff] }
 0x45d   : > { %v15777_v22 = vadd.f32 %v12079_v11, %v12023_v51  ;;  %12416 = vmatprep.mubr.msk.f32.mxu0 %vm5314_vm1, %v8587_v43  ;;  %v12026_v47 = vpop.f32.mrf.mxu1  ;;  %v8590_v51 = vld [vmem:[#allocation3 + $0xb9] sm:$0xff]  ;;  %v8170_v11 = vld [vmem:[#allocation3 + $0xc8] sm:$0xff]  ;;  %v17177_v43 = vld [vmem:[#allocation65_spill] sm:$0xff] }
 0x45e   : > { %v6404_v15 = vpop.f32.mrf.mxu0  ;;  %12361 = vmatmul.mubr.msk.f32.gmra.mxu1 %vm5314_vm1, %v8166_v23  ;;  %v8203_v23 = vmul.f32 %v17177_v43, %v8171_v2  ;;  %v17178_v14 = vld [vmem:[#allocation68_spill] sm:$0xff]  ;;  %v8175_v2 = vld [vmem:[#allocation3 + $0xf0] sm:$0xff] }
 0x45f   : > { %v15782_v58 = vadd.f32 %v6404_v15, %v6083_v25  ;;  %12363 = vmatprep.mubr.msk.f32.mxu1 %vm5314_vm1, %v8199_v34  ;;  %v6093_v46 = vpop.f32.mrf.mxu1 }
 0x460   : > { %v12082_v20 = vpop.f32.mrf.mxu0  ;;  %12417 = vmatmul.mubr.msk.f32.gmra.mxu0 %vm5314_vm1, %v8588_v53 }
 0x461   : > { %v15786_v59 = vadd.f32 %v12082_v20, %v12026_v47  ;;  %12419 = vmatprep.mubr.msk.f32.mxu0 %vm5314_vm1, %v8589_v17  ;;  %v12029_v37 = vpop.f32.mrf.mxu1  ;;  %v8173_v47 = vld [vmem:[#allocation3 + $0xe0] sm:$0xff]  ;;  %v8593_v20 = vld [vmem:[#allocation3 + $0xd1] sm:$0xff] }
 0x462   : > { %v6414_v10 = vpop.f32.mrf.mxu0  ;;  %12364 = vmatmul.mubr.msk.f32.gmra.mxu1 %vm5314_vm1, %v8168_v9  ;;  %v8172_v9 = vld [vmem:[#allocation3 + $0xd8] sm:$0xff] }
 0x463   : > { %v15791_v21 = vadd.f32 %v6414_v10, %v6093_v46  ;;  %12366 = vmatprep.mubr.msk.f32.mxu1 %vm5314_vm1, %v8201_v19  ;;  %v6103_v26 = vpop.f32.mrf.mxu1  ;;  %v8205_v19 = vmul.f32 %v17178_v14, %v8173_v47  ;;  %v8597_v14 = vld [vmem:[#allocation3 + $0xf1] sm:$0xff] }
 0x464   : > { %v12085_v35 = vpop.f32.mrf.mxu0  ;;  %12420 = vmatmul.mubr.msk.f32.gmra.mxu0 %vm5314_vm1, %v8590_v51 }
 0x465   : > { %v15795_v25 = vadd.f32 %v12085_v35, %v12029_v37  ;;  %12422 = vmatprep.mubr.msk.f32.mxu0 %vm5314_vm1, %v8591_v24  ;;  %v12032_v40 = vpop.f32.mrf.mxu1 }
 0x466   : > { %v6424_v34 = vpop.f32.mrf.mxu0  ;;  %12367 = vmatmul.mubr.msk.f32.gmra.mxu1 %vm5314_vm1, %v8170_v11  ;;  %v8595_v11 = vld [vmem:[#allocation3 + $0xe1] sm:$0xff] }
 0x467   : > { %v15800_v15 = vadd.f32 %v6424_v34, %v6103_v26  ;;  %12369 = vmatprep.mubr.msk.f32.mxu1 %vm5314_vm1, %v8203_v23  ;;  %v6113_v53 = vpop.f32.mrf.mxu1  ;;  %v8594_v26 = vld [vmem:[#allocation3 + $0xd9] sm:$0xff]  ;;  %v8174_v23 = vld [vmem:[#allocation3 + $0xe8] sm:$0xff] }
 0x468   : > { %v12088_v46 = vpop.f32.mrf.mxu0  ;;  %12423 = vmatmul.mubr.msk.f32.gmra.mxu0 %vm5314_vm1, %v8592_v52 }
 0x469   : > { %v15804_v17 = vadd.f32 %v12088_v46, %v12032_v40  ;;  %12425 = vmatprep.mubr.msk.f32.mxu0 %vm5314_vm1, %v8593_v20  ;;  %v12035_v37 = vpop.f32.mrf.mxu1  ;;  %v17179_v40 = vld [vmem:[#allocation71_spill] sm:$0xff]  ;;  %v8596_v46 = vld [vmem:[#allocation3 + $0xe9] sm:$0xff] }
 0x46a   : > { %v6434_v10 = vpop.f32.mrf.mxu0  ;;  %12370 = vmatmul.mubr.msk.f32.gmra.mxu1 %vm5314_vm1, %v8172_v9  ;;  %v8207_v34 = vmul.f32 %v17179_v40, %v8175_v2 }
 0x46b   : > { %v15809_v51 = vadd.f32 %v6434_v10, %v6113_v53  ;;  %12372 = vmatprep.mubr.msk.f32.mxu1 %vm5314_vm1, %v8205_v19  ;;  %v6123_v35 = vpop.f32.mrf.mxu1  ;;  %v17180_v10 = vld [vmem:[#allocation74_spill] sm:$0xff] }
 0x46c   : > { %v12091_v24 = vpop.f32.mrf.mxu0  ;;  %12426 = vmatmul.mubr.msk.f32.gmra.mxu0 %vm5314_vm1, %v8594_v26  ;;  %v8209_v2 = vmul.f32 %v17180_v10, %v15488_v30 }
 0x46d   : > { %v15813_v43 = vadd.f32 %v12091_v24, %v12035_v37  ;;  %12428 = vmatprep.mubr.msk.f32.mxu0 %vm5314_vm1, %v8595_v11  ;;  %v12038_v47 = vpop.f32.mrf.mxu1  ;;  %v8176_v37 = vld [vmem:[#allocation3 + $0xf8] sm:$0xff] }
 0x46e   : > { %v6444_v52 = vpop.f32.mrf.mxu0  ;;  %12373 = vmatmul.mubr.msk.f32.gmra.mxu1 %vm5314_vm1, %v8174_v23  ;;  %v8598_v23 = vld [vmem:[#allocation3 + $0xf9] sm:$0xff] }
 0x46f   : > { %v15818_v53 = vadd.f32 %v6444_v52, %v6123_v35  ;;  %12375 = vmatprep.mubr.msk.f32.mxu1 %vm5314_vm1, %v8207_v34  ;;  %v6133_v20 = vpop.f32.mrf.mxu1  ;;  %v8179_v35 = vld [vmem:[#allocation3 + $0x110] sm:$0xff] }
 0x470   : > { %v12094_v9 = vpop.f32.mrf.mxu0  ;;  %12429 = vmatmul.mubr.msk.f32.gmra.mxu0 %vm5314_vm1, %v8596_v46  ;;  %v8211_v30 = vmul.f32 %v17127_v55, %v8179_v35  ;;  %v8602_v55 = vld [vmem:[#allocation3 + $0x119] sm:$0xff] }
 0x471   : > { %v15822_v19 = vadd.f32 %v12094_v9, %v12038_v47  ;;  %12431 = vmatprep.mubr.msk.f32.mxu0 %vm5314_vm1, %v8597_v14  ;;  %v12041_v26 = vpop.f32.mrf.mxu1  ;;  %v8180_v14 = vld [vmem:[#allocation3 + $0x118] sm:$0xff] }
 0x472   : > { %v6454_v24 = vpop.f32.mrf.mxu0  ;;  %12376 = vmatmul.mubr.msk.f32.gmra.mxu1 %vm5314_vm1, %v8176_v37 }
 0x473   : > { %v15828_v11 = vadd.f32 %v6454_v24, %v6133_v20  ;;  %12378 = vmatprep.mubr.msk.f32.mxu1 %vm5314_vm1, %v8209_v2  ;;  %v6143_v40 = vpop.f32.mrf.mxu1  ;;  %v8601_v20 = vld [vmem:[#allocation3 + $0x111] sm:$0xff] }
 0x474   : > { %v12097_v34 = vpop.f32.mrf.mxu0  ;;  %12432 = vmatmul.mubr.msk.f32.gmra.mxu0 %vm5314_vm1, %v8598_v23 }
 0x475   : > { %v15832_v47 = vadd.f32 %v12097_v34, %v12041_v26  ;;  %12434 = vmatprep.mubr.msk.f32.mxu0 %vm5314_vm1, %v15675_v0  ;;  %v12044_v52 = vpop.f32.mrf.mxu1  ;;  %v8962_v0 = vld [vmem:[#allocation3 + $0x2a] sm:$0xff] }
 0x476   : > { %v6464_v46 = vpop.f32.mrf.mxu0  ;;  %12379 = vmatmul.mubr.msk.f32.gmra.mxu1 %vm5314_vm1, %v15508_v4  ;;  %v8961_v4 = vld [vmem:[#allocation3 + $0x22] sm:$0xff] }
 0x477   : > { %v15839_v9 = vadd.f32 %v6464_v46, %v6143_v40  ;;  %12381 = vmatprep.mubr.msk.f32.mxu1 %vm5314_vm1, %v8211_v30  ;;  %v6153_v37 = vpop.f32.mrf.mxu1  ;;  %v17181_v30 = vld [vmem:[#allocation4_spill] sm:$0xff] }
 0x478   : > { %v12100_v10 = vpop.f32.mrf.mxu0  ;;  %12435 = vmatmul.mubr.msk.f32.gmra.mxu0 %vm5314_vm1, %v15688_v54  ;;  %v8994_v54 = vmul.f32 %v17128_v31, %v8962_v0 }
 0x479   : > { %v15844_v2 = vadd.f32 %v12100_v10, %v12044_v52  ;;  %12437 = vmatprep.mubr.msk.f32.mxu0 %vm5314_vm1, %v8601_v20  ;;  %v12047_v26 = vpop.f32.mrf.mxu1  ;;  %v8964_v52 = vld [vmem:[#allocation3 + $0x3a] sm:$0xff] }
 0x47a   : > { %v6474_v24 = vpop.f32.mrf.mxu0  ;;  %12382 = vmatmul.mubr.msk.f32.gmra.mxu1 %vm5314_vm1, %v8180_v14  ;;  %v8963_v14 = vld [vmem:[#allocation3 + $0x32] sm:$0xff] }
 0x47b   : > { %v15848_v35 = vadd.f32 %v6474_v24, %v6153_v37  ;;  %12448 = vmatprep.mubr.msk.f32.mxu1 %vm5314_vm1, %v8961_v4  ;;  %v6163_v23 = vpop.f32.mrf.mxu1  ;;  %v6335_v37 = vadd.f32 %v15715_v57, %v15705_v1  ;;  %v17182_v24 = vld [vmem:[#allocation142_spill] sm:$0xff]  ;;  %v17183_v4 = vld [vmem:[#allocation5_spill] sm:$0xff] }
 0x47c   : > { %v12103_v40 = vpop.f32.mrf.mxu0  ;;  %12438 = vmatmul.mubr.msk.f32.gmra.mxu0 %vm5314_vm1, %v8602_v55  ;;  %v8966_v1 = vld [vmem:[#allocation3 + $0x4a] sm:$0xff] }
 0x47d   : > { %v15853_v34 = vadd.f32 %v12103_v40, %v12047_v26  ;;  %12498 = vmatprep.mubr.msk.f32.mxu0 %vm579_vm2, %v17181_v30  ;;  %v12114_v20 = vpop.f32.mrf.mxu1  ;;  %v8996_v26 = vmul.f32 %v17129_v13, %v8964_v52 }
 0x47e   : > { %v6484_v46 = vpop.f32.mrf.mxu0  ;;  %12449 = vmatmul.mubr.msk.f32.vlgmr.msra.gmra.mxu1 %vm5314_vm1, %v8994_v54  ;;  %v6884_v55 = vadd.f32 %v12114_v20, %v17182_v24  ;;  %v17184_v54 = vld [vmem:[#allocation6_spill] sm:$0xff]  ;;  %v17185_v24 = vld [vmem:[#allocation7_spill] sm:$0xff] }
 0x47f   : > { %v15860_v10 = vadd.f32 %v6484_v46, %v6163_v23  ;;  %12451 = vmatprep.mubr.msk.f32.mxu1 %vm5314_vm1, %v8963_v14  ;;  %v6724_v31 = vpop.f32.mrf.mxu1  ;;  %v8965_v46 = vld [vmem:[#allocation3 + $0x42] sm:$0xff] }
 0x480   : > { %v12170_v0 = vpop.f32.mrf.mxu0  ;;  %12499 = vmatmul.mubr.msk.f32.vlgmr.msra.gmra.mxu0 %vm579_vm2, %v17183_v4  ;;  %v6883_v40 = vadd.f32 %v6724_v31, %v6335_v37  ;;  %v8998_v37 = vmul.f32 %v17130_v29, %v8966_v1 }
 0x481   : > { %v15867_v30 = vadd.f32 %v12170_v0, %v6884_v55  ;;  %12501 = vmatprep.mubr.msk.f32.mxu0 %vm579_vm2, %v17184_v54  ;;  %v8968_v0 = vld [vmem:[#allocation3 + $0x5a] sm:$0xff] }
 0x482   : > { %v12117_v57 = vpop.f32.mrf.mxu1  ;;  %v7146_v23 = vpop.f32.mrf.mxu0  ;;  %12452 = vmatmul.mubr.msk.f32.gmra.mxu1 %vm5314_vm1, %v8996_v26  ;;  %v17186_v26 = vld [vmem:[#allocation8_spill] sm:$0xff] }
 0x483   : > { %v6886_v20 = vadd.f32 %v12117_v57, %v15723_v56  ;;  %v15873_v14 = vadd.f32 %v7146_v23, %v6883_v40  ;;  %12454 = vmatprep.mubr.msk.f32.mxu1 %vm5314_vm1, %v8965_v46  ;;  %v8967_v40 = vld [vmem:[#allocation3 + $0x52] sm:$0xff] }
 0x484   : > { %v6734_v13 = vpop.f32.mrf.mxu1  ;;  %v12173_v52 = vpop.f32.mrf.mxu0  ;;  %12502 = vmatmul.mubr.msk.f32.gmra.mxu0 %vm579_vm2, %v17185_v24  ;;  %v17187_v23 = vld [vmem:[#allocation9_spill] sm:$0xff]  ;;  %v8969_v24 = vld [vmem:[#allocation3 + $0x62] sm:$0xff] }
 0x485   : > { %v6885_v55 = vadd.f32 %v6734_v13, %v15728_v38  ;;  %v15880_v31 = vadd.f32 %v12173_v52, %v6886_v20  ;;  %12504 = vmatprep.mubr.msk.f32.mxu0 %vm579_vm2, %v17186_v26  ;;  %v9000_v38 = vmul.f32 %v17145_v48, %v8968_v0  ;;  %v8970_v13 = vld [vmem:[#allocation3 + $0x6a] sm:$0xff] }
 0x486   : > { %v12120_v56 = vpop.f32.mrf.mxu1  ;;  %v7156_v4 = vpop.f32.mrf.mxu0  ;;  %12455 = vmatmul.mubr.msk.f32.gmra.mxu1 %vm5314_vm1, %v8998_v37  ;;  %v17188_v52 = vld [vmem:[#allocation12_spill] sm:$0xff] }
 0x487   : > { %v6888_v54 = vadd.f32 %v12120_v56, %v15732_v41  ;;  %v15886_v57 = vadd.f32 %v7156_v4, %v6885_v55  ;;  %12457 = vmatprep.mubr.msk.f32.mxu1 %vm5314_vm1, %v8967_v40  ;;  %v17189_v56 = vld [vmem:[#allocation16_spill] sm:$0xff] }
 0x488   : > { %v6744_v29 = vpop.f32.mrf.mxu1  ;;  %v12176_v1 = vpop.f32.mrf.mxu0  ;;  %12505 = vmatmul.mubr.msk.f32.gmra.mxu0 %vm579_vm2, %v17187_v23 }
 0x489   : > { %v6887_v46 = vadd.f32 %v6744_v29, %v15737_v39  ;;  %v15893_v20 = vadd.f32 %v12176_v1, %v6888_v54  ;;  %12507 = vmatprep.mubr.msk.f32.mxu0 %vm579_vm2, %v17188_v52  ;;  %v9002_v39 = vmul.f32 %v17132_v18, %v8970_v13  ;;  %v8972_v54 = vld [vmem:[#allocation3 + $0x7a] sm:$0xff]  ;;  %v17190_v29 = vld [vmem:[#allocation17_spill] sm:$0xff]  ;;  %v17191_v52 = vld [vmem:[#allocation20_spill] sm:$0xff] }
 0x48a   : > { %v12123_v41 = vpop.f32.mrf.mxu1  ;;  %v7166_v37 = vpop.f32.mrf.mxu0  ;;  %12458 = vmatmul.mubr.msk.f32.gmra.mxu1 %vm5314_vm1, %v9000_v38  ;;  %v8971_v38 = vld [vmem:[#allocation3 + $0x72] sm:$0xff] }
 0x48b   : > { %v6890_v55 = vadd.f32 %v12123_v41, %v15741_v8  ;;  %v15899_v26 = vadd.f32 %v7166_v37, %v6887_v46  ;;  %12460 = vmatprep.mubr.msk.f32.mxu1 %vm5314_vm1, %v8969_v24  ;;  %v8974_v24 = vld [vmem:[#allocation3 + $0x8a] sm:$0xff] }
 0x48c   : > { %v6754_v48 = vpop.f32.mrf.mxu1  ;;  %v12179_v0 = vpop.f32.mrf.mxu0  ;;  %12508 = vmatmul.mubr.msk.f32.gmra.mxu0 %vm579_vm2, %v17189_v56 }
 0x48d   : > { %v6889_v4 = vadd.f32 %v6754_v48, %v15746_v49  ;;  %v15906_v40 = vadd.f32 %v12179_v0, %v6890_v55  ;;  %12510 = vmatprep.mubr.msk.f32.mxu0 %vm579_vm2, %v17190_v29  ;;  %v9004_v49 = vmul.f32 %v17134_v6, %v8972_v54  ;;  %v17192_v55 = vld [vmem:[#allocation21_spill] sm:$0xff]  ;;  %v8973_v0 = vld [vmem:[#allocation3 + $0x82] sm:$0xff] }
 0x48e   : > { %v12126_v8 = vpop.f32.mrf.mxu1  ;;  %v7176_v1 = vpop.f32.mrf.mxu0  ;;  %12461 = vmatmul.mubr.msk.f32.gmra.mxu1 %vm5314_vm1, %v9002_v39  ;;  %v17193_v54 = vld [vmem:[#allocation24_spill] sm:$0xff] }
 0x48f   : > { %v6892_v23 = vadd.f32 %v12126_v8, %v15750_v33  ;;  %v15912_v46 = vadd.f32 %v7176_v1, %v6889_v4  ;;  %12463 = vmatprep.mubr.msk.f32.mxu1 %vm5314_vm1, %v8971_v38  ;;  %v8976_v1 = vld [vmem:[#allocation3 + $0x9a] sm:$0xff]  ;;  %v17194_v38 = vld [vmem:[#allocation25_spill] sm:$0xff] }
 0x490   : > { %v6764_v18 = vpop.f32.mrf.mxu1  ;;  %v12182_v13 = vpop.f32.mrf.mxu0  ;;  %12511 = vmatmul.mubr.msk.f32.gmra.mxu0 %vm579_vm2, %v17191_v52 }
 0x491   : > { %v6891_v41 = vadd.f32 %v6764_v18, %v15755_v36  ;;  %v15919_v37 = vadd.f32 %v12182_v13, %v6892_v23  ;;  %12513 = vmatprep.mubr.msk.f32.mxu0 %vm579_vm2, %v17192_v55  ;;  %v9006_v36 = vmul.f32 %v17135_v7, %v8974_v24  ;;  %v8975_v18 = vld [vmem:[#allocation3 + $0x92] sm:$0xff] }
 0x492   : > { %v12129_v33 = vpop.f32.mrf.mxu1  ;;  %v7186_v48 = vpop.f32.mrf.mxu0  ;;  %12464 = vmatmul.mubr.msk.f32.gmra.mxu1 %vm5314_vm1, %v9004_v49 }
 0x493   : > { %v6894_v39 = vadd.f32 %v12129_v33, %v15759_v50  ;;  %v15925_v56 = vadd.f32 %v7186_v48, %v6891_v41  ;;  %12466 = vmatprep.mubr.msk.f32.mxu1 %vm5314_vm1, %v8973_v0  ;;  %v17195_v41 = vld [vmem:[#allocation28_spill] sm:$0xff]  ;;  %v17196_v48 = vld [vmem:[#allocation29_spill] sm:$0xff] }
 0x494   : > { %v6774_v6 = vpop.f32.mrf.mxu1  ;;  %v12185_v4 = vpop.f32.mrf.mxu0  ;;  %12514 = vmatmul.mubr.msk.f32.gmra.mxu0 %vm579_vm2, %v17193_v54  ;;  %v8978_v33 = vld [vmem:[#allocation3 + $0xaa] sm:$0xff] }
 0x495   : > { %v6893_v29 = vadd.f32 %v6774_v6, %v15764_v16  ;;  %v15932_v8 = vadd.f32 %v12185_v4, %v6894_v39  ;;  %12516 = vmatprep.mubr.msk.f32.mxu0 %vm579_vm2, %v17194_v38  ;;  %v9008_v16 = vmul.f32 %v17136_v61, %v8976_v1  ;;  %v8977_v39 = vld [vmem:[#allocation3 + $0xa2] sm:$0xff]  ;;  %v8980_v38 = vld [vmem:[#allocation3 + $0xba] sm:$0xff] }
 0x496   : > { %v12132_v50 = vpop.f32.mrf.mxu1  ;;  %v7196_v23 = vpop.f32.mrf.mxu0  ;;  %12467 = vmatmul.mubr.msk.f32.gmra.mxu1 %vm5314_vm1, %v9006_v36  ;;  %v17197_v54 = vld [vmem:[#allocation32_spill] sm:$0xff] }
 0x497   : > { %v6896_v13 = vadd.f32 %v12132_v50, %v15768_v45  ;;  %v15938_v49 = vadd.f32 %v7196_v23, %v6893_v29  ;;  %12469 = vmatprep.mubr.msk.f32.mxu1 %vm5314_vm1, %v8975_v18  ;;  %v17198_v50 = vld [vmem:[#allocation10_spill] sm:$0xff] }
 0x498   : > { %v6784_v7 = vpop.f32.mrf.mxu1  ;;  %v12188_v52 = vpop.f32.mrf.mxu0  ;;  %12517 = vmatmul.mubr.msk.f32.gmra.mxu0 %vm579_vm2, %v17195_v41  ;;  %v8979_v18 = vld [vmem:[#allocation3 + $0xb2] sm:$0xff] }
 0x499   : > { %v6895_v24 = vadd.f32 %v6784_v7, %v15773_v63  ;;  %v15945_v55 = vadd.f32 %v12188_v52, %v6896_v13  ;;  %12519 = vmatprep.mubr.msk.f32.mxu0 %vm579_vm2, %v17196_v48  ;;  %v9010_v63 = vmul.f32 %v17137_v12, %v8978_v33  ;;  %v8982_v33 = vld [vmem:[#allocation3 + $0xca] sm:$0xff] }
 0x49a   : > { %v12135_v45 = vpop.f32.mrf.mxu1  ;;  %v7206_v0 = vpop.f32.mrf.mxu0  ;;  %12470 = vmatmul.mubr.msk.f32.gmra.mxu1 %vm5314_vm1, %v9008_v16  ;;  %v17199_v16 = vld [vmem:[#allocation11_spill] sm:$0xff]  ;;  %v17200_v48 = vld [vmem:[#allocation13_spill] sm:$0xff] }
 0x49b   : > { %v6898_v6 = vadd.f32 %v12135_v45, %v15777_v22  ;;  %v15951_v4 = vadd.f32 %v7206_v0, %v6895_v24  ;;  %12472 = vmatprep.mubr.msk.f32.mxu1 %vm5314_vm1, %v8977_v39  ;;  %v8981_v0 = vld [vmem:[#allocation3 + $0xc2] sm:$0xff] }
 0x49c   : > { %v6794_v61 = vpop.f32.mrf.mxu1  ;;  %v12191_v36 = vpop.f32.mrf.mxu0  ;;  %12520 = vmatmul.mubr.msk.f32.gmra.mxu0 %vm579_vm2, %v17197_v54 }
 0x49d   : > { %v6897_v29 = vadd.f32 %v6794_v61, %v15782_v58  ;;  %v15958_v1 = vadd.f32 %v12191_v36, %v6898_v6  ;;  %12522 = vmatprep.mubr.msk.f32.mxu0 %vm579_vm2, %v17198_v50  ;;  %v9012_v58 = vmul.f32 %v17138_v27, %v8980_v38  ;;  %v17201_v36 = vld [vmem:[#allocation14_spill] sm:$0xff]  ;;  %v17202_v38 = vld [vmem:[#allocation15_spill] sm:$0xff] }
 0x49e   : > { %v12138_v22 = vpop.f32.mrf.mxu1  ;;  %v7216_v23 = vpop.f32.mrf.mxu0  ;;  %12473 = vmatmul.mubr.msk.f32.gmra.mxu1 %vm5314_vm1, %v9010_v63 }
 0x49f   : > { %v6900_v13 = vadd.f32 %v12138_v22, %v15786_v59  ;;  %v15964_v7 = vadd.f32 %v7216_v23, %v6897_v29  ;;  %12475 = vmatprep.mubr.msk.f32.mxu1 %vm5314_vm1, %v8979_v18  ;;  %v8984_v29 = vld [vmem:[#allocation3 + $0xda] sm:$0xff]  ;;  %v8983_v22 = vld [vmem:[#allocation3 + $0xd2] sm:$0xff] }
 0x4a0   : > { %v6804_v12 = vpop.f32.mrf.mxu1  ;;  %v12194_v52 = vpop.f32.mrf.mxu0  ;;  %12523 = vmatmul.mubr.msk.f32.gmra.mxu0 %vm579_vm2, %v17199_v16  ;;  %v8986_v16 = vld [vmem:[#allocation3 + $0xea] sm:$0xff] }
 0x4a1   : > { %v6899_v41 = vadd.f32 %v6804_v12, %v15791_v21  ;;  %v15971_v24 = vadd.f32 %v12194_v52, %v6900_v13  ;;  %12525 = vmatprep.mubr.msk.f32.mxu0 %vm579_vm2, %v17200_v48  ;;  %v9014_v21 = vmul.f32 %v17139_v44, %v8982_v33  ;;  %v17203_v12 = vld [vmem:[#allocation18_spill] sm:$0xff]  ;;  %v8985_v48 = vld [vmem:[#allocation3 + $0xe2] sm:$0xff] }
 0x4a2   : > { %v12141_v59 = vpop.f32.mrf.mxu1  ;;  %v7226_v45 = vpop.f32.mrf.mxu0  ;;  %12476 = vmatmul.mubr.msk.f32.gmra.mxu1 %vm5314_vm1, %v9012_v58 }
 0x4a3   : > { %v6902_v39 = vadd.f32 %v12141_v59, %v15795_v25  ;;  %v15977_v6 = vadd.f32 %v7226_v45, %v6899_v41  ;;  %12478 = vmatprep.mubr.msk.f32.mxu1 %vm5314_vm1, %v8981_v0  ;;  %v17204_v41 = vld [vmem:[#allocation19_spill] sm:$0xff] }
 0x4a4   : > { %v6814_v27 = vpop.f32.mrf.mxu1  ;;  %v12197_v61 = vpop.f32.mrf.mxu0  ;;  %12526 = vmatmul.mubr.msk.f32.gmra.mxu0 %vm579_vm2, %v17201_v36  ;;  %v17206_v36 = vld [vmem:[#allocation23_spill] sm:$0xff] }
 0x4a5   : > { %v6901_v63 = vadd.f32 %v6814_v27, %v15800_v15  ;;  %v15984_v54 = vadd.f32 %v12197_v61, %v6902_v39  ;;  %12528 = vmatprep.mubr.msk.f32.mxu0 %vm579_vm2, %v17202_v38  ;;  %v9016_v15 = vmul.f32 %v17140_v28, %v8984_v29  ;;  %v17205_v39 = vld [vmem:[#allocation22_spill] sm:$0xff] }
 0x4a6   : > { %v12144_v25 = vpop.f32.mrf.mxu1  ;;  %v7236_v50 = vpop.f32.mrf.mxu0  ;;  %12479 = vmatmul.mubr.msk.f32.gmra.mxu1 %vm5314_vm1, %v9014_v21  ;;  %v8988_v21 = vld [vmem:[#allocation3 + $0xfa] sm:$0xff]  ;;  %v8987_v29 = vld [vmem:[#allocation3 + $0xf2] sm:$0xff] }
 0x4a7   : > { %v6904_v23 = vadd.f32 %v12144_v25, %v15804_v17  ;;  %v15990_v18 = vadd.f32 %v7236_v50, %v6901_v63  ;;  %12481 = vmatprep.mubr.msk.f32.mxu1 %vm5314_vm1, %v8983_v22  ;;  %v17207_v22 = vld [vmem:[#allocation26_spill] sm:$0xff] }
 0x4a8   : > { %v6824_v44 = vpop.f32.mrf.mxu1  ;;  %v12200_v13 = vpop.f32.mrf.mxu0  ;;  %12529 = vmatmul.mubr.msk.f32.gmra.mxu0 %vm579_vm2, %v17203_v12 }
 0x4a9   : > { %v6903_v52 = vadd.f32 %v6824_v44, %v15809_v51  ;;  %v15997_v58 = vadd.f32 %v12200_v13, %v6904_v23  ;;  %12531 = vmatprep.mubr.msk.f32.mxu0 %vm579_vm2, %v17204_v41  ;;  %v9018_v51 = vmul.f32 %v17141_v32, %v8986_v16  ;;  %v17208_v13 = vld [vmem:[#allocation27_spill] sm:$0xff] }
 0x4aa   : > { %v12147_v17 = vpop.f32.mrf.mxu1  ;;  %v7246_v33 = vpop.f32.mrf.mxu0  ;;  %12482 = vmatmul.mubr.msk.f32.gmra.mxu1 %vm5314_vm1, %v9016_v15 }
 0x4ab   : > { %v6906_v59 = vadd.f32 %v12147_v17, %v15813_v43  ;;  %v16003_v45 = vadd.f32 %v7246_v33, %v6903_v52  ;;  %12484 = vmatprep.mubr.msk.f32.mxu1 %vm5314_vm1, %v8985_v48  ;;  %v17209_v17 = vld [vmem:[#allocation30_spill] sm:$0xff] }
 0x4ac   : > { %v6834_v28 = vpop.f32.mrf.mxu1  ;;  %v12203_v0 = vpop.f32.mrf.mxu0  ;;  %12532 = vmatmul.mubr.msk.f32.gmra.mxu0 %vm579_vm2, %v17205_v39  ;;  %v8991_v33 = vld [vmem:[#allocation3 + $0x112] sm:$0xff] }
 0x4ad   : > { %v6905_v27 = vadd.f32 %v6834_v28, %v15818_v53  ;;  %v16010_v61 = vadd.f32 %v12203_v0, %v6906_v59  ;;  %12534 = vmatprep.mubr.msk.f32.mxu0 %vm579_vm2, %v17206_v36  ;;  %v9020_v53 = vmul.f32 %v17142_v5, %v8988_v21  ;;  %v8992_v5 = vld [vmem:[#allocation3 + $0x11a] sm:$0xff] }
 0x4ae   : > { %v12150_v43 = vpop.f32.mrf.mxu1  ;;  %v7256_v63 = vpop.f32.mrf.mxu0  ;;  %12485 = vmatmul.mubr.msk.f32.gmra.mxu1 %vm5314_vm1, %v9018_v51  ;;  %v17212_v36 = vld [vmem:[#allocation34_spill] sm:$0xff] }
 0x4af   : > { %v6908_v38 = vadd.f32 %v12150_v43, %v15822_v19  ;;  %v16016_v25 = vadd.f32 %v7256_v63, %v6905_v27  ;;  %12487 = vmatprep.mubr.msk.f32.mxu1 %vm5314_vm1, %v8987_v29 }
 0x4b0   : > { %v6844_v32 = vpop.f32.mrf.mxu1  ;;  %v12206_v50 = vpop.f32.mrf.mxu0  ;;  %12535 = vmatmul.mubr.msk.f32.gmra.mxu0 %vm579_vm2, %v17207_v22 }
 0x4b1   : > { %v6907_v23 = vadd.f32 %v6844_v32, %v15828_v11  ;;  %v16023_v44 = vadd.f32 %v12206_v50, %v6908_v38  ;;  %12537 = vmatprep.mubr.msk.f32.mxu0 %vm579_vm2, %v17208_v13  ;;  %v9022_v11 = vmul.f32 %v17143_v42, %v15681_v62  ;;  %v17213_v32 = vld [vmem:[#allocation35_spill] sm:$0xff] }
 0x4b2   : > { %v12153_v15 = vpop.f32.mrf.mxu1  ;;  %v7266_v19 = vpop.f32.mrf.mxu0  ;;  %12488 = vmatmul.mubr.msk.f32.gmra.mxu1 %vm5314_vm1, %v9020_v53 }
 0x4b3   : > { %v6910_v12 = vadd.f32 %v12153_v15, %v15832_v47  ;;  %v16029_v52 = vadd.f32 %v7266_v19, %v6907_v23  ;;  %12490 = vmatprep.mubr.msk.f32.mxu1 %vm5314_vm1, %v15684_v60  ;;  %v17210_v47 = vld [vmem:[#allocation31_spill] sm:$0xff]  ;;  %v9024_v60 = vmul.f32 %v17144_v3, %v8992_v5 }
 0x4b4   : > { %v6854_v16 = vpop.f32.mrf.mxu1  ;;  %v12209_v41 = vpop.f32.mrf.mxu0  ;;  %12538 = vmatmul.mubr.msk.f32.gmra.mxu0 %vm579_vm2, %v17209_v17 }
 0x4b5   : > { %v6909_v48 = vadd.f32 %v6854_v16, %v15839_v9  ;;  %v16038_v59 = vadd.f32 %v12209_v41, %v6910_v12  ;;  %12540 = vmatprep.mubr.msk.f32.mxu0 %vm579_vm2, %v17210_v47  ;;  %v17211_v9 = vld [vmem:[#allocation33_spill] sm:$0xff] }
 0x4b6   : > { %v12156_v28 = vpop.f32.mrf.mxu1  ;;  %v7276_v0 = vpop.f32.mrf.mxu0  ;;  %12491 = vmatmul.mubr.msk.f32.gmra.mxu1 %vm5314_vm1, %v9022_v11 }
 0x4b7   : > { %v6912_v51 = vadd.f32 %v12156_v28, %v15844_v2  ;;  %v16045_v42 = vadd.f32 %v7276_v0, %v6909_v48  ;;  %12493 = vmatprep.mubr.msk.f32.mxu1 %vm5314_vm1, %v8991_v33 }
 0x4b8   : > { %v6864_v62 = vpop.f32.mrf.mxu1  ;;  %v12212_v39 = vpop.f32.mrf.mxu0  ;;  %12541 = vmatmul.mubr.msk.f32.gmra.mxu0 %vm579_vm2, %v17211_v9 }
 0x4b9   : > { %v6911_v27 = vadd.f32 %v6864_v62, %v15848_v35  ;;  %v16051_v21 = vadd.f32 %v12212_v39, %v6912_v51  ;;  %12543 = vmatprep.mubr.msk.f32.mxu0 %vm579_vm2, %v17212_v36 }
 0x4ba   : > { %v12159_v43 = vpop.f32.mrf.mxu1  ;;  %v7286_v3 = vpop.f32.mrf.mxu0  ;;  %12494 = vmatmul.mubr.msk.f32.gmra.mxu1 %vm5314_vm1, %v9024_v60 }
 0x4bb   : > { %v6914_v2 = vadd.f32 %v12159_v43, %v15853_v34  ;;  %v16057_v63 = vadd.f32 %v7286_v3, %v6911_v27 }
 0x4bc   : > { %v6874_v29 = vpop.f32.mrf.mxu1  ;;  %v12215_v38 = vpop.f32.mrf.mxu0  ;;  %12544 = vmatmul.mubr.msk.f32.gmra.mxu0 %vm579_vm2, %v17213_v32 }
 0x4bd   : > { %v6913_v35 = vadd.f32 %v6874_v29, %v15860_v10  ;;  %v16062_v50 = vadd.f32 %v12215_v38, %v6914_v2 }
 0x4be   : > { %v7296_v53 = vpop.f32.mrf.mxu0  ;;  %v12226_v22 = vpop.f32.mrf.mxu1 }
 0x4bf   : > { %v16064_v23 = vadd.f32 %v7296_v53, %v6913_v35  ;;  %v7696_v13 = vadd.f32 %v12226_v22, %v15867_v30 }
 0x4c0   : > { %v7536_v15 = vpop.f32.mrf.mxu1  ;;  %v12282_v19 = vpop.f32.mrf.mxu0 }
 0x4c1   : > { %v7695_v34 = vadd.f32 %v7536_v15, %v15873_v14  ;;  %v16068_v12 = vadd.f32 %v12282_v19, %v7696_v13 }
 0x4c2   : > { %v12229_v5 = vpop.f32.mrf.mxu1  ;;  %v7958_v16 = vpop.f32.mrf.mxu0 }
 0x4c3   : > { %v7698_v41 = vadd.f32 %v12229_v5, %v15880_v31  ;;  %v16071_v11 = vadd.f32 %v7958_v16, %v7695_v34 }
 0x4c4   : > { %v7546_v10 = vpop.f32.mrf.mxu1  ;;  %v12285_v17 = vpop.f32.mrf.mxu0 }
 0x4c5   : > { %v7697_v33 = vadd.f32 %v7546_v10, %v15886_v57  ;;  %v16074_v48 = vadd.f32 %v12285_v17, %v7698_v41 }
 0x4c6   : > { %v12232_v47 = vpop.f32.mrf.mxu1  ;;  %v7968_v30 = vpop.f32.mrf.mxu0 }
 0x4c7   : > { %v7700_v28 = vadd.f32 %v12232_v47, %v15893_v20  ;;  %v16077_v0 = vadd.f32 %v7968_v30, %v7697_v33 }
 0x4c8   : > { %v7556_v14 = vpop.f32.mrf.mxu1  ;;  %v12288_v60 = vpop.f32.mrf.mxu0 }
 0x4c9   : > { %v7699_v51 = vadd.f32 %v7556_v14, %v15899_v26  ;;  %v16080_v62 = vadd.f32 %v12288_v60, %v7700_v28 }
 0x4ca   : > { %v12235_v31 = vpop.f32.mrf.mxu1  ;;  %v7978_v39 = vpop.f32.mrf.mxu0 }
 0x4cb   : > { %v7702_v9 = vadd.f32 %v12235_v31, %v15906_v40  ;;  %v16083_v27 = vadd.f32 %v7978_v39, %v7699_v51 }
 0x4cc   : > { %v7566_v57 = vpop.f32.mrf.mxu1  ;;  %v12291_v36 = vpop.f32.mrf.mxu0 }
 0x4cd   : > { %v7701_v43 = vadd.f32 %v7566_v57, %v15912_v46  ;;  %v16086_v3 = vadd.f32 %v12291_v36, %v7702_v9 }
 0x4ce   : > { %v12238_v20 = vpop.f32.mrf.mxu1  ;;  %v7988_v2 = vpop.f32.mrf.mxu0 }
 0x4cf   : > { %v7704_v29 = vadd.f32 %v12238_v20, %v15919_v37  ;;  %v16089_v38 = vadd.f32 %v7988_v2, %v7701_v43 }
 0x4d0   : > { %v7576_v26 = vpop.f32.mrf.mxu1  ;;  %v12294_v32 = vpop.f32.mrf.mxu0 }
 0x4d1   : > { %v7703_v35 = vadd.f32 %v7576_v26, %v15925_v56  ;;  %v16092_v53 = vadd.f32 %v12294_v32, %v7704_v29 }
 0x4d2   : > { %v12241_v40 = vpop.f32.mrf.mxu1  ;;  %v7998_v22 = vpop.f32.mrf.mxu0 }
 0x4d3   : > { %v7706_v13 = vadd.f32 %v12241_v40, %v15932_v8  ;;  %v16095_v15 = vadd.f32 %v7998_v22, %v7703_v35 }
 0x4d4   : > { %v7586_v46 = vpop.f32.mrf.mxu1  ;;  %v12297_v19 = vpop.f32.mrf.mxu0 }
 0x4d5   : > { %v7705_v34 = vadd.f32 %v7586_v46, %v15938_v49  ;;  %v16098_v5 = vadd.f32 %v12297_v19, %v7706_v13 }
 0x4d6   : > { %v12244_v37 = vpop.f32.mrf.mxu1  ;;  %v8008_v16 = vpop.f32.mrf.mxu0 }
 0x4d7   : > { %v7708_v41 = vadd.f32 %v12244_v37, %v15945_v55  ;;  %v16101_v10 = vadd.f32 %v8008_v16, %v7705_v34 }
 0x4d8   : > { %v7596_v56 = vpop.f32.mrf.mxu1  ;;  %v12300_v17 = vpop.f32.mrf.mxu0 }
 0x4d9   : > { %v7707_v33 = vadd.f32 %v7596_v56, %v15951_v4  ;;  %v16104_v47 = vadd.f32 %v12300_v17, %v7708_v41 }
 0x4da   : > { %v12247_v8 = vpop.f32.mrf.mxu1  ;;  %v8018_v30 = vpop.f32.mrf.mxu0 }
 0x4db   : > { %v7710_v28 = vadd.f32 %v12247_v8, %v15958_v1  ;;  %v16107_v14 = vadd.f32 %v8018_v30, %v7707_v33 }
 0x4dc   : > { %v7606_v49 = vpop.f32.mrf.mxu1  ;;  %v12303_v60 = vpop.f32.mrf.mxu0 }
 0x4dd   : > { %v7709_v51 = vadd.f32 %v7606_v49, %v15964_v7  ;;  %v16110_v31 = vadd.f32 %v12303_v60, %v7710_v28 }
 0x4de   : > { %v12250_v55 = vpop.f32.mrf.mxu1  ;;  %v8028_v39 = vpop.f32.mrf.mxu0 }
 0x4df   : > { %v7712_v9 = vadd.f32 %v12250_v55, %v15971_v24  ;;  %v16113_v57 = vadd.f32 %v8028_v39, %v7709_v51 }
 0x4e0   : > { %v7616_v4 = vpop.f32.mrf.mxu1  ;;  %v12306_v36 = vpop.f32.mrf.mxu0 }
 0x4e1   : > { %v7711_v43 = vadd.f32 %v7616_v4, %v15977_v6  ;;  %v16116_v20 = vadd.f32 %v12306_v36, %v7712_v9 }
 0x4e2   : > { %v12253_v1 = vpop.f32.mrf.mxu1  ;;  %v8038_v2 = vpop.f32.mrf.mxu0 }
 0x4e3   : > { %v7714_v29 = vadd.f32 %v12253_v1, %v15984_v54  ;;  %v16119_v26 = vadd.f32 %v8038_v2, %v7711_v43 }
 0x4e4   : > { %v7626_v7 = vpop.f32.mrf.mxu1  ;;  %v12309_v32 = vpop.f32.mrf.mxu0 }
 0x4e5   : > { %v7713_v35 = vadd.f32 %v7626_v7, %v15990_v18  ;;  %v16122_v40 = vadd.f32 %v12309_v32, %v7714_v29 }
 0x4e6   : > { %v12256_v24 = vpop.f32.mrf.mxu1  ;;  %v8048_v22 = vpop.f32.mrf.mxu0 }
 0x4e7   : > { %v7716_v13 = vadd.f32 %v12256_v24, %v15997_v58  ;;  %v16125_v46 = vadd.f32 %v8048_v22, %v7713_v35 }
 0x4e8   : > { %v7636_v6 = vpop.f32.mrf.mxu1  ;;  %v12312_v19 = vpop.f32.mrf.mxu0 }
 0x4e9   : > { %17214 = vst [vmem:[#allocation82_spill] sm:$0xff] %v16125_v46  ;;  %v7715_v34 = vadd.f32 %v7636_v6, %v16003_v45  ;;  %v16128_v37 = vadd.f32 %v12312_v19, %v7716_v13 }
 0x4ea   : > { %v12259_v54 = vpop.f32.mrf.mxu1  ;;  %v8058_v16 = vpop.f32.mrf.mxu0 }
 0x4eb   : > { %v7718_v41 = vadd.f32 %v12259_v54, %v16010_v61  ;;  %v16131_v56 = vadd.f32 %v8058_v16, %v7715_v34 }
 0x4ec   : > { %v7646_v18 = vpop.f32.mrf.mxu1  ;;  %v12315_v17 = vpop.f32.mrf.mxu0 }
 0x4ed   : > { %17215 = vst [vmem:[#allocation143_spill] sm:$0xff] %v16131_v56  ;;  %v7717_v33 = vadd.f32 %v7646_v18, %v16016_v25  ;;  %v16134_v8 = vadd.f32 %v12315_v17, %v7718_v41 }
 0x4ee   : > { %v12262_v58 = vpop.f32.mrf.mxu1  ;;  %v8068_v30 = vpop.f32.mrf.mxu0 }
 0x4ef   : > { %v7720_v28 = vadd.f32 %v12262_v58, %v16023_v44  ;;  %v16137_v49 = vadd.f32 %v8068_v30, %v7717_v33 }
 0x4f0   : > { %v7656_v45 = vpop.f32.mrf.mxu1  ;;  %v12318_v60 = vpop.f32.mrf.mxu0 }
 0x4f1   : > { %17216 = vst [vmem:[#allocation147_spill] sm:$0xff] %v16137_v49  ;;  %v7719_v51 = vadd.f32 %v7656_v45, %v16029_v52  ;;  %v16140_v55 = vadd.f32 %v12318_v60, %v7720_v28 }
 0x4f2   : > { %v12265_v61 = vpop.f32.mrf.mxu1  ;;  %v8078_v39 = vpop.f32.mrf.mxu0 }
 0x4f3   : > { %v7722_v9 = vadd.f32 %v12265_v61, %v16038_v59  ;;  %v16143_v4 = vadd.f32 %v8078_v39, %v7719_v51 }
 0x4f4   : > { %v7666_v25 = vpop.f32.mrf.mxu1  ;;  %v12321_v36 = vpop.f32.mrf.mxu0 }
 0x4f5   : > { %17217 = vst [vmem:[#allocation97_spill] sm:$0xff] %v16143_v4  ;;  %v7721_v43 = vadd.f32 %v7666_v25, %v16045_v42  ;;  %v16146_v1 = vadd.f32 %v12321_v36, %v7722_v9 }
 0x4f6   : > { %v12268_v44 = vpop.f32.mrf.mxu1  ;;  %v8088_v2 = vpop.f32.mrf.mxu0 }
 0x4f7   : > { %v7724_v29 = vadd.f32 %v12268_v44, %v16051_v21  ;;  %v16149_v7 = vadd.f32 %v8088_v2, %v7721_v43 }
 0x4f8   : > { %v7676_v52 = vpop.f32.mrf.mxu1  ;;  %v12324_v32 = vpop.f32.mrf.mxu0 }
 0x4f9   : > { %17218 = vst [vmem:[#allocation99_spill] sm:$0xff] %v16149_v7  ;;  %v7723_v35 = vadd.f32 %v7676_v52, %v16057_v63  ;;  %v16152_v24 = vadd.f32 %v12324_v32, %v7724_v29 }
 0x4fa   : > { %v12271_v59 = vpop.f32.mrf.mxu1  ;;  %v8098_v22 = vpop.f32.mrf.mxu0 }
 0x4fb   : > { %v7726_v13 = vadd.f32 %v12271_v59, %v16062_v50  ;;  %v16155_v6 = vadd.f32 %v8098_v22, %v7723_v35 }
 0x4fc   : > { %v7686_v42 = vpop.f32.mrf.mxu1  ;;  %v12327_v19 = vpop.f32.mrf.mxu0 }
 0x4fd   : > { %17219 = vst [vmem:[#allocation100_spill] sm:$0xff] %v16155_v6  ;;  %v7725_v34 = vadd.f32 %v7686_v42, %v16064_v23  ;;  %v16158_v54 = vadd.f32 %v12327_v19, %v7726_v13 }
 0x4fe   : > { %v8108_v21 = vpop.f32.mrf.mxu0  ;;  %v16160_v16 = vpop.f32.mrf.mxu1 }
 0x4ff   : > { %v16162_v41 = vadd.f32 %v8108_v21, %v7725_v34 }
 0x500   : > { %v16164_v63 = vpop.f32.mrf.mxu1  ;;  %v16166_v18 = vpop.f32.mrf.mxu0 }
 0x501   : > { %17220 = vst [vmem:[#allocation102_spill] sm:$0xff] %v16162_v41 }
 0x502   : > { %v16168_v17 = vpop.f32.mrf.mxu1  ;;  %v16170_v50 = vpop.f32.mrf.mxu0 }
 0x504   : > { %v16172_v33 = vpop.f32.mrf.mxu1  ;;  %v16174_v58 = vpop.f32.mrf.mxu0 }
 0x506   : > { %v12344_v23 = vpop.f32.mrf.mxu1  ;;  %v16176_v30 = vpop.f32.mrf.mxu0 }
 0x507   : > { %v16179_v28 = vadd.f32 %v12344_v23, %v16080_v62 }
 0x508   : > { %v16181_v45 = vpop.f32.mrf.mxu1  ;;  %v16183_v60 = vpop.f32.mrf.mxu0 }
 0x50a   : > { %v12347_v51 = vpop.f32.mrf.mxu1  ;;  %v16185_v61 = vpop.f32.mrf.mxu0 }
 0x50b   : > { %v16188_v39 = vadd.f32 %v12347_v51, %v16086_v3 }
 0x50c   : > { %v16190_v9 = vpop.f32.mrf.mxu1  ;;  %v16192_v25 = vpop.f32.mrf.mxu0 }
 0x50e   : > { %v12350_v36 = vpop.f32.mrf.mxu1  ;;  %v16194_v43 = vpop.f32.mrf.mxu0 }
 0x50f   : > { %v16197_v62 = vadd.f32 %v12350_v36, %v16092_v53 }
 0x510   : > { %v16199_v44 = vpop.f32.mrf.mxu1  ;;  %v16201_v2 = vpop.f32.mrf.mxu0 }
 0x512   : > { %v12353_v29 = vpop.f32.mrf.mxu1  ;;  %v16203_v52 = vpop.f32.mrf.mxu0 }
 0x513   : > { %v16206_v3 = vadd.f32 %v12353_v29, %v16098_v5 }
 0x514   : > { %v16208_v32 = vpop.f32.mrf.mxu1  ;;  %v16210_v35 = vpop.f32.mrf.mxu0 }
 0x516   : > { %v12356_v59 = vpop.f32.mrf.mxu1  ;;  %v16212_v22 = vpop.f32.mrf.mxu0 }
 0x517   : > { %v16215_v53 = vadd.f32 %v12356_v59, %v16104_v47 }
 0x518   : > { %v16217_v13 = vpop.f32.mrf.mxu1  ;;  %v16219_v42 = vpop.f32.mrf.mxu0 }
 0x51a   : > { %v12359_v19 = vpop.f32.mrf.mxu1  ;;  %v16221_v34 = vpop.f32.mrf.mxu0 }
 0x51b   : > { %v16224_v5 = vadd.f32 %v12359_v19, %v16110_v31 }
 0x51c   : > { %v16226_v21 = vpop.f32.mrf.mxu1  ;;  %v16228_v23 = vpop.f32.mrf.mxu0 }
 0x51e   : > { %v12362_v51 = vpop.f32.mrf.mxu1  ;;  %v16230_v36 = vpop.f32.mrf.mxu0 }
 0x51f   : > { %v16233_v47 = vadd.f32 %v12362_v51, %v16116_v20 }
 0x520   : > { %v16235_v29 = vpop.f32.mrf.mxu1  ;;  %v16237_v59 = vpop.f32.mrf.mxu0 }
 0x521   : > { %17221 = vst [vmem:[#allocation145_spill] sm:$0xff] %v16237_v59 }
 0x522   : > { %v12365_v41 = vpop.f32.mrf.mxu1  ;;  %v16239_v6 = vpop.f32.mrf.mxu0 }
 0x523   : > { %v16242_v31 = vadd.f32 %v12365_v41, %v16122_v40 }
 0x524   : > { %v16244_v19 = vpop.f32.mrf.mxu1  ;;  %v16246_v7 = vpop.f32.mrf.mxu0 }
 0x525   : > { %17222 = vst [vmem:[#allocation150_spill] sm:$0xff] %v16242_v31  ;;  %17223 = vst [vmem:[#allocation141_spill] sm:$0xff] %v16244_v19 }
 0x526   : > { %17224 = vst [vmem:[#allocation153_spill] sm:$0xff] %v16246_v7  ;;  %v12368_v4 = vpop.f32.mrf.mxu1  ;;  %v16248_v49 = vpop.f32.mrf.mxu0 }
 0x527   : > { %17225 = vst [vmem:[#allocation146_spill] sm:$0xff] %v16248_v49  ;;  %v16251_v20 = vadd.f32 %v12368_v4, %v16128_v37 }
 0x528   : > { %v16253_v51 = vpop.f32.mrf.mxu1  ;;  %v16255_v56 = vpop.f32.mrf.mxu0 }
 0x529   : > { %17226 = vst [vmem:[#allocation101_spill] sm:$0xff] %v16251_v20  ;;  %17227 = vst [vmem:[#allocation103_spill] sm:$0xff] %v16255_v56 }
 0x52a   : > { %v12371_v46 = vpop.f32.mrf.mxu1  ;;  %v16257_v59 = vpop.f32.mrf.mxu0 }
 0x52b   : > { %v16260_v40 = vadd.f32 %v12371_v46, %v16134_v8 }
 0x52c   : > { %v16262_v41 = vpop.f32.mrf.mxu1  ;;  %v16264_v31 = vpop.f32.mrf.mxu0 }
 0x52d   : > { %17228 = vst [vmem:[#allocation104_spill] sm:$0xff] %v16260_v40  ;;  %17229 = vst [vmem:[#allocation156_spill] sm:$0xff] %v16262_v41 }
 0x52e   : > { %17230 = vst [vmem:[#allocation148_spill] sm:$0xff] %v16264_v31  ;;  %v12374_v7 = vpop.f32.mrf.mxu1  ;;  %v16266_v19 = vpop.f32.mrf.mxu0 }
 0x52f   : > { %v16269_v37 = vadd.f32 %v12374_v7, %v16140_v55 }
 0x530   : > { %v16271_v4 = vpop.f32.mrf.mxu1  ;;  %v16273_v20 = vpop.f32.mrf.mxu0 }
 0x531   : > { %17231 = vst [vmem:[#allocation106_spill] sm:$0xff] %v16269_v37  ;;  %17232 = vst [vmem:[#allocation149_spill] sm:$0xff] %v16273_v20 }
 0x532   : > { %v12377_v56 = vpop.f32.mrf.mxu1  ;;  %v16275_v49 = vpop.f32.mrf.mxu0 }
 0x533   : > { %17233 = vst [vmem:[#allocation159_spill] sm:$0xff] %v16275_v49  ;;  %v16278_v46 = vadd.f32 %v12377_v56, %v16146_v1  ;;  %v8540_v49 = vadd.f32 %v16160_v16, %v16068_v12  ;;  %v8539_v1 = vadd.f32 %v16164_v63, %v16071_v11  ;;  %v16314_v16 = vld [vmem:[%s16571_s12] ss:$0 sm:$0xff] }
 0x534   : > { %v16280_v8 = vpop.f32.mrf.mxu1  ;;  %v16282_v40 = vpop.f32.mrf.mxu0 }
 0x535   : > { %17234 = vst [vmem:[#allocation56_spill] sm:$0xff] %v16282_v40  ;;  %v8929_v11 = vadd.f32 %v16170_v50, %v8539_v1 }
 0x536   : > { %v12380_v31 = vpop.f32.mrf.mxu1  ;;  %v16284_v41 = vpop.f32.mrf.mxu0 }
 0x537   : > { %17235 = vst [vmem:[#allocation105_spill] sm:$0xff] %v16284_v41  ;;  %v16287_v55 = vadd.f32 %v12380_v31, %v16152_v24  ;;  %v8930_v31 = vadd.f32 %v16166_v18, %v8540_v49  ;;  %v16322_v49 = vld [vmem:[%s16572_s13] ss:$0 sm:$0xff] }
 0x538   : > { %v16289_v7 = vpop.f32.mrf.mxu1  ;;  %v16291_v37 = vpop.f32.mrf.mxu0 }
 0x539   : > { %17236 = vst [vmem:[#allocation107_spill] sm:$0xff] %v16287_v55  ;;  %17237 = vst [vmem:[#allocation110_spill] sm:$0xff] %v16291_v37  ;;  %v8542_v37 = vadd.f32 %v16168_v17, %v16074_v48 }
 0x53a   : > { %v12383_v20 = vpop.f32.mrf.mxu1  ;;  %v16295_v56 = vpop.f32.mrf.mxu0 }
 0x53b   : > { %v16300_v40 = vadd.f32 %v12383_v20, %v16158_v54  ;;  %v8541_v54 = vadd.f32 %v16172_v33, %v16077_v0  ;;  %v8932_v18 = vadd.f32 %v16174_v58, %v8542_v37 }
 0x53c   : > { %v16302_v41 = vpop.f32.mrf.mxu1  ;;  %v16304_v24 = vpop.f32.mrf.mxu0 }
 0x53d   : > { %17238 = vst [vmem:[#allocation151_spill] sm:$0xff] %v16300_v40  ;;  %17239 = vst [vmem:[#allocation162_spill] sm:$0xff] %v16302_v41  ;;  %v8931_v0 = vadd.f32 %v16176_v30, %v8541_v54  ;;  %v8934_v40 = vadd.f32 %v16183_v60, %v16179_v28  ;;  %v8936_v60 = vadd.f32 %v16192_v25, %v16188_v39 }
 0x53e   : > { %17240 = vst [vmem:[#allocation108_spill] sm:$0xff] %v16304_v24  ;;  %v16309_v55 = vpop.f32.mrf.mxu0  ;;  %v12450_v12 = vpop.f32.mrf.mxu1  ;;  %v8543_v24 = vadd.f32 %v16181_v45, %v16083_v27  ;;  %v8938_v39 = vadd.f32 %v16201_v2, %v16197_v62 }
 0x53f   : > { %17241 = vst [vmem:[#allocation165_spill] sm:$0xff] %v16309_v55  ;;  %v9352_v63 = vadd.f32 %v12450_v12, %v8930_v31 }
 0x540   : > { %v9192_v20 = vpop.f32.mrf.mxu1  ;;  %v12500_v48 = vpop.f32.mrf.mxu0  ;;  %v8933_v45 = vadd.f32 %v16185_v61, %v8543_v24 }
 0x541   : > { %v9391_v17 = vadd.f32 %v16314_v16, %v9352_v63  ;;  %v9351_v55 = vadd.f32 %v9192_v20, %v8929_v11 }
 0x542   : > { %v12453_v50 = vpop.f32.mrf.mxu1  ;;  %v9530_v1 = vpop.f32.mrf.mxu0 }
 0x543   : > { %v9390_v33 = vadd.f32 %v16314_v16, %v9351_v55  ;;  %v9354_v31 = vadd.f32 %v12453_v50, %v8932_v18  ;;  %v9430_v12 = vmul.f32 %v16322_v49, %v9391_v17  ;;  %v8545_v55 = vadd.f32 %v16190_v9, %v16089_v38 }
 0x544   : > { %v9202_v41 = vpop.f32.mrf.mxu1  ;;  %v12503_v58 = vpop.f32.mrf.mxu0  ;;  %v8547_v9 = vadd.f32 %v16199_v44, %v16095_v15 }
 0x545   : > { %v9393_v37 = vadd.f32 %v16314_v16, %v9354_v31  ;;  %v9536_v11 = vadd.f32 %v12500_v48, %v9430_v12  ;;  %v9353_v63 = vadd.f32 %v9202_v41, %v8931_v0  ;;  %v9429_v27 = vmul.f32 %v16322_v49, %v9390_v33 }
 0x546   : > { %v12456_v20 = vpop.f32.mrf.mxu1  ;;  %v9540_v30 = vpop.f32.mrf.mxu0  ;;  %v8935_v33 = vadd.f32 %v16194_v43, %v8545_v55 }
 0x547   : > { %v9392_v54 = vadd.f32 %v16314_v16, %v9353_v63  ;;  %v9356_v18 = vadd.f32 %v12456_v20, %v8934_v40  ;;  %v9432_v28 = vmul.f32 %v16322_v49, %v9393_v37  ;;  %9755 = vrot.lane.b32.xlu0 %v9536_v11, %s12567_s27  ;;  %v9531_v41 = vadd.f32 %v9530_v1, %v9429_v27 }
 0x548   : > { %v9212_v48 = vpop.f32.mrf.mxu1  ;;  %v12506_v17 = vpop.f32.mrf.mxu0  ;;  %v8937_v11 = vadd.f32 %v16203_v52, %v8547_v9 }
 0x549   : > { %v9395_v61 = vadd.f32 %v16314_v16, %v9356_v18  ;;  %v9546_v24 = vadd.f32 %v12503_v58, %v9432_v28  ;;  %v9355_v50 = vadd.f32 %v9212_v48, %v8933_v45  ;;  %v9431_v38 = vmul.f32 %v16322_v49, %v9392_v54 }
 0x54a   : > { %v12459_v40 = vpop.f32.mrf.mxu1  ;;  %v9550_v0 = vpop.f32.mrf.mxu0  ;;  %v8549_v45 = vadd.f32 %v16208_v32, %v16101_v10  ;;  %v8551_v32 = vadd.f32 %v16217_v13, %v16107_v14 }
 0x54b   : > { %v9394_v31 = vadd.f32 %v16314_v16, %v9355_v50  ;;  %v9358_v12 = vadd.f32 %v12459_v40, %v8936_v60  ;;  %9759 = vrot.lane.b32.xlu1 %v9546_v24, %s12567_s27  ;;  %9753 = vrot.lane.b32.xlu0 %v9531_v41, %s12567_s27  ;;  %v9541_v25 = vadd.f32 %v9540_v30, %v9431_v38 }
 0x54c   : > { %v9222_v1 = vpop.f32.mrf.mxu1  ;;  %v12509_v58 = vpop.f32.mrf.mxu0  ;;  %v9434_v44 = vmul.f32 %v16322_v49, %v9395_v61  ;;  %v8940_v30 = vadd.f32 %v16210_v35, %v16206_v3  ;;  %v8939_v61 = vadd.f32 %v16212_v22, %v8549_v45  ;;  %v8941_v13 = vadd.f32 %v16221_v34, %v8551_v32  ;;  %v17242_v45 = vld [vmem:[#allocation145_spill] sm:$0xff] }
 0x54d   : > { %v9397_v37 = vadd.f32 %v16314_v16, %v9358_v12  ;;  %v9357_v15 = vadd.f32 %v9222_v1, %v8935_v33  ;;  %v9433_v43 = vmul.f32 %v16322_v49, %v9394_v31  ;;  %v8553_v12 = vadd.f32 %v16226_v21, %v16113_v57 }
 0x54e   : > { %v12462_v63 = vpop.f32.mrf.mxu1  ;;  %v9560_v27 = vpop.f32.mrf.mxu0  ;;  %v9556_v28 = vadd.f32 %v12506_v17, %v9434_v44  ;;  %v8942_v17 = vadd.f32 %v16219_v42, %v16215_v53  ;;  %v8555_v21 = vadd.f32 %v16235_v29, %v16119_v26 }
 0x54f   : > { %v9396_v20 = vadd.f32 %v16314_v16, %v9357_v15  ;;  %v9360_v62 = vadd.f32 %v12462_v63, %v8938_v39  ;;  %v9551_v2 = vadd.f32 %v9550_v0, %v9433_v43  ;;  %9757 = vrot.lane.b32.xlu1 %v9541_v25, %s12567_s27  ;;  %v9436_v54 = vmul.f32 %v16322_v49, %v9397_v37 }
 0x550   : > { %v9232_v55 = vpop.f32.mrf.mxu1  ;;  %v12512_v18 = vpop.f32.mrf.mxu0  ;;  %v8944_v25 = vadd.f32 %v16228_v23, %v16224_v5  ;;  %v8943_v63 = vadd.f32 %v16230_v36, %v8553_v12  ;;  %v8945_v29 = vadd.f32 %v16239_v6, %v8555_v21 }
 0x551   : > { %v9399_v52 = vadd.f32 %v16314_v16, %v9360_v62  ;;  %v9359_v60 = vadd.f32 %v9232_v55, %v8937_v11  ;;  %9761 = vrot.lane.b32.xlu0 %v9551_v2, %s12567_s27  ;;  %v9435_v10 = vmul.f32 %v16322_v49, %v9396_v20  ;;  %v9566_v50 = vadd.f32 %v12509_v58, %v9436_v54 }
 0x552   : > { %v12465_v41 = vpop.f32.mrf.mxu1  ;;  %v9570_v48 = vpop.f32.mrf.mxu0  ;;  %v8946_v20 = vadd.f32 %v17242_v45, %v16233_v47 }
 0x553   : > { %v9398_v3 = vadd.f32 %v16314_v16, %v9359_v60  ;;  %v9362_v35 = vadd.f32 %v12465_v41, %v8940_v30  ;;  %v9561_v24 = vadd.f32 %v9560_v27, %v9435_v10  ;;  %9763 = vrot.lane.b32.xlu1 %v9556_v28, %s12567_s27  ;;  %v9438_v14 = vmul.f32 %v16322_v49, %v9399_v52  ;;  %v17243_v52 = vld [vmem:[#allocation82_spill] sm:$0xff]  ;;  %v17244_v60 = vld [vmem:[#allocation141_spill] sm:$0xff] }
 0x554   : > { %v9242_v38 = vpop.f32.mrf.mxu1  ;;  %v12515_v9 = vpop.f32.mrf.mxu0  ;;  %v8557_v10 = vadd.f32 %v17244_v60, %v17243_v52 }
 0x555   : > { %v9401_v40 = vadd.f32 %v16314_v16, %v9362_v35  ;;  %v9361_v0 = vadd.f32 %v9242_v38, %v8939_v61  ;;  %9765 = vrot.lane.b32.xlu0 %v9561_v24, %s12567_s27  ;;  %v9437_v22 = vmul.f32 %v16322_v49, %v9398_v3  ;;  %v9576_v15 = vadd.f32 %v12512_v18, %v9438_v14  ;;  %v17246_v61 = vld [vmem:[#allocation153_spill] sm:$0xff] }
 0x556   : > { %v12468_v33 = vpop.f32.mrf.mxu1  ;;  %v9580_v31 = vpop.f32.mrf.mxu0 }
 0x557   : > { %v9400_v53 = vadd.f32 %v16314_v16, %v9361_v0  ;;  %v9364_v42 = vadd.f32 %v12468_v33, %v8942_v17  ;;  %v9571_v39 = vadd.f32 %v9570_v48, %v9437_v22  ;;  %9767 = vrot.lane.b32.xlu1 %v9566_v50, %s12567_s27  ;;  %v9440_v58 = vmul.f32 %v16322_v49, %v9401_v40  ;;  %v17245_v48 = vld [vmem:[#allocation150_spill] sm:$0xff]  ;;  %v17247_v40 = vld [vmem:[#allocation143_spill] sm:$0xff] }
 0x558   : > { %v9252_v1 = vpop.f32.mrf.mxu1  ;;  %v12518_v37 = vpop.f32.mrf.mxu0  ;;  %v8948_v3 = vadd.f32 %v17246_v61, %v17245_v48  ;;  %v8559_v0 = vadd.f32 %v16253_v51, %v17247_v40  ;;  %v17256_v48 = vld [vmem:[#allocation106_spill] sm:$0xff]  ;;  %v17257_v61 = vld [vmem:[#allocation149_spill] sm:$0xff] }
 0x559   : > { %v9403_v34 = vadd.f32 %v16314_v16, %v9364_v42  ;;  %v9363_v44 = vadd.f32 %v9252_v1, %v8941_v13  ;;  %9769 = vrot.lane.b32.xlu0 %v9571_v39, %s12567_s27  ;;  %v9439_v57 = vmul.f32 %v16322_v49, %v9400_v53  ;;  %v9586_v62 = vadd.f32 %v12515_v9, %v9440_v58  ;;  %v17248_v13 = vld [vmem:[#allocation146_spill] sm:$0xff]  ;;  %v17249_v42 = vld [vmem:[#allocation101_spill] sm:$0xff]  ;;  %v17250_v39 = vld [vmem:[#allocation103_spill] sm:$0xff] }
 0x55a   : > { %v12471_v43 = vpop.f32.mrf.mxu1  ;;  %v9590_v11 = vpop.f32.mrf.mxu0  ;;  %v8947_v33 = vadd.f32 %v17248_v13, %v8557_v10 }
 0x55b   : > { %v9402_v5 = vadd.f32 %v16314_v16, %v9363_v44  ;;  %v9366_v23 = vadd.f32 %v12471_v43, %v8944_v25  ;;  %v9581_v27 = vadd.f32 %v9580_v31, %v9439_v57  ;;  %9771 = vrot.lane.b32.xlu1 %v9576_v15, %s12567_s27  ;;  %v9442_v26 = vmul.f32 %v16322_v49, %v9403_v34 }
 0x55c   : > { %v9262_v2 = vpop.f32.mrf.mxu1  ;;  %v12521_v30 = vpop.f32.mrf.mxu0  ;;  %v8950_v25 = vadd.f32 %v17250_v39, %v17249_v42  ;;  %v8949_v57 = vadd.f32 %v16257_v59, %v8559_v0 }
 0x55d   : > { %v9405_v55 = vadd.f32 %v16314_v16, %v9366_v23  ;;  %v9365_v54 = vadd.f32 %v9262_v2, %v8943_v63  ;;  %9773 = vrot.lane.b32.xlu0 %v9581_v27, %s12567_s27  ;;  %v9441_v36 = vmul.f32 %v16322_v49, %v9402_v5  ;;  %v9596_v50 = vadd.f32 %v12518_v37, %v9442_v26  ;;  %v17252_v63 = vld [vmem:[#allocation156_spill] sm:$0xff] }
 0x55e   : > { %v12474_v18 = vpop.f32.mrf.mxu1  ;;  %v9600_v28 = vpop.f32.mrf.mxu0 }
 0x55f   : > { %v9404_v47 = vadd.f32 %v16314_v16, %v9365_v54  ;;  %v9368_v32 = vadd.f32 %v12474_v18, %v8946_v20  ;;  %v9591_v41 = vadd.f32 %v9590_v11, %v9441_v36  ;;  %9775 = vrot.lane.b32.xlu1 %v9586_v62, %s12567_s27  ;;  %v9444_v24 = vmul.f32 %v16322_v49, %v9405_v55  ;;  %v17251_v11 = vld [vmem:[#allocation147_spill] sm:$0xff]  ;;  %v17253_v20 = vld [vmem:[#allocation104_spill] sm:$0xff]  ;;  %v17255_v18 = vld [vmem:[#allocation97_spill] sm:$0xff] }
 0x560   : > { %v9272_v35 = vpop.f32.mrf.mxu1  ;;  %v12524_v17 = vpop.f32.mrf.mxu0  ;;  %v8561_v5 = vadd.f32 %v17252_v63, %v17251_v11  ;;  %v17254_v62 = vld [vmem:[#allocation148_spill] sm:$0xff]  ;;  %v17263_v63 = vld [vmem:[#allocation107_spill] sm:$0xff] }
 0x561   : > { %v9407_v6 = vadd.f32 %v16314_v16, %v9368_v32  ;;  %v9367_v38 = vadd.f32 %v9272_v35, %v8945_v29  ;;  %9777 = vrot.lane.b32.xlu0 %v9591_v41, %s12567_s27  ;;  %v9443_v9 = vmul.f32 %v16322_v49, %v9404_v47  ;;  %v9606_v1 = vadd.f32 %v12521_v30, %v9444_v24 }
 0x562   : > { %v12477_v14 = vpop.f32.mrf.mxu1  ;;  %v9610_v22 = vpop.f32.mrf.mxu0  ;;  %v8952_v2 = vadd.f32 %v17254_v62, %v17253_v20  ;;  %v8951_v10 = vadd.f32 %v16266_v19, %v8561_v5  ;;  %v17264_v5 = vld [vmem:[#allocation110_spill] sm:$0xff] }
 0x563   : > { %v9406_v31 = vadd.f32 %v16314_v16, %v9367_v38  ;;  %v9370_v12 = vadd.f32 %v12477_v14, %v8948_v3  ;;  %v9601_v53 = vadd.f32 %v9600_v28, %v9443_v9  ;;  %9779 = vrot.lane.b32.xlu1 %v9596_v50, %s12567_s27  ;;  %v9446_v51 = vmul.f32 %v16322_v49, %v9407_v6  ;;  %v17258_v38 = vld [vmem:[#allocation159_spill] sm:$0xff] }
 0x564   : > { %v9282_v58 = vpop.f32.mrf.mxu1  ;;  %v12527_v37 = vpop.f32.mrf.mxu0  ;;  %v8563_v28 = vadd.f32 %v16271_v4, %v17255_v18  ;;  %v8954_v3 = vadd.f32 %v17257_v61, %v17256_v48  ;;  %v17259_v14 = vld [vmem:[#allocation99_spill] sm:$0xff] }
 0x565   : > { %v9409_v15 = vadd.f32 %v16314_v16, %v9370_v12  ;;  %v9369_v34 = vadd.f32 %v9282_v58, %v8947_v33  ;;  %9781 = vrot.lane.b32.xlu0 %v9601_v53, %s12567_s27  ;;  %v9445_v44 = vmul.f32 %v16322_v49, %v9406_v31  ;;  %v9616_v26 = vadd.f32 %v12524_v17, %v9446_v51  ;;  %v17260_v12 = vld [vmem:[#allocation56_spill] sm:$0xff] }
 0x566   : > { %v12480_v21 = vpop.f32.mrf.mxu1  ;;  %v9620_v43 = vpop.f32.mrf.mxu0  ;;  %v8953_v9 = vadd.f32 %v17258_v38, %v8563_v28  ;;  %v8956_v53 = vadd.f32 %v17260_v12, %v16278_v46 }
 0x567   : > { %v9408_v23 = vadd.f32 %v16314_v16, %v9369_v34  ;;  %v9372_v27 = vadd.f32 %v12480_v21, %v8950_v25  ;;  %v9611_v45 = vadd.f32 %v9610_v22, %v9445_v44  ;;  %9783 = vrot.lane.b32.xlu1 %v9606_v1, %s12567_s27  ;;  %v9448_v55 = vmul.f32 %v16322_v49, %v9409_v15  ;;  %v17261_v15 = vld [vmem:[#allocation100_spill] sm:$0xff] }
 0x568   : > { %v9292_v30 = vpop.f32.mrf.mxu1  ;;  %v12530_v54 = vpop.f32.mrf.mxu0  ;;  %v8565_v22 = vadd.f32 %v16280_v8, %v17259_v14  ;;  %v8567_v34 = vadd.f32 %v16289_v7, %v17261_v15 }
 0x569   : > { %v9411_v59 = vadd.f32 %v16314_v16, %v9372_v27  ;;  %v9371_v36 = vadd.f32 %v9292_v30, %v8949_v57  ;;  %9785 = vrot.lane.b32.xlu0 %v9611_v45, %s12567_s27  ;;  %v9447_v29 = vmul.f32 %v16322_v49, %v9408_v23  ;;  %v9626_v35 = vadd.f32 %v12527_v37, %v9448_v55  ;;  %v17262_v57 = vld [vmem:[#allocation105_spill] sm:$0xff] }
 0x56a   : > { %v12483_v52 = vpop.f32.mrf.mxu1  ;;  %v9630_v60 = vpop.f32.mrf.mxu0  ;;  %v8955_v21 = vadd.f32 %v17262_v57, %v8565_v22  ;;  %v8958_v23 = vadd.f32 %v17264_v5, %v17263_v63  ;;  %v8957_v55 = vadd.f32 %v16295_v56, %v8567_v34 }
 0x56b   : > { %v9410_v47 = vadd.f32 %v16314_v16, %v9371_v36  ;;  %v9374_v32 = vadd.f32 %v12483_v52, %v8952_v2  ;;  %v9621_v41 = vadd.f32 %v9620_v43, %v9447_v29  ;;  %9787 = vrot.lane.b32.xlu1 %v9616_v26, %s12567_s27  ;;  %v9450_v4 = vmul.f32 %v16322_v49, %v9411_v59  ;;  %v17265_v59 = vld [vmem:[#allocation102_spill] sm:$0xff] }
 0x56c   : > { %v9302_v24 = vpop.f32.mrf.mxu1  ;;  %v12533_v17 = vpop.f32.mrf.mxu0  ;;  %v17266_v36 = vld [vmem:[#allocation162_spill] sm:$0xff] }
 0x56d   : > { %v9413_v50 = vadd.f32 %v16314_v16, %v9374_v32  ;;  %v9373_v6 = vadd.f32 %v9302_v24, %v8951_v10  ;;  %9789 = vrot.lane.b32.xlu0 %v9621_v41, %s12567_s27  ;;  %v9449_v19 = vmul.f32 %v16322_v49, %v9410_v47  ;;  %v9636_v1 = vadd.f32 %v12530_v54, %v9450_v4  ;;  %v17268_v10 = vld [vmem:[#allocation108_spill] sm:$0xff] }
 0x56e   : > { %v12486_v40 = vpop.f32.mrf.mxu1  ;;  %v9640_v0 = vpop.f32.mrf.mxu0  ;;  %v8569_v29 = vadd.f32 %v17266_v36, %v17265_v59 }
 0x56f   : > { %v9412_v13 = vadd.f32 %v16314_v16, %v9373_v6  ;;  %v9376_v33 = vadd.f32 %v12486_v40, %v8954_v3  ;;  %v9631_v31 = vadd.f32 %v9630_v60, %v9449_v19  ;;  %9791 = vrot.lane.b32.xlu1 %v9626_v35, %s12567_s27  ;;  %v9452_v39 = vmul.f32 %v16322_v49, %v9413_v50  ;;  %v17267_v60 = vld [vmem:[#allocation151_spill] sm:$0xff]  ;;  %v17269_v50 = vld [vmem:[#allocation165_spill] sm:$0xff] }
 0x570   : > { %v9312_v42 = vpop.f32.mrf.mxu1  ;;  %v12536_v25 = vpop.f32.mrf.mxu0  ;;  %v8960_v47 = vadd.f32 %v17268_v10, %v17267_v60  ;;  %v8959_v6 = vadd.f32 %v17269_v50, %v8569_v29 }
 0x571   : > { %v9415_v58 = vadd.f32 %v16314_v16, %v9376_v33  ;;  %v9375_v37 = vadd.f32 %v9312_v42, %v8953_v9  ;;  %9793 = vrot.lane.b32.xlu0 %v9631_v31, %s12567_s27  ;;  %v9451_v8 = vmul.f32 %v16322_v49, %v9412_v13  ;;  %v9646_v27 = vadd.f32 %v12533_v17, %v9452_v39 }
 0x572   : > { %v12489_v51 = vpop.f32.mrf.mxu1  ;;  %v9650_v44 = vpop.f32.mrf.mxu0 }
 0x573   : > { %v9414_v46 = vadd.f32 %v16314_v16, %v9375_v37  ;;  %v9378_v43 = vadd.f32 %v12489_v51, %v8956_v53  ;;  %v9641_v11 = vadd.f32 %v9640_v0, %v9451_v8  ;;  %9795 = vrot.lane.b32.xlu1 %v9636_v1, %s12567_s27  ;;  %v9454_v7 = vmul.f32 %v16322_v49, %v9415_v58 }
 0x574   : > { %v9322_v45 = vpop.f32.mrf.mxu1  ;;  %v12539_v20 = vpop.f32.mrf.mxu0 }
 0x575   : > { %v9417_v62 = vadd.f32 %v16314_v16, %v9378_v43  ;;  %v9377_v2 = vadd.f32 %v9322_v45, %v8955_v21  ;;  %9797 = vrot.lane.b32.xlu0 %v9641_v11, %s12567_s27  ;;  %v9453_v30 = vmul.f32 %v16322_v49, %v9414_v46  ;;  %v9656_v61 = vadd.f32 %v12536_v25, %v9454_v7 }
 0x576   : > { %v12492_v54 = vpop.f32.mrf.mxu1  ;;  %v9660_v26 = vpop.f32.mrf.mxu0 }
 0x577   : > { %v9416_v18 = vadd.f32 %v16314_v16, %v9377_v2  ;;  %v9380_v28 = vadd.f32 %v12492_v54, %v8958_v23  ;;  %v9651_v52 = vadd.f32 %v9650_v44, %v9453_v30  ;;  %9799 = vrot.lane.b32.xlu1 %v9646_v27, %s12567_s27  ;;  %v9456_v41 = vmul.f32 %v16322_v49, %v9417_v62 }
 0x578   : > { %v9332_v32 = vpop.f32.mrf.mxu1  ;;  %v12542_v48 = vpop.f32.mrf.mxu0 }
 0x579   : > { %v9419_v56 = vadd.f32 %v16314_v16, %v9380_v28  ;;  %v9379_v3 = vadd.f32 %v9332_v32, %v8957_v55  ;;  %9801 = vrot.lane.b32.xlu0 %v9651_v52, %s12567_s27  ;;  %v9455_v35 = vmul.f32 %v16322_v49, %v9416_v18  ;;  %v9666_v9 = vadd.f32 %v12539_v20, %v9456_v41 }
 0x57a   : > { %v12495_v24 = vpop.f32.mrf.mxu1  ;;  %v9670_v17 = vpop.f32.mrf.mxu0 }
 0x57b   : > { %v9418_v4 = vadd.f32 %v16314_v16, %v9379_v3  ;;  %v9382_v19 = vadd.f32 %v12495_v24, %v8960_v47  ;;  %v9661_v38 = vadd.f32 %v9660_v26, %v9455_v35  ;;  %9803 = vrot.lane.b32.xlu1 %v9656_v61, %s12567_s27  ;;  %v9458_v13 = vmul.f32 %v16322_v49, %v9419_v56 }
 0x57c   : > { %v9342_v40 = vpop.f32.mrf.mxu1  ;;  %v12545_v0 = vpop.f32.mrf.mxu0 }
 0x57d   : > { %v9421_v14 = vadd.f32 %v16314_v16, %v9382_v19  ;;  %v9381_v22 = vadd.f32 %v9342_v40, %v8959_v6  ;;  %9805 = vrot.lane.b32.xlu0 %v9661_v38, %s12567_s27  ;;  %v9457_v33 = vmul.f32 %v16322_v49, %v9418_v4  ;;  %v9676_v39 = vadd.f32 %v12542_v48, %v9458_v13 }
 0x57e   : > { %v9680_v42 = vpop.f32.mrf.mxu0 }
 0x57f   : > { %v9420_v31 = vadd.f32 %v16314_v16, %v9381_v22  ;;  %v9671_v12 = vadd.f32 %v9670_v17, %v9457_v33  ;;  %9807 = vrot.lane.b32.xlu1 %v9666_v9, %s12567_s27  ;;  %v9460_v53 = vmul.f32 %v16322_v49, %v9421_v14 }
 0x581   : > { %9809 = vrot.lane.b32.xlu0 %v9671_v12, %s12567_s27  ;;  %v9459_v25 = vmul.f32 %v16322_v49, %v9420_v31  ;;  %v9686_v16 = vadd.f32 %v12545_v0, %v9460_v53 }
 0x583   : > { %v9681_v1 = vadd.f32 %v9680_v42, %v9459_v25  ;;  %9811 = vrot.lane.b32.xlu1 %v9676_v39, %s12567_s27 }
 0x585   : > { %9813 = vrot.lane.b32.xlu0 %v9681_v1, %s12567_s27 }
 0x587   : > { %9815 = vrot.lane.b32.xlu1 %v9686_v16, %s12567_s27 }
 0x5b9   : > { %v9756_v58 = vpop.permute.xlu0 %9755 }
 0x5ba   : > { %9851 = vst.msk [vmem:[%s12960_s24 + $0x8] sm:$0xff] %vm9849_vm0, %v9756_v58 }
 0x5bd   : > { %v9760_v37 = vpop.permute.xlu1 %9759  ;;  %v9754_v8 = vpop.permute.xlu0 %9753 }
 0x5be   : > { %9853 = vst.msk [vmem:[%s12960_s24 + $0x18] sm:$0xff] %vm9849_vm0, %v9760_v37  ;;  %9850 = vst.msk [vmem:[%s12960_s24] sm:$0xff] %vm9849_vm0, %v9754_v8 }
 0x5c1   : > { %v9758_v49 = vpop.permute.xlu1 %9757 }
 0x5c2   : > { %9852 = vst.msk [vmem:[%s12960_s24 + $0x10] sm:$0xff] %vm9849_vm0, %v9758_v49 }
 0x5c3   : > { %v9762_v15 = vpop.permute.xlu0 %9761 }
 0x5c4   : > { %9854 = vst.msk [vmem:[%s12960_s24 + $0x20] sm:$0xff] %vm9849_vm0, %v9762_v15 }
 0x5c5   : > { %v9764_v34 = vpop.permute.xlu1 %9763 }
 0x5c6   : > { %9855 = vst.msk [vmem:[%s12960_s24 + $0x28] sm:$0xff] %vm9849_vm0, %v9764_v34 }
 0x5c7   : > { %v9766_v51 = vpop.permute.xlu0 %9765 }
 0x5c8   : > { %9856 = vst.msk [vmem:[%s12960_s24 + $0x30] sm:$0xff] %vm9849_vm0, %v9766_v51 }
 0x5c9   : > { %v9768_v44 = vpop.permute.xlu1 %9767 }
 0x5ca   : > { %9857 = vst.msk [vmem:[%s12960_s24 + $0x38] sm:$0xff] %vm9849_vm0, %v9768_v44 }
 0x5cb   : > { %v9770_v57 = vpop.permute.xlu0 %9769 }
 0x5cc   : > { %9858 = vst.msk [vmem:[%s12960_s24 + $0x40] sm:$0xff] %vm9849_vm0, %v9770_v57 }
 0x5cd   : > { %v9772_v21 = vpop.permute.xlu1 %9771 }
 0x5ce   : > { %9859 = vst.msk [vmem:[%s12960_s24 + $0x48] sm:$0xff] %vm9849_vm0, %v9772_v21 }
 0x5cf   : > { %v9774_v46 = vpop.permute.xlu0 %9773 }
 0x5d0   : > { %9860 = vst.msk [vmem:[%s12960_s24 + $0x50] sm:$0xff] %vm9849_vm0, %v9774_v46 }
 0x5d1   : > { %v9776_v43 = vpop.permute.xlu1 %9775 }
 0x5d2   : > { %9861 = vst.msk [vmem:[%s12960_s24 + $0x58] sm:$0xff] %vm9849_vm0, %v9776_v43 }
 0x5d3   : > { %v9778_v11 = vpop.permute.xlu0 %9777 }
 0x5d4   : > { %9862 = vst.msk [vmem:[%s12960_s24 + $0x60] sm:$0xff] %vm9849_vm0, %v9778_v11 }
 0x5d5   : > { %v9780_v63 = vpop.permute.xlu1 %9779 }
 0x5d6   : > { %9863 = vst.msk [vmem:[%s12960_s24 + $0x68] sm:$0xff] %vm9849_vm0, %v9780_v63 }
 0x5d7   : > { %v9782_v5 = vpop.permute.xlu0 %9781 }
 0x5d8   : > { %9864 = vst.msk [vmem:[%s12960_s24 + $0x70] sm:$0xff] %vm9849_vm0, %v9782_v5 }
 0x5d9   : > { %v9784_v23 = vpop.permute.xlu1 %9783 }
 0x5da   : > { %9865 = vst.msk [vmem:[%s12960_s24 + $0x78] sm:$0xff] %vm9849_vm0, %v9784_v23 }
 0x5db   : > { %v9786_v27 = vpop.permute.xlu0 %9785 }
 0x5dc   : > { %9866 = vst.msk [vmem:[%s12960_s24 + $0x80] sm:$0xff] %vm9849_vm0, %v9786_v27 }
 0x5dd   : > { %v9788_v45 = vpop.permute.xlu1 %9787 }
 0x5de   : > { %9867 = vst.msk [vmem:[%s12960_s24 + $0x88] sm:$0xff] %vm9849_vm0, %v9788_v45 }
 0x5df   : > { %v9790_v20 = vpop.permute.xlu0 %9789 }
 0x5e0   : > { %9868 = vst.msk [vmem:[%s12960_s24 + $0x90] sm:$0xff] %vm9849_vm0, %v9790_v20 }
 0x5e1   : > { %v9792_v62 = vpop.permute.xlu1 %9791 }
 0x5e2   : > { %9869 = vst.msk [vmem:[%s12960_s24 + $0x98] sm:$0xff] %vm9849_vm0, %v9792_v62 }
 0x5e3   : > { %v9794_v2 = vpop.permute.xlu0 %9793 }
 0x5e4   : > { %9870 = vst.msk [vmem:[%s12960_s24 + $0xa0] sm:$0xff] %vm9849_vm0, %v9794_v2 }
 0x5e5   : > { %v9796_v7 = vpop.permute.xlu1 %9795 }
 0x5e6   : > { %9871 = vst.msk [vmem:[%s12960_s24 + $0xa8] sm:$0xff] %vm9849_vm0, %v9796_v7 }
 0x5e7   : > { %v9798_v30 = vpop.permute.xlu0 %9797 }
 0x5e8   : > { %9872 = vst.msk [vmem:[%s12960_s24 + $0xb0] sm:$0xff] %vm9849_vm0, %v9798_v30 }
 0x5e9   : > { %v9800_v55 = vpop.permute.xlu1 %9799 }
 0x5ea   : > { %9873 = vst.msk [vmem:[%s12960_s24 + $0xb8] sm:$0xff] %vm9849_vm0, %v9800_v55 }
 0x5eb   : > { %v9802_v54 = vpop.permute.xlu0 %9801 }
 0x5ec   : > { %9874 = vst.msk [vmem:[%s12960_s24 + $0xc0] sm:$0xff] %vm9849_vm0, %v9802_v54 }
 0x5ed   : > { %v9804_v26 = vpop.permute.xlu1 %9803 }
 0x5ee   : > { %9875 = vst.msk [vmem:[%s12960_s24 + $0xc8] sm:$0xff] %vm9849_vm0, %v9804_v26 }
 0x5ef   : > { %v9806_v59 = vpop.permute.xlu0 %9805 }
 0x5f0   : > { %9876 = vst.msk [vmem:[%s12960_s24 + $0xd0] sm:$0xff] %vm9849_vm0, %v9806_v59 }
 0x5f1   : > { %v9808_v36 = vpop.permute.xlu1 %9807 }
 0x5f2   : > { %9877 = vst.msk [vmem:[%s12960_s24 + $0xd8] sm:$0xff] %vm9849_vm0, %v9808_v36 }
 0x5f3   : > { %v9810_v29 = vpop.permute.xlu0 %9809 }
 0x5f4   : > { %9878 = vst.msk [vmem:[%s12960_s24 + $0xe0] sm:$0xff] %vm9849_vm0, %v9810_v29 }
 0x5f5   : > { %v9812_v18 = vpop.permute.xlu1 %9811 }
 0x5f6   : > { %9879 = vst.msk [vmem:[%s12960_s24 + $0xe8] sm:$0xff] %vm9849_vm0, %v9812_v18 }
 0x5f7   : > { %v9814_v28 = vpop.permute.xlu0 %9813 }
 0x5f8   : > { %9880 = vst.msk [vmem:[%s12960_s24 + $0xf0] sm:$0xff] %vm9849_vm0, %v9814_v28 }
 0x5f9   : > { %v9816_v52 = vpop.permute.xlu1 %9815 }
 0x5fa   : > { %9881 = vst.msk [vmem:[%s12960_s24 + $0xf8] sm:$0xff] %vm9849_vm0, %v9816_v52 }
 0x5fb PF: > { %s24_s29 = sadd.s32 1, %s12564_s29  }
 0x5fc   : > { %p21_p4 = scmp.ge.s32.totalorder %s24_s29, 4  }
 0x5fe   :  { %23 = sbr.rel (!%p21_p4) target bundleno = 1 (0x1), region = 122 }

</bundles_post_ra>
